<compile_context>
chip_gen: v5e
topology: v5e:2x2
jax: 0.10.0
libtpu: 0.0.40
codegen_flags: <defaults>
</compile_context>

<pallas_src>
import functools

import jax
import jax.numpy as jnp
from jax.experimental import pallas as pl
from jax.experimental.pallas import tpu as pltpu


# ----------------------------------------------------------------------------
# Pallas kernel: fused (A @ B) + bias [+ residual] [+ ReLU]
# ----------------------------------------------------------------------------
def _mm_fused_kernel(*refs, relu, has_res):
    if has_res:
        a_ref, b_ref, bias_ref, res_ref, o_ref = refs
    else:
        a_ref, b_ref, bias_ref, o_ref = refs
        res_ref = None

    k = pl.program_id(2)

    @pl.when(k == 0)
    def _():
        o_ref[...] = jnp.zeros_like(o_ref)

    # bf16 x bf16 -> f32 accumulate directly into the resident output block.
    o_ref[...] += jnp.dot(a_ref[...], b_ref[...],
                          preferred_element_type=jnp.float32)

    @pl.when(k == pl.num_programs(2) - 1)
    def _():
        y = o_ref[...] + bias_ref[...]
        if has_res:
            y = y + res_ref[...]
        if relu:
            y = jnp.maximum(y, 0.0)
        o_ref[...] = y


def _round_up(x, m):
    return ((x + m - 1) // m) * m


def _pick_tile(dim_padded, candidates=(512, 384, 256, 128)):
    """Largest candidate tile that exactly divides the (128-padded) dim."""
    for c in candidates:
        if c <= dim_padded and dim_padded % c == 0:
            return c
    return dim_padded


def fused_matmul(a, b, bias, relu=False, residual=None):
    """(M,K) @ (K,N) + bias [+ residual] (+ReLU), bf16 operands / f32 accum."""
    M, K = a.shape
    Kb, N = b.shape
    assert K == Kb

    Mp = _round_up(M, 8)
    Np = _round_up(N, 128)
    Kp = _round_up(K, 128)

    # M tile: whole M if small, otherwise 256-row tiles (parallel axis).
    if Mp <= 512:
        tm = Mp
    else:
        tm = 256
        Mp = _round_up(Mp, tm)
    tn = _pick_tile(Np)
    tk = _pick_tile(Kp)

    a_p = jnp.pad(a.astype(jnp.float32), ((0, Mp - M), (0, Kp - K))).astype(jnp.bfloat16)
    b_p = jnp.pad(b.astype(jnp.float32), ((0, Kp - K), (0, Np - N))).astype(jnp.bfloat16)
    bias_p = jnp.pad(bias.astype(jnp.float32), (0, Np - N)).reshape(1, Np)

    in_specs = [
        pl.BlockSpec((tm, tk), lambda i, j, k: (i, k)),
        pl.BlockSpec((tk, tn), lambda i, j, k: (k, j)),
        pl.BlockSpec((1, tn), lambda i, j, k: (0, j)),
    ]
    inputs = [a_p, b_p, bias_p]

    has_res = residual is not None
    if has_res:
        res_p = jnp.pad(residual.astype(jnp.float32), ((0, Mp - M), (0, Np - N)))
        in_specs.append(pl.BlockSpec((tm, tn), lambda i, j, k: (i, j)))
        inputs.append(res_p)

    out = pl.pallas_call(
        functools.partial(_mm_fused_kernel, relu=relu, has_res=has_res),
        out_shape=jax.ShapeDtypeStruct((Mp, Np), jnp.float32),
        grid_spec=pltpu.PrefetchScalarGridSpec(
            num_scalar_prefetch=0,
            grid=(Mp // tm, Np // tn, Kp // tk),
            in_specs=in_specs,
            out_specs=pl.BlockSpec((tm, tn), lambda i, j, k: (i, j)),
        ),
        compiler_params=pltpu.CompilerParams(
            dimension_semantics=("parallel", "parallel", "arbitrary")),
    )(*inputs)
    return out[:M, :N]


# ----------------------------------------------------------------------------
# ResNet-18 built on the Pallas kernel (im2col + fused matmul)
# ----------------------------------------------------------------------------
def im2col(x, kh, kw, stride, padding):
    """x: (N,H,W,C) NHWC -> (N*OH*OW, kh*kw*C), plus OH, OW."""
    N, H, W, C = x.shape
    x_pad = jnp.pad(x, ((0, 0), (padding, padding), (padding, padding), (0, 0)))
    OH = (H + 2 * padding - kh) // stride + 1
    OW = (W + 2 * padding - kw) // stride + 1
    patches = []
    for i in range(kh):
        for j in range(kw):
            patches.append(
                x_pad[:, i:i + stride * OH:stride, j:j + stride * OW:stride, :])
    cols = jnp.concatenate(patches, axis=-1)          # (N, OH, OW, kh*kw*C)
    return cols.reshape(N * OH * OW, kh * kw * C), OH, OW


def conv_bn(x, w, bn, stride, padding, relu, residual=None, eps=1e-5):
    """Conv (no bias, PyTorch layout) + eval-mode BN (+residual +ReLU)."""
    outc, inc, kh, kw = w.shape
    N = x.shape[0]
    cols, OH, OW = im2col(x, kh, kw, stride, padding)
    scale = bn['gamma'] / jnp.sqrt(bn['var'] + eps)
    bias = bn['beta'] - bn['mean'] * scale
    # Fold the BN scale into the weight columns: epilogue is bias(+res)+ReLU only.
    wmat = jnp.transpose(w, (2, 3, 1, 0)).reshape(kh * kw * inc, outc) * scale[None, :]
    res = None
    if residual is not None:
        res = residual.reshape(N * OH * OW, outc)
    y = fused_matmul(cols, wmat, bias, relu=relu, residual=res)
    return y.reshape(N, OH, OW, outc)


def maxpool3x3s2(x):
    return jax.lax.reduce_window(
        x, -jnp.inf, jax.lax.max,
        window_dimensions=(1, 3, 3, 1),
        window_strides=(1, 2, 2, 1),
        padding=((0, 0), (1, 1), (1, 1), (0, 0)))


def basic_block(x, p, stride):
    identity = x
    if 'down_conv' in p:
        identity = conv_bn(x, p['down_conv'], p['down_bn'],
                           stride=stride, padding=0, relu=False)
    out = conv_bn(x, p['conv1'], p['bn1'], stride=stride, padding=1, relu=True)
    # Residual add + ReLU fused into conv2's matmul epilogue.
    out = conv_bn(out, p['conv2'], p['bn2'], stride=1, padding=1, relu=True,
                  residual=identity)
    return out


def res18feature_forward(params, x_nchw):
    """Equivalent of res18feature.forward(x, grads=False) -> logits (N, 7)."""
    x = jnp.transpose(x_nchw, (0, 2, 3, 1)).astype(jnp.float32)  # NCHW -> NHWC
    x = conv_bn(x, params['conv1'], params['bn1'], stride=2, padding=3, relu=True)
    x = maxpool3x3s2(x)
    for li in range(4):
        for bi, blk in enumerate(params[f'layer{li + 1}']):
            stride = 2 if (li > 0 and bi == 0) else 1
            x = basic_block(x, blk, stride)
    feat = jnp.mean(x, axis=(1, 2))                   # global avg pool -> (N, 512)
    fc_w = params['fc_w']                             # (num_classes, 512)
    logits = fused_matmul(feat, fc_w.T, params['fc_b'], relu=False)
    return logits


# ----------------------------------------------------------------------------
# Deterministic parameter init (ResNet-18 shapes; PyTorch BN defaults)
# ----------------------------------------------------------------------------
def _make_conv(key, outc, inc, k):
    fan_in = inc * k * k
    return jax.random.normal(key, (outc, inc, k, k), jnp.float32) * jnp.sqrt(2.0 / fan_in)


def _make_bn(c):
    return dict(gamma=jnp.ones((c,), jnp.float32),
                beta=jnp.zeros((c,), jnp.float32),
                mean=jnp.zeros((c,), jnp.float32),
                var=jnp.ones((c,), jnp.float32))


def init_params(key, num_classes=7):
    keys = iter(jax.random.split(key, 64))
    p = {'conv1': _make_conv(next(keys), 64, 3, 7), 'bn1': _make_bn(64)}
    inc = 64
    for li, outc in enumerate([64, 128, 256, 512]):
        blocks = []
        for bi in range(2):
            stride = 2 if (li > 0 and bi == 0) else 1
            blk = {
                'conv1': _make_conv(next(keys), outc, inc, 3),
                'bn1': _make_bn(outc),
                'conv2': _make_conv(next(keys), outc, outc, 3),
                'bn2': _make_bn(outc),
            }
            if stride != 1 or inc != outc:
                blk['down_conv'] = _make_conv(next(keys), outc, inc, 1)
                blk['down_bn'] = _make_bn(outc)
            blocks.append(blk)
            inc = outc
        p[f'layer{li + 1}'] = blocks
    p['fc_w'] = jax.random.normal(next(keys), (num_classes, 512), jnp.float32) / jnp.sqrt(512.0)
    p['fc_b'] = jnp.zeros((num_classes,), jnp.float32)
    return p


if __name__ == "__main__":
    key = jax.random.PRNGKey(0)
    pkey, xkey = jax.random.split(key)
    params = init_params(pkey, num_classes=7)
    # Small NCHW input consistent with an RGB image classifier (downsamples 32x).
    x = jax.random.normal(xkey, (2, 3, 32, 32), jnp.float32)

    fwd = jax.jit(res18feature_forward)
    logits = fwd(params, x)
    jax.block_until_ready(logits)
    assert logits.shape == (2, 7) and logits.dtype == jnp.float32
    print("KERNEL_OK")
</pallas_src>

<mosaic_0001>
module attributes {stable_mosaic.version = 11 : i64} {
  func.func @_mm_fused_kernel(%arg0: i32, %arg1: i32, %arg2: i32, %arg3: memref<512x256xbf16, #tpu.memory_space<vmem>>, %arg4: memref<256x128xbf16, #tpu.memory_space<vmem>>, %arg5: memref<1x128xf32, #tpu.memory_space<vmem>>, %arg6: memref<512x128xf32, #tpu.memory_space<vmem>>) attributes {dimension_semantics = [#tpu.dimension_semantics<parallel>, #tpu.dimension_semantics<parallel>, #tpu.dimension_semantics<arbitrary>], iteration_bounds = array<i64: 1, 1, 1>, scalar_prefetch = 0 : i64, scratch_operands = 0 : i64, tpu.core_type = #tpu.core_type<tc>, window_params = [{transform_indices = @transform_0, window_bounds = array<i64: 512, 256>}, {transform_indices = @transform_1, window_bounds = array<i64: 256, 128>}, {transform_indices = @transform_2, window_bounds = array<i64: 1, 128>}, {transform_indices = @transform_3, window_bounds = array<i64: 512, 128>}]} {
    %c0_i32 = arith.constant 0 : i32
    %0 = arith.cmpi eq, %arg2, %c0_i32 : i32
    %1 = arith.extui %0 : i1 to i32
    %c0_i32_0 = arith.constant 0 : i32
    %2 = arith.cmpi ne, %1, %c0_i32_0 : i32
    scf.if %2 {
      %cst_10 = arith.constant 0.000000e+00 : f32
      %12 = vector.broadcast %cst_10 : f32 to vector<512x128xf32>
      %c0_11 = arith.constant 0 : index
      %c0_12 = arith.constant 0 : index
      %13 = vector.load %arg6[%c0_11, %c0_12] : memref<512x128xf32, #tpu.memory_space<vmem>>, vector<512x128xf32>
      tpu.vector_store %arg6[%c0_11, %c0_12], %12 {strides = array<i32>} : memref<512x128xf32, #tpu.memory_space<vmem>>, vector<512x128xf32>,
    } else {
    }
    %c0 = arith.constant 0 : index
    %c0_1 = arith.constant 0 : index
    %3 = vector.load %arg6[%c0, %c0_1] : memref<512x128xf32, #tpu.memory_space<vmem>>, vector<512x128xf32>
    %c0_2 = arith.constant 0 : index
    %c0_3 = arith.constant 0 : index
    %4 = vector.load %arg3[%c0_2, %c0_3] : memref<512x256xbf16, #tpu.memory_space<vmem>>, vector<512x256xbf16>
    %c0_4 = arith.constant 0 : index
    %c0_5 = arith.constant 0 : index
    %5 = vector.load %arg4[%c0_4, %c0_5] : memref<256x128xbf16, #tpu.memory_space<vmem>>, vector<256x128xbf16>
    %cst = arith.constant dense<0.000000e+00> : vector<512x128xf32>
    %6 = tpu.matmul %4, %5, %cst {dimension_numbers = #tpu.dot_dimension_numbers<[1], [0], [0], [1], [0, 0, 1, 1], [], []>} : vector<512x256xbf16>, vector<256x128xbf16>, vector<512x128xf32> -> vector<512x128xf32>
    %7 = arith.addf %3, %6 : vector<512x128xf32>
    %c0_6 = arith.constant 0 : index
    %c0_7 = arith.constant 0 : index
    %8 = vector.load %arg6[%c0_6, %c0_7] : memref<512x128xf32, #tpu.memory_space<vmem>>, vector<512x128xf32>
    tpu.vector_store %arg6[%c0_6, %c0_7], %7 {strides = array<i32>} : memref<512x128xf32, #tpu.memory_space<vmem>>, vector<512x128xf32>,
    %c0_i32_8 = arith.constant 0 : i32
    %9 = arith.cmpi eq, %arg2, %c0_i32_8 : i32
    %10 = arith.extui %9 : i1 to i32
    %c0_i32_9 = arith.constant 0 : i32
    %11 = arith.cmpi ne, %10, %c0_i32_9 : i32
    scf.if %11 {
      %c0_10 = arith.constant 0 : index
      %c0_11 = arith.constant 0 : index
      %12 = vector.load %arg6[%c0_10, %c0_11] : memref<512x128xf32, #tpu.memory_space<vmem>>, vector<512x128xf32>
      %c0_12 = arith.constant 0 : index
      %c0_13 = arith.constant 0 : index
      %13 = vector.load %arg5[%c0_12, %c0_13] : memref<1x128xf32, #tpu.memory_space<vmem>>, vector<1x128xf32>
      %14 = vector.broadcast %13 : vector<1x128xf32> to vector<512x128xf32>
      %15 = arith.addf %12, %14 : vector<512x128xf32>
      %cst_14 = arith.constant 0.000000e+00 : f32
      %16 = vector.broadcast %cst_14 : f32 to vector<512x128xf32>
      %17 = arith.maximumf %15, %16 : vector<512x128xf32>
      %c0_15 = arith.constant 0 : index
      %c0_16 = arith.constant 0 : index
      %18 = vector.load %arg6[%c0_15, %c0_16] : memref<512x128xf32, #tpu.memory_space<vmem>>, vector<512x128xf32>
      tpu.vector_store %arg6[%c0_15, %c0_16], %17 {strides = array<i32>} : memref<512x128xf32, #tpu.memory_space<vmem>>, vector<512x128xf32>,
    } else {
    }
    return
  }
  func.func @transform_0(%arg0: i32, %arg1: i32, %arg2: i32) -> (i32, i32) {
    %c0_i32 = arith.constant 0 : i32
    return %arg0, %arg2 : i32, i32
  }
  func.func @transform_1(%arg0: i32, %arg1: i32, %arg2: i32) -> (i32, i32) {
    %c0_i32 = arith.constant 0 : i32
    return %arg2, %arg1 : i32, i32
  }
  func.func @transform_2(%arg0: i32, %arg1: i32, %arg2: i32) -> (i32, i32) {
    %c0_i32 = arith.constant 0 : i32
    %c0_i32_0 = arith.constant 0 : i32
    return %c0_i32, %arg1 : i32, i32
  }
  func.func @transform_3(%arg0: i32, %arg1: i32, %arg2: i32) -> (i32, i32) {
    %c0_i32 = arith.constant 0 : i32
    return %arg0, %arg1 : i32, i32
  }
}

module attributes {stable_mosaic.version = 11 : i64} {
  func.func @_mm_fused_kernel(%arg0: i32, %arg1: i32, %arg2: i32, %arg3: memref<128x128xbf16, #tpu.memory_space<vmem>>, %arg4: memref<128x128xbf16, #tpu.memory_space<vmem>>, %arg5: memref<1x128xf32, #tpu.memory_space<vmem>>, %arg6: memref<128x128xf32, #tpu.memory_space<vmem>>) attributes {dimension_semantics = [#tpu.dimension_semantics<parallel>, #tpu.dimension_semantics<parallel>, #tpu.dimension_semantics<arbitrary>], iteration_bounds = array<i64: 1, 1, 5>, scalar_prefetch = 0 : i64, scratch_operands = 0 : i64, tpu.core_type = #tpu.core_type<tc>, window_params = [{transform_indices = @transform_0, window_bounds = array<i64: 128, 128>}, {transform_indices = @transform_1, window_bounds = array<i64: 128, 128>}, {transform_indices = @transform_2, window_bounds = array<i64: 1, 128>}, {transform_indices = @transform_3, window_bounds = array<i64: 128, 128>}]} {
    %c0_i32 = arith.constant 0 : i32
    %0 = arith.cmpi eq, %arg2, %c0_i32 : i32
    %1 = arith.extui %0 : i1 to i32
    %c0_i32_0 = arith.constant 0 : i32
    %2 = arith.cmpi ne, %1, %c0_i32_0 : i32
    scf.if %2 {
      %cst_9 = arith.constant 0.000000e+00 : f32
      %12 = vector.broadcast %cst_9 : f32 to vector<128x128xf32>
      %c0_10 = arith.constant 0 : index
      %c0_11 = arith.constant 0 : index
      %13 = vector.load %arg6[%c0_10, %c0_11] : memref<128x128xf32, #tpu.memory_space<vmem>>, vector<128x128xf32>
      tpu.vector_store %arg6[%c0_10, %c0_11], %12 {strides = array<i32>} : memref<128x128xf32, #tpu.memory_space<vmem>>, vector<128x128xf32>,
    } else {
    }
    %c0 = arith.constant 0 : index
    %c0_1 = arith.constant 0 : index
    %3 = vector.load %arg6[%c0, %c0_1] : memref<128x128xf32, #tpu.memory_space<vmem>>, vector<128x128xf32>
    %c0_2 = arith.constant 0 : index
    %c0_3 = arith.constant 0 : index
    %4 = vector.load %arg3[%c0_2, %c0_3] : memref<128x128xbf16, #tpu.memory_space<vmem>>, vector<128x128xbf16>
    %c0_4 = arith.constant 0 : index
    %c0_5 = arith.constant 0 : index
    %5 = vector.load %arg4[%c0_4, %c0_5] : memref<128x128xbf16, #tpu.memory_space<vmem>>, vector<128x128xbf16>
    %cst = arith.constant dense<0.000000e+00> : vector<128x128xf32>
    %6 = tpu.matmul %4, %5, %cst {dimension_numbers = #tpu.dot_dimension_numbers<[1], [0], [0], [1], [0, 0, 1, 1], [], []>} : vector<128x128xbf16>, vector<128x128xbf16>, vector<128x128xf32> -> vector<128x128xf32>
    %7 = arith.addf %3, %6 : vector<128x128xf32>
    %c0_6 = arith.constant 0 : index
    %c0_7 = arith.constant 0 : index
    %8 = vector.load %arg6[%c0_6, %c0_7] : memref<128x128xf32, #tpu.memory_space<vmem>>, vector<128x128xf32>
    tpu.vector_store %arg6[%c0_6, %c0_7], %7 {strides = array<i32>} : memref<128x128xf32, #tpu.memory_space<vmem>>, vector<128x128xf32>,
    %c4_i32 = arith.constant 4 : i32
    %9 = arith.cmpi eq, %arg2, %c4_i32 : i32
    %10 = arith.extui %9 : i1 to i32
    %c0_i32_8 = arith.constant 0 : i32
    %11 = arith.cmpi ne, %10, %c0_i32_8 : i32
    scf.if %11 {
      %c0_9 = arith.constant 0 : index
      %c0_10 = arith.constant 0 : index
      %12 = vector.load %arg6[%c0_9, %c0_10] : memref<128x128xf32, #tpu.memory_space<vmem>>, vector<128x128xf32>
      %c0_11 = arith.constant 0 : index
      %c0_12 = arith.constant 0 : index
      %13 = vector.load %arg5[%c0_11, %c0_12] : memref<1x128xf32, #tpu.memory_space<vmem>>, vector<1x128xf32>
      %14 = vector.broadcast %13 : vector<1x128xf32> to vector<128x128xf32>
      %15 = arith.addf %12, %14 : vector<128x128xf32>
      %cst_13 = arith.constant 0.000000e+00 : f32
      %16 = vector.broadcast %cst_13 : f32 to vector<128x128xf32>
      %17 = arith.maximumf %15, %16 : vector<128x128xf32>
      %c0_14 = arith.constant 0 : index
      %c0_15 = arith.constant 0 : index
      %18 = vector.load %arg6[%c0_14, %c0_15] : memref<128x128xf32, #tpu.memory_space<vmem>>, vector<128x128xf32>
      tpu.vector_store %arg6[%c0_14, %c0_15], %17 {strides = array<i32>} : memref<128x128xf32, #tpu.memory_space<vmem>>, vector<128x128xf32>,
    } else {
    }
    return
  }
  func.func @transform_0(%arg0: i32, %arg1: i32, %arg2: i32) -> (i32, i32) {
    %c0_i32 = arith.constant 0 : i32
    return %arg0, %arg2 : i32, i32
  }
  func.func @transform_1(%arg0: i32, %arg1: i32, %arg2: i32) -> (i32, i32) {
    %c0_i32 = arith.constant 0 : i32
    return %arg2, %arg1 : i32, i32
  }
  func.func @transform_2(%arg0: i32, %arg1: i32, %arg2: i32) -> (i32, i32) {
    %c0_i32 = arith.constant 0 : i32
    %c0_i32_0 = arith.constant 0 : i32
    return %c0_i32, %arg1 : i32, i32
  }
  func.func @transform_3(%arg0: i32, %arg1: i32, %arg2: i32) -> (i32, i32) {
    %c0_i32 = arith.constant 0 : i32
    return %arg0, %arg1 : i32, i32
  }
}

module attributes {stable_mosaic.version = 11 : i64} {
  func.func @_mm_fused_kernel(%arg0: i32, %arg1: i32, %arg2: i32, %arg3: memref<128x128xbf16, #tpu.memory_space<vmem>>, %arg4: memref<128x128xbf16, #tpu.memory_space<vmem>>, %arg5: memref<1x128xf32, #tpu.memory_space<vmem>>, %arg6: memref<128x128xf32, #tpu.memory_space<vmem>>, %arg7: memref<128x128xf32, #tpu.memory_space<vmem>>) attributes {dimension_semantics = [#tpu.dimension_semantics<parallel>, #tpu.dimension_semantics<parallel>, #tpu.dimension_semantics<arbitrary>], iteration_bounds = array<i64: 1, 1, 5>, scalar_prefetch = 0 : i64, scratch_operands = 0 : i64, tpu.core_type = #tpu.core_type<tc>, window_params = [{transform_indices = @transform_0, window_bounds = array<i64: 128, 128>}, {transform_indices = @transform_1, window_bounds = array<i64: 128, 128>}, {transform_indices = @transform_2, window_bounds = array<i64: 1, 128>}, {transform_indices = @transform_3, window_bounds = array<i64: 128, 128>}, {transform_indices = @transform_4, window_bounds = array<i64: 128, 128>}]} {
    %c0_i32 = arith.constant 0 : i32
    %0 = arith.cmpi eq, %arg2, %c0_i32 : i32
    %1 = arith.extui %0 : i1 to i32
    %c0_i32_0 = arith.constant 0 : i32
    %2 = arith.cmpi ne, %1, %c0_i32_0 : i32
    scf.if %2 {
      %cst_9 = arith.constant 0.000000e+00 : f32
      %12 = vector.broadcast %cst_9 : f32 to vector<128x128xf32>
      %c0_10 = arith.constant 0 : index
      %c0_11 = arith.constant 0 : index
      %13 = vector.load %arg7[%c0_10, %c0_11] : memref<128x128xf32, #tpu.memory_space<vmem>>, vector<128x128xf32>
      tpu.vector_store %arg7[%c0_10, %c0_11], %12 {strides = array<i32>} : memref<128x128xf32, #tpu.memory_space<vmem>>, vector<128x128xf32>,
    } else {
    }
    %c0 = arith.constant 0 : index
    %c0_1 = arith.constant 0 : index
    %3 = vector.load %arg7[%c0, %c0_1] : memref<128x128xf32, #tpu.memory_space<vmem>>, vector<128x128xf32>
    %c0_2 = arith.constant 0 : index
    %c0_3 = arith.constant 0 : index
    %4 = vector.load %arg3[%c0_2, %c0_3] : memref<128x128xbf16, #tpu.memory_space<vmem>>, vector<128x128xbf16>
    %c0_4 = arith.constant 0 : index
    %c0_5 = arith.constant 0 : index
    %5 = vector.load %arg4[%c0_4, %c0_5] : memref<128x128xbf16, #tpu.memory_space<vmem>>, vector<128x128xbf16>
    %cst = arith.constant dense<0.000000e+00> : vector<128x128xf32>
    %6 = tpu.matmul %4, %5, %cst {dimension_numbers = #tpu.dot_dimension_numbers<[1], [0], [0], [1], [0, 0, 1, 1], [], []>} : vector<128x128xbf16>, vector<128x128xbf16>, vector<128x128xf32> -> vector<128x128xf32>
    %7 = arith.addf %3, %6 : vector<128x128xf32>
    %c0_6 = arith.constant 0 : index
    %c0_7 = arith.constant 0 : index
    %8 = vector.load %arg7[%c0_6, %c0_7] : memref<128x128xf32, #tpu.memory_space<vmem>>, vector<128x128xf32>
    tpu.vector_store %arg7[%c0_6, %c0_7], %7 {strides = array<i32>} : memref<128x128xf32, #tpu.memory_space<vmem>>, vector<128x128xf32>,
    %c4_i32 = arith.constant 4 : i32
    %9 = arith.cmpi eq, %arg2, %c4_i32 : i32
    %10 = arith.extui %9 : i1 to i32
    %c0_i32_8 = arith.constant 0 : i32
    %11 = arith.cmpi ne, %10, %c0_i32_8 : i32
    scf.if %11 {
      %c0_9 = arith.constant 0 : index
      %c0_10 = arith.constant 0 : index
      %12 = vector.load %arg7[%c0_9, %c0_10] : memref<128x128xf32, #tpu.memory_space<vmem>>, vector<128x128xf32>
      %c0_11 = arith.constant 0 : index
      %c0_12 = arith.constant 0 : index
      %13 = vector.load %arg5[%c0_11, %c0_12] : memref<1x128xf32, #tpu.memory_space<vmem>>, vector<1x128xf32>
      %14 = vector.broadcast %13 : vector<1x128xf32> to vector<128x128xf32>
      %15 = arith.addf %12, %14 : vector<128x128xf32>
      %c0_13 = arith.constant 0 : index
      %c0_14 = arith.constant 0 : index
      %16 = vector.load %arg6[%c0_13, %c0_14] : memref<128x128xf32, #tpu.memory_space<vmem>>, vector<128x128xf32>
      %17 = arith.addf %15, %16 : vector<128x128xf32>
      %cst_15 = arith.constant 0.000000e+00 : f32
      %18 = vector.broadcast %cst_15 : f32 to vector<128x128xf32>
      %19 = arith.maximumf %17, %18 : vector<128x128xf32>
      %c0_16 = arith.constant 0 : index
      %c0_17 = arith.constant 0 : index
      %20 = vector.load %arg7[%c0_16, %c0_17] : memref<128x128xf32, #tpu.memory_space<vmem>>, vector<128x128xf32>
      tpu.vector_store %arg7[%c0_16, %c0_17], %19 {strides = array<i32>} : memref<128x128xf32, #tpu.memory_space<vmem>>, vector<128x128xf32>,
    } else {
    }
    return
  }
  func.func @transform_0(%arg0: i32, %arg1: i32, %arg2: i32) -> (i32, i32) {
    %c0_i32 = arith.constant 0 : i32
    return %arg0, %arg2 : i32, i32
  }
  func.func @transform_1(%arg0: i32, %arg1: i32, %arg2: i32) -> (i32, i32) {
    %c0_i32 = arith.constant 0 : i32
    return %arg2, %arg1 : i32, i32
  }
  func.func @transform_2(%arg0: i32, %arg1: i32, %arg2: i32) -> (i32, i32) {
    %c0_i32 = arith.constant 0 : i32
    %c0_i32_0 = arith.constant 0 : i32
    return %c0_i32, %arg1 : i32, i32
  }
  func.func @transform_3(%arg0: i32, %arg1: i32, %arg2: i32) -> (i32, i32) {
    %c0_i32 = arith.constant 0 : i32
    return %arg0, %arg1 : i32, i32
  }
  func.func @transform_4(%arg0: i32, %arg1: i32, %arg2: i32) -> (i32, i32) {
    %c0_i32 = arith.constant 0 : i32
    return %arg0, %arg1 : i32, i32
  }
}

module attributes {stable_mosaic.version = 11 : i64} {
  func.func @_mm_fused_kernel(%arg0: i32, %arg1: i32, %arg2: i32, %arg3: memref<32x128xbf16, #tpu.memory_space<vmem>>, %arg4: memref<128x128xbf16, #tpu.memory_space<vmem>>, %arg5: memref<1x128xf32, #tpu.memory_space<vmem>>, %arg6: memref<32x128xf32, #tpu.memory_space<vmem>>) attributes {dimension_semantics = [#tpu.dimension_semantics<parallel>, #tpu.dimension_semantics<parallel>, #tpu.dimension_semantics<arbitrary>], iteration_bounds = array<i64: 1, 1, 5>, scalar_prefetch = 0 : i64, scratch_operands = 0 : i64, tpu.core_type = #tpu.core_type<tc>, window_params = [{transform_indices = @transform_0, window_bounds = array<i64: 32, 128>}, {transform_indices = @transform_1, window_bounds = array<i64: 128, 128>}, {transform_indices = @transform_2, window_bounds = array<i64: 1, 128>}, {transform_indices = @transform_3, window_bounds = array<i64: 32, 128>}]} {
    %c0_i32 = arith.constant 0 : i32
    %0 = arith.cmpi eq, %arg2, %c0_i32 : i32
    %1 = arith.extui %0 : i1 to i32
    %c0_i32_0 = arith.constant 0 : i32
    %2 = arith.cmpi ne, %1, %c0_i32_0 : i32
    scf.if %2 {
      %cst_9 = arith.constant 0.000000e+00 : f32
      %12 = vector.broadcast %cst_9 : f32 to vector<32x128xf32>
      %c0_10 = arith.constant 0 : index
      %c0_11 = arith.constant 0 : index
      %13 = vector.load %arg6[%c0_10, %c0_11] : memref<32x128xf32, #tpu.memory_space<vmem>>, vector<32x128xf32>
      tpu.vector_store %arg6[%c0_10, %c0_11], %12 {strides = array<i32>} : memref<32x128xf32, #tpu.memory_space<vmem>>, vector<32x128xf32>,
    } else {
    }
    %c0 = arith.constant 0 : index
    %c0_1 = arith.constant 0 : index
    %3 = vector.load %arg6[%c0, %c0_1] : memref<32x128xf32, #tpu.memory_space<vmem>>, vector<32x128xf32>
    %c0_2 = arith.constant 0 : index
    %c0_3 = arith.constant 0 : index
    %4 = vector.load %arg3[%c0_2, %c0_3] : memref<32x128xbf16, #tpu.memory_space<vmem>>, vector<32x128xbf16>
    %c0_4 = arith.constant 0 : index
    %c0_5 = arith.constant 0 : index
    %5 = vector.load %arg4[%c0_4, %c0_5] : memref<128x128xbf16, #tpu.memory_space<vmem>>, vector<128x128xbf16>
    %cst = arith.constant dense<0.000000e+00> : vector<32x128xf32>
    %6 = tpu.matmul %4, %5, %cst {dimension_numbers = #tpu.dot_dimension_numbers<[1], [0], [0], [1], [0, 0, 1, 1], [], []>} : vector<32x128xbf16>, vector<128x128xbf16>, vector<32x128xf32> -> vector<32x128xf32>
    %7 = arith.addf %3, %6 : vector<32x128xf32>
    %c0_6 = arith.constant 0 : index
    %c0_7 = arith.constant 0 : index
    %8 = vector.load %arg6[%c0_6, %c0_7] : memref<32x128xf32, #tpu.memory_space<vmem>>, vector<32x128xf32>
    tpu.vector_store %arg6[%c0_6, %c0_7], %7 {strides = array<i32>} : memref<32x128xf32, #tpu.memory_space<vmem>>, vector<32x128xf32>,
    %c4_i32 = arith.constant 4 : i32
    %9 = arith.cmpi eq, %arg2, %c4_i32 : i32
    %10 = arith.extui %9 : i1 to i32
    %c0_i32_8 = arith.constant 0 : i32
    %11 = arith.cmpi ne, %10, %c0_i32_8 : i32
    scf.if %11 {
      %c0_9 = arith.constant 0 : index
      %c0_10 = arith.constant 0 : index
      %12 = vector.load %arg6[%c0_9, %c0_10] : memref<32x128xf32, #tpu.memory_space<vmem>>, vector<32x128xf32>
      %c0_11 = arith.constant 0 : index
      %c0_12 = arith.constant 0 : index
      %13 = vector.load %arg5[%c0_11, %c0_12] : memref<1x128xf32, #tpu.memory_space<vmem>>, vector<1x128xf32>
      %14 = vector.broadcast %13 : vector<1x128xf32> to vector<32x128xf32>
      %15 = arith.addf %12, %14 : vector<32x128xf32>
      %cst_13 = arith.constant 0.000000e+00 : f32
      %16 = vector.broadcast %cst_13 : f32 to vector<32x128xf32>
      %17 = arith.maximumf %15, %16 : vector<32x128xf32>
      %c0_14 = arith.constant 0 : index
      %c0_15 = arith.constant 0 : index
      %18 = vector.load %arg6[%c0_14, %c0_15] : memref<32x128xf32, #tpu.memory_space<vmem>>, vector<32x128xf32>
      tpu.vector_store %arg6[%c0_14, %c0_15], %17 {strides = array<i32>} : memref<32x128xf32, #tpu.memory_space<vmem>>, vector<32x128xf32>,
    } else {
    }
    return
  }
  func.func @transform_0(%arg0: i32, %arg1: i32, %arg2: i32) -> (i32, i32) {
    %c0_i32 = arith.constant 0 : i32
    return %arg0, %arg2 : i32, i32
  }
  func.func @transform_1(%arg0: i32, %arg1: i32, %arg2: i32) -> (i32, i32) {
    %c0_i32 = arith.constant 0 : i32
    return %arg2, %arg1 : i32, i32
  }
  func.func @transform_2(%arg0: i32, %arg1: i32, %arg2: i32) -> (i32, i32) {
    %c0_i32 = arith.constant 0 : i32
    %c0_i32_0 = arith.constant 0 : i32
    return %c0_i32, %arg1 : i32, i32
  }
  func.func @transform_3(%arg0: i32, %arg1: i32, %arg2: i32) -> (i32, i32) {
    %c0_i32 = arith.constant 0 : i32
    return %arg0, %arg1 : i32, i32
  }
}

module attributes {stable_mosaic.version = 11 : i64} {
  func.func @_mm_fused_kernel(%arg0: i32, %arg1: i32, %arg2: i32, %arg3: memref<32x128xbf16, #tpu.memory_space<vmem>>, %arg4: memref<128x128xbf16, #tpu.memory_space<vmem>>, %arg5: memref<1x128xf32, #tpu.memory_space<vmem>>, %arg6: memref<32x128xf32, #tpu.memory_space<vmem>>) attributes {dimension_semantics = [#tpu.dimension_semantics<parallel>, #tpu.dimension_semantics<parallel>, #tpu.dimension_semantics<arbitrary>], iteration_bounds = array<i64: 1, 1, 1>, scalar_prefetch = 0 : i64, scratch_operands = 0 : i64, tpu.core_type = #tpu.core_type<tc>, window_params = [{transform_indices = @transform_0, window_bounds = array<i64: 32, 128>}, {transform_indices = @transform_1, window_bounds = array<i64: 128, 128>}, {transform_indices = @transform_2, window_bounds = array<i64: 1, 128>}, {transform_indices = @transform_3, window_bounds = array<i64: 32, 128>}]} {
    %c0_i32 = arith.constant 0 : i32
    %0 = arith.cmpi eq, %arg2, %c0_i32 : i32
    %1 = arith.extui %0 : i1 to i32
    %c0_i32_0 = arith.constant 0 : i32
    %2 = arith.cmpi ne, %1, %c0_i32_0 : i32
    scf.if %2 {
      %cst_10 = arith.constant 0.000000e+00 : f32
      %12 = vector.broadcast %cst_10 : f32 to vector<32x128xf32>
      %c0_11 = arith.constant 0 : index
      %c0_12 = arith.constant 0 : index
      %13 = vector.load %arg6[%c0_11, %c0_12] : memref<32x128xf32, #tpu.memory_space<vmem>>, vector<32x128xf32>
      tpu.vector_store %arg6[%c0_11, %c0_12], %12 {strides = array<i32>} : memref<32x128xf32, #tpu.memory_space<vmem>>, vector<32x128xf32>,
    } else {
    }
    %c0 = arith.constant 0 : index
    %c0_1 = arith.constant 0 : index
    %3 = vector.load %arg6[%c0, %c0_1] : memref<32x128xf32, #tpu.memory_space<vmem>>, vector<32x128xf32>
    %c0_2 = arith.constant 0 : index
    %c0_3 = arith.constant 0 : index
    %4 = vector.load %arg3[%c0_2, %c0_3] : memref<32x128xbf16, #tpu.memory_space<vmem>>, vector<32x128xbf16>
    %c0_4 = arith.constant 0 : index
    %c0_5 = arith.constant 0 : index
    %5 = vector.load %arg4[%c0_4, %c0_5] : memref<128x128xbf16, #tpu.memory_space<vmem>>, vector<128x128xbf16>
    %cst = arith.constant dense<0.000000e+00> : vector<32x128xf32>
    %6 = tpu.matmul %4, %5, %cst {dimension_numbers = #tpu.dot_dimension_numbers<[1], [0], [0], [1], [0, 0, 1, 1], [], []>} : vector<32x128xbf16>, vector<128x128xbf16>, vector<32x128xf32> -> vector<32x128xf32>
    %7 = arith.addf %3, %6 : vector<32x128xf32>
    %c0_6 = arith.constant 0 : index
    %c0_7 = arith.constant 0 : index
    %8 = vector.load %arg6[%c0_6, %c0_7] : memref<32x128xf32, #tpu.memory_space<vmem>>, vector<32x128xf32>
    tpu.vector_store %arg6[%c0_6, %c0_7], %7 {strides = array<i32>} : memref<32x128xf32, #tpu.memory_space<vmem>>, vector<32x128xf32>,
    %c0_i32_8 = arith.constant 0 : i32
    %9 = arith.cmpi eq, %arg2, %c0_i32_8 : i32
    %10 = arith.extui %9 : i1 to i32
    %c0_i32_9 = arith.constant 0 : i32
    %11 = arith.cmpi ne, %10, %c0_i32_9 : i32
    scf.if %11 {
      %c0_10 = arith.constant 0 : index
      %c0_11 = arith.constant 0 : index
      %12 = vector.load %arg6[%c0_10, %c0_11] : memref<32x128xf32, #tpu.memory_space<vmem>>, vector<32x128xf32>
      %c0_12 = arith.constant 0 : index
      %c0_13 = arith.constant 0 : index
      %13 = vector.load %arg5[%c0_12, %c0_13] : memref<1x128xf32, #tpu.memory_space<vmem>>, vector<1x128xf32>
      %14 = vector.broadcast %13 : vector<1x128xf32> to vector<32x128xf32>
      %15 = arith.addf %12, %14 : vector<32x128xf32>
      %c0_14 = arith.constant 0 : index
      %c0_15 = arith.constant 0 : index
      %16 = vector.load %arg6[%c0_14, %c0_15] : memref<32x128xf32, #tpu.memory_space<vmem>>, vector<32x128xf32>
      tpu.vector_store %arg6[%c0_14, %c0_15], %15 {strides = array<i32>} : memref<32x128xf32, #tpu.memory_space<vmem>>, vector<32x128xf32>,
    } else {
    }
    return
  }
  func.func @transform_0(%arg0: i32, %arg1: i32, %arg2: i32) -> (i32, i32) {
    %c0_i32 = arith.constant 0 : i32
    return %arg0, %arg2 : i32, i32
  }
  func.func @transform_1(%arg0: i32, %arg1: i32, %arg2: i32) -> (i32, i32) {
    %c0_i32 = arith.constant 0 : i32
    return %arg2, %arg1 : i32, i32
  }
  func.func @transform_2(%arg0: i32, %arg1: i32, %arg2: i32) -> (i32, i32) {
    %c0_i32 = arith.constant 0 : i32
    %c0_i32_0 = arith.constant 0 : i32
    return %c0_i32, %arg1 : i32, i32
  }
  func.func @transform_3(%arg0: i32, %arg1: i32, %arg2: i32) -> (i32, i32) {
    %c0_i32 = arith.constant 0 : i32
    return %arg0, %arg1 : i32, i32
  }
}

module attributes {stable_mosaic.version = 11 : i64} {
  func.func @_mm_fused_kernel(%arg0: i32, %arg1: i32, %arg2: i32, %arg3: memref<32x384xbf16, #tpu.memory_space<vmem>>, %arg4: memref<384x128xbf16, #tpu.memory_space<vmem>>, %arg5: memref<1x128xf32, #tpu.memory_space<vmem>>, %arg6: memref<32x128xf32, #tpu.memory_space<vmem>>) attributes {dimension_semantics = [#tpu.dimension_semantics<parallel>, #tpu.dimension_semantics<parallel>, #tpu.dimension_semantics<arbitrary>], iteration_bounds = array<i64: 1, 1, 3>, scalar_prefetch = 0 : i64, scratch_operands = 0 : i64, tpu.core_type = #tpu.core_type<tc>, window_params = [{transform_indices = @transform_0, window_bounds = array<i64: 32, 384>}, {transform_indices = @transform_1, window_bounds = array<i64: 384, 128>}, {transform_indices = @transform_2, window_bounds = array<i64: 1, 128>}, {transform_indices = @transform_3, window_bounds = array<i64: 32, 128>}]} {
    %c0_i32 = arith.constant 0 : i32
    %0 = arith.cmpi eq, %arg2, %c0_i32 : i32
    %1 = arith.extui %0 : i1 to i32
    %c0_i32_0 = arith.constant 0 : i32
    %2 = arith.cmpi ne, %1, %c0_i32_0 : i32
    scf.if %2 {
      %cst_9 = arith.constant 0.000000e+00 : f32
      %12 = vector.broadcast %cst_9 : f32 to vector<32x128xf32>
      %c0_10 = arith.constant 0 : index
      %c0_11 = arith.constant 0 : index
      %13 = vector.load %arg6[%c0_10, %c0_11] : memref<32x128xf32, #tpu.memory_space<vmem>>, vector<32x128xf32>
      tpu.vector_store %arg6[%c0_10, %c0_11], %12 {strides = array<i32>} : memref<32x128xf32, #tpu.memory_space<vmem>>, vector<32x128xf32>,
    } else {
    }
    %c0 = arith.constant 0 : index
    %c0_1 = arith.constant 0 : index
    %3 = vector.load %arg6[%c0, %c0_1] : memref<32x128xf32, #tpu.memory_space<vmem>>, vector<32x128xf32>
    %c0_2 = arith.constant 0 : index
    %c0_3 = arith.constant 0 : index
    %4 = vector.load %arg3[%c0_2, %c0_3] : memref<32x384xbf16, #tpu.memory_space<vmem>>, vector<32x384xbf16>
    %c0_4 = arith.constant 0 : index
    %c0_5 = arith.constant 0 : index
    %5 = vector.load %arg4[%c0_4, %c0_5] : memref<384x128xbf16, #tpu.memory_space<vmem>>, vector<384x128xbf16>
    %cst = arith.constant dense<0.000000e+00> : vector<32x128xf32>
    %6 = tpu.matmul %4, %5, %cst {dimension_numbers = #tpu.dot_dimension_numbers<[1], [0], [0], [1], [0, 0, 1, 1], [], []>} : vector<32x384xbf16>, vector<384x128xbf16>, vector<32x128xf32> -> vector<32x128xf32>
    %7 = arith.addf %3, %6 : vector<32x128xf32>
    %c0_6 = arith.constant 0 : index
    %c0_7 = arith.constant 0 : index
    %8 = vector.load %arg6[%c0_6, %c0_7] : memref<32x128xf32, #tpu.memory_space<vmem>>, vector<32x128xf32>
    tpu.vector_store %arg6[%c0_6, %c0_7], %7 {strides = array<i32>} : memref<32x128xf32, #tpu.memory_space<vmem>>, vector<32x128xf32>,
    %c2_i32 = arith.constant 2 : i32
    %9 = arith.cmpi eq, %arg2, %c2_i32 : i32
    %10 = arith.extui %9 : i1 to i32
    %c0_i32_8 = arith.constant 0 : i32
    %11 = arith.cmpi ne, %10, %c0_i32_8 : i32
    scf.if %11 {
      %c0_9 = arith.constant 0 : index
      %c0_10 = arith.constant 0 : index
      %12 = vector.load %arg6[%c0_9, %c0_10] : memref<32x128xf32, #tpu.memory_space<vmem>>, vector<32x128xf32>
      %c0_11 = arith.constant 0 : index
      %c0_12 = arith.constant 0 : index
      %13 = vector.load %arg5[%c0_11, %c0_12] : memref<1x128xf32, #tpu.memory_space<vmem>>, vector<1x128xf32>
      %14 = vector.broadcast %13 : vector<1x128xf32> to vector<32x128xf32>
      %15 = arith.addf %12, %14 : vector<32x128xf32>
      %cst_13 = arith.constant 0.000000e+00 : f32
      %16 = vector.broadcast %cst_13 : f32 to vector<32x128xf32>
      %17 = arith.maximumf %15, %16 : vector<32x128xf32>
      %c0_14 = arith.constant 0 : index
      %c0_15 = arith.constant 0 : index
      %18 = vector.load %arg6[%c0_14, %c0_15] : memref<32x128xf32, #tpu.memory_space<vmem>>, vector<32x128xf32>
      tpu.vector_store %arg6[%c0_14, %c0_15], %17 {strides = array<i32>} : memref<32x128xf32, #tpu.memory_space<vmem>>, vector<32x128xf32>,
    } else {
    }
    return
  }
  func.func @transform_0(%arg0: i32, %arg1: i32, %arg2: i32) -> (i32, i32) {
    %c0_i32 = arith.constant 0 : i32
    return %arg0, %arg2 : i32, i32
  }
  func.func @transform_1(%arg0: i32, %arg1: i32, %arg2: i32) -> (i32, i32) {
    %c0_i32 = arith.constant 0 : i32
    return %arg2, %arg1 : i32, i32
  }
  func.func @transform_2(%arg0: i32, %arg1: i32, %arg2: i32) -> (i32, i32) {
    %c0_i32 = arith.constant 0 : i32
    %c0_i32_0 = arith.constant 0 : i32
    return %c0_i32, %arg1 : i32, i32
  }
  func.func @transform_3(%arg0: i32, %arg1: i32, %arg2: i32) -> (i32, i32) {
    %c0_i32 = arith.constant 0 : i32
    return %arg0, %arg1 : i32, i32
  }
}

module attributes {stable_mosaic.version = 11 : i64} {
  func.func @_mm_fused_kernel(%arg0: i32, %arg1: i32, %arg2: i32, %arg3: memref<32x384xbf16, #tpu.memory_space<vmem>>, %arg4: memref<384x128xbf16, #tpu.memory_space<vmem>>, %arg5: memref<1x128xf32, #tpu.memory_space<vmem>>, %arg6: memref<32x128xf32, #tpu.memory_space<vmem>>, %arg7: memref<32x128xf32, #tpu.memory_space<vmem>>) attributes {dimension_semantics = [#tpu.dimension_semantics<parallel>, #tpu.dimension_semantics<parallel>, #tpu.dimension_semantics<arbitrary>], iteration_bounds = array<i64: 1, 1, 3>, scalar_prefetch = 0 : i64, scratch_operands = 0 : i64, tpu.core_type = #tpu.core_type<tc>, window_params = [{transform_indices = @transform_0, window_bounds = array<i64: 32, 384>}, {transform_indices = @transform_1, window_bounds = array<i64: 384, 128>}, {transform_indices = @transform_2, window_bounds = array<i64: 1, 128>}, {transform_indices = @transform_3, window_bounds = array<i64: 32, 128>}, {transform_indices = @transform_4, window_bounds = array<i64: 32, 128>}]} {
    %c0_i32 = arith.constant 0 : i32
    %0 = arith.cmpi eq, %arg2, %c0_i32 : i32
    %1 = arith.extui %0 : i1 to i32
    %c0_i32_0 = arith.constant 0 : i32
    %2 = arith.cmpi ne, %1, %c0_i32_0 : i32
    scf.if %2 {
      %cst_9 = arith.constant 0.000000e+00 : f32
      %12 = vector.broadcast %cst_9 : f32 to vector<32x128xf32>
      %c0_10 = arith.constant 0 : index
      %c0_11 = arith.constant 0 : index
      %13 = vector.load %arg7[%c0_10, %c0_11] : memref<32x128xf32, #tpu.memory_space<vmem>>, vector<32x128xf32>
      tpu.vector_store %arg7[%c0_10, %c0_11], %12 {strides = array<i32>} : memref<32x128xf32, #tpu.memory_space<vmem>>, vector<32x128xf32>,
    } else {
    }
    %c0 = arith.constant 0 : index
    %c0_1 = arith.constant 0 : index
    %3 = vector.load %arg7[%c0, %c0_1] : memref<32x128xf32, #tpu.memory_space<vmem>>, vector<32x128xf32>
    %c0_2 = arith.constant 0 : index
    %c0_3 = arith.constant 0 : index
    %4 = vector.load %arg3[%c0_2, %c0_3] : memref<32x384xbf16, #tpu.memory_space<vmem>>, vector<32x384xbf16>
    %c0_4 = arith.constant 0 : index
    %c0_5 = arith.constant 0 : index
    %5 = vector.load %arg4[%c0_4, %c0_5] : memref<384x128xbf16, #tpu.memory_space<vmem>>, vector<384x128xbf16>
    %cst = arith.constant dense<0.000000e+00> : vector<32x128xf32>
    %6 = tpu.matmul %4, %5, %cst {dimension_numbers = #tpu.dot_dimension_numbers<[1], [0], [0], [1], [0, 0, 1, 1], [], []>} : vector<32x384xbf16>, vector<384x128xbf16>, vector<32x128xf32> -> vector<32x128xf32>
    %7 = arith.addf %3, %6 : vector<32x128xf32>
    %c0_6 = arith.constant 0 : index
    %c0_7 = arith.constant 0 : index
    %8 = vector.load %arg7[%c0_6, %c0_7] : memref<32x128xf32, #tpu.memory_space<vmem>>, vector<32x128xf32>
    tpu.vector_store %arg7[%c0_6, %c0_7], %7 {strides = array<i32>} : memref<32x128xf32, #tpu.memory_space<vmem>>, vector<32x128xf32>,
    %c2_i32 = arith.constant 2 : i32
    %9 = arith.cmpi eq, %arg2, %c2_i32 : i32
    %10 = arith.extui %9 : i1 to i32
    %c0_i32_8 = arith.constant 0 : i32
    %11 = arith.cmpi ne, %10, %c0_i32_8 : i32
    scf.if %11 {
      %c0_9 = arith.constant 0 : index
      %c0_10 = arith.constant 0 : index
      %12 = vector.load %arg7[%c0_9, %c0_10] : memref<32x128xf32, #tpu.memory_space<vmem>>, vector<32x128xf32>
      %c0_11 = arith.constant 0 : index
      %c0_12 = arith.constant 0 : index
      %13 = vector.load %arg5[%c0_11, %c0_12] : memref<1x128xf32, #tpu.memory_space<vmem>>, vector<1x128xf32>
      %14 = vector.broadcast %13 : vector<1x128xf32> to vector<32x128xf32>
      %15 = arith.addf %12, %14 : vector<32x128xf32>
      %c0_13 = arith.constant 0 : index
      %c0_14 = arith.constant 0 : index
      %16 = vector.load %arg6[%c0_13, %c0_14] : memref<32x128xf32, #tpu.memory_space<vmem>>, vector<32x128xf32>
      %17 = arith.addf %15, %16 : vector<32x128xf32>
      %cst_15 = arith.constant 0.000000e+00 : f32
      %18 = vector.broadcast %cst_15 : f32 to vector<32x128xf32>
      %19 = arith.maximumf %17, %18 : vector<32x128xf32>
      %c0_16 = arith.constant 0 : index
      %c0_17 = arith.constant 0 : index
      %20 = vector.load %arg7[%c0_16, %c0_17] : memref<32x128xf32, #tpu.memory_space<vmem>>, vector<32x128xf32>
      tpu.vector_store %arg7[%c0_16, %c0_17], %19 {strides = array<i32>} : memref<32x128xf32, #tpu.memory_space<vmem>>, vector<32x128xf32>,
    } else {
    }
    return
  }
  func.func @transform_0(%arg0: i32, %arg1: i32, %arg2: i32) -> (i32, i32) {
    %c0_i32 = arith.constant 0 : i32
    return %arg0, %arg2 : i32, i32
  }
  func.func @transform_1(%arg0: i32, %arg1: i32, %arg2: i32) -> (i32, i32) {
    %c0_i32 = arith.constant 0 : i32
    return %arg2, %arg1 : i32, i32
  }
  func.func @transform_2(%arg0: i32, %arg1: i32, %arg2: i32) -> (i32, i32) {
    %c0_i32 = arith.constant 0 : i32
    %c0_i32_0 = arith.constant 0 : i32
    return %c0_i32, %arg1 : i32, i32
  }
  func.func @transform_3(%arg0: i32, %arg1: i32, %arg2: i32) -> (i32, i32) {
    %c0_i32 = arith.constant 0 : i32
    return %arg0, %arg1 : i32, i32
  }
  func.func @transform_4(%arg0: i32, %arg1: i32, %arg2: i32) -> (i32, i32) {
    %c0_i32 = arith.constant 0 : i32
    return %arg0, %arg1 : i32, i32
  }
}

module attributes {stable_mosaic.version = 11 : i64} {
  func.func @_mm_fused_kernel(%arg0: i32, %arg1: i32, %arg2: i32, %arg3: memref<8x384xbf16, #tpu.memory_space<vmem>>, %arg4: memref<384x256xbf16, #tpu.memory_space<vmem>>, %arg5: memref<1x256xf32, #tpu.memory_space<vmem>>, %arg6: memref<8x256xf32, #tpu.memory_space<vmem>>) attributes {dimension_semantics = [#tpu.dimension_semantics<parallel>, #tpu.dimension_semantics<parallel>, #tpu.dimension_semantics<arbitrary>], iteration_bounds = array<i64: 1, 1, 3>, scalar_prefetch = 0 : i64, scratch_operands = 0 : i64, tpu.core_type = #tpu.core_type<tc>, window_params = [{transform_indices = @transform_0, window_bounds = array<i64: 8, 384>}, {transform_indices = @transform_1, window_bounds = array<i64: 384, 256>}, {transform_indices = @transform_2, window_bounds = array<i64: 1, 256>}, {transform_indices = @transform_3, window_bounds = array<i64: 8, 256>}]} {
    %c0_i32 = arith.constant 0 : i32
    %0 = arith.cmpi eq, %arg2, %c0_i32 : i32
    %1 = arith.extui %0 : i1 to i32
    %c0_i32_0 = arith.constant 0 : i32
    %2 = arith.cmpi ne, %1, %c0_i32_0 : i32
    scf.if %2 {
      %cst_9 = arith.constant 0.000000e+00 : f32
      %12 = vector.broadcast %cst_9 : f32 to vector<8x256xf32>
      %c0_10 = arith.constant 0 : index
      %c0_11 = arith.constant 0 : index
      %13 = vector.load %arg6[%c0_10, %c0_11] : memref<8x256xf32, #tpu.memory_space<vmem>>, vector<8x256xf32>
      tpu.vector_store %arg6[%c0_10, %c0_11], %12 {strides = array<i32>} : memref<8x256xf32, #tpu.memory_space<vmem>>, vector<8x256xf32>,
    } else {
    }
    %c0 = arith.constant 0 : index
    %c0_1 = arith.constant 0 : index
    %3 = vector.load %arg6[%c0, %c0_1] : memref<8x256xf32, #tpu.memory_space<vmem>>, vector<8x256xf32>
    %c0_2 = arith.constant 0 : index
    %c0_3 = arith.constant 0 : index
    %4 = vector.load %arg3[%c0_2, %c0_3] : memref<8x384xbf16, #tpu.memory_space<vmem>>, vector<8x384xbf16>
    %c0_4 = arith.constant 0 : index
    %c0_5 = arith.constant 0 : index
    %5 = vector.load %arg4[%c0_4, %c0_5] : memref<384x256xbf16, #tpu.memory_space<vmem>>, vector<384x256xbf16>
    %cst = arith.constant dense<0.000000e+00> : vector<8x256xf32>
    %6 = tpu.matmul %4, %5, %cst {dimension_numbers = #tpu.dot_dimension_numbers<[1], [0], [0], [1], [0, 0, 1, 1], [], []>} : vector<8x384xbf16>, vector<384x256xbf16>, vector<8x256xf32> -> vector<8x256xf32>
    %7 = arith.addf %3, %6 : vector<8x256xf32>
    %c0_6 = arith.constant 0 : index
    %c0_7 = arith.constant 0 : index
    %8 = vector.load %arg6[%c0_6, %c0_7] : memref<8x256xf32, #tpu.memory_space<vmem>>, vector<8x256xf32>
    tpu.vector_store %arg6[%c0_6, %c0_7], %7 {strides = array<i32>} : memref<8x256xf32, #tpu.memory_space<vmem>>, vector<8x256xf32>,
    %c2_i32 = arith.constant 2 : i32
    %9 = arith.cmpi eq, %arg2, %c2_i32 : i32
    %10 = arith.extui %9 : i1 to i32
    %c0_i32_8 = arith.constant 0 : i32
    %11 = arith.cmpi ne, %10, %c0_i32_8 : i32
    scf.if %11 {
      %c0_9 = arith.constant 0 : index
      %c0_10 = arith.constant 0 : index
      %12 = vector.load %arg6[%c0_9, %c0_10] : memref<8x256xf32, #tpu.memory_space<vmem>>, vector<8x256xf32>
      %c0_11 = arith.constant 0 : index
      %c0_12 = arith.constant 0 : index
      %13 = vector.load %arg5[%c0_11, %c0_12] : memref<1x256xf32, #tpu.memory_space<vmem>>, vector<1x256xf32>
      %14 = vector.broadcast %13 : vector<1x256xf32> to vector<8x256xf32>
      %15 = arith.addf %12, %14 : vector<8x256xf32>
      %cst_13 = arith.constant 0.000000e+00 : f32
      %16 = vector.broadcast %cst_13 : f32 to vector<8x256xf32>
      %17 = arith.maximumf %15, %16 : vector<8x256xf32>
      %c0_14 = arith.constant 0 : index
      %c0_15 = arith.constant 0 : index
      %18 = vector.load %arg6[%c0_14, %c0_15] : memref<8x256xf32, #tpu.memory_space<vmem>>, vector<8x256xf32>
      tpu.vector_store %arg6[%c0_14, %c0_15], %17 {strides = array<i32>} : memref<8x256xf32, #tpu.memory_space<vmem>>, vector<8x256xf32>,
    } else {
    }
    return
  }
  func.func @transform_0(%arg0: i32, %arg1: i32, %arg2: i32) -> (i32, i32) {
    %c0_i32 = arith.constant 0 : i32
    return %arg0, %arg2 : i32, i32
  }
  func.func @transform_1(%arg0: i32, %arg1: i32, %arg2: i32) -> (i32, i32) {
    %c0_i32 = arith.constant 0 : i32
    return %arg2, %arg1 : i32, i32
  }
  func.func @transform_2(%arg0: i32, %arg1: i32, %arg2: i32) -> (i32, i32) {
    %c0_i32 = arith.constant 0 : i32
    %c0_i32_0 = arith.constant 0 : i32
    return %c0_i32, %arg1 : i32, i32
  }
  func.func @transform_3(%arg0: i32, %arg1: i32, %arg2: i32) -> (i32, i32) {
    %c0_i32 = arith.constant 0 : i32
    return %arg0, %arg1 : i32, i32
  }
}

module attributes {stable_mosaic.version = 11 : i64} {
  func.func @_mm_fused_kernel(%arg0: i32, %arg1: i32, %arg2: i32, %arg3: memref<8x128xbf16, #tpu.memory_space<vmem>>, %arg4: memref<128x256xbf16, #tpu.memory_space<vmem>>, %arg5: memref<1x256xf32, #tpu.memory_space<vmem>>, %arg6: memref<8x256xf32, #tpu.memory_space<vmem>>) attributes {dimension_semantics = [#tpu.dimension_semantics<parallel>, #tpu.dimension_semantics<parallel>, #tpu.dimension_semantics<arbitrary>], iteration_bounds = array<i64: 1, 1, 1>, scalar_prefetch = 0 : i64, scratch_operands = 0 : i64, tpu.core_type = #tpu.core_type<tc>, window_params = [{transform_indices = @transform_0, window_bounds = array<i64: 8, 128>}, {transform_indices = @transform_1, window_bounds = array<i64: 128, 256>}, {transform_indices = @transform_2, window_bounds = array<i64: 1, 256>}, {transform_indices = @transform_3, window_bounds = array<i64: 8, 256>}]} {
    %c0_i32 = arith.constant 0 : i32
    %0 = arith.cmpi eq, %arg2, %c0_i32 : i32
    %1 = arith.extui %0 : i1 to i32
    %c0_i32_0 = arith.constant 0 : i32
    %2 = arith.cmpi ne, %1, %c0_i32_0 : i32
    scf.if %2 {
      %cst_10 = arith.constant 0.000000e+00 : f32
      %12 = vector.broadcast %cst_10 : f32 to vector<8x256xf32>
      %c0_11 = arith.constant 0 : index
      %c0_12 = arith.constant 0 : index
      %13 = vector.load %arg6[%c0_11, %c0_12] : memref<8x256xf32, #tpu.memory_space<vmem>>, vector<8x256xf32>
      tpu.vector_store %arg6[%c0_11, %c0_12], %12 {strides = array<i32>} : memref<8x256xf32, #tpu.memory_space<vmem>>, vector<8x256xf32>,
    } else {
    }
    %c0 = arith.constant 0 : index
    %c0_1 = arith.constant 0 : index
    %3 = vector.load %arg6[%c0, %c0_1] : memref<8x256xf32, #tpu.memory_space<vmem>>, vector<8x256xf32>
    %c0_2 = arith.constant 0 : index
    %c0_3 = arith.constant 0 : index
    %4 = vector.load %arg3[%c0_2, %c0_3] : memref<8x128xbf16, #tpu.memory_space<vmem>>, vector<8x128xbf16>
    %c0_4 = arith.constant 0 : index
    %c0_5 = arith.constant 0 : index
    %5 = vector.load %arg4[%c0_4, %c0_5] : memref<128x256xbf16, #tpu.memory_space<vmem>>, vector<128x256xbf16>
    %cst = arith.constant dense<0.000000e+00> : vector<8x256xf32>
    %6 = tpu.matmul %4, %5, %cst {dimension_numbers = #tpu.dot_dimension_numbers<[1], [0], [0], [1], [0, 0, 1, 1], [], []>} : vector<8x128xbf16>, vector<128x256xbf16>, vector<8x256xf32> -> vector<8x256xf32>
    %7 = arith.addf %3, %6 : vector<8x256xf32>
    %c0_6 = arith.constant 0 : index
    %c0_7 = arith.constant 0 : index
    %8 = vector.load %arg6[%c0_6, %c0_7] : memref<8x256xf32, #tpu.memory_space<vmem>>, vector<8x256xf32>
    tpu.vector_store %arg6[%c0_6, %c0_7], %7 {strides = array<i32>} : memref<8x256xf32, #tpu.memory_space<vmem>>, vector<8x256xf32>,
    %c0_i32_8 = arith.constant 0 : i32
    %9 = arith.cmpi eq, %arg2, %c0_i32_8 : i32
    %10 = arith.extui %9 : i1 to i32
    %c0_i32_9 = arith.constant 0 : i32
    %11 = arith.cmpi ne, %10, %c0_i32_9 : i32
    scf.if %11 {
      %c0_10 = arith.constant 0 : index
      %c0_11 = arith.constant 0 : index
      %12 = vector.load %arg6[%c0_10, %c0_11] : memref<8x256xf32, #tpu.memory_space<vmem>>, vector<8x256xf32>
      %c0_12 = arith.constant 0 : index
      %c0_13 = arith.constant 0 : index
      %13 = vector.load %arg5[%c0_12, %c0_13] : memref<1x256xf32, #tpu.memory_space<vmem>>, vector<1x256xf32>
      %14 = vector.broadcast %13 : vector<1x256xf32> to vector<8x256xf32>
      %15 = arith.addf %12, %14 : vector<8x256xf32>
      %c0_14 = arith.constant 0 : index
      %c0_15 = arith.constant 0 : index
      %16 = vector.load %arg6[%c0_14, %c0_15] : memref<8x256xf32, #tpu.memory_space<vmem>>, vector<8x256xf32>
      tpu.vector_store %arg6[%c0_14, %c0_15], %15 {strides = array<i32>} : memref<8x256xf32, #tpu.memory_space<vmem>>, vector<8x256xf32>,
    } else {
    }
    return
  }
  func.func @transform_0(%arg0: i32, %arg1: i32, %arg2: i32) -> (i32, i32) {
    %c0_i32 = arith.constant 0 : i32
    return %arg0, %arg2 : i32, i32
  }
  func.func @transform_1(%arg0: i32, %arg1: i32, %arg2: i32) -> (i32, i32) {
    %c0_i32 = arith.constant 0 : i32
    return %arg2, %arg1 : i32, i32
  }
  func.func @transform_2(%arg0: i32, %arg1: i32, %arg2: i32) -> (i32, i32) {
    %c0_i32 = arith.constant 0 : i32
    %c0_i32_0 = arith.constant 0 : i32
    return %c0_i32, %arg1 : i32, i32
  }
  func.func @transform_3(%arg0: i32, %arg1: i32, %arg2: i32) -> (i32, i32) {
    %c0_i32 = arith.constant 0 : i32
    return %arg0, %arg1 : i32, i32
  }
}

module attributes {stable_mosaic.version = 11 : i64} {
  func.func @_mm_fused_kernel(%arg0: i32, %arg1: i32, %arg2: i32, %arg3: memref<8x384xbf16, #tpu.memory_space<vmem>>, %arg4: memref<384x256xbf16, #tpu.memory_space<vmem>>, %arg5: memref<1x256xf32, #tpu.memory_space<vmem>>, %arg6: memref<8x256xf32, #tpu.memory_space<vmem>>, %arg7: memref<8x256xf32, #tpu.memory_space<vmem>>) attributes {dimension_semantics = [#tpu.dimension_semantics<parallel>, #tpu.dimension_semantics<parallel>, #tpu.dimension_semantics<arbitrary>], iteration_bounds = array<i64: 1, 1, 6>, scalar_prefetch = 0 : i64, scratch_operands = 0 : i64, tpu.core_type = #tpu.core_type<tc>, window_params = [{transform_indices = @transform_0, window_bounds = array<i64: 8, 384>}, {transform_indices = @transform_1, window_bounds = array<i64: 384, 256>}, {transform_indices = @transform_2, window_bounds = array<i64: 1, 256>}, {transform_indices = @transform_3, window_bounds = array<i64: 8, 256>}, {transform_indices = @transform_4, window_bounds = array<i64: 8, 256>}]} {
    %c0_i32 = arith.constant 0 : i32
    %0 = arith.cmpi eq, %arg2, %c0_i32 : i32
    %1 = arith.extui %0 : i1 to i32
    %c0_i32_0 = arith.constant 0 : i32
    %2 = arith.cmpi ne, %1, %c0_i32_0 : i32
    scf.if %2 {
      %cst_9 = arith.constant 0.000000e+00 : f32
      %12 = vector.broadcast %cst_9 : f32 to vector<8x256xf32>
      %c0_10 = arith.constant 0 : index
      %c0_11 = arith.constant 0 : index
      %13 = vector.load %arg7[%c0_10, %c0_11] : memref<8x256xf32, #tpu.memory_space<vmem>>, vector<8x256xf32>
      tpu.vector_store %arg7[%c0_10, %c0_11], %12 {strides = array<i32>} : memref<8x256xf32, #tpu.memory_space<vmem>>, vector<8x256xf32>,
    } else {
    }
    %c0 = arith.constant 0 : index
    %c0_1 = arith.constant 0 : index
    %3 = vector.load %arg7[%c0, %c0_1] : memref<8x256xf32, #tpu.memory_space<vmem>>, vector<8x256xf32>
    %c0_2 = arith.constant 0 : index
    %c0_3 = arith.constant 0 : index
    %4 = vector.load %arg3[%c0_2, %c0_3] : memref<8x384xbf16, #tpu.memory_space<vmem>>, vector<8x384xbf16>
    %c0_4 = arith.constant 0 : index
    %c0_5 = arith.constant 0 : index
    %5 = vector.load %arg4[%c0_4, %c0_5] : memref<384x256xbf16, #tpu.memory_space<vmem>>, vector<384x256xbf16>
    %cst = arith.constant dense<0.000000e+00> : vector<8x256xf32>
    %6 = tpu.matmul %4, %5, %cst {dimension_numbers = #tpu.dot_dimension_numbers<[1], [0], [0], [1], [0, 0, 1, 1], [], []>} : vector<8x384xbf16>, vector<384x256xbf16>, vector<8x256xf32> -> vector<8x256xf32>
    %7 = arith.addf %3, %6 : vector<8x256xf32>
    %c0_6 = arith.constant 0 : index
    %c0_7 = arith.constant 0 : index
    %8 = vector.load %arg7[%c0_6, %c0_7] : memref<8x256xf32, #tpu.memory_space<vmem>>, vector<8x256xf32>
    tpu.vector_store %arg7[%c0_6, %c0_7], %7 {strides = array<i32>} : memref<8x256xf32, #tpu.memory_space<vmem>>, vector<8x256xf32>,
    %c5_i32 = arith.constant 5 : i32
    %9 = arith.cmpi eq, %arg2, %c5_i32 : i32
    %10 = arith.extui %9 : i1 to i32
    %c0_i32_8 = arith.constant 0 : i32
    %11 = arith.cmpi ne, %10, %c0_i32_8 : i32
    scf.if %11 {
      %c0_9 = arith.constant 0 : index
      %c0_10 = arith.constant 0 : index
      %12 = vector.load %arg7[%c0_9, %c0_10] : memref<8x256xf32, #tpu.memory_space<vmem>>, vector<8x256xf32>
      %c0_11 = arith.constant 0 : index
      %c0_12 = arith.constant 0 : index
      %13 = vector.load %arg5[%c0_11, %c0_12] : memref<1x256xf32, #tpu.memory_space<vmem>>, vector<1x256xf32>
      %14 = vector.broadcast %13 : vector<1x256xf32> to vector<8x256xf32>
      %15 = arith.addf %12, %14 : vector<8x256xf32>
      %c0_13 = arith.constant 0 : index
      %c0_14 = arith.constant 0 : index
      %16 = vector.load %arg6[%c0_13, %c0_14] : memref<8x256xf32, #tpu.memory_space<vmem>>, vector<8x256xf32>
      %17 = arith.addf %15, %16 : vector<8x256xf32>
      %cst_15 = arith.constant 0.000000e+00 : f32
      %18 = vector.broadcast %cst_15 : f32 to vector<8x256xf32>
      %19 = arith.maximumf %17, %18 : vector<8x256xf32>
      %c0_16 = arith.constant 0 : index
      %c0_17 = arith.constant 0 : index
      %20 = vector.load %arg7[%c0_16, %c0_17] : memref<8x256xf32, #tpu.memory_space<vmem>>, vector<8x256xf32>
      tpu.vector_store %arg7[%c0_16, %c0_17], %19 {strides = array<i32>} : memref<8x256xf32, #tpu.memory_space<vmem>>, vector<8x256xf32>,
    } else {
    }
    return
  }
  func.func @transform_0(%arg0: i32, %arg1: i32, %arg2: i32) -> (i32, i32) {
    %c0_i32 = arith.constant 0 : i32
    return %arg0, %arg2 : i32, i32
  }
  func.func @transform_1(%arg0: i32, %arg1: i32, %arg2: i32) -> (i32, i32) {
    %c0_i32 = arith.constant 0 : i32
    return %arg2, %arg1 : i32, i32
  }
  func.func @transform_2(%arg0: i32, %arg1: i32, %arg2: i32) -> (i32, i32) {
    %c0_i32 = arith.constant 0 : i32
    %c0_i32_0 = arith.constant 0 : i32
    return %c0_i32, %arg1 : i32, i32
  }
  func.func @transform_3(%arg0: i32, %arg1: i32, %arg2: i32) -> (i32, i32) {
    %c0_i32 = arith.constant 0 : i32
    return %arg0, %arg1 : i32, i32
  }
  func.func @transform_4(%arg0: i32, %arg1: i32, %arg2: i32) -> (i32, i32) {
    %c0_i32 = arith.constant 0 : i32
    return %arg0, %arg1 : i32, i32
  }
}

module attributes {stable_mosaic.version = 11 : i64} {
  func.func @_mm_fused_kernel(%arg0: i32, %arg1: i32, %arg2: i32, %arg3: memref<8x384xbf16, #tpu.memory_space<vmem>>, %arg4: memref<384x256xbf16, #tpu.memory_space<vmem>>, %arg5: memref<1x256xf32, #tpu.memory_space<vmem>>, %arg6: memref<8x256xf32, #tpu.memory_space<vmem>>) attributes {dimension_semantics = [#tpu.dimension_semantics<parallel>, #tpu.dimension_semantics<parallel>, #tpu.dimension_semantics<arbitrary>], iteration_bounds = array<i64: 1, 1, 6>, scalar_prefetch = 0 : i64, scratch_operands = 0 : i64, tpu.core_type = #tpu.core_type<tc>, window_params = [{transform_indices = @transform_0, window_bounds = array<i64: 8, 384>}, {transform_indices = @transform_1, window_bounds = array<i64: 384, 256>}, {transform_indices = @transform_2, window_bounds = array<i64: 1, 256>}, {transform_indices = @transform_3, window_bounds = array<i64: 8, 256>}]} {
    %c0_i32 = arith.constant 0 : i32
    %0 = arith.cmpi eq, %arg2, %c0_i32 : i32
    %1 = arith.extui %0 : i1 to i32
    %c0_i32_0 = arith.constant 0 : i32
    %2 = arith.cmpi ne, %1, %c0_i32_0 : i32
    scf.if %2 {
      %cst_9 = arith.constant 0.000000e+00 : f32
      %12 = vector.broadcast %cst_9 : f32 to vector<8x256xf32>
      %c0_10 = arith.constant 0 : index
      %c0_11 = arith.constant 0 : index
      %13 = vector.load %arg6[%c0_10, %c0_11] : memref<8x256xf32, #tpu.memory_space<vmem>>, vector<8x256xf32>
      tpu.vector_store %arg6[%c0_10, %c0_11], %12 {strides = array<i32>} : memref<8x256xf32, #tpu.memory_space<vmem>>, vector<8x256xf32>,
    } else {
    }
    %c0 = arith.constant 0 : index
    %c0_1 = arith.constant 0 : index
    %3 = vector.load %arg6[%c0, %c0_1] : memref<8x256xf32, #tpu.memory_space<vmem>>, vector<8x256xf32>
    %c0_2 = arith.constant 0 : index
    %c0_3 = arith.constant 0 : index
    %4 = vector.load %arg3[%c0_2, %c0_3] : memref<8x384xbf16, #tpu.memory_space<vmem>>, vector<8x384xbf16>
    %c0_4 = arith.constant 0 : index
    %c0_5 = arith.constant 0 : index
    %5 = vector.load %arg4[%c0_4, %c0_5] : memref<384x256xbf16, #tpu.memory_space<vmem>>, vector<384x256xbf16>
    %cst = arith.constant dense<0.000000e+00> : vector<8x256xf32>
    %6 = tpu.matmul %4, %5, %cst {dimension_numbers = #tpu.dot_dimension_numbers<[1], [0], [0], [1], [0, 0, 1, 1], [], []>} : vector<8x384xbf16>, vector<384x256xbf16>, vector<8x256xf32> -> vector<8x256xf32>
    %7 = arith.addf %3, %6 : vector<8x256xf32>
    %c0_6 = arith.constant 0 : index
    %c0_7 = arith.constant 0 : index
    %8 = vector.load %arg6[%c0_6, %c0_7] : memref<8x256xf32, #tpu.memory_space<vmem>>, vector<8x256xf32>
    tpu.vector_store %arg6[%c0_6, %c0_7], %7 {strides = array<i32>} : memref<8x256xf32, #tpu.memory_space<vmem>>, vector<8x256xf32>,
    %c5_i32 = arith.constant 5 : i32
    %9 = arith.cmpi eq, %arg2, %c5_i32 : i32
    %10 = arith.extui %9 : i1 to i32
    %c0_i32_8 = arith.constant 0 : i32
    %11 = arith.cmpi ne, %10, %c0_i32_8 : i32
    scf.if %11 {
      %c0_9 = arith.constant 0 : index
      %c0_10 = arith.constant 0 : index
      %12 = vector.load %arg6[%c0_9, %c0_10] : memref<8x256xf32, #tpu.memory_space<vmem>>, vector<8x256xf32>
      %c0_11 = arith.constant 0 : index
      %c0_12 = arith.constant 0 : index
      %13 = vector.load %arg5[%c0_11, %c0_12] : memref<1x256xf32, #tpu.memory_space<vmem>>, vector<1x256xf32>
      %14 = vector.broadcast %13 : vector<1x256xf32> to vector<8x256xf32>
      %15 = arith.addf %12, %14 : vector<8x256xf32>
      %cst_13 = arith.constant 0.000000e+00 : f32
      %16 = vector.broadcast %cst_13 : f32 to vector<8x256xf32>
      %17 = arith.maximumf %15, %16 : vector<8x256xf32>
      %c0_14 = arith.constant 0 : index
      %c0_15 = arith.constant 0 : index
      %18 = vector.load %arg6[%c0_14, %c0_15] : memref<8x256xf32, #tpu.memory_space<vmem>>, vector<8x256xf32>
      tpu.vector_store %arg6[%c0_14, %c0_15], %17 {strides = array<i32>} : memref<8x256xf32, #tpu.memory_space<vmem>>, vector<8x256xf32>,
    } else {
    }
    return
  }
  func.func @transform_0(%arg0: i32, %arg1: i32, %arg2: i32) -> (i32, i32) {
    %c0_i32 = arith.constant 0 : i32
    return %arg0, %arg2 : i32, i32
  }
  func.func @transform_1(%arg0: i32, %arg1: i32, %arg2: i32) -> (i32, i32) {
    %c0_i32 = arith.constant 0 : i32
    return %arg2, %arg1 : i32, i32
  }
  func.func @transform_2(%arg0: i32, %arg1: i32, %arg2: i32) -> (i32, i32) {
    %c0_i32 = arith.constant 0 : i32
    %c0_i32_0 = arith.constant 0 : i32
    return %c0_i32, %arg1 : i32, i32
  }
  func.func @transform_3(%arg0: i32, %arg1: i32, %arg2: i32) -> (i32, i32) {
    %c0_i32 = arith.constant 0 : i32
    return %arg0, %arg1 : i32, i32
  }
}

module attributes {stable_mosaic.version = 11 : i64} {
  func.func @_mm_fused_kernel(%arg0: i32, %arg1: i32, %arg2: i32, %arg3: memref<8x384xbf16, #tpu.memory_space<vmem>>, %arg4: memref<384x512xbf16, #tpu.memory_space<vmem>>, %arg5: memref<1x512xf32, #tpu.memory_space<vmem>>, %arg6: memref<8x512xf32, #tpu.memory_space<vmem>>) attributes {dimension_semantics = [#tpu.dimension_semantics<parallel>, #tpu.dimension_semantics<parallel>, #tpu.dimension_semantics<arbitrary>], iteration_bounds = array<i64: 1, 1, 6>, scalar_prefetch = 0 : i64, scratch_operands = 0 : i64, tpu.core_type = #tpu.core_type<tc>, window_params = [{transform_indices = @transform_0, window_bounds = array<i64: 8, 384>}, {transform_indices = @transform_1, window_bounds = array<i64: 384, 512>}, {transform_indices = @transform_2, window_bounds = array<i64: 1, 512>}, {transform_indices = @transform_3, window_bounds = array<i64: 8, 512>}]} {
    %c0_i32 = arith.constant 0 : i32
    %0 = arith.cmpi eq, %arg2, %c0_i32 : i32
    %1 = arith.extui %0 : i1 to i32
    %c0_i32_0 = arith.constant 0 : i32
    %2 = arith.cmpi ne, %1, %c0_i32_0 : i32
    scf.if %2 {
      %cst_9 = arith.constant 0.000000e+00 : f32
      %12 = vector.broadcast %cst_9 : f32 to vector<8x512xf32>
      %c0_10 = arith.constant 0 : index
      %c0_11 = arith.constant 0 : index
      %13 = vector.load %arg6[%c0_10, %c0_11] : memref<8x512xf32, #tpu.memory_space<vmem>>, vector<8x512xf32>
      tpu.vector_store %arg6[%c0_10, %c0_11], %12 {strides = array<i32>} : memref<8x512xf32, #tpu.memory_space<vmem>>, vector<8x512xf32>,
    } else {
    }
    %c0 = arith.constant 0 : index
    %c0_1 = arith.constant 0 : index
    %3 = vector.load %arg6[%c0, %c0_1] : memref<8x512xf32, #tpu.memory_space<vmem>>, vector<8x512xf32>
    %c0_2 = arith.constant 0 : index
    %c0_3 = arith.constant 0 : index
    %4 = vector.load %arg3[%c0_2, %c0_3] : memref<8x384xbf16, #tpu.memory_space<vmem>>, vector<8x384xbf16>
    %c0_4 = arith.constant 0 : index
    %c0_5 = arith.constant 0 : index
    %5 = vector.load %arg4[%c0_4, %c0_5] : memref<384x512xbf16, #tpu.memory_space<vmem>>, vector<384x512xbf16>
    %cst = arith.constant dense<0.000000e+00> : vector<8x512xf32>
    %6 = tpu.matmul %4, %5, %cst {dimension_numbers = #tpu.dot_dimension_numbers<[1], [0], [0], [1], [0, 0, 1, 1], [], []>} : vector<8x384xbf16>, vector<384x512xbf16>, vector<8x512xf32> -> vector<8x512xf32>
    %7 = arith.addf %3, %6 : vector<8x512xf32>
    %c0_6 = arith.constant 0 : index
    %c0_7 = arith.constant 0 : index
    %8 = vector.load %arg6[%c0_6, %c0_7] : memref<8x512xf32, #tpu.memory_space<vmem>>, vector<8x512xf32>
    tpu.vector_store %arg6[%c0_6, %c0_7], %7 {strides = array<i32>} : memref<8x512xf32, #tpu.memory_space<vmem>>, vector<8x512xf32>,
    %c5_i32 = arith.constant 5 : i32
    %9 = arith.cmpi eq, %arg2, %c5_i32 : i32
    %10 = arith.extui %9 : i1 to i32
    %c0_i32_8 = arith.constant 0 : i32
    %11 = arith.cmpi ne, %10, %c0_i32_8 : i32
    scf.if %11 {
      %c0_9 = arith.constant 0 : index
      %c0_10 = arith.constant 0 : index
      %12 = vector.load %arg6[%c0_9, %c0_10] : memref<8x512xf32, #tpu.memory_space<vmem>>, vector<8x512xf32>
      %c0_11 = arith.constant 0 : index
      %c0_12 = arith.constant 0 : index
      %13 = vector.load %arg5[%c0_11, %c0_12] : memref<1x512xf32, #tpu.memory_space<vmem>>, vector<1x512xf32>
      %14 = vector.broadcast %13 : vector<1x512xf32> to vector<8x512xf32>
      %15 = arith.addf %12, %14 : vector<8x512xf32>
      %cst_13 = arith.constant 0.000000e+00 : f32
      %16 = vector.broadcast %cst_13 : f32 to vector<8x512xf32>
      %17 = arith.maximumf %15, %16 : vector<8x512xf32>
      %c0_14 = arith.constant 0 : index
      %c0_15 = arith.constant 0 : index
      %18 = vector.load %arg6[%c0_14, %c0_15] : memref<8x512xf32, #tpu.memory_space<vmem>>, vector<8x512xf32>
      tpu.vector_store %arg6[%c0_14, %c0_15], %17 {strides = array<i32>} : memref<8x512xf32, #tpu.memory_space<vmem>>, vector<8x512xf32>,
    } else {
    }
    return
  }
  func.func @transform_0(%arg0: i32, %arg1: i32, %arg2: i32) -> (i32, i32) {
    %c0_i32 = arith.constant 0 : i32
    return %arg0, %arg2 : i32, i32
  }
  func.func @transform_1(%arg0: i32, %arg1: i32, %arg2: i32) -> (i32, i32) {
    %c0_i32 = arith.constant 0 : i32
    return %arg2, %arg1 : i32, i32
  }
  func.func @transform_2(%arg0: i32, %arg1: i32, %arg2: i32) -> (i32, i32) {
    %c0_i32 = arith.constant 0 : i32
    %c0_i32_0 = arith.constant 0 : i32
    return %c0_i32, %arg1 : i32, i32
  }
  func.func @transform_3(%arg0: i32, %arg1: i32, %arg2: i32) -> (i32, i32) {
    %c0_i32 = arith.constant 0 : i32
    return %arg0, %arg1 : i32, i32
  }
}

module attributes {stable_mosaic.version = 11 : i64} {
  func.func @_mm_fused_kernel(%arg0: i32, %arg1: i32, %arg2: i32, %arg3: memref<8x256xbf16, #tpu.memory_space<vmem>>, %arg4: memref<256x512xbf16, #tpu.memory_space<vmem>>, %arg5: memref<1x512xf32, #tpu.memory_space<vmem>>, %arg6: memref<8x512xf32, #tpu.memory_space<vmem>>) attributes {dimension_semantics = [#tpu.dimension_semantics<parallel>, #tpu.dimension_semantics<parallel>, #tpu.dimension_semantics<arbitrary>], iteration_bounds = array<i64: 1, 1, 1>, scalar_prefetch = 0 : i64, scratch_operands = 0 : i64, tpu.core_type = #tpu.core_type<tc>, window_params = [{transform_indices = @transform_0, window_bounds = array<i64: 8, 256>}, {transform_indices = @transform_1, window_bounds = array<i64: 256, 512>}, {transform_indices = @transform_2, window_bounds = array<i64: 1, 512>}, {transform_indices = @transform_3, window_bounds = array<i64: 8, 512>}]} {
    %c0_i32 = arith.constant 0 : i32
    %0 = arith.cmpi eq, %arg2, %c0_i32 : i32
    %1 = arith.extui %0 : i1 to i32
    %c0_i32_0 = arith.constant 0 : i32
    %2 = arith.cmpi ne, %1, %c0_i32_0 : i32
    scf.if %2 {
      %cst_10 = arith.constant 0.000000e+00 : f32
      %12 = vector.broadcast %cst_10 : f32 to vector<8x512xf32>
      %c0_11 = arith.constant 0 : index
      %c0_12 = arith.constant 0 : index
      %13 = vector.load %arg6[%c0_11, %c0_12] : memref<8x512xf32, #tpu.memory_space<vmem>>, vector<8x512xf32>
      tpu.vector_store %arg6[%c0_11, %c0_12], %12 {strides = array<i32>} : memref<8x512xf32, #tpu.memory_space<vmem>>, vector<8x512xf32>,
    } else {
    }
    %c0 = arith.constant 0 : index
    %c0_1 = arith.constant 0 : index
    %3 = vector.load %arg6[%c0, %c0_1] : memref<8x512xf32, #tpu.memory_space<vmem>>, vector<8x512xf32>
    %c0_2 = arith.constant 0 : index
    %c0_3 = arith.constant 0 : index
    %4 = vector.load %arg3[%c0_2, %c0_3] : memref<8x256xbf16, #tpu.memory_space<vmem>>, vector<8x256xbf16>
    %c0_4 = arith.constant 0 : index
    %c0_5 = arith.constant 0 : index
    %5 = vector.load %arg4[%c0_4, %c0_5] : memref<256x512xbf16, #tpu.memory_space<vmem>>, vector<256x512xbf16>
    %cst = arith.constant dense<0.000000e+00> : vector<8x512xf32>
    %6 = tpu.matmul %4, %5, %cst {dimension_numbers = #tpu.dot_dimension_numbers<[1], [0], [0], [1], [0, 0, 1, 1], [], []>} : vector<8x256xbf16>, vector<256x512xbf16>, vector<8x512xf32> -> vector<8x512xf32>
    %7 = arith.addf %3, %6 : vector<8x512xf32>
    %c0_6 = arith.constant 0 : index
    %c0_7 = arith.constant 0 : index
    %8 = vector.load %arg6[%c0_6, %c0_7] : memref<8x512xf32, #tpu.memory_space<vmem>>, vector<8x512xf32>
    tpu.vector_store %arg6[%c0_6, %c0_7], %7 {strides = array<i32>} : memref<8x512xf32, #tpu.memory_space<vmem>>, vector<8x512xf32>,
    %c0_i32_8 = arith.constant 0 : i32
    %9 = arith.cmpi eq, %arg2, %c0_i32_8 : i32
    %10 = arith.extui %9 : i1 to i32
    %c0_i32_9 = arith.constant 0 : i32
    %11 = arith.cmpi ne, %10, %c0_i32_9 : i32
    scf.if %11 {
      %c0_10 = arith.constant 0 : index
      %c0_11 = arith.constant 0 : index
      %12 = vector.load %arg6[%c0_10, %c0_11] : memref<8x512xf32, #tpu.memory_space<vmem>>, vector<8x512xf32>
      %c0_12 = arith.constant 0 : index
      %c0_13 = arith.constant 0 : index
      %13 = vector.load %arg5[%c0_12, %c0_13] : memref<1x512xf32, #tpu.memory_space<vmem>>, vector<1x512xf32>
      %14 = vector.broadcast %13 : vector<1x512xf32> to vector<8x512xf32>
      %15 = arith.addf %12, %14 : vector<8x512xf32>
      %c0_14 = arith.constant 0 : index
      %c0_15 = arith.constant 0 : index
      %16 = vector.load %arg6[%c0_14, %c0_15] : memref<8x512xf32, #tpu.memory_space<vmem>>, vector<8x512xf32>
      tpu.vector_store %arg6[%c0_14, %c0_15], %15 {strides = array<i32>} : memref<8x512xf32, #tpu.memory_space<vmem>>, vector<8x512xf32>,
    } else {
    }
    return
  }
  func.func @transform_0(%arg0: i32, %arg1: i32, %arg2: i32) -> (i32, i32) {
    %c0_i32 = arith.constant 0 : i32
    return %arg0, %arg2 : i32, i32
  }
  func.func @transform_1(%arg0: i32, %arg1: i32, %arg2: i32) -> (i32, i32) {
    %c0_i32 = arith.constant 0 : i32
    return %arg2, %arg1 : i32, i32
  }
  func.func @transform_2(%arg0: i32, %arg1: i32, %arg2: i32) -> (i32, i32) {
    %c0_i32 = arith.constant 0 : i32
    %c0_i32_0 = arith.constant 0 : i32
    return %c0_i32, %arg1 : i32, i32
  }
  func.func @transform_3(%arg0: i32, %arg1: i32, %arg2: i32) -> (i32, i32) {
    %c0_i32 = arith.constant 0 : i32
    return %arg0, %arg1 : i32, i32
  }
}

module attributes {stable_mosaic.version = 11 : i64} {
  func.func @_mm_fused_kernel(%arg0: i32, %arg1: i32, %arg2: i32, %arg3: memref<8x512xbf16, #tpu.memory_space<vmem>>, %arg4: memref<512x512xbf16, #tpu.memory_space<vmem>>, %arg5: memref<1x512xf32, #tpu.memory_space<vmem>>, %arg6: memref<8x512xf32, #tpu.memory_space<vmem>>, %arg7: memref<8x512xf32, #tpu.memory_space<vmem>>) attributes {dimension_semantics = [#tpu.dimension_semantics<parallel>, #tpu.dimension_semantics<parallel>, #tpu.dimension_semantics<arbitrary>], iteration_bounds = array<i64: 1, 1, 9>, scalar_prefetch = 0 : i64, scratch_operands = 0 : i64, tpu.core_type = #tpu.core_type<tc>, window_params = [{transform_indices = @transform_0, window_bounds = array<i64: 8, 512>}, {transform_indices = @transform_1, window_bounds = array<i64: 512, 512>}, {transform_indices = @transform_2, window_bounds = array<i64: 1, 512>}, {transform_indices = @transform_3, window_bounds = array<i64: 8, 512>}, {transform_indices = @transform_4, window_bounds = array<i64: 8, 512>}]} {
    %c0_i32 = arith.constant 0 : i32
    %0 = arith.cmpi eq, %arg2, %c0_i32 : i32
    %1 = arith.extui %0 : i1 to i32
    %c0_i32_0 = arith.constant 0 : i32
    %2 = arith.cmpi ne, %1, %c0_i32_0 : i32
    scf.if %2 {
      %cst_9 = arith.constant 0.000000e+00 : f32
      %12 = vector.broadcast %cst_9 : f32 to vector<8x512xf32>
      %c0_10 = arith.constant 0 : index
      %c0_11 = arith.constant 0 : index
      %13 = vector.load %arg7[%c0_10, %c0_11] : memref<8x512xf32, #tpu.memory_space<vmem>>, vector<8x512xf32>
      tpu.vector_store %arg7[%c0_10, %c0_11], %12 {strides = array<i32>} : memref<8x512xf32, #tpu.memory_space<vmem>>, vector<8x512xf32>,
    } else {
    }
    %c0 = arith.constant 0 : index
    %c0_1 = arith.constant 0 : index
    %3 = vector.load %arg7[%c0, %c0_1] : memref<8x512xf32, #tpu.memory_space<vmem>>, vector<8x512xf32>
    %c0_2 = arith.constant 0 : index
    %c0_3 = arith.constant 0 : index
    %4 = vector.load %arg3[%c0_2, %c0_3] : memref<8x512xbf16, #tpu.memory_space<vmem>>, vector<8x512xbf16>
    %c0_4 = arith.constant 0 : index
    %c0_5 = arith.constant 0 : index
    %5 = vector.load %arg4[%c0_4, %c0_5] : memref<512x512xbf16, #tpu.memory_space<vmem>>, vector<512x512xbf16>
    %cst = arith.constant dense<0.000000e+00> : vector<8x512xf32>
    %6 = tpu.matmul %4, %5, %cst {dimension_numbers = #tpu.dot_dimension_numbers<[1], [0], [0], [1], [0, 0, 1, 1], [], []>} : vector<8x512xbf16>, vector<512x512xbf16>, vector<8x512xf32> -> vector<8x512xf32>
    %7 = arith.addf %3, %6 : vector<8x512xf32>
    %c0_6 = arith.constant 0 : index
    %c0_7 = arith.constant 0 : index
    %8 = vector.load %arg7[%c0_6, %c0_7] : memref<8x512xf32, #tpu.memory_space<vmem>>, vector<8x512xf32>
    tpu.vector_store %arg7[%c0_6, %c0_7], %7 {strides = array<i32>} : memref<8x512xf32, #tpu.memory_space<vmem>>, vector<8x512xf32>,
    %c8_i32 = arith.constant 8 : i32
    %9 = arith.cmpi eq, %arg2, %c8_i32 : i32
    %10 = arith.extui %9 : i1 to i32
    %c0_i32_8 = arith.constant 0 : i32
    %11 = arith.cmpi ne, %10, %c0_i32_8 : i32
    scf.if %11 {
      %c0_9 = arith.constant 0 : index
      %c0_10 = arith.constant 0 : index
      %12 = vector.load %arg7[%c0_9, %c0_10] : memref<8x512xf32, #tpu.memory_space<vmem>>, vector<8x512xf32>
      %c0_11 = arith.constant 0 : index
      %c0_12 = arith.constant 0 : index
      %13 = vector.load %arg5[%c0_11, %c0_12] : memref<1x512xf32, #tpu.memory_space<vmem>>, vector<1x512xf32>
      %14 = vector.broadcast %13 : vector<1x512xf32> to vector<8x512xf32>
      %15 = arith.addf %12, %14 : vector<8x512xf32>
      %c0_13 = arith.constant 0 : index
      %c0_14 = arith.constant 0 : index
      %16 = vector.load %arg6[%c0_13, %c0_14] : memref<8x512xf32, #tpu.memory_space<vmem>>, vector<8x512xf32>
      %17 = arith.addf %15, %16 : vector<8x512xf32>
      %cst_15 = arith.constant 0.000000e+00 : f32
      %18 = vector.broadcast %cst_15 : f32 to vector<8x512xf32>
      %19 = arith.maximumf %17, %18 : vector<8x512xf32>
      %c0_16 = arith.constant 0 : index
      %c0_17 = arith.constant 0 : index
      %20 = vector.load %arg7[%c0_16, %c0_17] : memref<8x512xf32, #tpu.memory_space<vmem>>, vector<8x512xf32>
      tpu.vector_store %arg7[%c0_16, %c0_17], %19 {strides = array<i32>} : memref<8x512xf32, #tpu.memory_space<vmem>>, vector<8x512xf32>,
    } else {
    }
    return
  }
  func.func @transform_0(%arg0: i32, %arg1: i32, %arg2: i32) -> (i32, i32) {
    %c0_i32 = arith.constant 0 : i32
    return %arg0, %arg2 : i32, i32
  }
  func.func @transform_1(%arg0: i32, %arg1: i32, %arg2: i32) -> (i32, i32) {
    %c0_i32 = arith.constant 0 : i32
    return %arg2, %arg1 : i32, i32
  }
  func.func @transform_2(%arg0: i32, %arg1: i32, %arg2: i32) -> (i32, i32) {
    %c0_i32 = arith.constant 0 : i32
    %c0_i32_0 = arith.constant 0 : i32
    return %c0_i32, %arg1 : i32, i32
  }
  func.func @transform_3(%arg0: i32, %arg1: i32, %arg2: i32) -> (i32, i32) {
    %c0_i32 = arith.constant 0 : i32
    return %arg0, %arg1 : i32, i32
  }
  func.func @transform_4(%arg0: i32, %arg1: i32, %arg2: i32) -> (i32, i32) {
    %c0_i32 = arith.constant 0 : i32
    return %arg0, %arg1 : i32, i32
  }
}

module attributes {stable_mosaic.version = 11 : i64} {
  func.func @_mm_fused_kernel(%arg0: i32, %arg1: i32, %arg2: i32, %arg3: memref<8x512xbf16, #tpu.memory_space<vmem>>, %arg4: memref<512x512xbf16, #tpu.memory_space<vmem>>, %arg5: memref<1x512xf32, #tpu.memory_space<vmem>>, %arg6: memref<8x512xf32, #tpu.memory_space<vmem>>) attributes {dimension_semantics = [#tpu.dimension_semantics<parallel>, #tpu.dimension_semantics<parallel>, #tpu.dimension_semantics<arbitrary>], iteration_bounds = array<i64: 1, 1, 9>, scalar_prefetch = 0 : i64, scratch_operands = 0 : i64, tpu.core_type = #tpu.core_type<tc>, window_params = [{transform_indices = @transform_0, window_bounds = array<i64: 8, 512>}, {transform_indices = @transform_1, window_bounds = array<i64: 512, 512>}, {transform_indices = @transform_2, window_bounds = array<i64: 1, 512>}, {transform_indices = @transform_3, window_bounds = array<i64: 8, 512>}]} {
    %c0_i32 = arith.constant 0 : i32
    %0 = arith.cmpi eq, %arg2, %c0_i32 : i32
    %1 = arith.extui %0 : i1 to i32
    %c0_i32_0 = arith.constant 0 : i32
    %2 = arith.cmpi ne, %1, %c0_i32_0 : i32
    scf.if %2 {
      %cst_9 = arith.constant 0.000000e+00 : f32
      %12 = vector.broadcast %cst_9 : f32 to vector<8x512xf32>
      %c0_10 = arith.constant 0 : index
      %c0_11 = arith.constant 0 : index
      %13 = vector.load %arg6[%c0_10, %c0_11] : memref<8x512xf32, #tpu.memory_space<vmem>>, vector<8x512xf32>
      tpu.vector_store %arg6[%c0_10, %c0_11], %12 {strides = array<i32>} : memref<8x512xf32, #tpu.memory_space<vmem>>, vector<8x512xf32>,
    } else {
    }
    %c0 = arith.constant 0 : index
    %c0_1 = arith.constant 0 : index
    %3 = vector.load %arg6[%c0, %c0_1] : memref<8x512xf32, #tpu.memory_space<vmem>>, vector<8x512xf32>
    %c0_2 = arith.constant 0 : index
    %c0_3 = arith.constant 0 : index
    %4 = vector.load %arg3[%c0_2, %c0_3] : memref<8x512xbf16, #tpu.memory_space<vmem>>, vector<8x512xbf16>
    %c0_4 = arith.constant 0 : index
    %c0_5 = arith.constant 0 : index
    %5 = vector.load %arg4[%c0_4, %c0_5] : memref<512x512xbf16, #tpu.memory_space<vmem>>, vector<512x512xbf16>
    %cst = arith.constant dense<0.000000e+00> : vector<8x512xf32>
    %6 = tpu.matmul %4, %5, %cst {dimension_numbers = #tpu.dot_dimension_numbers<[1], [0], [0], [1], [0, 0, 1, 1], [], []>} : vector<8x512xbf16>, vector<512x512xbf16>, vector<8x512xf32> -> vector<8x512xf32>
    %7 = arith.addf %3, %6 : vector<8x512xf32>
    %c0_6 = arith.constant 0 : index
    %c0_7 = arith.constant 0 : index
    %8 = vector.load %arg6[%c0_6, %c0_7] : memref<8x512xf32, #tpu.memory_space<vmem>>, vector<8x512xf32>
    tpu.vector_store %arg6[%c0_6, %c0_7], %7 {strides = array<i32>} : memref<8x512xf32, #tpu.memory_space<vmem>>, vector<8x512xf32>,
    %c8_i32 = arith.constant 8 : i32
    %9 = arith.cmpi eq, %arg2, %c8_i32 : i32
    %10 = arith.extui %9 : i1 to i32
    %c0_i32_8 = arith.constant 0 : i32
    %11 = arith.cmpi ne, %10, %c0_i32_8 : i32
    scf.if %11 {
      %c0_9 = arith.constant 0 : index
      %c0_10 = arith.constant 0 : index
      %12 = vector.load %arg6[%c0_9, %c0_10] : memref<8x512xf32, #tpu.memory_space<vmem>>, vector<8x512xf32>
      %c0_11 = arith.constant 0 : index
      %c0_12 = arith.constant 0 : index
      %13 = vector.load %arg5[%c0_11, %c0_12] : memref<1x512xf32, #tpu.memory_space<vmem>>, vector<1x512xf32>
      %14 = vector.broadcast %13 : vector<1x512xf32> to vector<8x512xf32>
      %15 = arith.addf %12, %14 : vector<8x512xf32>
      %cst_13 = arith.constant 0.000000e+00 : f32
      %16 = vector.broadcast %cst_13 : f32 to vector<8x512xf32>
      %17 = arith.maximumf %15, %16 : vector<8x512xf32>
      %c0_14 = arith.constant 0 : index
      %c0_15 = arith.constant 0 : index
      %18 = vector.load %arg6[%c0_14, %c0_15] : memref<8x512xf32, #tpu.memory_space<vmem>>, vector<8x512xf32>
      tpu.vector_store %arg6[%c0_14, %c0_15], %17 {strides = array<i32>} : memref<8x512xf32, #tpu.memory_space<vmem>>, vector<8x512xf32>,
    } else {
    }
    return
  }
  func.func @transform_0(%arg0: i32, %arg1: i32, %arg2: i32) -> (i32, i32) {
    %c0_i32 = arith.constant 0 : i32
    return %arg0, %arg2 : i32, i32
  }
  func.func @transform_1(%arg0: i32, %arg1: i32, %arg2: i32) -> (i32, i32) {
    %c0_i32 = arith.constant 0 : i32
    return %arg2, %arg1 : i32, i32
  }
  func.func @transform_2(%arg0: i32, %arg1: i32, %arg2: i32) -> (i32, i32) {
    %c0_i32 = arith.constant 0 : i32
    %c0_i32_0 = arith.constant 0 : i32
    return %c0_i32, %arg1 : i32, i32
  }
  func.func @transform_3(%arg0: i32, %arg1: i32, %arg2: i32) -> (i32, i32) {
    %c0_i32 = arith.constant 0 : i32
    return %arg0, %arg1 : i32, i32
  }
}

module attributes {stable_mosaic.version = 11 : i64} {
  func.func @_mm_fused_kernel(%arg0: i32, %arg1: i32, %arg2: i32, %arg3: memref<8x512xbf16, #tpu.memory_space<vmem>>, %arg4: memref<512x128xbf16, #tpu.memory_space<vmem>>, %arg5: memref<1x128xf32, #tpu.memory_space<vmem>>, %arg6: memref<8x128xf32, #tpu.memory_space<vmem>>) attributes {dimension_semantics = [#tpu.dimension_semantics<parallel>, #tpu.dimension_semantics<parallel>, #tpu.dimension_semantics<arbitrary>], iteration_bounds = array<i64: 1, 1, 1>, scalar_prefetch = 0 : i64, scratch_operands = 0 : i64, tpu.core_type = #tpu.core_type<tc>, window_params = [{transform_indices = @transform_0, window_bounds = array<i64: 8, 512>}, {transform_indices = @transform_1, window_bounds = array<i64: 512, 128>}, {transform_indices = @transform_2, window_bounds = array<i64: 1, 128>}, {transform_indices = @transform_3, window_bounds = array<i64: 8, 128>}]} {
    %c0_i32 = arith.constant 0 : i32
    %0 = arith.cmpi eq, %arg2, %c0_i32 : i32
    %1 = arith.extui %0 : i1 to i32
    %c0_i32_0 = arith.constant 0 : i32
    %2 = arith.cmpi ne, %1, %c0_i32_0 : i32
    scf.if %2 {
      %cst_10 = arith.constant 0.000000e+00 : f32
      %12 = vector.broadcast %cst_10 : f32 to vector<8x128xf32>
      %c0_11 = arith.constant 0 : index
      %c0_12 = arith.constant 0 : index
      %13 = vector.load %arg6[%c0_11, %c0_12] : memref<8x128xf32, #tpu.memory_space<vmem>>, vector<8x128xf32>
      tpu.vector_store %arg6[%c0_11, %c0_12], %12 {strides = array<i32>} : memref<8x128xf32, #tpu.memory_space<vmem>>, vector<8x128xf32>,
    } else {
    }
    %c0 = arith.constant 0 : index
    %c0_1 = arith.constant 0 : index
    %3 = vector.load %arg6[%c0, %c0_1] : memref<8x128xf32, #tpu.memory_space<vmem>>, vector<8x128xf32>
    %c0_2 = arith.constant 0 : index
    %c0_3 = arith.constant 0 : index
    %4 = vector.load %arg3[%c0_2, %c0_3] : memref<8x512xbf16, #tpu.memory_space<vmem>>, vector<8x512xbf16>
    %c0_4 = arith.constant 0 : index
    %c0_5 = arith.constant 0 : index
    %5 = vector.load %arg4[%c0_4, %c0_5] : memref<512x128xbf16, #tpu.memory_space<vmem>>, vector<512x128xbf16>
    %cst = arith.constant dense<0.000000e+00> : vector<8x128xf32>
    %6 = tpu.matmul %4, %5, %cst {dimension_numbers = #tpu.dot_dimension_numbers<[1], [0], [0], [1], [0, 0, 1, 1], [], []>} : vector<8x512xbf16>, vector<512x128xbf16>, vector<8x128xf32> -> vector<8x128xf32>
    %7 = arith.addf %3, %6 : vector<8x128xf32>
    %c0_6 = arith.constant 0 : index
    %c0_7 = arith.constant 0 : index
    %8 = vector.load %arg6[%c0_6, %c0_7] : memref<8x128xf32, #tpu.memory_space<vmem>>, vector<8x128xf32>
    tpu.vector_store %arg6[%c0_6, %c0_7], %7 {strides = array<i32>} : memref<8x128xf32, #tpu.memory_space<vmem>>, vector<8x128xf32>,
    %c0_i32_8 = arith.constant 0 : i32
    %9 = arith.cmpi eq, %arg2, %c0_i32_8 : i32
    %10 = arith.extui %9 : i1 to i32
    %c0_i32_9 = arith.constant 0 : i32
    %11 = arith.cmpi ne, %10, %c0_i32_9 : i32
    scf.if %11 {
      %c0_10 = arith.constant 0 : index
      %c0_11 = arith.constant 0 : index
      %12 = vector.load %arg6[%c0_10, %c0_11] : memref<8x128xf32, #tpu.memory_space<vmem>>, vector<8x128xf32>
      %c0_12 = arith.constant 0 : index
      %c0_13 = arith.constant 0 : index
      %13 = vector.load %arg5[%c0_12, %c0_13] : memref<1x128xf32, #tpu.memory_space<vmem>>, vector<1x128xf32>
      %14 = vector.broadcast %13 : vector<1x128xf32> to vector<8x128xf32>
      %15 = arith.addf %12, %14 : vector<8x128xf32>
      %c0_14 = arith.constant 0 : index
      %c0_15 = arith.constant 0 : index
      %16 = vector.load %arg6[%c0_14, %c0_15] : memref<8x128xf32, #tpu.memory_space<vmem>>, vector<8x128xf32>
      tpu.vector_store %arg6[%c0_14, %c0_15], %15 {strides = array<i32>} : memref<8x128xf32, #tpu.memory_space<vmem>>, vector<8x128xf32>,
    } else {
    }
    return
  }
  func.func @transform_0(%arg0: i32, %arg1: i32, %arg2: i32) -> (i32, i32) {
    %c0_i32 = arith.constant 0 : i32
    return %arg0, %arg2 : i32, i32
  }
  func.func @transform_1(%arg0: i32, %arg1: i32, %arg2: i32) -> (i32, i32) {
    %c0_i32 = arith.constant 0 : i32
    return %arg2, %arg1 : i32, i32
  }
  func.func @transform_2(%arg0: i32, %arg1: i32, %arg2: i32) -> (i32, i32) {
    %c0_i32 = arith.constant 0 : i32
    %c0_i32_0 = arith.constant 0 : i32
    return %c0_i32, %arg1 : i32, i32
  }
  func.func @transform_3(%arg0: i32, %arg1: i32, %arg2: i32) -> (i32, i32) {
    %c0_i32 = arith.constant 0 : i32
    return %arg0, %arg1 : i32, i32
  }
}

</mosaic_0001>

<bundles_post_ra>
// kernel: res18feature_forward.21
= control target key start
LH: loop header
LB: loop body
LE: loop exit
PB: predicated region body
PF: predicated region fallthrough
CT: control target
= control target key end

     0   :  { %s2519_s1 = inlined_call_operand.vmem [shape: bf16[256,128], index: 1, kind: input, shape index: {}]   ;;  %s2520_s0 = inlined_call_operand.vmem [shape: bf16[512,256], index: 0, kind: input, shape index: {}]   ;;  %s2521_s2 = inlined_call_operand.vmem [shape: f32[1,128], index: 2, kind: input, shape index: {}]   ;;  %s2522_s3 = inlined_call_operand.vmem [shape: f32[512,128], index: 3, kind: output, shape index: {}]  }
   0x1   :  { %v1782_v0 = vld [vmem:[%s2519_s1 + $0x38] sm:$0xff]  ;;  %v1781_v2 = vld [vmem:[%s2519_s1 + $0x30] sm:$0xff]  ;;  %v1780_v4 = vld [vmem:[%s2519_s1 + $0x28] sm:$0xff] }
   0x2   :  { %v1790_v1 = vld [vmem:[%s2519_s1 + $0x78] sm:$0xff]  ;;  %658 = vmatpush.bf16.msra.mxu0 %v1782_v0  ;;  %1791 = vmatpush.bf16.msra.mxu2 %v1782_v0  ;;  %v1789_v3 = vld [vmem:[%s2519_s1 + $0x70] sm:$0xff]  ;;  %v1788_v5 = vld [vmem:[%s2519_s1 + $0x68] sm:$0xff] }
   0x3   :  { %827 = vmatpush.bf16.msra.mxu1 %v1790_v1  ;;  %1799 = vmatpush.bf16.msra.mxu3 %v1790_v1  ;;  %v1779_v6 = vld [vmem:[%s2519_s1 + $0x20] sm:$0xff]  ;;  %v1778_v8 = vld [vmem:[%s2519_s1 + $0x18] sm:$0xff]  ;;  %v1777_v10 = vld [vmem:[%s2519_s1 + $0x10] sm:$0xff] }
   0x4   :  { %v1787_v7 = vld [vmem:[%s2519_s1 + $0x60] sm:$0xff]  ;;  %v1786_v9 = vld [vmem:[%s2519_s1 + $0x58] sm:$0xff]  ;;  %v1785_v11 = vld [vmem:[%s2519_s1 + $0x50] sm:$0xff] }
   0x5   :  { %v1776_v12 = vld [vmem:[%s2519_s1 + $0x8] sm:$0xff]  ;;  %v1775_v14 = vld [vmem:[%s2519_s1] sm:$0xff]  ;;  %v1401_v28 = vld [vmem:[%s2520_s0 + $0x10] sm:$0xf] }
   0x6   :  { %659 = vmatpush.bf16.msra.mxu0 %v1781_v2  ;;  %1792 = vmatpush.bf16.msra.mxu2 %v1781_v2  ;;  %v1784_v13 = vld [vmem:[%s2519_s1 + $0x48] sm:$0xff]  ;;  %v1783_v15 = vld [vmem:[%s2519_s1 + $0x40] sm:$0xff]  ;;  %v1714_v29 = vld [vmem:[%s2520_s0 + $0x14] sm:$0xf0] }
   0x7   :  { %828 = vmatpush.bf16.msra.mxu1 %v1789_v3  ;;  %1800 = vmatpush.bf16.msra.mxu3 %v1789_v3  ;;  %v1393_v16 = vld [vmem:[%s2520_s0] sm:$0xf]  ;;  %v1712_v17 = vld [vmem:[%s2520_s0 + $0x4] sm:$0xf0]  ;;  %v1711_v20 = vld [vmem:[%s2520_s0 + $0x4] sm:$0xf]  ;;  %v1402_v36 = vor.u32 %v1714_v29, %v1401_v28 }
   0x8   :  { %v1521_v18 = vld [vmem:[%s2520_s0 + $0x100] sm:$0xf]  ;;  %v1744_v19 = vld [vmem:[%s2520_s0 + $0x104] sm:$0xf0]  ;;  %v1395_v21 = vld [vmem:[%s2520_s0 + $0x8] sm:$0xf0]  ;;  %v1394_v24 = vor.u32 %v1712_v17, %v1393_v16 }
   0x9   :  { %v1743_v22 = vld [vmem:[%s2520_s0 + $0x104] sm:$0xf]  ;;  %v1523_v23 = vld [vmem:[%s2520_s0 + $0x108] sm:$0xf0]  ;;  %v1522_v25 = vor.u32 %v1744_v19, %v1521_v18  ;;  %v1398_v26 = vor.u32 %v1711_v20, %v1395_v21  ;;  %v1529_v30 = vld [vmem:[%s2520_s0 + $0x110] sm:$0xf] }
   0xa   :  { %660 = vmatpush.bf16.msra.mxu0 %v1780_v4  ;;  %1793 = vmatpush.bf16.msra.mxu2 %v1780_v4  ;;  %v1526_v27 = vor.u32 %v1743_v22, %v1523_v23  ;;  %v1746_v31 = vld [vmem:[%s2520_s0 + $0x114] sm:$0xf0]  ;;  %v1713_v32 = vld [vmem:[%s2520_s0 + $0x14] sm:$0xf]  ;;  %v1403_v33 = vld [vmem:[%s2520_s0 + $0x18] sm:$0xf0] }
   0xb   :  { %829 = vmatpush.bf16.msra.mxu1 %v1788_v5  ;;  %1801 = vmatpush.bf16.msra.mxu3 %v1788_v5  ;;  %v1745_v34 = vld [vmem:[%s2520_s0 + $0x114] sm:$0xf]  ;;  %v1531_v35 = vld [vmem:[%s2520_s0 + $0x118] sm:$0xf0]  ;;  %v1530_v37 = vor.u32 %v1746_v31, %v1529_v30  ;;  %v1406_v38 = vor.u32 %v1713_v32, %v1403_v33  ;;  %v1409_v40 = vld [vmem:[%s2520_s0 + $0x20] sm:$0xf] }
   0xc   :  { %v1534_v39 = vor.u32 %v1745_v34, %v1531_v35  ;;  %v1716_v41 = vld [vmem:[%s2520_s0 + $0x24] sm:$0xf0]  ;;  %v1537_v42 = vld [vmem:[%s2520_s0 + $0x120] sm:$0xf]  ;;  %v1715_v44 = vld [vmem:[%s2520_s0 + $0x24] sm:$0xf] }
   0xd   :  { %v1748_v43 = vld [vmem:[%s2520_s0 + $0x124] sm:$0xf0]  ;;  %v1411_v45 = vld [vmem:[%s2520_s0 + $0x28] sm:$0xf0]  ;;  %v1747_v46 = vld [vmem:[%s2520_s0 + $0x124] sm:$0xf]  ;;  %v1410_v48 = vor.u32 %v1716_v41, %v1409_v40 }
   0xe   :  { %661 = vmatpush.bf16.msra.mxu0 %v1779_v6  ;;  %1794 = vmatpush.bf16.msra.mxu2 %v1779_v6  ;;  %v1539_v47 = vld [vmem:[%s2520_s0 + $0x128] sm:$0xf0]  ;;  %v1538_v49 = vor.u32 %v1748_v43, %v1537_v42  ;;  %v1414_v50 = vor.u32 %v1715_v44, %v1411_v45  ;;  %v1417_v52 = vld [vmem:[%s2520_s0 + $0x30] sm:$0xf]  ;;  %v1718_v53 = vld [vmem:[%s2520_s0 + $0x34] sm:$0xf0] }
   0xf   :  { %830 = vmatpush.bf16.msra.mxu1 %v1787_v7  ;;  %1802 = vmatpush.bf16.msra.mxu3 %v1787_v7  ;;  %v1542_v51 = vor.u32 %v1747_v46, %v1539_v47  ;;  %v1545_v54 = vld [vmem:[%s2520_s0 + $0x130] sm:$0xf]  ;;  %v1750_v55 = vld [vmem:[%s2520_s0 + $0x134] sm:$0xf0]  ;;  %v1717_v56 = vld [vmem:[%s2520_s0 + $0x34] sm:$0xf]  ;;  %v1418_v60 = vor.u32 %v1718_v53, %v1417_v52 }
  0x10   :  { %v1419_v57 = vld [vmem:[%s2520_s0 + $0x38] sm:$0xf0]  ;;  %v1749_v58 = vld [vmem:[%s2520_s0 + $0x134] sm:$0xf]  ;;  %v1546_v61 = vor.u32 %v1750_v55, %v1545_v54  ;;  %v1425_v0 = vld [vmem:[%s2520_s0 + $0x40] sm:$0xf] }
  0x11   :  { %v1547_v59 = vld [vmem:[%s2520_s0 + $0x138] sm:$0xf0]  ;;  %v1422_v62 = vor.u32 %v1717_v56, %v1419_v57  ;;  %v1720_v1 = vld [vmem:[%s2520_s0 + $0x44] sm:$0xf0]  ;;  %v1553_v2 = vld [vmem:[%s2520_s0 + $0x140] sm:$0xf] }
  0x12   :  { %662 = vmatpush.bf16.msra.mxu0 %v1778_v8  ;;  %1795 = vmatpush.bf16.msra.mxu2 %v1778_v8  ;;  %v1550_v63 = vor.u32 %v1749_v58, %v1547_v59  ;;  %v1752_v3 = vld [vmem:[%s2520_s0 + $0x144] sm:$0xf0]  ;;  %v1719_v4 = vld [vmem:[%s2520_s0 + $0x44] sm:$0xf]  ;;  %v1427_v5 = vld [vmem:[%s2520_s0 + $0x48] sm:$0xf0]  ;;  %v1426_v8 = vor.u32 %v1720_v1, %v1425_v0 }
  0x13   :  { %831 = vmatpush.bf16.msra.mxu1 %v1786_v9  ;;  %1803 = vmatpush.bf16.msra.mxu3 %v1786_v9  ;;  %v1751_v6 = vld [vmem:[%s2520_s0 + $0x144] sm:$0xf]  ;;  %v1555_v7 = vld [vmem:[%s2520_s0 + $0x148] sm:$0xf0]  ;;  %v1554_v9 = vor.u32 %v1752_v3, %v1553_v2  ;;  %v1721_v16 = vld [vmem:[%s2520_s0 + $0x54] sm:$0xf] }
  0x14   :  { %v1435_v17 = vld [vmem:[%s2520_s0 + $0x58] sm:$0xf0]  ;;  %v1753_v18 = vld [vmem:[%s2520_s0 + $0x154] sm:$0xf]  ;;  %v1723_v28 = vld [vmem:[%s2520_s0 + $0x64] sm:$0xf] }
  0x15   :  { %v1563_v19 = vld [vmem:[%s2520_s0 + $0x158] sm:$0xf0]  ;;  %v1438_v22 = vor.u32 %v1721_v16, %v1435_v17  ;;  %v1443_v29 = vld [vmem:[%s2520_s0 + $0x68] sm:$0xf0]  ;;  %v1755_v30 = vld [vmem:[%s2520_s0 + $0x164] sm:$0xf] }
  0x16   :  { %663 = vmatpush.bf16.msra.mxu0 %v1777_v10  ;;  %1796 = vmatpush.bf16.msra.mxu2 %v1777_v10  ;;  %v1430_v10 = vor.u32 %v1719_v4, %v1427_v5  ;;  %v1566_v23 = vor.u32 %v1753_v18, %v1563_v19  ;;  %v1571_v31 = vld [vmem:[%s2520_s0 + $0x168] sm:$0xf0]  ;;  %v1446_v34 = vor.u32 %v1723_v28, %v1443_v29  ;;  %v1725_v40 = vld [vmem:[%s2520_s0 + $0x74] sm:$0xf]  ;;  %v1451_v41 = vld [vmem:[%s2520_s0 + $0x78] sm:$0xf0] }
  0x17   :  { %832 = vmatpush.bf16.msra.mxu1 %v1785_v11  ;;  %1804 = vmatpush.bf16.msra.mxu3 %v1785_v11  ;;  %v1558_v11 = vor.u32 %v1751_v6, %v1555_v7  ;;  %v1574_v35 = vor.u32 %v1755_v30, %v1571_v31  ;;  %v1757_v42 = vld [vmem:[%s2520_s0 + $0x174] sm:$0xf]  ;;  %v1579_v43 = vld [vmem:[%s2520_s0 + $0x178] sm:$0xf0]  ;;  %v1454_v46 = vor.u32 %v1725_v40, %v1451_v41  ;;  %v1727_v52 = vld [vmem:[%s2520_s0 + $0x84] sm:$0xf] }
  0x18   :  { %v1582_v47 = vor.u32 %v1757_v42, %v1579_v43  ;;  %v1459_v53 = vld [vmem:[%s2520_s0 + $0x88] sm:$0xf0]  ;;  %v1759_v54 = vld [vmem:[%s2520_s0 + $0x184] sm:$0xf]  ;;  %v1595_v16 = vld [vmem:[%s2520_s0 + $0x198] sm:$0xf0] }
  0x19   :  { %v1587_v55 = vld [vmem:[%s2520_s0 + $0x188] sm:$0xf0]  ;;  %v1462_v59 = vor.u32 %v1727_v52, %v1459_v53  ;;  %v1473_v40 = vld [vmem:[%s2520_s0 + $0xa0] sm:$0xf]  ;;  %v1732_v41 = vld [vmem:[%s2520_s0 + $0xa4] sm:$0xf0] }
  0x1a   :  { %664 = vmatpush.bf16.msra.mxu0 %v1776_v12  ;;  %1797 = vmatpush.bf16.msra.mxu2 %v1776_v12  ;;  %v1433_v12 = vld [vmem:[%s2520_s0 + $0x50] sm:$0xf]  ;;  %v1601_v43 = vld [vmem:[%s2520_s0 + $0x1a0] sm:$0xf]  ;;  %v1474_v53 = vor.u32 %v1732_v41, %v1473_v40 }
  0x1b   :  { %833 = vmatpush.bf16.msra.mxu1 %v1784_v13  ;;  %1805 = vmatpush.bf16.msra.mxu3 %v1784_v13  ;;  %v1722_v13 = vld [vmem:[%s2520_s0 + $0x54] sm:$0xf0]  ;;  %v1489_v41 = vld [vmem:[%s2520_s0 + $0xc0] sm:$0xf] }
  0x1c   :  { %v1434_v20 = vor.u32 %v1722_v13, %v1433_v12  ;;  %v1762_v12 = vld [vmem:[%s2520_s0 + $0x194] sm:$0xf0]  ;;  %v1729_v13 = vld [vmem:[%s2520_s0 + $0x94] sm:$0xf] }
  0x1e   :  { %665 = vmatpush.bf16.msra.mxu0 %v1775_v14  ;;  %1798 = vmatpush.bf16.msra.mxu2 %v1775_v14  ;;  %v1561_v14 = vld [vmem:[%s2520_s0 + $0x150] sm:$0xf] }
  0x1f   :  { %834 = vmatpush.bf16.msra.mxu1 %v1783_v15  ;;  %1806 = vmatpush.bf16.msra.mxu3 %v1783_v15  ;;  %v1754_v15 = vld [vmem:[%s2520_s0 + $0x154] sm:$0xf0] }
  0x20   :  { %v1562_v21 = vor.u32 %v1754_v15, %v1561_v14  ;;  %v1467_v14 = vld [vmem:[%s2520_s0 + $0x98] sm:$0xf0]  ;;  %v1761_v15 = vld [vmem:[%s2520_s0 + $0x194] sm:$0xf] }
  0x21   :  { %666 = vmatmul.bf16.vlgmr.msra.gmra.mxu0 %v1394_v24  ;;  %746 = vmatmul.bf16.vlgmr.msra.gmra.mxu2 %v1522_v25  ;;  %v1441_v24 = vld [vmem:[%s2520_s0 + $0x60] sm:$0xf]  ;;  %v1724_v25 = vld [vmem:[%s2520_s0 + $0x64] sm:$0xf0] }
  0x22   :  { %835 = vmatmul.bf16.vlgmr.msra.gmra.mxu1 %v1398_v26  ;;  %915 = vmatmul.bf16.vlgmr.msra.gmra.mxu3 %v1526_v27  ;;  %v1569_v26 = vld [vmem:[%s2520_s0 + $0x160] sm:$0xf]  ;;  %v1756_v27 = vld [vmem:[%s2520_s0 + $0x164] sm:$0xf0]  ;;  %v1442_v32 = vor.u32 %v1724_v25, %v1441_v24 }
  0x23   :  { %v1570_v33 = vor.u32 %v1756_v27, %v1569_v26  ;;  %v1470_v26 = vor.u32 %v1729_v13, %v1467_v14  ;;  %v1598_v27 = vor.u32 %v1761_v15, %v1595_v16  ;;  %v1766_v13 = vld [vmem:[%s2520_s0 + $0x1b4] sm:$0xf0]  ;;  %v1733_v14 = vld [vmem:[%s2520_s0 + $0xb4] sm:$0xf]  ;;  %v1483_v15 = vld [vmem:[%s2520_s0 + $0xb8] sm:$0xf0] }
  0x24   :  { %v1765_v16 = vld [vmem:[%s2520_s0 + $0x1b4] sm:$0xf] }
  0x31   :  { %671 = vmatmul.bf16.gmra.mxu0 %v1402_v36  ;;  %751 = vmatmul.bf16.gmra.mxu2 %v1530_v37  ;;  %v1449_v36 = vld [vmem:[%s2520_s0 + $0x70] sm:$0xf]  ;;  %v1726_v37 = vld [vmem:[%s2520_s0 + $0x74] sm:$0xf0] }
  0x32   :  { %840 = vmatmul.bf16.gmra.mxu1 %v1406_v38  ;;  %920 = vmatmul.bf16.gmra.mxu3 %v1534_v39  ;;  %v1577_v38 = vld [vmem:[%s2520_s0 + $0x170] sm:$0xf]  ;;  %v1758_v39 = vld [vmem:[%s2520_s0 + $0x174] sm:$0xf0]  ;;  %v1450_v44 = vor.u32 %v1726_v37, %v1449_v36 }
  0x33   :  { %v1578_v45 = vor.u32 %v1758_v39, %v1577_v38 }
  0x41   :  { %676 = vmatmul.bf16.gmra.mxu0 %v1410_v48  ;;  %756 = vmatmul.bf16.gmra.mxu2 %v1538_v49  ;;  %v1457_v48 = vld [vmem:[%s2520_s0 + $0x80] sm:$0xf]  ;;  %v1728_v49 = vld [vmem:[%s2520_s0 + $0x84] sm:$0xf0] }
  0x42   :  { %845 = vmatmul.bf16.gmra.mxu1 %v1414_v50  ;;  %925 = vmatmul.bf16.gmra.mxu3 %v1542_v51  ;;  %v1585_v50 = vld [vmem:[%s2520_s0 + $0x180] sm:$0xf]  ;;  %v1760_v51 = vld [vmem:[%s2520_s0 + $0x184] sm:$0xf0]  ;;  %v1458_v56 = vor.u32 %v1728_v49, %v1457_v48  ;;  %v1603_v48 = vld [vmem:[%s2520_s0 + $0x1a8] sm:$0xf0] }
  0x43   :  { %v1586_v57 = vor.u32 %v1760_v51, %v1585_v50 }
  0x51   :  { %681 = vmatmul.bf16.gmra.mxu0 %v1418_v60  ;;  %761 = vmatmul.bf16.gmra.mxu2 %v1546_v61  ;;  %v1590_v60 = vor.u32 %v1759_v54, %v1587_v55 }
  0x52   :  { %850 = vmatmul.bf16.gmra.mxu1 %v1422_v62  ;;  %930 = vmatmul.bf16.gmra.mxu3 %v1550_v63  ;;  %v2097_v63 = vld [vmem:[%s2521_s2] ss:$0 sm:$0xff] }
  0x61   :  { %686 = vmatmul.bf16.gmra.mxu0 %v1426_v8  ;;  %766 = vmatmul.bf16.gmra.mxu2 %v1554_v9  ;;  %v1465_v8 = vld [vmem:[%s2520_s0 + $0x90] sm:$0xf]  ;;  %v1730_v9 = vld [vmem:[%s2520_s0 + $0x94] sm:$0xf0] }
  0x62   :  { %855 = vmatmul.bf16.gmra.mxu1 %v1430_v10  ;;  %935 = vmatmul.bf16.gmra.mxu3 %v1558_v11  ;;  %v1593_v11 = vld [vmem:[%s2520_s0 + $0x190] sm:$0xf] }
  0x71   :  { %691 = vmatmul.bf16.gmra.mxu0 %v1434_v20  ;;  %771 = vmatmul.bf16.gmra.mxu2 %v1562_v21  ;;  %v1466_v21 = vor.u32 %v1730_v9, %v1465_v8  ;;  %v1481_v9 = vld [vmem:[%s2520_s0 + $0xb0] sm:$0xf] }
  0x72   :  { %860 = vmatmul.bf16.gmra.mxu1 %v1438_v22  ;;  %940 = vmatmul.bf16.gmra.mxu3 %v1566_v23  ;;  %v1594_v22 = vor.u32 %v1762_v12, %v1593_v11  ;;  %v1609_v12 = vld [vmem:[%s2520_s0 + $0x1b0] sm:$0xf] }
  0x81   :  { %696 = vmatmul.bf16.gmra.mxu0 %v1442_v32  ;;  %776 = vmatmul.bf16.gmra.mxu2 %v1570_v33 }
  0x82   :  { %865 = vmatmul.bf16.gmra.mxu1 %v1446_v34  ;;  %945 = vmatmul.bf16.gmra.mxu3 %v1574_v35 }
  0x91   :  { %701 = vmatmul.bf16.gmra.mxu0 %v1450_v44  ;;  %781 = vmatmul.bf16.gmra.mxu2 %v1578_v45  ;;  %v1764_v44 = vld [vmem:[%s2520_s0 + $0x1a4] sm:$0xf0]  ;;  %v1731_v45 = vld [vmem:[%s2520_s0 + $0xa4] sm:$0xf] }
  0x92   :  { %870 = vmatmul.bf16.gmra.mxu1 %v1454_v46  ;;  %950 = vmatmul.bf16.gmra.mxu3 %v1582_v47  ;;  %v1475_v46 = vld [vmem:[%s2520_s0 + $0xa8] sm:$0xf0]  ;;  %v1763_v47 = vld [vmem:[%s2520_s0 + $0x1a4] sm:$0xf]  ;;  %v1602_v54 = vor.u32 %v1764_v44, %v1601_v43  ;;  %v1617_v44 = vld [vmem:[%s2520_s0 + $0x1c0] sm:$0xf] }
  0x9e   :  { %v667_v58 = vpop.f32.mrf.mxu0 }
  0x9f   :  { %v836_v61 = vpop.f32.mrf.mxu1 }
  0xa0   :  { %v837_v62 = vadd.f32 %v836_v61, %v667_v58  ;;  %v1478_v58 = vor.u32 %v1731_v45, %v1475_v46  ;;  %v1768_v45 = vld [vmem:[%s2520_s0 + $0x1c4] sm:$0xf0]  ;;  %v1735_v46 = vld [vmem:[%s2520_s0 + $0xc4] sm:$0xf] }
  0xa1   :  { %706 = vmatmul.bf16.gmra.mxu0 %v1458_v56  ;;  %786 = vmatmul.bf16.gmra.mxu2 %v1586_v57 }
  0xa2   :  { %875 = vmatmul.bf16.gmra.mxu1 %v1462_v59  ;;  %955 = vmatmul.bf16.gmra.mxu3 %v1590_v60  ;;  %v1195_v0 = vadd.f32 %v2097_v63, %v837_v62  ;;  %v1606_v59 = vor.u32 %v1763_v47, %v1603_v48  ;;  %v1491_v47 = vld [vmem:[%s2520_s0 + $0xc8] sm:$0xf0]  ;;  %v1767_v48 = vld [vmem:[%s2520_s0 + $0x1c4] sm:$0xf] }
  0xa4   :  { %v747_v1 = vpop.f32.mrf.mxu2  ;;  %v1259_v3 = vmax.f32 %v1195_v0, 0.0 }
  0xa5   :  { %v916_v2 = vpop.f32.mrf.mxu3 }
  0xa6   :  { %v917_v4 = vadd.f32 %v916_v2, %v747_v1  ;;  %v669_v5 = vpop.f32.mrf.mxu0  ;;  %1323 = vst [vmem:[%s2522_s3] sm:$0xff] %v1259_v3 }
  0xa7   :  { %v838_v6 = vpop.f32.mrf.mxu1 }
  0xa8   :  { %v839_v7 = vadd.f32 %v838_v6, %v669_v5  ;;  %v1227_v10 = vadd.f32 %v2097_v63, %v917_v4 }
  0xaa   :  { %v1291_v17 = vmax.f32 %v1227_v10, 0.0  ;;  %v1196_v18 = vadd.f32 %v2097_v63, %v839_v7  ;;  %v1734_v10 = vld [vmem:[%s2520_s0 + $0xb4] sm:$0xf0] }
  0xac   :  { %v749_v19 = vpop.f32.mrf.mxu2  ;;  %1355 = vst [vmem:[%s2522_s3 + $0x100] sm:$0xff] %v1291_v17  ;;  %v1260_v23 = vmax.f32 %v1196_v18, 0.0  ;;  %v1611_v17 = vld [vmem:[%s2520_s0 + $0x1b8] sm:$0xf0] }
  0xad   :  { %v918_v20 = vpop.f32.mrf.mxu3 }
  0xae   :  { %v919_v24 = vadd.f32 %v918_v20, %v749_v19  ;;  %v672_v25 = vpop.f32.mrf.mxu0  ;;  %1324 = vst [vmem:[%s2522_s3 + $0x8] sm:$0xff] %v1260_v23  ;;  %v1610_v23 = vor.u32 %v1766_v13, %v1609_v12  ;;  %v1625_v13 = vld [vmem:[%s2520_s0 + $0x1d0] sm:$0xf] }
  0xaf   :  { %v841_v28 = vpop.f32.mrf.mxu1 }
  0xb0   :  { %v842_v29 = vadd.f32 %v841_v28, %v672_v25  ;;  %v1228_v30 = vadd.f32 %v2097_v63, %v919_v24  ;;  %v1614_v28 = vor.u32 %v1765_v16, %v1611_v17  ;;  %v1499_v16 = vld [vmem:[%s2520_s0 + $0xd8] sm:$0xf0]  ;;  %v1769_v17 = vld [vmem:[%s2520_s0 + $0x1d4] sm:$0xf] }
  0xb1   :  { %711 = vmatmul.bf16.gmra.mxu0 %v1466_v21  ;;  %791 = vmatmul.bf16.gmra.mxu2 %v1594_v22  ;;  %v1482_v22 = vor.u32 %v1734_v10, %v1481_v9  ;;  %v1497_v10 = vld [vmem:[%s2520_s0 + $0xd0] sm:$0xf] }
  0xb2   :  { %880 = vmatmul.bf16.gmra.mxu1 %v1470_v26  ;;  %960 = vmatmul.bf16.gmra.mxu3 %v1598_v27  ;;  %v1292_v31 = vmax.f32 %v1228_v30, 0.0  ;;  %v1197_v32 = vadd.f32 %v2097_v63, %v842_v29  ;;  %v1486_v27 = vor.u32 %v1733_v14, %v1483_v15  ;;  %v1770_v14 = vld [vmem:[%s2520_s0 + $0x1d4] sm:$0xf0]  ;;  %v1737_v15 = vld [vmem:[%s2520_s0 + $0xd4] sm:$0xf] }
  0xb4   :  { %v752_v33 = vpop.f32.mrf.mxu2  ;;  %1356 = vst [vmem:[%s2522_s3 + $0x108] sm:$0xff] %v1292_v31  ;;  %v1261_v35 = vmax.f32 %v1197_v32, 0.0 }
  0xb5   :  { %v921_v34 = vpop.f32.mrf.mxu3 }
  0xb6   :  { %v922_v36 = vadd.f32 %v921_v34, %v752_v33  ;;  %v674_v37 = vpop.f32.mrf.mxu0  ;;  %1325 = vst [vmem:[%s2522_s3 + $0x10] sm:$0xff] %v1261_v35 }
  0xb7   :  { %v843_v38 = vpop.f32.mrf.mxu1 }
  0xb8   :  { %v844_v39 = vadd.f32 %v843_v38, %v674_v37  ;;  %v1229_v42 = vadd.f32 %v2097_v63, %v922_v36 }
  0xba   :  { %v1293_v49 = vmax.f32 %v1229_v42, 0.0  ;;  %v1198_v50 = vadd.f32 %v2097_v63, %v844_v39  ;;  %v1736_v42 = vld [vmem:[%s2520_s0 + $0xc4] sm:$0xf0] }
  0xbc   :  { %v754_v51 = vpop.f32.mrf.mxu2  ;;  %1357 = vst [vmem:[%s2522_s3 + $0x110] sm:$0xff] %v1293_v49  ;;  %v1262_v55 = vmax.f32 %v1198_v50, 0.0  ;;  %v1619_v49 = vld [vmem:[%s2520_s0 + $0x1c8] sm:$0xf0] }
  0xbd   :  { %v923_v52 = vpop.f32.mrf.mxu3 }
  0xbe   :  { %v924_v56 = vadd.f32 %v923_v52, %v754_v51  ;;  %v677_v57 = vpop.f32.mrf.mxu0  ;;  %1326 = vst [vmem:[%s2522_s3 + $0x18] sm:$0xff] %v1262_v55  ;;  %v1618_v55 = vor.u32 %v1768_v45, %v1617_v44  ;;  %v1633_v45 = vld [vmem:[%s2520_s0 + $0x1e0] sm:$0xf] }
  0xbf   :  { %v846_v60 = vpop.f32.mrf.mxu1 }
  0xc0   :  { %v847_v61 = vadd.f32 %v846_v60, %v677_v57  ;;  %v1230_v62 = vadd.f32 %v2097_v63, %v924_v56  ;;  %v1622_v60 = vor.u32 %v1767_v48, %v1619_v49  ;;  %v1507_v48 = vld [vmem:[%s2520_s0 + $0xe8] sm:$0xf0]  ;;  %v1771_v49 = vld [vmem:[%s2520_s0 + $0x1e4] sm:$0xf] }
  0xc1   :  { %716 = vmatmul.bf16.gmra.mxu0 %v1474_v53  ;;  %796 = vmatmul.bf16.gmra.mxu2 %v1602_v54  ;;  %v1490_v54 = vor.u32 %v1736_v42, %v1489_v41  ;;  %v1505_v42 = vld [vmem:[%s2520_s0 + $0xe0] sm:$0xf] }
  0xc2   :  { %885 = vmatmul.bf16.gmra.mxu1 %v1478_v58  ;;  %965 = vmatmul.bf16.gmra.mxu3 %v1606_v59  ;;  %v1294_v0 = vmax.f32 %v1230_v62, 0.0  ;;  %v1199_v1 = vadd.f32 %v2097_v63, %v847_v61  ;;  %v1494_v59 = vor.u32 %v1735_v46, %v1491_v47  ;;  %v1772_v46 = vld [vmem:[%s2520_s0 + $0x1e4] sm:$0xf0]  ;;  %v1739_v47 = vld [vmem:[%s2520_s0 + $0xe4] sm:$0xf] }
  0xc4   :  { %v757_v2 = vpop.f32.mrf.mxu2  ;;  %1358 = vst [vmem:[%s2522_s3 + $0x118] sm:$0xff] %v1294_v0  ;;  %v1263_v4 = vmax.f32 %v1199_v1, 0.0 }
  0xc5   :  { %v926_v3 = vpop.f32.mrf.mxu3 }
  0xc6   :  { %v927_v5 = vadd.f32 %v926_v3, %v757_v2  ;;  %v679_v6 = vpop.f32.mrf.mxu0  ;;  %1327 = vst [vmem:[%s2522_s3 + $0x20] sm:$0xff] %v1263_v4 }
  0xc7   :  { %v848_v7 = vpop.f32.mrf.mxu1 }
  0xc8   :  { %v849_v8 = vadd.f32 %v848_v7, %v679_v6  ;;  %v1231_v11 = vadd.f32 %v2097_v63, %v927_v5 }
  0xca   :  { %v1295_v18 = vmax.f32 %v1231_v11, 0.0  ;;  %v1200_v19 = vadd.f32 %v2097_v63, %v849_v8  ;;  %v1738_v11 = vld [vmem:[%s2520_s0 + $0xd4] sm:$0xf0] }
  0xcc   :  { %v759_v20 = vpop.f32.mrf.mxu2  ;;  %1359 = vst [vmem:[%s2522_s3 + $0x120] sm:$0xff] %v1295_v18  ;;  %v1264_v24 = vmax.f32 %v1200_v19, 0.0  ;;  %v1627_v18 = vld [vmem:[%s2520_s0 + $0x1d8] sm:$0xf0] }
  0xcd   :  { %v928_v21 = vpop.f32.mrf.mxu3 }
  0xce   :  { %v929_v25 = vadd.f32 %v928_v21, %v759_v20  ;;  %v682_v26 = vpop.f32.mrf.mxu0  ;;  %1328 = vst [vmem:[%s2522_s3 + $0x28] sm:$0xff] %v1264_v24  ;;  %v1626_v24 = vor.u32 %v1770_v14, %v1625_v13  ;;  %v1641_v14 = vld [vmem:[%s2520_s0 + $0x1f0] sm:$0xf] }
  0xcf   :  { %v851_v29 = vpop.f32.mrf.mxu1 }
  0xd0   :  { %v852_v30 = vadd.f32 %v851_v29, %v682_v26  ;;  %v1232_v31 = vadd.f32 %v2097_v63, %v929_v25  ;;  %v1630_v29 = vor.u32 %v1769_v17, %v1627_v18  ;;  %v1515_v17 = vld [vmem:[%s2520_s0 + $0xf8] sm:$0xf0]  ;;  %v1773_v18 = vld [vmem:[%s2520_s0 + $0x1f4] sm:$0xf] }
  0xd1   :  { %721 = vmatmul.bf16.gmra.mxu0 %v1482_v22  ;;  %801 = vmatmul.bf16.gmra.mxu2 %v1610_v23  ;;  %v1498_v23 = vor.u32 %v1738_v11, %v1497_v10  ;;  %v1513_v11 = vld [vmem:[%s2520_s0 + $0xf0] sm:$0xf] }
  0xd2   :  { %890 = vmatmul.bf16.gmra.mxu1 %v1486_v27  ;;  %970 = vmatmul.bf16.gmra.mxu3 %v1614_v28  ;;  %v1296_v32 = vmax.f32 %v1232_v31, 0.0  ;;  %v1201_v33 = vadd.f32 %v2097_v63, %v852_v30  ;;  %v1502_v28 = vor.u32 %v1737_v15, %v1499_v16  ;;  %v1774_v15 = vld [vmem:[%s2520_s0 + $0x1f4] sm:$0xf0]  ;;  %v1741_v16 = vld [vmem:[%s2520_s0 + $0xf4] sm:$0xf] }
  0xd4   :  { %v762_v34 = vpop.f32.mrf.mxu2  ;;  %1360 = vst [vmem:[%s2522_s3 + $0x128] sm:$0xff] %v1296_v32  ;;  %v1265_v36 = vmax.f32 %v1201_v33, 0.0 }
  0xd5   :  { %v931_v35 = vpop.f32.mrf.mxu3 }
  0xd6   :  { %v932_v37 = vadd.f32 %v931_v35, %v762_v34  ;;  %v684_v38 = vpop.f32.mrf.mxu0  ;;  %1329 = vst [vmem:[%s2522_s3 + $0x30] sm:$0xff] %v1265_v36 }
  0xd7   :  { %v853_v39 = vpop.f32.mrf.mxu1 }
  0xd8   :  { %v854_v40 = vadd.f32 %v853_v39, %v684_v38  ;;  %v1233_v43 = vadd.f32 %v2097_v63, %v932_v37 }
  0xda   :  { %v1297_v50 = vmax.f32 %v1233_v43, 0.0  ;;  %v1202_v51 = vadd.f32 %v2097_v63, %v854_v40  ;;  %v1740_v43 = vld [vmem:[%s2520_s0 + $0xe4] sm:$0xf0] }
  0xdc   :  { %v764_v52 = vpop.f32.mrf.mxu2  ;;  %1361 = vst [vmem:[%s2522_s3 + $0x130] sm:$0xff] %v1297_v50  ;;  %v1266_v56 = vmax.f32 %v1202_v51, 0.0  ;;  %v1635_v50 = vld [vmem:[%s2520_s0 + $0x1e8] sm:$0xf0] }
  0xdd   :  { %v933_v53 = vpop.f32.mrf.mxu3 }
  0xde   :  { %v934_v57 = vadd.f32 %v933_v53, %v764_v52  ;;  %v687_v58 = vpop.f32.mrf.mxu0  ;;  %1330 = vst [vmem:[%s2522_s3 + $0x38] sm:$0xff] %v1266_v56  ;;  %v1634_v56 = vor.u32 %v1772_v46, %v1633_v45 }
  0xdf   :  { %v856_v61 = vpop.f32.mrf.mxu1 }
  0xe0   :  { %v857_v62 = vadd.f32 %v856_v61, %v687_v58  ;;  %v1234_v0 = vadd.f32 %v2097_v63, %v934_v57  ;;  %v1638_v61 = vor.u32 %v1771_v49, %v1635_v50 }
  0xe1   :  { %726 = vmatmul.bf16.gmra.mxu0 %v1490_v54  ;;  %806 = vmatmul.bf16.gmra.mxu2 %v1618_v55  ;;  %v1506_v55 = vor.u32 %v1740_v43, %v1505_v42 }
  0xe2   :  { %895 = vmatmul.bf16.gmra.mxu1 %v1494_v59  ;;  %975 = vmatmul.bf16.gmra.mxu3 %v1622_v60  ;;  %v1298_v1 = vmax.f32 %v1234_v0, 0.0  ;;  %v1203_v2 = vadd.f32 %v2097_v63, %v857_v62  ;;  %v1510_v60 = vor.u32 %v1739_v47, %v1507_v48 }
  0xe4   :  { %v767_v3 = vpop.f32.mrf.mxu2  ;;  %1362 = vst [vmem:[%s2522_s3 + $0x138] sm:$0xff] %v1298_v1  ;;  %v1267_v5 = vmax.f32 %v1203_v2, 0.0 }
  0xe5   :  { %v936_v4 = vpop.f32.mrf.mxu3 }
  0xe6   :  { %v937_v6 = vadd.f32 %v936_v4, %v767_v3  ;;  %v689_v7 = vpop.f32.mrf.mxu0  ;;  %1331 = vst [vmem:[%s2522_s3 + $0x40] sm:$0xff] %v1267_v5 }
  0xe7   :  { %v858_v8 = vpop.f32.mrf.mxu1 }
  0xe8   :  { %v859_v9 = vadd.f32 %v858_v8, %v689_v7  ;;  %v1235_v12 = vadd.f32 %v2097_v63, %v937_v6 }
  0xea   :  { %v1299_v19 = vmax.f32 %v1235_v12, 0.0  ;;  %v1204_v20 = vadd.f32 %v2097_v63, %v859_v9  ;;  %v1742_v12 = vld [vmem:[%s2520_s0 + $0xf4] sm:$0xf0] }
  0xec   :  { %v769_v21 = vpop.f32.mrf.mxu2  ;;  %1363 = vst [vmem:[%s2522_s3 + $0x140] sm:$0xff] %v1299_v19  ;;  %v1268_v25 = vmax.f32 %v1204_v20, 0.0  ;;  %v1643_v19 = vld [vmem:[%s2520_s0 + $0x1f8] sm:$0xf0] }
  0xed   :  { %v938_v22 = vpop.f32.mrf.mxu3 }
  0xee   :  { %v939_v26 = vadd.f32 %v938_v22, %v769_v21  ;;  %v692_v27 = vpop.f32.mrf.mxu0  ;;  %1332 = vst [vmem:[%s2522_s3 + $0x48] sm:$0xff] %v1268_v25  ;;  %v1642_v25 = vor.u32 %v1774_v15, %v1641_v14 }
  0xef   :  { %v861_v30 = vpop.f32.mrf.mxu1 }
  0xf0   :  { %v862_v31 = vadd.f32 %v861_v30, %v692_v27  ;;  %v1236_v32 = vadd.f32 %v2097_v63, %v939_v26  ;;  %v1646_v30 = vor.u32 %v1773_v18, %v1643_v19 }
  0xf1   :  { %731 = vmatmul.bf16.gmra.mxu0 %v1498_v23  ;;  %811 = vmatmul.bf16.gmra.mxu2 %v1626_v24  ;;  %v1514_v24 = vor.u32 %v1742_v12, %v1513_v11 }
  0xf2   :  { %900 = vmatmul.bf16.gmra.mxu1 %v1502_v28  ;;  %980 = vmatmul.bf16.gmra.mxu3 %v1630_v29  ;;  %v1300_v33 = vmax.f32 %v1236_v32, 0.0  ;;  %v1205_v34 = vadd.f32 %v2097_v63, %v862_v31  ;;  %v1518_v29 = vor.u32 %v1741_v16, %v1515_v17 }
  0xf4   :  { %v772_v35 = vpop.f32.mrf.mxu2  ;;  %1364 = vst [vmem:[%s2522_s3 + $0x148] sm:$0xff] %v1300_v33  ;;  %v1269_v37 = vmax.f32 %v1205_v34, 0.0 }
  0xf5   :  { %v941_v36 = vpop.f32.mrf.mxu3 }
  0xf6   :  { %v942_v38 = vadd.f32 %v941_v36, %v772_v35  ;;  %v694_v39 = vpop.f32.mrf.mxu0  ;;  %1333 = vst [vmem:[%s2522_s3 + $0x50] sm:$0xff] %v1269_v37 }
  0xf7   :  { %v863_v40 = vpop.f32.mrf.mxu1 }
  0xf8   :  { %v864_v41 = vadd.f32 %v863_v40, %v694_v39  ;;  %v1237_v44 = vadd.f32 %v2097_v63, %v942_v38 }
  0xfa   :  { %v1301_v51 = vmax.f32 %v1237_v44, 0.0  ;;  %v1206_v52 = vadd.f32 %v2097_v63, %v864_v41 }
  0xfc   :  { %v774_v53 = vpop.f32.mrf.mxu2  ;;  %1365 = vst [vmem:[%s2522_s3 + $0x150] sm:$0xff] %v1301_v51  ;;  %v1270_v57 = vmax.f32 %v1206_v52, 0.0 }
  0xfd   :  { %v943_v54 = vpop.f32.mrf.mxu3 }
  0xfe   :  { %v944_v58 = vadd.f32 %v943_v54, %v774_v53  ;;  %v697_v59 = vpop.f32.mrf.mxu0  ;;  %1334 = vst [vmem:[%s2522_s3 + $0x58] sm:$0xff] %v1270_v57 }
  0xff   :  { %v866_v62 = vpop.f32.mrf.mxu1 }
 0x100   :  { %v867_v0 = vadd.f32 %v866_v62, %v697_v59  ;;  %v1238_v1 = vadd.f32 %v2097_v63, %v944_v58 }
 0x101   :  { %736 = vmatmul.bf16.gmra.mxu0 %v1506_v55  ;;  %816 = vmatmul.bf16.gmra.mxu2 %v1634_v56 }
 0x102   :  { %905 = vmatmul.bf16.gmra.mxu1 %v1510_v60  ;;  %985 = vmatmul.bf16.gmra.mxu3 %v1638_v61  ;;  %v1302_v2 = vmax.f32 %v1238_v1, 0.0  ;;  %v1207_v3 = vadd.f32 %v2097_v63, %v867_v0 }
 0x104   :  { %v777_v4 = vpop.f32.mrf.mxu2  ;;  %1366 = vst [vmem:[%s2522_s3 + $0x158] sm:$0xff] %v1302_v2  ;;  %v1271_v6 = vmax.f32 %v1207_v3, 0.0 }
 0x105   :  { %v946_v5 = vpop.f32.mrf.mxu3 }
 0x106   :  { %v947_v7 = vadd.f32 %v946_v5, %v777_v4  ;;  %v699_v8 = vpop.f32.mrf.mxu0  ;;  %1335 = vst [vmem:[%s2522_s3 + $0x60] sm:$0xff] %v1271_v6 }
 0x107   :  { %v868_v9 = vpop.f32.mrf.mxu1 }
 0x108   :  { %v869_v10 = vadd.f32 %v868_v9, %v699_v8  ;;  %v1239_v13 = vadd.f32 %v2097_v63, %v947_v7 }
 0x10a   :  { %v1303_v20 = vmax.f32 %v1239_v13, 0.0  ;;  %v1208_v21 = vadd.f32 %v2097_v63, %v869_v10 }
 0x10c   :  { %v779_v22 = vpop.f32.mrf.mxu2  ;;  %1367 = vst [vmem:[%s2522_s3 + $0x160] sm:$0xff] %v1303_v20  ;;  %v1272_v26 = vmax.f32 %v1208_v21, 0.0 }
 0x10d   :  { %v948_v23 = vpop.f32.mrf.mxu3 }
 0x10e   :  { %v949_v27 = vadd.f32 %v948_v23, %v779_v22  ;;  %v702_v28 = vpop.f32.mrf.mxu0  ;;  %1336 = vst [vmem:[%s2522_s3 + $0x68] sm:$0xff] %v1272_v26 }
 0x10f   :  { %v871_v31 = vpop.f32.mrf.mxu1 }
 0x110   :  { %v872_v32 = vadd.f32 %v871_v31, %v702_v28  ;;  %v1240_v33 = vadd.f32 %v2097_v63, %v949_v27 }
 0x111   :  { %741 = vmatmul.bf16.gmra.mxu0 %v1514_v24  ;;  %821 = vmatmul.bf16.gmra.mxu2 %v1642_v25 }
 0x112   :  { %910 = vmatmul.bf16.gmra.mxu1 %v1518_v29  ;;  %990 = vmatmul.bf16.gmra.mxu3 %v1646_v30  ;;  %v1304_v34 = vmax.f32 %v1240_v33, 0.0  ;;  %v1209_v35 = vadd.f32 %v2097_v63, %v872_v32 }
 0x114   :  { %v782_v36 = vpop.f32.mrf.mxu2  ;;  %1368 = vst [vmem:[%s2522_s3 + $0x168] sm:$0xff] %v1304_v34  ;;  %v1273_v38 = vmax.f32 %v1209_v35, 0.0 }
 0x115   :  { %v951_v37 = vpop.f32.mrf.mxu3 }
 0x116   :  { %v952_v39 = vadd.f32 %v951_v37, %v782_v36  ;;  %v704_v40 = vpop.f32.mrf.mxu0  ;;  %1337 = vst [vmem:[%s2522_s3 + $0x70] sm:$0xff] %v1273_v38 }
 0x117   :  { %v873_v41 = vpop.f32.mrf.mxu1 }
 0x118   :  { %v874_v42 = vadd.f32 %v873_v41, %v704_v40  ;;  %v1241_v43 = vadd.f32 %v2097_v63, %v952_v39 }
 0x11a   :  { %v1305_v44 = vmax.f32 %v1241_v43, 0.0  ;;  %v1210_v45 = vadd.f32 %v2097_v63, %v874_v42 }
 0x11c   :  { %v784_v46 = vpop.f32.mrf.mxu2  ;;  %1369 = vst [vmem:[%s2522_s3 + $0x170] sm:$0xff] %v1305_v44  ;;  %v1274_v48 = vmax.f32 %v1210_v45, 0.0 }
 0x11d   :  { %v953_v47 = vpop.f32.mrf.mxu3 }
 0x11e   :  { %v954_v49 = vadd.f32 %v953_v47, %v784_v46  ;;  %v707_v50 = vpop.f32.mrf.mxu0  ;;  %1338 = vst [vmem:[%s2522_s3 + $0x78] sm:$0xff] %v1274_v48 }
 0x11f   :  { %v876_v51 = vpop.f32.mrf.mxu1 }
 0x120   :  { %v877_v52 = vadd.f32 %v876_v51, %v707_v50  ;;  %v1242_v53 = vadd.f32 %v2097_v63, %v954_v49 }
 0x122   :  { %v1306_v54 = vmax.f32 %v1242_v53, 0.0  ;;  %v1211_v55 = vadd.f32 %v2097_v63, %v877_v52 }
 0x124   :  { %v787_v56 = vpop.f32.mrf.mxu2  ;;  %1370 = vst [vmem:[%s2522_s3 + $0x178] sm:$0xff] %v1306_v54  ;;  %v1275_v58 = vmax.f32 %v1211_v55, 0.0 }
 0x125   :  { %v956_v57 = vpop.f32.mrf.mxu3 }
 0x126   :  { %v957_v59 = vadd.f32 %v956_v57, %v787_v56  ;;  %v709_v60 = vpop.f32.mrf.mxu0  ;;  %1339 = vst [vmem:[%s2522_s3 + $0x80] sm:$0xff] %v1275_v58 }
 0x127   :  { %v878_v61 = vpop.f32.mrf.mxu1 }
 0x128   :  { %v879_v62 = vadd.f32 %v878_v61, %v709_v60  ;;  %v1243_v0 = vadd.f32 %v2097_v63, %v957_v59 }
 0x12a   :  { %v1307_v1 = vmax.f32 %v1243_v0, 0.0  ;;  %v1212_v2 = vadd.f32 %v2097_v63, %v879_v62 }
 0x12c   :  { %v789_v3 = vpop.f32.mrf.mxu2  ;;  %1371 = vst [vmem:[%s2522_s3 + $0x180] sm:$0xff] %v1307_v1  ;;  %v1276_v5 = vmax.f32 %v1212_v2, 0.0 }
 0x12d   :  { %v958_v4 = vpop.f32.mrf.mxu3 }
 0x12e   :  { %v959_v6 = vadd.f32 %v958_v4, %v789_v3  ;;  %v712_v7 = vpop.f32.mrf.mxu0  ;;  %1340 = vst [vmem:[%s2522_s3 + $0x88] sm:$0xff] %v1276_v5 }
 0x12f   :  { %v881_v8 = vpop.f32.mrf.mxu1 }
 0x130   :  { %v882_v9 = vadd.f32 %v881_v8, %v712_v7  ;;  %v1244_v10 = vadd.f32 %v2097_v63, %v959_v6 }
 0x132   :  { %v1308_v11 = vmax.f32 %v1244_v10, 0.0  ;;  %v1213_v12 = vadd.f32 %v2097_v63, %v882_v9 }
 0x134   :  { %v792_v13 = vpop.f32.mrf.mxu2  ;;  %1372 = vst [vmem:[%s2522_s3 + $0x188] sm:$0xff] %v1308_v11  ;;  %v1277_v15 = vmax.f32 %v1213_v12, 0.0 }
 0x135   :  { %v961_v14 = vpop.f32.mrf.mxu3 }
 0x136   :  { %v962_v16 = vadd.f32 %v961_v14, %v792_v13  ;;  %v714_v17 = vpop.f32.mrf.mxu0  ;;  %1341 = vst [vmem:[%s2522_s3 + $0x90] sm:$0xff] %v1277_v15 }
 0x137   :  { %v883_v18 = vpop.f32.mrf.mxu1 }
 0x138   :  { %v884_v19 = vadd.f32 %v883_v18, %v714_v17  ;;  %v1245_v20 = vadd.f32 %v2097_v63, %v962_v16 }
 0x13a   :  { %v1309_v21 = vmax.f32 %v1245_v20, 0.0  ;;  %v1214_v22 = vadd.f32 %v2097_v63, %v884_v19 }
 0x13c   :  { %v794_v23 = vpop.f32.mrf.mxu2  ;;  %1373 = vst [vmem:[%s2522_s3 + $0x190] sm:$0xff] %v1309_v21  ;;  %v1278_v25 = vmax.f32 %v1214_v22, 0.0 }
 0x13d   :  { %v963_v24 = vpop.f32.mrf.mxu3 }
 0x13e   :  { %v964_v26 = vadd.f32 %v963_v24, %v794_v23  ;;  %v717_v27 = vpop.f32.mrf.mxu0  ;;  %1342 = vst [vmem:[%s2522_s3 + $0x98] sm:$0xff] %v1278_v25 }
 0x13f   :  { %v886_v28 = vpop.f32.mrf.mxu1 }
 0x140   :  { %v887_v29 = vadd.f32 %v886_v28, %v717_v27  ;;  %v1246_v30 = vadd.f32 %v2097_v63, %v964_v26 }
 0x142   :  { %v1310_v31 = vmax.f32 %v1246_v30, 0.0  ;;  %v1215_v32 = vadd.f32 %v2097_v63, %v887_v29 }
 0x144   :  { %v797_v33 = vpop.f32.mrf.mxu2  ;;  %1374 = vst [vmem:[%s2522_s3 + $0x198] sm:$0xff] %v1310_v31  ;;  %v1279_v35 = vmax.f32 %v1215_v32, 0.0 }
 0x145   :  { %v966_v34 = vpop.f32.mrf.mxu3 }
 0x146   :  { %v967_v36 = vadd.f32 %v966_v34, %v797_v33  ;;  %v719_v37 = vpop.f32.mrf.mxu0  ;;  %1343 = vst [vmem:[%s2522_s3 + $0xa0] sm:$0xff] %v1279_v35 }
 0x147   :  { %v888_v38 = vpop.f32.mrf.mxu1 }
 0x148   :  { %v889_v39 = vadd.f32 %v888_v38, %v719_v37  ;;  %v1247_v40 = vadd.f32 %v2097_v63, %v967_v36 }
 0x14a   :  { %v1311_v41 = vmax.f32 %v1247_v40, 0.0  ;;  %v1216_v42 = vadd.f32 %v2097_v63, %v889_v39 }
 0x14c   :  { %v799_v43 = vpop.f32.mrf.mxu2  ;;  %1375 = vst [vmem:[%s2522_s3 + $0x1a0] sm:$0xff] %v1311_v41  ;;  %v1280_v45 = vmax.f32 %v1216_v42, 0.0 }
 0x14d   :  { %v968_v44 = vpop.f32.mrf.mxu3 }
 0x14e   :  { %v969_v46 = vadd.f32 %v968_v44, %v799_v43  ;;  %v722_v47 = vpop.f32.mrf.mxu0  ;;  %1344 = vst [vmem:[%s2522_s3 + $0xa8] sm:$0xff] %v1280_v45 }
 0x14f   :  { %v891_v48 = vpop.f32.mrf.mxu1 }
 0x150   :  { %v892_v49 = vadd.f32 %v891_v48, %v722_v47  ;;  %v1248_v50 = vadd.f32 %v2097_v63, %v969_v46 }
 0x152   :  { %v1312_v51 = vmax.f32 %v1248_v50, 0.0  ;;  %v1217_v52 = vadd.f32 %v2097_v63, %v892_v49 }
 0x154   :  { %v802_v53 = vpop.f32.mrf.mxu2  ;;  %1376 = vst [vmem:[%s2522_s3 + $0x1a8] sm:$0xff] %v1312_v51  ;;  %v1281_v55 = vmax.f32 %v1217_v52, 0.0 }
 0x155   :  { %v971_v54 = vpop.f32.mrf.mxu3 }
 0x156   :  { %v972_v56 = vadd.f32 %v971_v54, %v802_v53  ;;  %v724_v57 = vpop.f32.mrf.mxu0  ;;  %1345 = vst [vmem:[%s2522_s3 + $0xb0] sm:$0xff] %v1281_v55 }
 0x157   :  { %v893_v58 = vpop.f32.mrf.mxu1 }
 0x158   :  { %v894_v59 = vadd.f32 %v893_v58, %v724_v57  ;;  %v1249_v60 = vadd.f32 %v2097_v63, %v972_v56  ;;  %v1809_v57 = vld [vmem:[%s2521_s2] ss:$0 sm:$0xff] }
 0x15a   :  { %v1313_v61 = vmax.f32 %v1249_v60, 0.0  ;;  %v1218_v62 = vadd.f32 %v2097_v63, %v894_v59 }
 0x15c   :  { %v804_v0 = vpop.f32.mrf.mxu2  ;;  %1377 = vst [vmem:[%s2522_s3 + $0x1b0] sm:$0xff] %v1313_v61  ;;  %v1282_v2 = vmax.f32 %v1218_v62, 0.0 }
 0x15d   :  { %v973_v1 = vpop.f32.mrf.mxu3 }
 0x15e   :  { %v974_v3 = vadd.f32 %v973_v1, %v804_v0  ;;  %v727_v4 = vpop.f32.mrf.mxu0  ;;  %1346 = vst [vmem:[%s2522_s3 + $0xb8] sm:$0xff] %v1282_v2 }
 0x15f   :  { %v896_v5 = vpop.f32.mrf.mxu1 }
 0x160   :  { %v897_v6 = vadd.f32 %v896_v5, %v727_v4  ;;  %v1250_v7 = vadd.f32 %v2097_v63, %v974_v3 }
 0x162   :  { %v1314_v8 = vmax.f32 %v1250_v7, 0.0  ;;  %v1219_v9 = vadd.f32 %v2097_v63, %v897_v6 }
 0x164   :  { %v807_v10 = vpop.f32.mrf.mxu2  ;;  %1378 = vst [vmem:[%s2522_s3 + $0x1b8] sm:$0xff] %v1314_v8  ;;  %v1283_v12 = vmax.f32 %v1219_v9, 0.0 }
 0x165   :  { %v976_v11 = vpop.f32.mrf.mxu3 }
 0x166   :  { %v977_v13 = vadd.f32 %v976_v11, %v807_v10  ;;  %v729_v14 = vpop.f32.mrf.mxu0  ;;  %1347 = vst [vmem:[%s2522_s3 + $0xc0] sm:$0xff] %v1283_v12 }
 0x167   :  { %v898_v15 = vpop.f32.mrf.mxu1 }
 0x168   :  { %v899_v16 = vadd.f32 %v898_v15, %v729_v14  ;;  %v1251_v17 = vadd.f32 %v2097_v63, %v977_v13 }
 0x16a   :  { %v1315_v18 = vmax.f32 %v1251_v17, 0.0  ;;  %v1220_v19 = vadd.f32 %v2097_v63, %v899_v16 }
 0x16c   :  { %v809_v20 = vpop.f32.mrf.mxu2  ;;  %1379 = vst [vmem:[%s2522_s3 + $0x1c0] sm:$0xff] %v1315_v18  ;;  %v1284_v22 = vmax.f32 %v1220_v19, 0.0 }
 0x16d   :  { %v978_v21 = vpop.f32.mrf.mxu3 }
 0x16e   :  { %v979_v23 = vadd.f32 %v978_v21, %v809_v20  ;;  %v732_v24 = vpop.f32.mrf.mxu0  ;;  %1348 = vst [vmem:[%s2522_s3 + $0xc8] sm:$0xff] %v1284_v22 }
 0x16f   :  { %v901_v25 = vpop.f32.mrf.mxu1 }
 0x170   :  { %v902_v26 = vadd.f32 %v901_v25, %v732_v24  ;;  %v1252_v27 = vadd.f32 %v2097_v63, %v979_v23 }
 0x172   :  { %v1316_v28 = vmax.f32 %v1252_v27, 0.0  ;;  %v1221_v29 = vadd.f32 %v2097_v63, %v902_v26 }
 0x174   :  { %v812_v30 = vpop.f32.mrf.mxu2  ;;  %1380 = vst [vmem:[%s2522_s3 + $0x1c8] sm:$0xff] %v1316_v28  ;;  %v1285_v32 = vmax.f32 %v1221_v29, 0.0 }
 0x175   :  { %v981_v31 = vpop.f32.mrf.mxu3 }
 0x176   :  { %v982_v33 = vadd.f32 %v981_v31, %v812_v30  ;;  %v734_v34 = vpop.f32.mrf.mxu0  ;;  %1349 = vst [vmem:[%s2522_s3 + $0xd0] sm:$0xff] %v1285_v32 }
 0x177   :  { %v903_v35 = vpop.f32.mrf.mxu1 }
 0x178   :  { %v904_v36 = vadd.f32 %v903_v35, %v734_v34  ;;  %v1253_v37 = vadd.f32 %v2097_v63, %v982_v33 }
 0x17a   :  { %v1317_v38 = vmax.f32 %v1253_v37, 0.0  ;;  %v1222_v39 = vadd.f32 %v2097_v63, %v904_v36 }
 0x17c   :  { %v814_v40 = vpop.f32.mrf.mxu2  ;;  %1381 = vst [vmem:[%s2522_s3 + $0x1d0] sm:$0xff] %v1317_v38  ;;  %v1286_v42 = vmax.f32 %v1222_v39, 0.0 }
 0x17d   :  { %v983_v41 = vpop.f32.mrf.mxu3 }
 0x17e   :  { %v984_v43 = vadd.f32 %v983_v41, %v814_v40  ;;  %v737_v44 = vpop.f32.mrf.mxu0  ;;  %1350 = vst [vmem:[%s2522_s3 + $0xd8] sm:$0xff] %v1286_v42 }
 0x17f   :  { %v906_v45 = vpop.f32.mrf.mxu1 }
 0x180   :  { %v907_v46 = vadd.f32 %v906_v45, %v737_v44  ;;  %v1254_v47 = vadd.f32 %v2097_v63, %v984_v43 }
 0x182   :  { %v1318_v48 = vmax.f32 %v1254_v47, 0.0  ;;  %v1223_v49 = vadd.f32 %v2097_v63, %v907_v46 }
 0x184   :  { %v817_v50 = vpop.f32.mrf.mxu2  ;;  %1382 = vst [vmem:[%s2522_s3 + $0x1d8] sm:$0xff] %v1318_v48  ;;  %v1287_v52 = vmax.f32 %v1223_v49, 0.0 }
 0x185   :  { %v986_v51 = vpop.f32.mrf.mxu3 }
 0x186   :  { %v987_v53 = vadd.f32 %v986_v51, %v817_v50  ;;  %v739_v54 = vpop.f32.mrf.mxu0  ;;  %1351 = vst [vmem:[%s2522_s3 + $0xe0] sm:$0xff] %v1287_v52 }
 0x187   :  { %v908_v55 = vpop.f32.mrf.mxu1 }
 0x188   :  { %v909_v56 = vadd.f32 %v908_v55, %v739_v54  ;;  %v1255_v63 = vadd.f32 %v1809_v57, %v987_v53 }
 0x18a   :  { %v1319_v58 = vmax.f32 %v1255_v63, 0.0  ;;  %v1224_v59 = vadd.f32 %v1809_v57, %v909_v56 }
 0x18c   :  { %v819_v60 = vpop.f32.mrf.mxu2  ;;  %1383 = vst [vmem:[%s2522_s3 + $0x1e0] sm:$0xff] %v1319_v58  ;;  %v1288_v62 = vmax.f32 %v1224_v59, 0.0 }
 0x18d   :  { %v988_v61 = vpop.f32.mrf.mxu3 }
 0x18e   :  { %v989_v0 = vadd.f32 %v988_v61, %v819_v60  ;;  %v742_v1 = vpop.f32.mrf.mxu0  ;;  %1352 = vst [vmem:[%s2522_s3 + $0xe8] sm:$0xff] %v1288_v62 }
 0x18f   :  { %v911_v2 = vpop.f32.mrf.mxu1 }
 0x190   :  { %v912_v3 = vadd.f32 %v911_v2, %v742_v1  ;;  %v1256_v4 = vadd.f32 %v1809_v57, %v989_v0 }
 0x192   :  { %v1320_v5 = vmax.f32 %v1256_v4, 0.0  ;;  %v1225_v6 = vadd.f32 %v1809_v57, %v912_v3 }
 0x194   :  { %v822_v7 = vpop.f32.mrf.mxu2  ;;  %1384 = vst [vmem:[%s2522_s3 + $0x1e8] sm:$0xff] %v1320_v5  ;;  %v1289_v9 = vmax.f32 %v1225_v6, 0.0 }
 0x195   :  { %v991_v8 = vpop.f32.mrf.mxu3 }
 0x196   :  { %v992_v10 = vadd.f32 %v991_v8, %v822_v7  ;;  %v744_v11 = vpop.f32.mrf.mxu0  ;;  %1353 = vst [vmem:[%s2522_s3 + $0xf0] sm:$0xff] %v1289_v9 }
 0x197   :  { %v913_v12 = vpop.f32.mrf.mxu1 }
 0x198   :  { %v914_v13 = vadd.f32 %v913_v12, %v744_v11  ;;  %v1257_v14 = vadd.f32 %v1809_v57, %v992_v10 }
 0x19a   :  { %v1321_v15 = vmax.f32 %v1257_v14, 0.0  ;;  %v1226_v16 = vadd.f32 %v1809_v57, %v914_v13 }
 0x19c   :  { %v824_v17 = vpop.f32.mrf.mxu2  ;;  %1385 = vst [vmem:[%s2522_s3 + $0x1f0] sm:$0xff] %v1321_v15  ;;  %v1290_v19 = vmax.f32 %v1226_v16, 0.0 }
 0x19d   :  { %v993_v18 = vpop.f32.mrf.mxu3 }
 0x19e   :  { %v994_v20 = vadd.f32 %v993_v18, %v824_v17  ;;  %1354 = vst [vmem:[%s2522_s3 + $0xf8] sm:$0xff] %v1290_v19 }
 0x1a0   :  { %v1258_v21 = vadd.f32 %v1809_v57, %v994_v20 }
 0x1a2   :  { %v1322_v22 = vmax.f32 %v1258_v21, 0.0 }
 0x1a4   :  { %1386 = vst [vmem:[%s2522_s3 + $0x1f8] sm:$0xff] %v1322_v22 }

// kernel: res18feature_forward.22
= control target key start
LH: loop header
LB: loop body
LE: loop exit
PB: predicated region body
PF: predicated region fallthrough
CT: control target
= control target key end

     0   :  { %s1005_s12 = smov 0   ;;  %s1007_s13 = smov 0   ;;  %s1353_s0 = inlined_call_operand.vmem [shape: bf16[128,640], index: 0, kind: input, shape index: {}]   ;;  %s1354_s1 = inlined_call_operand.vmem [shape: bf16[640,128], index: 1, kind: input, shape index: {}]   ;;  %s1355_s2 = inlined_call_operand.vmem [shape: f32[1,128], index: 2, kind: input, shape index: {}]   ;;  %s1356_s3 = inlined_call_operand.vmem [shape: f32[128,128], index: 3, kind: output, shape index: {}]  }
   0x1   :  { %s1009_s14 = smov 0   ;;  %s1011_s15 = smov 0  }
   0x2   :  { %s1013_s16 = smov 0  }
   0x3 LB: > { %s25_s17 = sadd.s32 1, %s978_s15  ;;  %p48_p1 = scmp.ne.s32.totalorder %s970_s13, %s966_s12  ;;  %s982_s16 = sphi %s1013_s16, %s13_s16   ;;  %s978_s15 = sphi %s1011_s15, %s1360_s15   ;;  %s974_s14 = sphi %s1009_s14, %s1359_s14   ;;  %s970_s13 = sphi %s1007_s13, %s1358_s13   ;;  %s966_s12 = sphi %s1005_s12, %s1357_s12  }
   0x4   : > { %p26_p0 = scmp.ge.s32.totalorder %s25_s17, 5  ;;  %p49_p2 = scmp.eq.s32.totalorder %s982_s16, 0 }
   0x5   : > { %s41_s19 = sadd.s32 1, %s970_s13  ;;  %p785_p5 = scmp.ge.s32.totalorder %s982_s16, 5 }
   0x6   : > { %s1362_s17 = smov (%p26_p0, %s25_s17), 0  ;;  %p50_p3 = por %p49_p2, %p48_p1 }
   0x7   : > { %s37_s18 = ssub.s32 %s978_s15, %s1362_s17  ;;  %162 = sbr.rel (%p785_p5) target bundleno = 32 (0x20), region = 20 }
   0x8   : > { %p39_p4 = scmp.eq.s32.totalorder %s37_s18, 0 }
   0xa   : > { %s1040_s20 = scalar_select %p39_p4, %s970_s13, %s41_s19  }
   0xc   : > { %165 = sbr.rel (!%p50_p3) target bundleno = 32 (0x20), region = 24  ;;  %s167_s21 = sand.u32 (%p50_p3), 1, %s970_s13  }
   0xd   : > { %s787_s22 = sshll.u32 (%p50_p3), %s978_s15, 2  ;;  %s786_s23 = sshll.u32 (%p50_p3), %s167_s21, 6 }
   0xe   : > { %s1048_s26 = scalar_lea.vmem (%p50_p3), %s1353_s0, %s787_s22  ;;  %s169_s27 = scalar_lea.vmem (%p50_p3), [#allocation2], %s786_s23 }
   0xf   : > { %v191_v0 = vld [vmem:[%s1048_s26] sm:$0xf] (%p50_p3)  ;;  %v193_v1 = vld [vmem:[%s1048_s26 + $0x14] sm:$0xf] (%p50_p3)  ;;  %v195_v2 = vld [vmem:[%s1048_s26 + $0x28] sm:$0xf] (%p50_p3) }
  0x10   : > { %192 = vst [vmem:[%s169_s27] sm:$0xf] (%p50_p3), %v191_v0  ;;  %v197_v3 = vld [vmem:[%s1048_s26 + $0x3c] sm:$0xf] (%p50_p3)  ;;  %v199_v4 = vld [vmem:[%s1048_s26 + $0x50] sm:$0xf] (%p50_p3) }
  0x11   : > { %194 = vst [vmem:[%s169_s27 + $0x4] sm:$0xf] %v193_v1  ;;  %v201_v5 = vld [vmem:[%s1048_s26 + $0x64] sm:$0xf]  ;;  %v203_v6 = vld [vmem:[%s1048_s26 + $0x78] sm:$0xf] }
  0x12   : > { %196 = vst [vmem:[%s169_s27 + $0x8] sm:$0xf] %v195_v2  ;;  %v205_v7 = vld [vmem:[%s1048_s26 + $0x8c] sm:$0xf]  ;;  %v207_v8 = vld [vmem:[%s1048_s26 + $0xa0] sm:$0xf] }
  0x13   : > { %198 = vst [vmem:[%s169_s27 + $0xc] sm:$0xf] %v197_v3  ;;  %v209_v9 = vld [vmem:[%s1048_s26 + $0xb4] sm:$0xf]  ;;  %v211_v10 = vld [vmem:[%s1048_s26 + $0xc8] sm:$0xf] }
  0x14   : > { %200 = vst [vmem:[%s169_s27 + $0x10] sm:$0xf] %v199_v4  ;;  %v213_v11 = vld [vmem:[%s1048_s26 + $0xdc] sm:$0xf]  ;;  %v215_v12 = vld [vmem:[%s1048_s26 + $0xf0] sm:$0xf] }
  0x15   : > { %202 = vst [vmem:[%s169_s27 + $0x14] sm:$0xf] %v201_v5  ;;  %v217_v13 = vld [vmem:[%s1048_s26 + $0x104] sm:$0xf]  ;;  %v219_v14 = vld [vmem:[%s1048_s26 + $0x118] sm:$0xf] }
  0x16   : > { %204 = vst [vmem:[%s169_s27 + $0x18] sm:$0xf] %v203_v6  ;;  %v221_v15 = vld [vmem:[%s1048_s26 + $0x12c] sm:$0xf] }
  0x17   : > { %206 = vst [vmem:[%s169_s27 + $0x1c] sm:$0xf] %v205_v7 }
  0x18   : > { %208 = vst [vmem:[%s169_s27 + $0x20] sm:$0xf] %v207_v8 }
  0x19   : > { %210 = vst [vmem:[%s169_s27 + $0x24] sm:$0xf] %v209_v9 }
  0x1a   : > { %212 = vst [vmem:[%s169_s27 + $0x28] sm:$0xf] %v211_v10 }
  0x1b   : > { %214 = vst [vmem:[%s169_s27 + $0x2c] sm:$0xf] %v213_v11 }
  0x1c   : > { %216 = vst [vmem:[%s169_s27 + $0x30] sm:$0xf] %v215_v12 }
  0x1d   : > { %218 = vst [vmem:[%s169_s27 + $0x34] sm:$0xf] %v217_v13 }
  0x1e   : > { %220 = vst [vmem:[%s169_s27 + $0x38] sm:$0xf] %v219_v14 }
  0x1f   : > { %222 = vst [vmem:[%s169_s27 + $0x3c] sm:$0xf] %v221_v15 }
  0x20 PF: > { %p788_p6 = scmp.ge.s32.totalorder %s982_s16, 1  ;;  %p289_p7 = scmp.lt.s32.totalorder %s982_s16, 6 }
  0x22   : > { %p290_p8 = pnand %p788_p6, %p289_p7 }
  0x23   : > { %s296_s28 = sand.u32 (!%p290_p8), 1, %s966_s12   ;;  %s790_s29 = sshll.u32 (!%p290_p8), %s974_s14, 4 }
  0x24   : > { %293 = sbr.rel (%p290_p8) target bundleno = 278 (0x116), region = 69  ;;  %s789_s30 = sshll.u32 (!%p290_p8), %s296_s28, 6 }
  0x25   : > { %p335_p9 = scmp.lt.s32.totalorder (!%p290_p8), %s790_s29, 79  ;;  %s1075_s8 = scalar_lea.vmem (!%p290_p8), [#allocation2], %s789_s30 }
  0x26   : > { %p792_p10 = scmp.ne.s32.totalorder (!%p290_p8), %s974_s14, 0 }
  0x29   : > { %s1364_s29 = smov (!%p335_p9, %s790_s29), 79  ;;  %358 = sbr.rel (%p792_p10) target bundleno = 63 (0x3f), region = 77 }
  0x2a   : > { %s791_s4 = sshll.u32 %s1364_s29, 2 }
  0x2b   : > { %s1073_s7 = scalar_lea.vmem %s1354_s1, %s791_s4 }
  0x2e   : > { %v984_v16 = vmov 0.0  }
  0x2f   : > { %359 = vst [vmem:[%s1356_s3] sm:$0xff] %v984_v16 }
  0x30   : > { %360 = vst [vmem:[%s1356_s3 + $0x8] sm:$0xff] %v984_v16 }
  0x31   : > { %361 = vst [vmem:[%s1356_s3 + $0x10] sm:$0xff] %v984_v16 }
  0x32   : > { %362 = vst [vmem:[%s1356_s3 + $0x18] sm:$0xff] %v984_v16 }
  0x33   : > { %363 = vst [vmem:[%s1356_s3 + $0x20] sm:$0xff] %v984_v16 }
  0x34   : > { %364 = vst [vmem:[%s1356_s3 + $0x28] sm:$0xff] %v984_v16 }
  0x35   : > { %365 = vst [vmem:[%s1356_s3 + $0x30] sm:$0xff] %v984_v16 }
  0x36   : > { %366 = vst [vmem:[%s1356_s3 + $0x38] sm:$0xff] %v984_v16 }
  0x37   : > { %367 = vst [vmem:[%s1356_s3 + $0x40] sm:$0xff] %v984_v16 }
  0x38   : > { %368 = vst [vmem:[%s1356_s3 + $0x48] sm:$0xff] %v984_v16 }
  0x39   : > { %369 = vst [vmem:[%s1356_s3 + $0x50] sm:$0xff] %v984_v16 }
  0x3a   : > { %370 = vst [vmem:[%s1356_s3 + $0x58] sm:$0xff] %v984_v16 }
  0x3b   : > { %371 = vst [vmem:[%s1356_s3 + $0x60] sm:$0xff] %v984_v16 }
  0x3c   : > { %372 = vst [vmem:[%s1356_s3 + $0x68] sm:$0xff] %v984_v16 }
  0x3d   : > { %373 = vst [vmem:[%s1356_s3 + $0x70] sm:$0xff] %v984_v16 }
  0x3e   : > { %374 = vst [vmem:[%s1356_s3 + $0x78] sm:$0xff] %v984_v16 }
  0x3f PF: > { %v877_v17 = vld [vmem:[%s1073_s7 + $0x38] sm:$0xff]  ;;  %v876_v18 = vld [vmem:[%s1073_s7 + $0x30] sm:$0xff]  ;;  %v875_v19 = vld [vmem:[%s1073_s7 + $0x28] sm:$0xff]  ;;  %p857_p11 = scmp.ne.s32.totalorder %s974_s14, 4 }
  0x40   : > { %519 = vmatpush.bf16.msra.mxu0 %v877_v17  ;;  %878 = vmatpush.bf16.msra.mxu1 %v877_v17  ;;  %v874_v20 = vld [vmem:[%s1073_s7 + $0x20] sm:$0xff]  ;;  %v873_v21 = vld [vmem:[%s1073_s7 + $0x18] sm:$0xff]  ;;  %v872_v22 = vld [vmem:[%s1073_s7 + $0x10] sm:$0xff] }
  0x41   : > { %879 = vmatpush.bf16.msra.mxu2 %v877_v17  ;;  %880 = vmatpush.bf16.msra.mxu3 %v877_v17  ;;  %v871_v23 = vld [vmem:[%s1073_s7 + $0x8] sm:$0xff]  ;;  %v870_v24 = vld [vmem:[%s1073_s7] sm:$0xff]  ;;  %v864_v26 = vld [vmem:[%s1075_s8 + $0x10] sm:$0xff] }
  0x42   : > { %v862_v25 = vld [vmem:[%s1075_s8] sm:$0xff]  ;;  %v868_v28 = vld [vmem:[%s1075_s8 + $0x30] sm:$0xff]  ;;  %v863_v29 = vld [vmem:[%s1075_s8 + $0x8] sm:$0xff] }
  0x43   : > { %v866_v27 = vld [vmem:[%s1075_s8 + $0x20] sm:$0xff]  ;;  %v865_v30 = vld [vmem:[%s1075_s8 + $0x18] sm:$0xff]  ;;  %v867_v31 = vld [vmem:[%s1075_s8 + $0x28] sm:$0xff] }
  0x44   : > { %520 = vmatpush.bf16.msra.mxu0 %v876_v18  ;;  %881 = vmatpush.bf16.msra.mxu1 %v876_v18  ;;  %v869_v32 = vld [vmem:[%s1075_s8 + $0x38] sm:$0xff]  ;;  %v375_v33 = vld [vmem:[%s1356_s3] sm:$0xff]  ;;  %v376_v41 = vld [vmem:[%s1356_s3 + $0x8] sm:$0xff] }
  0x45   : > { %882 = vmatpush.bf16.msra.mxu2 %v876_v18  ;;  %883 = vmatpush.bf16.msra.mxu3 %v876_v18  ;;  %v379_v34 = vld [vmem:[%s1356_s3 + $0x20] sm:$0xff]  ;;  %v380_v42 = vld [vmem:[%s1356_s3 + $0x28] sm:$0xff]  ;;  %v377_v53 = vld [vmem:[%s1356_s3 + $0x10] sm:$0xff] }
  0x46   : > { %v383_v39 = vld [vmem:[%s1356_s3 + $0x40] sm:$0xff]  ;;  %v384_v51 = vld [vmem:[%s1356_s3 + $0x48] sm:$0xff]  ;;  %v381_v54 = vld [vmem:[%s1356_s3 + $0x30] sm:$0xff] }
  0x47   : > { %v387_v40 = vld [vmem:[%s1356_s3 + $0x60] sm:$0xff]  ;;  %v388_v52 = vld [vmem:[%s1356_s3 + $0x68] sm:$0xff]  ;;  %v385_v63 = vld [vmem:[%s1356_s3 + $0x50] sm:$0xff] }
  0x48   : > { %521 = vmatpush.bf16.msra.mxu0 %v875_v19  ;;  %884 = vmatpush.bf16.msra.mxu1 %v875_v19  ;;  %v389_v0 = vld [vmem:[%s1356_s3 + $0x70] sm:$0xff]  ;;  %v378_v1 = vld [vmem:[%s1356_s3 + $0x18] sm:$0xff] }
  0x49   : > { %885 = vmatpush.bf16.msra.mxu2 %v875_v19  ;;  %886 = vmatpush.bf16.msra.mxu3 %v875_v19  ;;  %v382_v2 = vld [vmem:[%s1356_s3 + $0x38] sm:$0xff] }
  0x4a   : > { %v386_v11 = vld [vmem:[%s1356_s3 + $0x58] sm:$0xff] }
  0x4b   : > { %v390_v12 = vld [vmem:[%s1356_s3 + $0x78] sm:$0xff] }
  0x4c   : > { %522 = vmatpush.bf16.msra.mxu0 %v874_v20  ;;  %887 = vmatpush.bf16.msra.mxu1 %v874_v20 }
  0x4d   : > { %888 = vmatpush.bf16.msra.mxu2 %v874_v20  ;;  %889 = vmatpush.bf16.msra.mxu3 %v874_v20 }
  0x50   : > { %523 = vmatpush.bf16.msra.mxu0 %v873_v21  ;;  %890 = vmatpush.bf16.msra.mxu1 %v873_v21 }
  0x51   : > { %891 = vmatpush.bf16.msra.mxu2 %v873_v21  ;;  %892 = vmatpush.bf16.msra.mxu3 %v873_v21 }
  0x54   : > { %524 = vmatpush.bf16.msra.mxu0 %v872_v22  ;;  %893 = vmatpush.bf16.msra.mxu1 %v872_v22 }
  0x55   : > { %894 = vmatpush.bf16.msra.mxu2 %v872_v22  ;;  %895 = vmatpush.bf16.msra.mxu3 %v872_v22 }
  0x58   : > { %525 = vmatpush.bf16.msra.mxu0 %v871_v23  ;;  %896 = vmatpush.bf16.msra.mxu1 %v871_v23 }
  0x59   : > { %897 = vmatpush.bf16.msra.mxu2 %v871_v23  ;;  %898 = vmatpush.bf16.msra.mxu3 %v871_v23 }
  0x5c   : > { %526 = vmatpush.bf16.msra.mxu0 %v870_v24  ;;  %899 = vmatpush.bf16.msra.mxu1 %v870_v24 }
  0x5d   : > { %900 = vmatpush.bf16.msra.mxu2 %v870_v24  ;;  %901 = vmatpush.bf16.msra.mxu3 %v870_v24 }
  0x5f   : > { %527 = vmatmul.bf16.vlgmr.msra.gmra.mxu0 %v862_v25  ;;  %537 = vmatmul.bf16.vlgmr.msra.gmra.mxu1 %v864_v26 }
  0x60   : > { %547 = vmatmul.bf16.vlgmr.msra.gmra.mxu2 %v866_v27  ;;  %557 = vmatmul.bf16.vlgmr.msra.gmra.mxu3 %v868_v28 }
  0x6f   : > { %532 = vmatmul.bf16.gmra.mxu0 %v863_v29  ;;  %542 = vmatmul.bf16.gmra.mxu1 %v865_v30 }
  0x70   : > { %552 = vmatmul.bf16.gmra.mxu2 %v867_v31  ;;  %562 = vmatmul.bf16.gmra.mxu3 %v869_v32 }
  0xdc   : > { %v528_v35 = vpop.f32.mrf.mxu0  ;;  %v538_v36 = vpop.f32.mrf.mxu1 }
  0xdd   : > { %v568_v37 = vadd.f32 %v528_v35, %v375_v33  ;;  %v572_v38 = vadd.f32 %v538_v36, %v379_v34 }
  0xdf   : > { %584 = vst [vmem:[%s1356_s3] sm:$0xff] %v568_v37 }
  0xe0   : > { %588 = vst [vmem:[%s1356_s3 + $0x20] sm:$0xff] %v572_v38 }
  0xe3   : > { %v548_v43 = vpop.f32.mrf.mxu2  ;;  %v558_v44 = vpop.f32.mrf.mxu3 }
  0xe4   : > { %v576_v45 = vadd.f32 %v548_v43, %v383_v39  ;;  %v580_v46 = vadd.f32 %v558_v44, %v387_v40  ;;  %v530_v47 = vpop.f32.mrf.mxu0  ;;  %v540_v48 = vpop.f32.mrf.mxu1 }
  0xe5   : > { %v569_v49 = vadd.f32 %v530_v47, %v376_v41  ;;  %v573_v50 = vadd.f32 %v540_v48, %v380_v42 }
  0xe6   : > { %592 = vst [vmem:[%s1356_s3 + $0x40] sm:$0xff] %v576_v45 }
  0xe7   : > { %596 = vst [vmem:[%s1356_s3 + $0x60] sm:$0xff] %v580_v46 }
  0xe8   : > { %585 = vst [vmem:[%s1356_s3 + $0x8] sm:$0xff] %v569_v49 }
  0xe9   : > { %589 = vst [vmem:[%s1356_s3 + $0x28] sm:$0xff] %v573_v50 }
  0xeb   : > { %v550_v55 = vpop.f32.mrf.mxu2  ;;  %v560_v56 = vpop.f32.mrf.mxu3 }
  0xec   : > { %v577_v57 = vadd.f32 %v550_v55, %v384_v51  ;;  %v581_v58 = vadd.f32 %v560_v56, %v388_v52  ;;  %v533_v59 = vpop.f32.mrf.mxu0  ;;  %v543_v60 = vpop.f32.mrf.mxu1 }
  0xed   : > { %v570_v61 = vadd.f32 %v533_v59, %v377_v53  ;;  %v574_v62 = vadd.f32 %v543_v60, %v381_v54 }
  0xee   : > { %593 = vst [vmem:[%s1356_s3 + $0x48] sm:$0xff] %v577_v57 }
  0xef   : > { %597 = vst [vmem:[%s1356_s3 + $0x68] sm:$0xff] %v581_v58 }
  0xf0   : > { %586 = vst [vmem:[%s1356_s3 + $0x10] sm:$0xff] %v570_v61 }
  0xf1   : > { %590 = vst [vmem:[%s1356_s3 + $0x30] sm:$0xff] %v574_v62 }
  0xf3   : > { %v553_v3 = vpop.f32.mrf.mxu2  ;;  %v563_v4 = vpop.f32.mrf.mxu3 }
  0xf4   : > { %v578_v5 = vadd.f32 %v553_v3, %v385_v63  ;;  %v582_v6 = vadd.f32 %v563_v4, %v389_v0  ;;  %v535_v7 = vpop.f32.mrf.mxu0  ;;  %v545_v8 = vpop.f32.mrf.mxu1 }
  0xf5   : > { %v571_v9 = vadd.f32 %v535_v7, %v378_v1  ;;  %v575_v10 = vadd.f32 %v545_v8, %v382_v2 }
  0xf6   : > { %594 = vst [vmem:[%s1356_s3 + $0x50] sm:$0xff] %v578_v5 }
  0xf7   : > { %598 = vst [vmem:[%s1356_s3 + $0x70] sm:$0xff] %v582_v6 }
  0xf8   : > { %587 = vst [vmem:[%s1356_s3 + $0x18] sm:$0xff] %v571_v9 }
  0xf9   : > { %591 = vst [vmem:[%s1356_s3 + $0x38] sm:$0xff] %v575_v10 }
  0xfb   : > { %v555_v13 = vpop.f32.mrf.mxu2  ;;  %v565_v14 = vpop.f32.mrf.mxu3  ;;  %603 = sbr.rel (%p857_p11) target bundleno = 278 (0x116), region = 81 }
  0xfc   : > { %v579_v15 = vadd.f32 %v555_v13, %v386_v11  ;;  %v583_v16 = vadd.f32 %v565_v14, %v390_v12 }
  0xfe   : > { %595 = vst [vmem:[%s1356_s3 + $0x58] sm:$0xff] %v579_v15 }
  0xff   : > { %599 = vst [vmem:[%s1356_s3 + $0x78] sm:$0xff] %v583_v16 }
 0x100   : > { %v604_v17 = vld [vmem:[%s1356_s3] sm:$0xff]  ;;  %v605_v19 = vld [vmem:[%s1356_s3 + $0x8] sm:$0xff]  ;;  %v606_v20 = vld [vmem:[%s1356_s3 + $0x10] sm:$0xff] }
 0x101   : > { %v943_v18 = vld [vmem:[%s1355_s2] ss:$0 sm:$0xff]  ;;  %v607_v21 = vld [vmem:[%s1356_s3 + $0x18] sm:$0xff]  ;;  %v609_v27 = vld [vmem:[%s1356_s3 + $0x28] sm:$0xff] }
 0x102   : > { %v624_v22 = vadd.f32 %v943_v18, %v604_v17  ;;  %v625_v23 = vadd.f32 %v943_v18, %v605_v19  ;;  %v626_v24 = vadd.f32 %v943_v18, %v606_v20  ;;  %v627_v25 = vadd.f32 %v943_v18, %v607_v21  ;;  %v608_v26 = vld [vmem:[%s1356_s3 + $0x20] sm:$0xff]  ;;  %v610_v28 = vld [vmem:[%s1356_s3 + $0x30] sm:$0xff]  ;;  %v611_v31 = vld [vmem:[%s1356_s3 + $0x38] sm:$0xff] }
 0x103   : > { %v628_v29 = vadd.f32 %v943_v18, %v608_v26  ;;  %v629_v30 = vadd.f32 %v943_v18, %v609_v27  ;;  %v612_v32 = vld [vmem:[%s1356_s3 + $0x40] sm:$0xff]  ;;  %v630_v36 = vadd.f32 %v943_v18, %v610_v28  ;;  %v613_v37 = vld [vmem:[%s1356_s3 + $0x48] sm:$0xff]  ;;  %v631_v39 = vadd.f32 %v943_v18, %v611_v31  ;;  %v614_v40 = vld [vmem:[%s1356_s3 + $0x50] sm:$0xff] }
 0x104   : > { %v640_v33 = vmax.f32 %v624_v22, 0.0  ;;  %v641_v34 = vmax.f32 %v625_v23, 0.0  ;;  %v642_v35 = vmax.f32 %v626_v24, 0.0  ;;  %v643_v38 = vmax.f32 %v627_v25, 0.0  ;;  %v616_v46 = vld [vmem:[%s1356_s3 + $0x60] sm:$0xff]  ;;  %v617_v49 = vld [vmem:[%s1356_s3 + $0x68] sm:$0xff] }
 0x105   : > { %v644_v41 = vmax.f32 %v628_v29, 0.0  ;;  %v632_v42 = vadd.f32 %v943_v18, %v612_v32  ;;  %v615_v43 = vld [vmem:[%s1356_s3 + $0x58] sm:$0xff]  ;;  %v645_v44 = vmax.f32 %v629_v30, 0.0  ;;  %v633_v45 = vadd.f32 %v943_v18, %v613_v37  ;;  %v618_v52 = vld [vmem:[%s1356_s3 + $0x70] sm:$0xff] }
 0x106   : > { %656 = vst [vmem:[%s1356_s3] sm:$0xff] %v640_v33  ;;  %v646_v47 = vmax.f32 %v630_v36, 0.0  ;;  %v634_v48 = vadd.f32 %v943_v18, %v614_v40  ;;  %v647_v50 = vmax.f32 %v631_v39, 0.0  ;;  %v635_v51 = vadd.f32 %v943_v18, %v615_v43  ;;  %v619_v55 = vld [vmem:[%s1356_s3 + $0x78] sm:$0xff] }
 0x107   : > { %657 = vst [vmem:[%s1356_s3 + $0x8] sm:$0xff] %v641_v34  ;;  %v648_v53 = vmax.f32 %v632_v42, 0.0  ;;  %v636_v54 = vadd.f32 %v943_v18, %v616_v46  ;;  %v649_v56 = vmax.f32 %v633_v45, 0.0  ;;  %v637_v57 = vadd.f32 %v943_v18, %v617_v49 }
 0x108   : > { %658 = vst [vmem:[%s1356_s3 + $0x10] sm:$0xff] %v642_v35  ;;  %v650_v58 = vmax.f32 %v634_v48, 0.0  ;;  %v638_v59 = vadd.f32 %v943_v18, %v618_v52  ;;  %v651_v60 = vmax.f32 %v635_v51, 0.0  ;;  %v639_v61 = vadd.f32 %v943_v18, %v619_v55 }
 0x109   : > { %659 = vst [vmem:[%s1356_s3 + $0x18] sm:$0xff] %v643_v38  ;;  %v652_v62 = vmax.f32 %v636_v54, 0.0  ;;  %v653_v63 = vmax.f32 %v637_v57, 0.0 }
 0x10a   : > { %660 = vst [vmem:[%s1356_s3 + $0x20] sm:$0xff] %v644_v41  ;;  %v654_v0 = vmax.f32 %v638_v59, 0.0  ;;  %v655_v1 = vmax.f32 %v639_v61, 0.0 }
 0x10b   : > { %661 = vst [vmem:[%s1356_s3 + $0x28] sm:$0xff] %v645_v44 }
 0x10c   : > { %662 = vst [vmem:[%s1356_s3 + $0x30] sm:$0xff] %v646_v47 }
 0x10d   : > { %663 = vst [vmem:[%s1356_s3 + $0x38] sm:$0xff] %v647_v50 }
 0x10e   : > { %664 = vst [vmem:[%s1356_s3 + $0x40] sm:$0xff] %v648_v53 }
 0x10f   : > { %665 = vst [vmem:[%s1356_s3 + $0x48] sm:$0xff] %v649_v56 }
 0x110   : > { %666 = vst [vmem:[%s1356_s3 + $0x50] sm:$0xff] %v650_v58 }
 0x111   : > { %667 = vst [vmem:[%s1356_s3 + $0x58] sm:$0xff] %v651_v60 }
 0x112   : > { %668 = vst [vmem:[%s1356_s3 + $0x60] sm:$0xff] %v652_v62 }
 0x113   : > { %669 = vst [vmem:[%s1356_s3 + $0x68] sm:$0xff] %v653_v63 }
 0x114   : > { %670 = vst [vmem:[%s1356_s3 + $0x70] sm:$0xff] %v654_v0 }
 0x115   : > { %671 = vst [vmem:[%s1356_s3 + $0x78] sm:$0xff] %v655_v1 }
 0x116 PF: > { %s13_s16 = sadd.s32 1, %s982_s16   ;;  %s1357_s12 = smov %s970_s13 }
 0x117   : > { %p10_p12 = scmp.ge.s32.totalorder %s13_s16, 7   ;;  %s1358_s13 = smov %s1040_s20 }
 0x118   : > { %s1359_s14 = smov %s978_s15  ;;  %s1360_s15 = smov %s1362_s17 }
 0x119   :  { %12 = sbr.rel (!%p10_p12) target bundleno = 3 (0x3), region = 122 }

// kernel: res18feature_forward.23
= control target key start
LH: loop header
LB: loop body
LE: loop exit
PB: predicated region body
PF: predicated region fallthrough
CT: control target
= control target key end

     0   :  { %s1121_s15 = smov 0   ;;  %s1123_s16 = smov 0   ;;  %s1535_s0 = inlined_call_operand.vmem [shape: bf16[128,640], index: 0, kind: input, shape index: {}]   ;;  %s1536_s1 = inlined_call_operand.vmem [shape: bf16[640,128], index: 1, kind: input, shape index: {}]   ;;  %s1537_s2 = inlined_call_operand.vmem [shape: f32[1,128], index: 2, kind: input, shape index: {}]   ;;  %s1538_s3 = inlined_call_operand.vmem [shape: f32[128,128], index: 3, kind: input, shape index: {}]   ;;  %s1539_s4 = inlined_call_operand.vmem [shape: f32[128,128], index: 4, kind: output, shape index: {}]  }
   0x1   :  { %s1125_s17 = smov 0   ;;  %s1127_s18 = smov 0  }
   0x2   :  { %s1129_s19 = smov 0  }
   0x3 LB: > { %s26_s20 = sadd.s32 1, %s1089_s18  ;;  %p49_p1 = scmp.ne.s32.totalorder %s1081_s16, %s1077_s15  ;;  %s1093_s19 = sphi %s1129_s19, %s14_s19   ;;  %s1089_s18 = sphi %s1127_s18, %s1543_s18   ;;  %s1085_s17 = sphi %s1125_s17, %s1542_s17   ;;  %s1081_s16 = sphi %s1123_s16, %s1541_s16   ;;  %s1077_s15 = sphi %s1121_s15, %s1540_s15  }
   0x4   : > { %p27_p0 = scmp.ge.s32.totalorder %s26_s20, 5  ;;  %p50_p2 = scmp.eq.s32.totalorder %s1093_s19, 0 }
   0x5   : > { %s42_s22 = sadd.s32 1, %s1081_s16  ;;  %p896_p5 = scmp.ge.s32.totalorder %s1093_s19, 5 }
   0x6   : > { %s1545_s20 = smov (%p27_p0, %s26_s20), 0  ;;  %p51_p3 = por %p50_p2, %p49_p1 }
   0x7   : > { %s38_s21 = ssub.s32 %s1089_s18, %s1545_s20  ;;  %203 = sbr.rel (%p896_p5) target bundleno = 32 (0x20), region = 24 }
   0x8   : > { %p40_p4 = scmp.eq.s32.totalorder %s38_s21, 0 }
   0xa   : > { %s1156_s23 = scalar_select %p40_p4, %s1081_s16, %s42_s22  }
   0xc   : > { %206 = sbr.rel (!%p51_p3) target bundleno = 32 (0x20), region = 28  ;;  %s208_s24 = sand.u32 (%p51_p3), 1, %s1081_s16  }
   0xd   : > { %s898_s25 = sshll.u32 (%p51_p3), %s1089_s18, 2  ;;  %s897_s26 = sshll.u32 (%p51_p3), %s208_s24, 6 }
   0xe   : > { %s1164_s29 = scalar_lea.vmem (%p51_p3), %s1535_s0, %s898_s25  ;;  %s210_s30 = scalar_lea.vmem (%p51_p3), [#allocation2], %s897_s26 }
   0xf   : > { %v232_v0 = vld [vmem:[%s1164_s29] sm:$0xf] (%p51_p3)  ;;  %v234_v1 = vld [vmem:[%s1164_s29 + $0x14] sm:$0xf] (%p51_p3)  ;;  %v236_v2 = vld [vmem:[%s1164_s29 + $0x28] sm:$0xf] (%p51_p3) }
  0x10   : > { %233 = vst [vmem:[%s210_s30] sm:$0xf] (%p51_p3), %v232_v0  ;;  %v238_v3 = vld [vmem:[%s1164_s29 + $0x3c] sm:$0xf] (%p51_p3)  ;;  %v240_v4 = vld [vmem:[%s1164_s29 + $0x50] sm:$0xf] (%p51_p3) }
  0x11   : > { %235 = vst [vmem:[%s210_s30 + $0x4] sm:$0xf] %v234_v1  ;;  %v242_v5 = vld [vmem:[%s1164_s29 + $0x64] sm:$0xf]  ;;  %v244_v6 = vld [vmem:[%s1164_s29 + $0x78] sm:$0xf] }
  0x12   : > { %237 = vst [vmem:[%s210_s30 + $0x8] sm:$0xf] %v236_v2  ;;  %v246_v7 = vld [vmem:[%s1164_s29 + $0x8c] sm:$0xf]  ;;  %v248_v8 = vld [vmem:[%s1164_s29 + $0xa0] sm:$0xf] }
  0x13   : > { %239 = vst [vmem:[%s210_s30 + $0xc] sm:$0xf] %v238_v3  ;;  %v250_v9 = vld [vmem:[%s1164_s29 + $0xb4] sm:$0xf]  ;;  %v252_v10 = vld [vmem:[%s1164_s29 + $0xc8] sm:$0xf] }
  0x14   : > { %241 = vst [vmem:[%s210_s30 + $0x10] sm:$0xf] %v240_v4  ;;  %v254_v11 = vld [vmem:[%s1164_s29 + $0xdc] sm:$0xf]  ;;  %v256_v12 = vld [vmem:[%s1164_s29 + $0xf0] sm:$0xf] }
  0x15   : > { %243 = vst [vmem:[%s210_s30 + $0x14] sm:$0xf] %v242_v5  ;;  %v258_v13 = vld [vmem:[%s1164_s29 + $0x104] sm:$0xf]  ;;  %v260_v14 = vld [vmem:[%s1164_s29 + $0x118] sm:$0xf] }
  0x16   : > { %245 = vst [vmem:[%s210_s30 + $0x18] sm:$0xf] %v244_v6  ;;  %v262_v15 = vld [vmem:[%s1164_s29 + $0x12c] sm:$0xf] }
  0x17   : > { %247 = vst [vmem:[%s210_s30 + $0x1c] sm:$0xf] %v246_v7 }
  0x18   : > { %249 = vst [vmem:[%s210_s30 + $0x20] sm:$0xf] %v248_v8 }
  0x19   : > { %251 = vst [vmem:[%s210_s30 + $0x24] sm:$0xf] %v250_v9 }
  0x1a   : > { %253 = vst [vmem:[%s210_s30 + $0x28] sm:$0xf] %v252_v10 }
  0x1b   : > { %255 = vst [vmem:[%s210_s30 + $0x2c] sm:$0xf] %v254_v11 }
  0x1c   : > { %257 = vst [vmem:[%s210_s30 + $0x30] sm:$0xf] %v256_v12 }
  0x1d   : > { %259 = vst [vmem:[%s210_s30 + $0x34] sm:$0xf] %v258_v13 }
  0x1e   : > { %261 = vst [vmem:[%s210_s30 + $0x38] sm:$0xf] %v260_v14 }
  0x1f   : > { %263 = vst [vmem:[%s210_s30 + $0x3c] sm:$0xf] %v262_v15 }
  0x20 PF: > { %p899_p6 = scmp.ge.s32.totalorder %s1093_s19, 1  ;;  %p330_p7 = scmp.lt.s32.totalorder %s1093_s19, 6 }
  0x22   : > { %p331_p8 = pnand %p899_p6, %p330_p7 }
  0x23   : > { %s337_s5 = sand.u32 (!%p331_p8), 1, %s1077_s15   ;;  %s901_s6 = sshll.u32 (!%p331_p8), %s1085_s17, 4 }
  0x24   : > { %334 = sbr.rel (%p331_p8) target bundleno = 280 (0x118), region = 73  ;;  %s900_s7 = sshll.u32 (!%p331_p8), %s337_s5, 6 }
  0x25   : > { %p386_p9 = scmp.lt.s32.totalorder (!%p331_p8), %s901_s6, 79  ;;  %s1191_s12 = scalar_lea.vmem (!%p331_p8), [#allocation2], %s900_s7 }
  0x26   : > { %p903_p10 = scmp.ne.s32.totalorder (!%p331_p8), %s1085_s17, 0 }
  0x29   : > { %s1547_s6 = smov (!%p386_p9, %s901_s6), 79  ;;  %418 = sbr.rel (%p903_p10) target bundleno = 63 (0x3f), region = 81 }
  0x2a   : > { %s902_s8 = sshll.u32 %s1547_s6, 2 }
  0x2b   : > { %s1189_s11 = scalar_lea.vmem %s1536_s1, %s902_s8 }
  0x2e   : > { %v1095_v16 = vmov 0.0  }
  0x2f   : > { %419 = vst [vmem:[%s1539_s4] sm:$0xff] %v1095_v16 }
  0x30   : > { %420 = vst [vmem:[%s1539_s4 + $0x8] sm:$0xff] %v1095_v16 }
  0x31   : > { %421 = vst [vmem:[%s1539_s4 + $0x10] sm:$0xff] %v1095_v16 }
  0x32   : > { %422 = vst [vmem:[%s1539_s4 + $0x18] sm:$0xff] %v1095_v16 }
  0x33   : > { %423 = vst [vmem:[%s1539_s4 + $0x20] sm:$0xff] %v1095_v16 }
  0x34   : > { %424 = vst [vmem:[%s1539_s4 + $0x28] sm:$0xff] %v1095_v16 }
  0x35   : > { %425 = vst [vmem:[%s1539_s4 + $0x30] sm:$0xff] %v1095_v16 }
  0x36   : > { %426 = vst [vmem:[%s1539_s4 + $0x38] sm:$0xff] %v1095_v16 }
  0x37   : > { %427 = vst [vmem:[%s1539_s4 + $0x40] sm:$0xff] %v1095_v16 }
  0x38   : > { %428 = vst [vmem:[%s1539_s4 + $0x48] sm:$0xff] %v1095_v16 }
  0x39   : > { %429 = vst [vmem:[%s1539_s4 + $0x50] sm:$0xff] %v1095_v16 }
  0x3a   : > { %430 = vst [vmem:[%s1539_s4 + $0x58] sm:$0xff] %v1095_v16 }
  0x3b   : > { %431 = vst [vmem:[%s1539_s4 + $0x60] sm:$0xff] %v1095_v16 }
  0x3c   : > { %432 = vst [vmem:[%s1539_s4 + $0x68] sm:$0xff] %v1095_v16 }
  0x3d   : > { %433 = vst [vmem:[%s1539_s4 + $0x70] sm:$0xff] %v1095_v16 }
  0x3e   : > { %434 = vst [vmem:[%s1539_s4 + $0x78] sm:$0xff] %v1095_v16 }
  0x3f PF: > { %v988_v17 = vld [vmem:[%s1189_s11 + $0x38] sm:$0xff]  ;;  %v987_v18 = vld [vmem:[%s1189_s11 + $0x30] sm:$0xff]  ;;  %v986_v19 = vld [vmem:[%s1189_s11 + $0x28] sm:$0xff]  ;;  %p968_p11 = scmp.ne.s32.totalorder %s1085_s17, 4 }
  0x40   : > { %579 = vmatpush.bf16.msra.mxu0 %v988_v17  ;;  %989 = vmatpush.bf16.msra.mxu1 %v988_v17  ;;  %v985_v20 = vld [vmem:[%s1189_s11 + $0x20] sm:$0xff]  ;;  %v984_v21 = vld [vmem:[%s1189_s11 + $0x18] sm:$0xff]  ;;  %v983_v22 = vld [vmem:[%s1189_s11 + $0x10] sm:$0xff] }
  0x41   : > { %990 = vmatpush.bf16.msra.mxu2 %v988_v17  ;;  %991 = vmatpush.bf16.msra.mxu3 %v988_v17  ;;  %v982_v23 = vld [vmem:[%s1189_s11 + $0x8] sm:$0xff]  ;;  %v981_v24 = vld [vmem:[%s1189_s11] sm:$0xff]  ;;  %v975_v26 = vld [vmem:[%s1191_s12 + $0x10] sm:$0xff] }
  0x42   : > { %v973_v25 = vld [vmem:[%s1191_s12] sm:$0xff]  ;;  %v979_v28 = vld [vmem:[%s1191_s12 + $0x30] sm:$0xff]  ;;  %v974_v29 = vld [vmem:[%s1191_s12 + $0x8] sm:$0xff] }
  0x43   : > { %v977_v27 = vld [vmem:[%s1191_s12 + $0x20] sm:$0xff]  ;;  %v976_v30 = vld [vmem:[%s1191_s12 + $0x18] sm:$0xff]  ;;  %v978_v31 = vld [vmem:[%s1191_s12 + $0x28] sm:$0xff] }
  0x44   : > { %580 = vmatpush.bf16.msra.mxu0 %v987_v18  ;;  %992 = vmatpush.bf16.msra.mxu1 %v987_v18  ;;  %v980_v32 = vld [vmem:[%s1191_s12 + $0x38] sm:$0xff]  ;;  %v435_v33 = vld [vmem:[%s1539_s4] sm:$0xff]  ;;  %v436_v41 = vld [vmem:[%s1539_s4 + $0x8] sm:$0xff] }
  0x45   : > { %993 = vmatpush.bf16.msra.mxu2 %v987_v18  ;;  %994 = vmatpush.bf16.msra.mxu3 %v987_v18  ;;  %v439_v34 = vld [vmem:[%s1539_s4 + $0x20] sm:$0xff]  ;;  %v440_v42 = vld [vmem:[%s1539_s4 + $0x28] sm:$0xff]  ;;  %v437_v53 = vld [vmem:[%s1539_s4 + $0x10] sm:$0xff] }
  0x46   : > { %v443_v39 = vld [vmem:[%s1539_s4 + $0x40] sm:$0xff]  ;;  %v444_v51 = vld [vmem:[%s1539_s4 + $0x48] sm:$0xff]  ;;  %v441_v54 = vld [vmem:[%s1539_s4 + $0x30] sm:$0xff] }
  0x47   : > { %v447_v40 = vld [vmem:[%s1539_s4 + $0x60] sm:$0xff]  ;;  %v448_v52 = vld [vmem:[%s1539_s4 + $0x68] sm:$0xff]  ;;  %v445_v63 = vld [vmem:[%s1539_s4 + $0x50] sm:$0xff] }
  0x48   : > { %581 = vmatpush.bf16.msra.mxu0 %v986_v19  ;;  %995 = vmatpush.bf16.msra.mxu1 %v986_v19  ;;  %v449_v0 = vld [vmem:[%s1539_s4 + $0x70] sm:$0xff]  ;;  %v438_v1 = vld [vmem:[%s1539_s4 + $0x18] sm:$0xff] }
  0x49   : > { %996 = vmatpush.bf16.msra.mxu2 %v986_v19  ;;  %997 = vmatpush.bf16.msra.mxu3 %v986_v19  ;;  %v442_v2 = vld [vmem:[%s1539_s4 + $0x38] sm:$0xff] }
  0x4a   : > { %v446_v11 = vld [vmem:[%s1539_s4 + $0x58] sm:$0xff] }
  0x4b   : > { %v450_v12 = vld [vmem:[%s1539_s4 + $0x78] sm:$0xff] }
  0x4c   : > { %582 = vmatpush.bf16.msra.mxu0 %v985_v20  ;;  %998 = vmatpush.bf16.msra.mxu1 %v985_v20 }
  0x4d   : > { %999 = vmatpush.bf16.msra.mxu2 %v985_v20  ;;  %1000 = vmatpush.bf16.msra.mxu3 %v985_v20 }
  0x50   : > { %583 = vmatpush.bf16.msra.mxu0 %v984_v21  ;;  %1001 = vmatpush.bf16.msra.mxu1 %v984_v21 }
  0x51   : > { %1002 = vmatpush.bf16.msra.mxu2 %v984_v21  ;;  %1003 = vmatpush.bf16.msra.mxu3 %v984_v21 }
  0x54   : > { %584 = vmatpush.bf16.msra.mxu0 %v983_v22  ;;  %1004 = vmatpush.bf16.msra.mxu1 %v983_v22 }
  0x55   : > { %1005 = vmatpush.bf16.msra.mxu2 %v983_v22  ;;  %1006 = vmatpush.bf16.msra.mxu3 %v983_v22 }
  0x58   : > { %585 = vmatpush.bf16.msra.mxu0 %v982_v23  ;;  %1007 = vmatpush.bf16.msra.mxu1 %v982_v23 }
  0x59   : > { %1008 = vmatpush.bf16.msra.mxu2 %v982_v23  ;;  %1009 = vmatpush.bf16.msra.mxu3 %v982_v23 }
  0x5c   : > { %586 = vmatpush.bf16.msra.mxu0 %v981_v24  ;;  %1010 = vmatpush.bf16.msra.mxu1 %v981_v24 }
  0x5d   : > { %1011 = vmatpush.bf16.msra.mxu2 %v981_v24  ;;  %1012 = vmatpush.bf16.msra.mxu3 %v981_v24 }
  0x5f   : > { %587 = vmatmul.bf16.vlgmr.msra.gmra.mxu0 %v973_v25  ;;  %597 = vmatmul.bf16.vlgmr.msra.gmra.mxu1 %v975_v26 }
  0x60   : > { %607 = vmatmul.bf16.vlgmr.msra.gmra.mxu2 %v977_v27  ;;  %617 = vmatmul.bf16.vlgmr.msra.gmra.mxu3 %v979_v28 }
  0x6f   : > { %592 = vmatmul.bf16.gmra.mxu0 %v974_v29  ;;  %602 = vmatmul.bf16.gmra.mxu1 %v976_v30 }
  0x70   : > { %612 = vmatmul.bf16.gmra.mxu2 %v978_v31  ;;  %622 = vmatmul.bf16.gmra.mxu3 %v980_v32 }
  0xdc   : > { %v588_v35 = vpop.f32.mrf.mxu0  ;;  %v598_v36 = vpop.f32.mrf.mxu1 }
  0xdd   : > { %v628_v37 = vadd.f32 %v588_v35, %v435_v33  ;;  %v632_v38 = vadd.f32 %v598_v36, %v439_v34 }
  0xdf   : > { %644 = vst [vmem:[%s1539_s4] sm:$0xff] %v628_v37 }
  0xe0   : > { %648 = vst [vmem:[%s1539_s4 + $0x20] sm:$0xff] %v632_v38 }
  0xe3   : > { %v608_v43 = vpop.f32.mrf.mxu2  ;;  %v618_v44 = vpop.f32.mrf.mxu3 }
  0xe4   : > { %v636_v45 = vadd.f32 %v608_v43, %v443_v39  ;;  %v640_v46 = vadd.f32 %v618_v44, %v447_v40  ;;  %v590_v47 = vpop.f32.mrf.mxu0  ;;  %v600_v48 = vpop.f32.mrf.mxu1 }
  0xe5   : > { %v629_v49 = vadd.f32 %v590_v47, %v436_v41  ;;  %v633_v50 = vadd.f32 %v600_v48, %v440_v42 }
  0xe6   : > { %652 = vst [vmem:[%s1539_s4 + $0x40] sm:$0xff] %v636_v45 }
  0xe7   : > { %656 = vst [vmem:[%s1539_s4 + $0x60] sm:$0xff] %v640_v46 }
  0xe8   : > { %645 = vst [vmem:[%s1539_s4 + $0x8] sm:$0xff] %v629_v49 }
  0xe9   : > { %649 = vst [vmem:[%s1539_s4 + $0x28] sm:$0xff] %v633_v50 }
  0xeb   : > { %v610_v55 = vpop.f32.mrf.mxu2  ;;  %v620_v56 = vpop.f32.mrf.mxu3 }
  0xec   : > { %v637_v57 = vadd.f32 %v610_v55, %v444_v51  ;;  %v641_v58 = vadd.f32 %v620_v56, %v448_v52  ;;  %v593_v59 = vpop.f32.mrf.mxu0  ;;  %v603_v60 = vpop.f32.mrf.mxu1 }
  0xed   : > { %v630_v61 = vadd.f32 %v593_v59, %v437_v53  ;;  %v634_v62 = vadd.f32 %v603_v60, %v441_v54 }
  0xee   : > { %653 = vst [vmem:[%s1539_s4 + $0x48] sm:$0xff] %v637_v57 }
  0xef   : > { %657 = vst [vmem:[%s1539_s4 + $0x68] sm:$0xff] %v641_v58 }
  0xf0   : > { %646 = vst [vmem:[%s1539_s4 + $0x10] sm:$0xff] %v630_v61 }
  0xf1   : > { %650 = vst [vmem:[%s1539_s4 + $0x30] sm:$0xff] %v634_v62 }
  0xf3   : > { %v613_v3 = vpop.f32.mrf.mxu2  ;;  %v623_v4 = vpop.f32.mrf.mxu3 }
  0xf4   : > { %v638_v5 = vadd.f32 %v613_v3, %v445_v63  ;;  %v642_v6 = vadd.f32 %v623_v4, %v449_v0  ;;  %v595_v7 = vpop.f32.mrf.mxu0  ;;  %v605_v8 = vpop.f32.mrf.mxu1 }
  0xf5   : > { %v631_v9 = vadd.f32 %v595_v7, %v438_v1  ;;  %v635_v10 = vadd.f32 %v605_v8, %v442_v2 }
  0xf6   : > { %654 = vst [vmem:[%s1539_s4 + $0x50] sm:$0xff] %v638_v5 }
  0xf7   : > { %658 = vst [vmem:[%s1539_s4 + $0x70] sm:$0xff] %v642_v6 }
  0xf8   : > { %647 = vst [vmem:[%s1539_s4 + $0x18] sm:$0xff] %v631_v9 }
  0xf9   : > { %651 = vst [vmem:[%s1539_s4 + $0x38] sm:$0xff] %v635_v10 }
  0xfb   : > { %v615_v13 = vpop.f32.mrf.mxu2  ;;  %v625_v14 = vpop.f32.mrf.mxu3  ;;  %663 = sbr.rel (%p968_p11) target bundleno = 280 (0x118), region = 85 }
  0xfc   : > { %v639_v15 = vadd.f32 %v615_v13, %v446_v11  ;;  %v643_v16 = vadd.f32 %v625_v14, %v450_v12 }
  0xfe   : > { %655 = vst [vmem:[%s1539_s4 + $0x58] sm:$0xff] %v639_v15 }
  0xff   : > { %659 = vst [vmem:[%s1539_s4 + $0x78] sm:$0xff] %v643_v16 }
 0x100   : > { %v664_v17 = vld [vmem:[%s1539_s4] sm:$0xff]  ;;  %v665_v20 = vld [vmem:[%s1539_s4 + $0x8] sm:$0xff]  ;;  %v666_v24 = vld [vmem:[%s1539_s4 + $0x10] sm:$0xff] }
 0x101   : > { %v1361_v18 = vld [vmem:[%s1537_s2] ss:$0 sm:$0xff]  ;;  %v701_v21 = vld [vmem:[%s1538_s3 + $0x8] sm:$0xff]  ;;  %v702_v25 = vld [vmem:[%s1538_s3 + $0x10] sm:$0xff] }
 0x102   : > { %v700_v19 = vld [vmem:[%s1538_s3] sm:$0xff]  ;;  %v684_v22 = vadd.f32 %v1361_v18, %v664_v17  ;;  %v685_v23 = vadd.f32 %v1361_v18, %v665_v20  ;;  %v667_v26 = vld [vmem:[%s1539_s4 + $0x18] sm:$0xff]  ;;  %v686_v27 = vadd.f32 %v1361_v18, %v666_v24  ;;  %v669_v35 = vld [vmem:[%s1539_s4 + $0x28] sm:$0xff] }
 0x103   : > { %v687_v28 = vadd.f32 %v1361_v18, %v667_v26  ;;  %v703_v29 = vld [vmem:[%s1538_s3 + $0x18] sm:$0xff]  ;;  %v668_v30 = vld [vmem:[%s1539_s4 + $0x20] sm:$0xff]  ;;  %v705_v36 = vld [vmem:[%s1538_s3 + $0x28] sm:$0xff]  ;;  %v689_v40 = vadd.f32 %v1361_v18, %v669_v35 }
 0x104   : > { %v704_v31 = vld [vmem:[%s1538_s3 + $0x20] sm:$0xff]  ;;  %v716_v32 = vadd.f32 %v700_v19, %v684_v22  ;;  %v717_v33 = vadd.f32 %v701_v21, %v685_v23  ;;  %v688_v34 = vadd.f32 %v1361_v18, %v668_v30  ;;  %v670_v37 = vld [vmem:[%s1539_s4 + $0x30] sm:$0xff]  ;;  %v718_v38 = vadd.f32 %v702_v25, %v686_v27  ;;  %v671_v43 = vld [vmem:[%s1539_s4 + $0x38] sm:$0xff] }
 0x105   : > { %v719_v39 = vadd.f32 %v703_v29, %v687_v28  ;;  %v690_v41 = vadd.f32 %v1361_v18, %v670_v37  ;;  %v706_v42 = vld [vmem:[%s1538_s3 + $0x30] sm:$0xff]  ;;  %v707_v44 = vld [vmem:[%s1538_s3 + $0x38] sm:$0xff]  ;;  %v691_v48 = vadd.f32 %v1361_v18, %v671_v43  ;;  %v672_v49 = vld [vmem:[%s1539_s4 + $0x40] sm:$0xff]  ;;  %v721_v54 = vadd.f32 %v705_v36, %v689_v40 }
 0x106   : > { %v732_v45 = vmax.f32 %v716_v32, 0.0  ;;  %v733_v46 = vmax.f32 %v717_v33, 0.0  ;;  %v720_v47 = vadd.f32 %v704_v31, %v688_v34  ;;  %v708_v50 = vld [vmem:[%s1538_s3 + $0x40] sm:$0xff]  ;;  %v673_v51 = vld [vmem:[%s1539_s4 + $0x48] sm:$0xff]  ;;  %v734_v52 = vmax.f32 %v718_v38, 0.0  ;;  %v674_v57 = vld [vmem:[%s1539_s4 + $0x50] sm:$0xff] }
 0x107   : > { %v735_v53 = vmax.f32 %v719_v39, 0.0  ;;  %v722_v55 = vadd.f32 %v706_v42, %v690_v41  ;;  %v709_v56 = vld [vmem:[%s1538_s3 + $0x48] sm:$0xff]  ;;  %v710_v58 = vld [vmem:[%s1538_s3 + $0x50] sm:$0xff]  ;;  %v723_v60 = vadd.f32 %v707_v44, %v691_v48  ;;  %v692_v61 = vadd.f32 %v1361_v18, %v672_v49  ;;  %v675_v63 = vld [vmem:[%s1539_s4 + $0x58] sm:$0xff] }
 0x108   : > { %748 = vst [vmem:[%s1539_s4] sm:$0xff] %v732_v45  ;;  %v736_v59 = vmax.f32 %v720_v47, 0.0  ;;  %v693_v62 = vadd.f32 %v1361_v18, %v673_v51  ;;  %v711_v0 = vld [vmem:[%s1538_s3 + $0x58] sm:$0xff]  ;;  %v676_v1 = vld [vmem:[%s1539_s4 + $0x60] sm:$0xff]  ;;  %v737_v2 = vmax.f32 %v721_v54, 0.0  ;;  %v694_v4 = vadd.f32 %v1361_v18, %v674_v57  ;;  %v677_v7 = vld [vmem:[%s1539_s4 + $0x68] sm:$0xff] }
 0x109   : > { %749 = vst [vmem:[%s1539_s4 + $0x8] sm:$0xff] %v733_v46  ;;  %v738_v3 = vmax.f32 %v722_v55, 0.0  ;;  %v695_v5 = vadd.f32 %v1361_v18, %v675_v63  ;;  %v712_v6 = vld [vmem:[%s1538_s3 + $0x60] sm:$0xff]  ;;  %v739_v8 = vmax.f32 %v723_v60, 0.0  ;;  %v724_v9 = vadd.f32 %v708_v50, %v692_v61  ;;  %v713_v12 = vld [vmem:[%s1538_s3 + $0x68] sm:$0xff]  ;;  %v678_v13 = vld [vmem:[%s1539_s4 + $0x70] sm:$0xff] }
 0x10a   : > { %750 = vst [vmem:[%s1539_s4 + $0x10] sm:$0xff] %v734_v52  ;;  %v725_v10 = vadd.f32 %v709_v56, %v693_v62  ;;  %v696_v11 = vadd.f32 %v1361_v18, %v676_v1  ;;  %v679_v14 = vld [vmem:[%s1539_s4 + $0x78] sm:$0xff]  ;;  %v726_v15 = vadd.f32 %v710_v58, %v694_v4  ;;  %v697_v17 = vadd.f32 %v1361_v18, %v677_v7  ;;  %v714_v20 = vld [vmem:[%s1538_s3 + $0x70] sm:$0xff] }
 0x10b   : > { %751 = vst [vmem:[%s1539_s4 + $0x18] sm:$0xff] %v735_v53  ;;  %v727_v16 = vadd.f32 %v711_v0, %v695_v5  ;;  %v698_v19 = vadd.f32 %v1361_v18, %v678_v13  ;;  %v740_v21 = vmax.f32 %v724_v9, 0.0  ;;  %v699_v23 = vadd.f32 %v1361_v18, %v679_v14  ;;  %v715_v24 = vld [vmem:[%s1538_s3 + $0x78] sm:$0xff] }
 0x10c   : > { %752 = vst [vmem:[%s1539_s4 + $0x20] sm:$0xff] %v736_v59  ;;  %v728_v22 = vadd.f32 %v712_v6, %v696_v11  ;;  %v741_v25 = vmax.f32 %v725_v10, 0.0  ;;  %v729_v26 = vadd.f32 %v713_v12, %v697_v17  ;;  %v742_v27 = vmax.f32 %v726_v15, 0.0 }
 0x10d   : > { %753 = vst [vmem:[%s1539_s4 + $0x28] sm:$0xff] %v737_v2  ;;  %v730_v28 = vadd.f32 %v714_v20, %v698_v19  ;;  %v743_v18 = vmax.f32 %v727_v16, 0.0  ;;  %v731_v29 = vadd.f32 %v715_v24, %v699_v23 }
 0x10e   : > { %754 = vst [vmem:[%s1539_s4 + $0x30] sm:$0xff] %v738_v3  ;;  %v744_v30 = vmax.f32 %v728_v22, 0.0  ;;  %v745_v31 = vmax.f32 %v729_v26, 0.0 }
 0x10f   : > { %755 = vst [vmem:[%s1539_s4 + $0x38] sm:$0xff] %v739_v8  ;;  %v746_v32 = vmax.f32 %v730_v28, 0.0  ;;  %v747_v33 = vmax.f32 %v731_v29, 0.0 }
 0x110   : > { %756 = vst [vmem:[%s1539_s4 + $0x40] sm:$0xff] %v740_v21 }
 0x111   : > { %757 = vst [vmem:[%s1539_s4 + $0x48] sm:$0xff] %v741_v25 }
 0x112   : > { %758 = vst [vmem:[%s1539_s4 + $0x50] sm:$0xff] %v742_v27 }
 0x113   : > { %759 = vst [vmem:[%s1539_s4 + $0x58] sm:$0xff] %v743_v18 }
 0x114   : > { %760 = vst [vmem:[%s1539_s4 + $0x60] sm:$0xff] %v744_v30 }
 0x115   : > { %761 = vst [vmem:[%s1539_s4 + $0x68] sm:$0xff] %v745_v31 }
 0x116   : > { %762 = vst [vmem:[%s1539_s4 + $0x70] sm:$0xff] %v746_v32 }
 0x117   : > { %763 = vst [vmem:[%s1539_s4 + $0x78] sm:$0xff] %v747_v33 }
 0x118 PF: > { %s14_s19 = sadd.s32 1, %s1093_s19   ;;  %s1540_s15 = smov %s1081_s16 }
 0x119   : > { %p11_p12 = scmp.ge.s32.totalorder %s14_s19, 7   ;;  %s1541_s16 = smov %s1156_s23 }
 0x11a   : > { %s1542_s17 = smov %s1089_s18  ;;  %s1543_s18 = smov %s1545_s20 }
 0x11b   :  { %13 = sbr.rel (!%p11_p12) target bundleno = 3 (0x3), region = 129 }

// kernel: res18feature_forward.27
= control target key start
LH: loop header
LB: loop body
LE: loop exit
PB: predicated region body
PF: predicated region fallthrough
CT: control target
= control target key end

     0   :  { %s737_s12 = smov 0   ;;  %s739_s13 = smov 0   ;;  %s884_s0 = inlined_call_operand.vmem [shape: bf16[32,640], index: 0, kind: input, shape index: {}]   ;;  %s885_s1 = inlined_call_operand.vmem [shape: bf16[640,128], index: 1, kind: input, shape index: {}]   ;;  %s886_s2 = inlined_call_operand.vmem [shape: f32[1,128], index: 2, kind: input, shape index: {}]   ;;  %s887_s3 = inlined_call_operand.vmem [shape: f32[32,128], index: 3, kind: output, shape index: {}]  }
   0x1   :  { %s741_s14 = smov 0   ;;  %s743_s15 = smov 0  }
   0x2   :  { %s745_s16 = smov 0  }
   0x3 LB: > { %s25_s17 = sadd.s32 1, %s710_s15  ;;  %p48_p1 = scmp.ne.s32.totalorder %s702_s13, %s698_s12  ;;  %s714_s16 = sphi %s745_s16, %s13_s16   ;;  %s710_s15 = sphi %s743_s15, %s891_s15   ;;  %s706_s14 = sphi %s741_s14, %s890_s14   ;;  %s702_s13 = sphi %s739_s13, %s889_s13   ;;  %s698_s12 = sphi %s737_s12, %s888_s12  }
   0x4   : > { %p26_p0 = scmp.ge.s32.totalorder %s25_s17, 5  ;;  %p49_p2 = scmp.eq.s32.totalorder %s714_s16, 0 }
   0x5   : > { %s41_s19 = sadd.s32 1, %s702_s13  ;;  %p563_p5 = scmp.ge.s32.totalorder %s714_s16, 5 }
   0x6   : > { %s893_s17 = smov (%p26_p0, %s25_s17), 0  ;;  %p50_p3 = por %p49_p2, %p48_p1 }
   0x7   : > { %s37_s18 = ssub.s32 %s710_s15, %s893_s17  ;;  %162 = sbr.rel (%p563_p5) target bundleno = 20 (0x14), region = 20 }
   0x8   : > { %p39_p4 = scmp.eq.s32.totalorder %s37_s18, 0 }
   0xa   : > { %s772_s20 = scalar_select %p39_p4, %s702_s13, %s41_s19  }
   0xc   : > { %165 = sbr.rel (!%p50_p3) target bundleno = 20 (0x14), region = 24  ;;  %s167_s21 = sand.u32 (%p50_p3), 1, %s702_s13  }
   0xd   : > { %s565_s22 = sshll.u32 (%p50_p3), %s710_s15, 2  ;;  %s564_s23 = sshll.u32 (%p50_p3), %s167_s21, 4 }
   0xe   : > { %s174_s26 = scalar_lea.vmem (%p50_p3), %s884_s0, %s565_s22  ;;  %s169_s27 = scalar_lea.vmem (%p50_p3), [#allocation2], %s564_s23 }
   0xf   : > { %v191_v0 = vld [vmem:[%s174_s26] sm:$0xf] (%p50_p3)  ;;  %v193_v1 = vld [vmem:[%s174_s26 + $0x14] sm:$0xf] (%p50_p3)  ;;  %v195_v2 = vld [vmem:[%s174_s26 + $0x28] sm:$0xf] (%p50_p3) }
  0x10   : > { %192 = vst [vmem:[%s169_s27] sm:$0xf] (%p50_p3), %v191_v0  ;;  %v197_v3 = vld [vmem:[%s174_s26 + $0x3c] sm:$0xf] (%p50_p3) }
  0x11   : > { %194 = vst [vmem:[%s169_s27 + $0x4] sm:$0xf] %v193_v1 }
  0x12   : > { %196 = vst [vmem:[%s169_s27 + $0x8] sm:$0xf] %v195_v2 }
  0x13   : > { %198 = vst [vmem:[%s169_s27 + $0xc] sm:$0xf] %v197_v3 }
  0x14 PF: > { %p566_p6 = scmp.ge.s32.totalorder %s714_s16, 1  ;;  %p241_p7 = scmp.lt.s32.totalorder %s714_s16, 6 }
  0x16   : > { %p242_p8 = pnand %p566_p6, %p241_p7 }
  0x17   : > { %s248_s28 = sand.u32 (!%p242_p8), 1, %s698_s12   ;;  %s568_s29 = sshll.u32 (!%p242_p8), %s706_s14, 4 }
  0x18   : > { %245 = sbr.rel (%p242_p8) target bundleno = 221 (0xdd), region = 69  ;;  %s784_s30 = sshll.u32 (!%p242_p8), %s248_s28, 4 }
  0x19   : > { %p287_p9 = scmp.lt.s32.totalorder (!%p242_p8), %s568_s29, 79  ;;  %s250_s8 = scalar_lea.vmem (!%p242_p8), [#allocation2], %s784_s30 }
  0x1a   : > { %p570_p10 = scmp.ne.s32.totalorder (!%p242_p8), %s706_s14, 0 }
  0x1d   : > { %s895_s29 = smov (!%p287_p9, %s568_s29), 79  ;;  %310 = sbr.rel (%p570_p10) target bundleno = 39 (0x27), region = 77 }
  0x1e   : > { %s569_s4 = sshll.u32 %s895_s29, 2 }
  0x1f   : > { %s789_s7 = scalar_lea.vmem %s885_s1, %s569_s4 }
  0x22   : > { %v716_v4 = vmov 0.0  }
  0x23   : > { %311 = vst [vmem:[%s887_s3] sm:$0xff] %v716_v4 }
  0x24   : > { %312 = vst [vmem:[%s887_s3 + $0x8] sm:$0xff] %v716_v4 }
  0x25   : > { %313 = vst [vmem:[%s887_s3 + $0x10] sm:$0xff] %v716_v4 }
  0x26   : > { %314 = vst [vmem:[%s887_s3 + $0x18] sm:$0xff] %v716_v4 }
  0x27 PF: > { %v625_v5 = vld [vmem:[%s789_s7 + $0x38] sm:$0xff]  ;;  %v624_v6 = vld [vmem:[%s789_s7 + $0x30] sm:$0xff]  ;;  %v623_v7 = vld [vmem:[%s789_s7 + $0x28] sm:$0xff]  ;;  %p611_p11 = scmp.ne.s32.totalorder %s706_s14, 4 }
  0x28   : > { %399 = vmatpush.bf16.msra.mxu0 %v625_v5  ;;  %626 = vmatpush.bf16.msra.mxu1 %v625_v5  ;;  %v622_v8 = vld [vmem:[%s789_s7 + $0x20] sm:$0xff]  ;;  %v621_v9 = vld [vmem:[%s789_s7 + $0x18] sm:$0xff]  ;;  %v620_v10 = vld [vmem:[%s789_s7 + $0x10] sm:$0xff] }
  0x29   : > { %v619_v11 = vld [vmem:[%s789_s7 + $0x8] sm:$0xff]  ;;  %v618_v12 = vld [vmem:[%s789_s7] sm:$0xff] }
  0x2a   : > { %v616_v13 = vld [vmem:[%s250_s8] sm:$0xff]  ;;  %v617_v14 = vld [vmem:[%s250_s8 + $0x8] sm:$0xff] }
  0x2b   : > { %v315_v15 = vld [vmem:[%s887_s3] sm:$0xff]  ;;  %v316_v21 = vld [vmem:[%s887_s3 + $0x8] sm:$0xff] }
  0x2c   : > { %400 = vmatpush.bf16.msra.mxu0 %v624_v6  ;;  %627 = vmatpush.bf16.msra.mxu1 %v624_v6  ;;  %v317_v16 = vld [vmem:[%s887_s3 + $0x10] sm:$0xff] }
  0x2d   : > { %v318_v22 = vld [vmem:[%s887_s3 + $0x18] sm:$0xff] }
  0x30   : > { %401 = vmatpush.bf16.msra.mxu0 %v623_v7  ;;  %628 = vmatpush.bf16.msra.mxu1 %v623_v7 }
  0x34   : > { %402 = vmatpush.bf16.msra.mxu0 %v622_v8  ;;  %629 = vmatpush.bf16.msra.mxu1 %v622_v8 }
  0x38   : > { %403 = vmatpush.bf16.msra.mxu0 %v621_v9  ;;  %630 = vmatpush.bf16.msra.mxu1 %v621_v9 }
  0x3c   : > { %404 = vmatpush.bf16.msra.mxu0 %v620_v10  ;;  %631 = vmatpush.bf16.msra.mxu1 %v620_v10 }
  0x40   : > { %405 = vmatpush.bf16.msra.mxu0 %v619_v11  ;;  %632 = vmatpush.bf16.msra.mxu1 %v619_v11 }
  0x44   : > { %406 = vmatpush.bf16.msra.mxu0 %v618_v12  ;;  %633 = vmatpush.bf16.msra.mxu1 %v618_v12 }
  0x47   : > { %407 = vmatmul.bf16.vlgmr.msra.gmra.mxu0 %v616_v13  ;;  %412 = vmatmul.bf16.vlgmr.msra.gmra.mxu1 %v617_v14 }
  0xc4   : > { %v408_v17 = vpop.f32.mrf.mxu0  ;;  %v413_v18 = vpop.f32.mrf.mxu1 }
  0xc5   : > { %v418_v19 = vadd.f32 %v408_v17, %v315_v15  ;;  %v420_v20 = vadd.f32 %v413_v18, %v317_v16 }
  0xc7   : > { %422 = vst [vmem:[%s887_s3] sm:$0xff] %v418_v19 }
  0xc8   : > { %424 = vst [vmem:[%s887_s3 + $0x10] sm:$0xff] %v420_v20 }
  0xcc   : > { %v410_v23 = vpop.f32.mrf.mxu0  ;;  %v415_v24 = vpop.f32.mrf.mxu1  ;;  %429 = sbr.rel (%p611_p11) target bundleno = 221 (0xdd), region = 81 }
  0xcd   : > { %v419_v25 = vadd.f32 %v410_v23, %v316_v21  ;;  %v421_v26 = vadd.f32 %v415_v24, %v318_v22 }
  0xcf   : > { %423 = vst [vmem:[%s887_s3 + $0x8] sm:$0xff] %v419_v25 }
  0xd0   : > { %425 = vst [vmem:[%s887_s3 + $0x18] sm:$0xff] %v421_v26 }
  0xd1   : > { %v430_v27 = vld [vmem:[%s887_s3] sm:$0xff]  ;;  %v432_v30 = vld [vmem:[%s887_s3 + $0x10] sm:$0xff] }
  0xd2   : > { %v675_v28 = vld [vmem:[%s886_s2] ss:$0 sm:$0xff] }
  0xd3   : > { %v438_v32 = vadd.f32 %v675_v28, %v430_v27  ;;  %v440_v34 = vadd.f32 %v675_v28, %v432_v30 }
  0xd5   : > { %v442_v36 = vmax.f32 %v438_v32, 0.0  ;;  %v444_v38 = vmax.f32 %v440_v34, 0.0 }
  0xd6   : > { %v431_v29 = vld [vmem:[%s887_s3 + $0x8] sm:$0xff] }
  0xd7   : > { %v433_v31 = vld [vmem:[%s887_s3 + $0x18] sm:$0xff]  ;;  %v439_v33 = vadd.f32 %v675_v28, %v431_v29  ;;  %446 = vst [vmem:[%s887_s3] sm:$0xff] %v442_v36 }
  0xd8   : > { %v441_v35 = vadd.f32 %v675_v28, %v433_v31  ;;  %448 = vst [vmem:[%s887_s3 + $0x10] sm:$0xff] %v444_v38 }
  0xd9   : > { %v443_v37 = vmax.f32 %v439_v33, 0.0 }
  0xda   : > { %v445_v39 = vmax.f32 %v441_v35, 0.0 }
  0xdb   : > { %447 = vst [vmem:[%s887_s3 + $0x8] sm:$0xff] %v443_v37 }
  0xdc   : > { %449 = vst [vmem:[%s887_s3 + $0x18] sm:$0xff] %v445_v39 }
  0xdd PF: > { %s13_s16 = sadd.s32 1, %s714_s16   ;;  %s888_s12 = smov %s702_s13 }
  0xde   : > { %p10_p12 = scmp.ge.s32.totalorder %s13_s16, 7   ;;  %s889_s13 = smov %s772_s20 }
  0xdf   : > { %s890_s14 = smov %s710_s15  ;;  %s891_s15 = smov %s893_s17 }
  0xe0   :  { %12 = sbr.rel (!%p10_p12) target bundleno = 3 (0x3), region = 122 }

// kernel: res18feature_forward.26
= control target key start
LH: loop header
LB: loop body
LE: loop exit
PB: predicated region body
PF: predicated region fallthrough
CT: control target
= control target key end

     0   :  { %s281_s1 = inlined_call_operand.vmem [shape: bf16[128,128], index: 1, kind: input, shape index: {}]   ;;  %s282_s2 = inlined_call_operand.vmem [shape: f32[1,128], index: 2, kind: input, shape index: {}]   ;;  %s283_s0 = inlined_call_operand.vmem [shape: bf16[32,128], index: 0, kind: input, shape index: {}]   ;;  %s284_s3 = inlined_call_operand.vmem [shape: f32[32,128], index: 3, kind: output, shape index: {}]  }
   0x1   :  { %v205_v0 = vld [vmem:[%s281_s1 + $0x38] sm:$0xff]  ;;  %v204_v1 = vld [vmem:[%s281_s1 + $0x30] sm:$0xff]  ;;  %v203_v2 = vld [vmem:[%s281_s1 + $0x28] sm:$0xff] }
   0x2   :  { %106 = vmatpush.bf16.msra.mxu0 %v205_v0  ;;  %206 = vmatpush.bf16.msra.mxu1 %v205_v0  ;;  %v202_v3 = vld [vmem:[%s281_s1 + $0x20] sm:$0xff]  ;;  %v201_v4 = vld [vmem:[%s281_s1 + $0x18] sm:$0xff]  ;;  %v200_v5 = vld [vmem:[%s281_s1 + $0x10] sm:$0xff] }
   0x3   :  { %v199_v6 = vld [vmem:[%s281_s1 + $0x8] sm:$0xff]  ;;  %v198_v7 = vld [vmem:[%s281_s1] sm:$0xff] }
   0x4   :  { %v196_v8 = vld [vmem:[%s283_s0] sm:$0xff]  ;;  %v197_v9 = vld [vmem:[%s283_s0 + $0x8] sm:$0xff] }
   0x5   :  { %v215_v10 = vld [vmem:[%s282_s2] ss:$0 sm:$0xff] }
   0x6   :  { %107 = vmatpush.bf16.msra.mxu0 %v204_v1  ;;  %207 = vmatpush.bf16.msra.mxu1 %v204_v1 }
   0xa   :  { %108 = vmatpush.bf16.msra.mxu0 %v203_v2  ;;  %208 = vmatpush.bf16.msra.mxu1 %v203_v2 }
   0xe   :  { %109 = vmatpush.bf16.msra.mxu0 %v202_v3  ;;  %209 = vmatpush.bf16.msra.mxu1 %v202_v3 }
  0x12   :  { %110 = vmatpush.bf16.msra.mxu0 %v201_v4  ;;  %210 = vmatpush.bf16.msra.mxu1 %v201_v4 }
  0x16   :  { %111 = vmatpush.bf16.msra.mxu0 %v200_v5  ;;  %211 = vmatpush.bf16.msra.mxu1 %v200_v5 }
  0x1a   :  { %112 = vmatpush.bf16.msra.mxu0 %v199_v6  ;;  %212 = vmatpush.bf16.msra.mxu1 %v199_v6 }
  0x1e   :  { %113 = vmatpush.bf16.msra.mxu0 %v198_v7  ;;  %213 = vmatpush.bf16.msra.mxu1 %v198_v7 }
  0x21   :  { %114 = vmatmul.bf16.vlgmr.msra.gmra.mxu0 %v196_v8  ;;  %119 = vmatmul.bf16.vlgmr.msra.gmra.mxu1 %v197_v9 }
  0x9e   :  { %v115_v11 = vpop.f32.mrf.mxu0  ;;  %v120_v12 = vpop.f32.mrf.mxu1 }
  0x9f   :  { %v144_v13 = vadd.f32 %v215_v10, %v115_v11  ;;  %v146_v14 = vadd.f32 %v215_v10, %v120_v12 }
  0xa1   :  { %148 = vst [vmem:[%s284_s3] sm:$0xff] %v144_v13 }
  0xa2   :  { %150 = vst [vmem:[%s284_s3 + $0x10] sm:$0xff] %v146_v14 }
  0xa6   :  { %v117_v15 = vpop.f32.mrf.mxu0  ;;  %v122_v16 = vpop.f32.mrf.mxu1 }
  0xa7   :  { %v145_v17 = vadd.f32 %v215_v10, %v117_v15  ;;  %v147_v18 = vadd.f32 %v215_v10, %v122_v16 }
  0xa9   :  { %149 = vst [vmem:[%s284_s3 + $0x8] sm:$0xff] %v145_v17 }
  0xaa   :  { %151 = vst [vmem:[%s284_s3 + $0x18] sm:$0xff] %v147_v18 }

// kernel: res18feature_forward.29
= control target key start
LH: loop header
LB: loop body
LE: loop exit
PB: predicated region body
PF: predicated region fallthrough
CT: control target
= control target key end

     0   :  { %s1030_s12 = smov 0   ;;  %s1032_s13 = smov 0   ;;  %s1200_s0 = inlined_call_operand.vmem [shape: bf16[32,1152], index: 0, kind: input, shape index: {}]   ;;  %s1201_s1 = inlined_call_operand.vmem [shape: bf16[1152,128], index: 1, kind: input, shape index: {}]   ;;  %s1202_s2 = inlined_call_operand.vmem [shape: f32[1,128], index: 2, kind: input, shape index: {}]   ;;  %s1203_s3 = inlined_call_operand.vmem [shape: f32[32,128], index: 3, kind: output, shape index: {}]  }
   0x1   :  { %s1034_s14 = smov 0   ;;  %s1036_s15 = smov 0  }
   0x2   :  { %s1038_s16 = smov 0  }
   0x3 LB: > { %s25_s17 = sadd.s32 1, %s1003_s15  ;;  %p48_p1 = scmp.ne.s32.totalorder %s995_s13, %s991_s12  ;;  %s1007_s16 = sphi %s1038_s16, %s13_s16   ;;  %s1003_s15 = sphi %s1036_s15, %s1207_s15   ;;  %s999_s14 = sphi %s1034_s14, %s1206_s14   ;;  %s995_s13 = sphi %s1032_s13, %s1205_s13   ;;  %s991_s12 = sphi %s1030_s12, %s1204_s12  }
   0x4   : > { %p26_p0 = scmp.ge.s32.totalorder %s25_s17, 3  ;;  %p49_p2 = scmp.eq.s32.totalorder %s1007_s16, 0 }
   0x5   : > { %s41_s19 = sadd.s32 1, %s995_s13  ;;  %p748_p5 = scmp.ge.s32.totalorder %s1007_s16, 3 }
   0x6   : > { %s1209_s17 = smov (%p26_p0, %s25_s17), 0  ;;  %p50_p3 = por %p49_p2, %p48_p1 }
   0x7   : > { %s37_s18 = ssub.s32 %s1003_s15, %s1209_s17  ;;  %162 = sbr.rel (%p748_p5) target bundleno = 25 (0x19), region = 20 }
   0x8   : > { %p39_p4 = scmp.eq.s32.totalorder %s37_s18, 0 }
   0xa   : > { %s1065_s20 = scalar_select %p39_p4, %s995_s13, %s41_s19  }
   0xc   : > { %165 = sbr.rel (!%p50_p3) target bundleno = 25 (0x19), region = 24  ;;  %s167_s21 = sand.u32 (%p50_p3), 1, %s995_s13  }
   0xd   : > { %s886_s22 = smul.u32 (%p50_p3), 12, %s1003_s15 }
   0xe   : > { %s925_s23 = smul.u32 (%p50_p3), 48, %s167_s21 }
   0xf   : > { %s175_s26 = scalar_lea.vmem (%p50_p3), %s1200_s0, %s886_s22 }
  0x10   : > { %v190_v0 = vld [vmem:[%s175_s26] sm:$0xff] (%p50_p3)  ;;  %v194_v2 = vld [vmem:[%s175_s26 + $0x48] sm:$0xff] (%p50_p3)  ;;  %s169_s27 = scalar_lea.vmem (%p50_p3), [#allocation2], %s925_s23  ;;  %v754_v6 = vld [vmem:[%s175_s26 + $0x50] sm:$0xf] (%p50_p3) }
  0x11   : > { %v192_v1 = vld [vmem:[%s175_s26 + $0x24] sm:$0xff]  ;;  %191 = vst [vmem:[%s169_s27] sm:$0xff] %v190_v0  ;;  %v196_v3 = vld [vmem:[%s175_s26 + $0x6c] sm:$0xff]  ;;  %v756_v7 = vld [vmem:[%s175_s26 + $0x74] sm:$0xf] }
  0x12   : > { %193 = vst [vmem:[%s169_s27 + $0xc] sm:$0xff] %v192_v1  ;;  %v750_v4 = vld [vmem:[%s175_s26 + $0x8] sm:$0xf]  ;;  %v752_v5 = vld [vmem:[%s175_s26 + $0x2c] sm:$0xf] }
  0x13   : > { %195 = vst [vmem:[%s169_s27 + $0x18] sm:$0xff] %v194_v2 }
  0x14   : > { %197 = vst [vmem:[%s169_s27 + $0x24] sm:$0xff] %v196_v3 }
  0x15   : > { %751 = vst [vmem:[%s169_s27 + $0x8] sm:$0xf] %v750_v4 }
  0x16   : > { %753 = vst [vmem:[%s169_s27 + $0x14] sm:$0xf] %v752_v5 }
  0x17   : > { %755 = vst [vmem:[%s169_s27 + $0x20] sm:$0xf] %v754_v6 }
  0x18   : > { %757 = vst [vmem:[%s169_s27 + $0x2c] sm:$0xf] %v756_v7 }
  0x19 PF: > { %p758_p6 = scmp.ge.s32.totalorder %s1007_s16, 1  ;;  %p230_p7 = scmp.lt.s32.totalorder %s1007_s16, 4 }
  0x1b   : > { %p231_p8 = pnand %p758_p6, %p230_p7 }
  0x1c   : > { %s237_s28 = sand.u32 (!%p231_p8), 1, %s991_s12   ;;  %s276_s29 = smul.u32 (!%p231_p8), 48, %s999_s14 }
  0x1d   : > { %234 = sbr.rel (%p231_p8) target bundleno = 251 (0xfb), region = 54  ;;  %p760_p10 = scmp.ne.s32.totalorder (!%p231_p8), %s999_s14, 0 }
  0x1e   : > { %s926_s30 = smul.u32 (!%p231_p8), 48, %s237_s28  ;;  %p277_p9 = scmp.lt.s32.totalorder (!%p231_p8), %s276_s29, 143 }
  0x20   : > { %s1082_s8 = scalar_lea.vmem (!%p231_p8), [#allocation2], %s926_s30 }
  0x22   : > { %s1211_s29 = smov (!%p277_p9, %s276_s29), 143  ;;  %300 = sbr.rel (%p760_p10) target bundleno = 44 (0x2c), region = 62 }
  0x23   : > { %s759_s4 = sshll.u32 %s1211_s29, 2 }
  0x24   : > { %s1080_s7 = scalar_lea.vmem %s1201_s1, %s759_s4 }
  0x27   : > { %v1009_v8 = vmov 0.0  }
  0x28   : > { %301 = vst [vmem:[%s1203_s3] sm:$0xff] %v1009_v8 }
  0x29   : > { %302 = vst [vmem:[%s1203_s3 + $0x8] sm:$0xff] %v1009_v8 }
  0x2a   : > { %303 = vst [vmem:[%s1203_s3 + $0x10] sm:$0xff] %v1009_v8 }
  0x2b   : > { %304 = vst [vmem:[%s1203_s3 + $0x18] sm:$0xff] %v1009_v8 }
  0x2c PF: > { %v900_v9 = vld [vmem:[%s1080_s7 + $0x38] sm:$0xff]  ;;  %v899_v12 = vld [vmem:[%s1080_s7 + $0x30] sm:$0xff]  ;;  %v898_v15 = vld [vmem:[%s1080_s7 + $0x28] sm:$0xff]  ;;  %p881_p11 = scmp.ne.s32.totalorder %s999_s14, 2 }
  0x2d   : > { %v908_v10 = vld [vmem:[%s1080_s7 + $0x78] sm:$0xff]  ;;  %541 = vmatpush.bf16.msra.mxu0 %v900_v9  ;;  %v907_v13 = vld [vmem:[%s1080_s7 + $0x70] sm:$0xff]  ;;  %917 = vmatpush.bf16.msra.mxu3 %v900_v9  ;;  %v906_v16 = vld [vmem:[%s1080_s7 + $0x68] sm:$0xff] }
  0x2e   : > { %v916_v11 = vld [vmem:[%s1080_s7 + $0xb8] sm:$0xff]  ;;  %560 = vmatpush.bf16.msra.mxu1 %v908_v10  ;;  %v915_v14 = vld [vmem:[%s1080_s7 + $0xb0] sm:$0xff]  ;;  %v914_v17 = vld [vmem:[%s1080_s7 + $0xa8] sm:$0xff] }
  0x2f   : > { %579 = vmatpush.bf16.msra.mxu2 %v916_v11  ;;  %v897_v18 = vld [vmem:[%s1080_s7 + $0x20] sm:$0xff]  ;;  %v896_v21 = vld [vmem:[%s1080_s7 + $0x18] sm:$0xff]  ;;  %v895_v24 = vld [vmem:[%s1080_s7 + $0x10] sm:$0xff] }
  0x30   : > { %v905_v19 = vld [vmem:[%s1080_s7 + $0x60] sm:$0xff]  ;;  %v904_v22 = vld [vmem:[%s1080_s7 + $0x58] sm:$0xff]  ;;  %v903_v25 = vld [vmem:[%s1080_s7 + $0x50] sm:$0xff] }
  0x31   : > { %542 = vmatpush.bf16.msra.mxu0 %v899_v12  ;;  %918 = vmatpush.bf16.msra.mxu3 %v899_v12  ;;  %v913_v20 = vld [vmem:[%s1080_s7 + $0xa0] sm:$0xff]  ;;  %v912_v23 = vld [vmem:[%s1080_s7 + $0x98] sm:$0xff]  ;;  %v911_v26 = vld [vmem:[%s1080_s7 + $0x90] sm:$0xff] }
  0x32   : > { %561 = vmatpush.bf16.msra.mxu1 %v907_v13  ;;  %v894_v27 = vld [vmem:[%s1080_s7 + $0x8] sm:$0xff]  ;;  %v893_v30 = vld [vmem:[%s1080_s7] sm:$0xff]  ;;  %v307_v4 = vld [vmem:[%s1203_s3 + $0x10] sm:$0xff] }
  0x33   : > { %580 = vmatpush.bf16.msra.mxu2 %v915_v14  ;;  %v902_v28 = vld [vmem:[%s1080_s7 + $0x48] sm:$0xff]  ;;  %v901_v31 = vld [vmem:[%s1080_s7 + $0x40] sm:$0xff]  ;;  %v308_v11 = vld [vmem:[%s1203_s3 + $0x18] sm:$0xff] }
  0x34   : > { %v910_v29 = vld [vmem:[%s1080_s7 + $0x88] sm:$0xff]  ;;  %v909_v32 = vld [vmem:[%s1080_s7 + $0x80] sm:$0xff] }
  0x35   : > { %543 = vmatpush.bf16.msra.mxu0 %v898_v15  ;;  %919 = vmatpush.bf16.msra.mxu3 %v898_v15  ;;  %v763_v33 = vld [vmem:[%s1082_s8] sm:$0xf]  ;;  %v888_v34 = vld [vmem:[%s1082_s8 + $0x8] sm:$0xf0]  ;;  %v887_v35 = vld [vmem:[%s1082_s8 + $0x4] sm:$0xf] }
  0x36   : > { %562 = vmatpush.bf16.msra.mxu1 %v906_v16  ;;  %v765_v36 = vld [vmem:[%s1082_s8 + $0xc] sm:$0xf0]  ;;  %v771_v37 = vld [vmem:[%s1082_s8 + $0x8] sm:$0xf]  ;;  %v889_v38 = vld [vmem:[%s1082_s8 + $0x10] sm:$0xf0]  ;;  %v764_v41 = vor.u32 %v888_v34, %v763_v33 }
  0x37   : > { %581 = vmatpush.bf16.msra.mxu2 %v914_v17  ;;  %v775_v39 = vld [vmem:[%s1082_s8 + $0x18] sm:$0xf]  ;;  %v891_v40 = vld [vmem:[%s1082_s8 + $0x20] sm:$0xf0]  ;;  %v768_v42 = vor.u32 %v887_v35, %v765_v36  ;;  %v772_v43 = vor.u32 %v889_v38, %v771_v37  ;;  %v890_v45 = vld [vmem:[%s1082_s8 + $0x1c] sm:$0xf] }
  0x38   : > { %v776_v44 = vor.u32 %v891_v40, %v775_v39  ;;  %v777_v46 = vld [vmem:[%s1082_s8 + $0x24] sm:$0xf0]  ;;  %v783_v47 = vld [vmem:[%s1082_s8 + $0x20] sm:$0xf]  ;;  %v892_v48 = vld [vmem:[%s1082_s8 + $0x28] sm:$0xf0] }
  0x39   : > { %544 = vmatpush.bf16.msra.mxu0 %v897_v18  ;;  %920 = vmatpush.bf16.msra.mxu3 %v897_v18  ;;  %v780_v49 = vor.u32 %v890_v45, %v777_v46  ;;  %v784_v50 = vor.u32 %v892_v48, %v783_v47  ;;  %v305_v54 = vld [vmem:[%s1203_s3] sm:$0xff]  ;;  %v306_v61 = vld [vmem:[%s1203_s3 + $0x8] sm:$0xff] }
  0x3a   : > { %563 = vmatpush.bf16.msra.mxu1 %v905_v19 }
  0x3b   : > { %582 = vmatpush.bf16.msra.mxu2 %v913_v20 }
  0x3d   : > { %545 = vmatpush.bf16.msra.mxu0 %v896_v21  ;;  %921 = vmatpush.bf16.msra.mxu3 %v896_v21 }
  0x3e   : > { %564 = vmatpush.bf16.msra.mxu1 %v904_v22 }
  0x3f   : > { %583 = vmatpush.bf16.msra.mxu2 %v912_v23 }
  0x41   : > { %546 = vmatpush.bf16.msra.mxu0 %v895_v24  ;;  %922 = vmatpush.bf16.msra.mxu3 %v895_v24 }
  0x42   : > { %565 = vmatpush.bf16.msra.mxu1 %v903_v25 }
  0x43   : > { %584 = vmatpush.bf16.msra.mxu2 %v911_v26 }
  0x45   : > { %547 = vmatpush.bf16.msra.mxu0 %v894_v27  ;;  %923 = vmatpush.bf16.msra.mxu3 %v894_v27 }
  0x46   : > { %566 = vmatpush.bf16.msra.mxu1 %v902_v28 }
  0x47   : > { %585 = vmatpush.bf16.msra.mxu2 %v910_v29 }
  0x49   : > { %548 = vmatpush.bf16.msra.mxu0 %v893_v30  ;;  %924 = vmatpush.bf16.msra.mxu3 %v893_v30 }
  0x4a   : > { %567 = vmatpush.bf16.msra.mxu1 %v901_v31 }
  0x4b   : > { %586 = vmatpush.bf16.msra.mxu2 %v909_v32 }
  0x4c   : > { %549 = vmatmul.bf16.vlgmr.msra.gmra.mxu0 %v764_v41  ;;  %554 = vmatmul.bf16.vlgmr.msra.gmra.mxu3 %v776_v44 }
  0x4d   : > { %568 = vmatmul.bf16.vlgmr.msra.gmra.mxu1 %v768_v42 }
  0x4e   : > { %587 = vmatmul.bf16.vlgmr.msra.gmra.mxu2 %v772_v43 }
  0x5d   : > { %573 = vmatmul.bf16.gmra.mxu1 %v780_v49 }
  0x5e   : > { %592 = vmatmul.bf16.gmra.mxu2 %v784_v50 }
  0xc9   : > { %v550_v52 = vpop.f32.mrf.mxu0 }
  0xca   : > { %v569_v51 = vpop.f32.mrf.mxu1 }
  0xcb   : > { %v570_v53 = vadd.f32 %v569_v51, %v550_v52 }
  0xcf   : > { %v555_v2 = vpop.f32.mrf.mxu3 }
  0xd1   : > { %v588_v55 = vpop.f32.mrf.mxu2  ;;  %v552_v59 = vpop.f32.mrf.mxu0 }
  0xd2   : > { %v589_v56 = vadd.f32 %v588_v55, %v570_v53  ;;  %v571_v57 = vpop.f32.mrf.mxu1 }
  0xd3   : > { %v572_v60 = vadd.f32 %v571_v57, %v552_v59 }
  0xd4   : > { %v598_v58 = vadd.f32 %v589_v56, %v305_v54 }
  0xd6   : > { %602 = vst [vmem:[%s1203_s3] sm:$0xff] %v598_v58 }
  0xd7   : > { %v557_v9 = vpop.f32.mrf.mxu3 }
  0xd9   : > { %v590_v62 = vpop.f32.mrf.mxu2 }
  0xda   : > { %v591_v63 = vadd.f32 %v590_v62, %v572_v60  ;;  %v574_v0 = vpop.f32.mrf.mxu1 }
  0xdb   : > { %v575_v3 = vadd.f32 %v574_v0, %v555_v2 }
  0xdc   : > { %v599_v1 = vadd.f32 %v591_v63, %v306_v61 }
  0xde   : > { %603 = vst [vmem:[%s1203_s3 + $0x8] sm:$0xff] %v599_v1 }
  0xe1   : > { %v593_v5 = vpop.f32.mrf.mxu2 }
  0xe2   : > { %v594_v6 = vadd.f32 %v593_v5, %v575_v3  ;;  %v576_v8 = vpop.f32.mrf.mxu1 }
  0xe3   : > { %v577_v10 = vadd.f32 %v576_v8, %v557_v9 }
  0xe4   : > { %v600_v7 = vadd.f32 %v594_v6, %v307_v4 }
  0xe6   : > { %604 = vst [vmem:[%s1203_s3 + $0x10] sm:$0xff] %v600_v7 }
  0xe9   : > { %v595_v12 = vpop.f32.mrf.mxu2 }
  0xea   : > { %v596_v13 = vadd.f32 %v595_v12, %v577_v10  ;;  %609 = sbr.rel (%p881_p11) target bundleno = 251 (0xfb), region = 66 }
  0xec   : > { %v601_v14 = vadd.f32 %v596_v13, %v308_v11 }
  0xee   : > { %605 = vst [vmem:[%s1203_s3 + $0x18] sm:$0xff] %v601_v14 }
  0xef   : > { %v610_v15 = vld [vmem:[%s1203_s3] sm:$0xff]  ;;  %v611_v17 = vld [vmem:[%s1203_s3 + $0x8] sm:$0xff]  ;;  %v612_v18 = vld [vmem:[%s1203_s3 + $0x10] sm:$0xff] }
  0xf0   : > { %v968_v16 = vld [vmem:[%s1202_s2] ss:$0 sm:$0xff] }
  0xf1   : > { %v618_v20 = vadd.f32 %v968_v16, %v610_v15  ;;  %v619_v21 = vadd.f32 %v968_v16, %v611_v17  ;;  %v620_v22 = vadd.f32 %v968_v16, %v612_v18 }
  0xf3   : > { %v622_v24 = vmax.f32 %v618_v20, 0.0  ;;  %v623_v25 = vmax.f32 %v619_v21, 0.0  ;;  %v624_v26 = vmax.f32 %v620_v22, 0.0 }
  0xf5   : > { %v613_v19 = vld [vmem:[%s1203_s3 + $0x18] sm:$0xff]  ;;  %626 = vst [vmem:[%s1203_s3] sm:$0xff] %v622_v24 }
  0xf6   : > { %v621_v23 = vadd.f32 %v968_v16, %v613_v19  ;;  %627 = vst [vmem:[%s1203_s3 + $0x8] sm:$0xff] %v623_v25 }
  0xf7   : > { %628 = vst [vmem:[%s1203_s3 + $0x10] sm:$0xff] %v624_v26 }
  0xf8   : > { %v625_v27 = vmax.f32 %v621_v23, 0.0 }
  0xfa   : > { %629 = vst [vmem:[%s1203_s3 + $0x18] sm:$0xff] %v625_v27 }
  0xfb PF: > { %s13_s16 = sadd.s32 1, %s1007_s16   ;;  %s1204_s12 = smov %s995_s13 }
  0xfc   : > { %p10_p12 = scmp.ge.s32.totalorder %s13_s16, 5   ;;  %s1205_s13 = smov %s1065_s20 }
  0xfd   : > { %s1206_s14 = smov %s1003_s15  ;;  %s1207_s15 = smov %s1209_s17 }
  0xfe   :  { %12 = sbr.rel (!%p10_p12) target bundleno = 3 (0x3), region = 113 }

// kernel: res18feature_forward.28
= control target key start
LH: loop header
LB: loop body
LE: loop exit
PB: predicated region body
PF: predicated region fallthrough
CT: control target
= control target key end

     0   :  { %s1122_s15 = smov 0   ;;  %s1124_s16 = smov 0   ;;  %s1304_s0 = inlined_call_operand.vmem [shape: bf16[32,1152], index: 0, kind: input, shape index: {}]   ;;  %s1305_s1 = inlined_call_operand.vmem [shape: bf16[1152,128], index: 1, kind: input, shape index: {}]   ;;  %s1306_s2 = inlined_call_operand.vmem [shape: f32[1,128], index: 2, kind: input, shape index: {}]   ;;  %s1307_s3 = inlined_call_operand.vmem [shape: f32[32,128], index: 3, kind: input, shape index: {}]   ;;  %s1308_s4 = inlined_call_operand.vmem [shape: f32[32,128], index: 4, kind: output, shape index: {}]  }
   0x1   :  { %s1126_s17 = smov 0   ;;  %s1128_s18 = smov 0  }
   0x2   :  { %s1130_s19 = smov 0  }
   0x3 LB: > { %s26_s20 = sadd.s32 1, %s1090_s18  ;;  %p49_p1 = scmp.ne.s32.totalorder %s1082_s16, %s1078_s15  ;;  %s1094_s19 = sphi %s1130_s19, %s14_s19   ;;  %s1090_s18 = sphi %s1128_s18, %s1312_s18   ;;  %s1086_s17 = sphi %s1126_s17, %s1311_s17   ;;  %s1082_s16 = sphi %s1124_s16, %s1310_s16   ;;  %s1078_s15 = sphi %s1122_s15, %s1309_s15  }
   0x4   : > { %p27_p0 = scmp.ge.s32.totalorder %s26_s20, 3  ;;  %p50_p2 = scmp.eq.s32.totalorder %s1094_s19, 0 }
   0x5   : > { %s42_s22 = sadd.s32 1, %s1082_s16  ;;  %p835_p5 = scmp.ge.s32.totalorder %s1094_s19, 3 }
   0x6   : > { %s1314_s20 = smov (%p27_p0, %s26_s20), 0  ;;  %p51_p3 = por %p50_p2, %p49_p1 }
   0x7   : > { %s38_s21 = ssub.s32 %s1090_s18, %s1314_s20  ;;  %203 = sbr.rel (%p835_p5) target bundleno = 25 (0x19), region = 24 }
   0x8   : > { %p40_p4 = scmp.eq.s32.totalorder %s38_s21, 0 }
   0xa   : > { %s1157_s23 = scalar_select %p40_p4, %s1082_s16, %s42_s22  }
   0xc   : > { %206 = sbr.rel (!%p51_p3) target bundleno = 25 (0x19), region = 28  ;;  %s208_s24 = sand.u32 (%p51_p3), 1, %s1082_s16  }
   0xd   : > { %s973_s25 = smul.u32 (%p51_p3), 12, %s1090_s18 }
   0xe   : > { %s1012_s26 = smul.u32 (%p51_p3), 48, %s208_s24 }
   0xf   : > { %s216_s29 = scalar_lea.vmem (%p51_p3), %s1304_s0, %s973_s25 }
  0x10   : > { %v231_v0 = vld [vmem:[%s216_s29] sm:$0xff] (%p51_p3)  ;;  %v235_v2 = vld [vmem:[%s216_s29 + $0x48] sm:$0xff] (%p51_p3)  ;;  %s210_s30 = scalar_lea.vmem (%p51_p3), [#allocation2], %s1012_s26  ;;  %v841_v6 = vld [vmem:[%s216_s29 + $0x50] sm:$0xf] (%p51_p3) }
  0x11   : > { %v233_v1 = vld [vmem:[%s216_s29 + $0x24] sm:$0xff]  ;;  %232 = vst [vmem:[%s210_s30] sm:$0xff] %v231_v0  ;;  %v237_v3 = vld [vmem:[%s216_s29 + $0x6c] sm:$0xff]  ;;  %v843_v7 = vld [vmem:[%s216_s29 + $0x74] sm:$0xf] }
  0x12   : > { %234 = vst [vmem:[%s210_s30 + $0xc] sm:$0xff] %v233_v1  ;;  %v837_v4 = vld [vmem:[%s216_s29 + $0x8] sm:$0xf]  ;;  %v839_v5 = vld [vmem:[%s216_s29 + $0x2c] sm:$0xf] }
  0x13   : > { %236 = vst [vmem:[%s210_s30 + $0x18] sm:$0xff] %v235_v2 }
  0x14   : > { %238 = vst [vmem:[%s210_s30 + $0x24] sm:$0xff] %v237_v3 }
  0x15   : > { %838 = vst [vmem:[%s210_s30 + $0x8] sm:$0xf] %v837_v4 }
  0x16   : > { %840 = vst [vmem:[%s210_s30 + $0x14] sm:$0xf] %v839_v5 }
  0x17   : > { %842 = vst [vmem:[%s210_s30 + $0x20] sm:$0xf] %v841_v6 }
  0x18   : > { %844 = vst [vmem:[%s210_s30 + $0x2c] sm:$0xf] %v843_v7 }
  0x19 PF: > { %p845_p6 = scmp.ge.s32.totalorder %s1094_s19, 1  ;;  %p271_p7 = scmp.lt.s32.totalorder %s1094_s19, 4 }
  0x1b   : > { %p272_p8 = pnand %p845_p6, %p271_p7 }
  0x1c   : > { %s278_s5 = sand.u32 (!%p272_p8), 1, %s1078_s15   ;;  %s327_s6 = smul.u32 (!%p272_p8), 48, %s1086_s17 }
  0x1d   : > { %275 = sbr.rel (%p272_p8) target bundleno = 253 (0xfd), region = 58  ;;  %p847_p10 = scmp.ne.s32.totalorder (!%p272_p8), %s1086_s17, 0 }
  0x1e   : > { %s1013_s7 = smul.u32 (!%p272_p8), 48, %s278_s5  ;;  %p328_p9 = scmp.lt.s32.totalorder (!%p272_p8), %s327_s6, 143 }
  0x20   : > { %s1174_s12 = scalar_lea.vmem (!%p272_p8), [#allocation2], %s1013_s7 }
  0x22   : > { %s1316_s6 = smov (!%p328_p9, %s327_s6), 143  ;;  %360 = sbr.rel (%p847_p10) target bundleno = 44 (0x2c), region = 66 }
  0x23   : > { %s846_s8 = sshll.u32 %s1316_s6, 2 }
  0x24   : > { %s1172_s11 = scalar_lea.vmem %s1305_s1, %s846_s8 }
  0x27   : > { %v1096_v8 = vmov 0.0  }
  0x28   : > { %361 = vst [vmem:[%s1308_s4] sm:$0xff] %v1096_v8 }
  0x29   : > { %362 = vst [vmem:[%s1308_s4 + $0x8] sm:$0xff] %v1096_v8 }
  0x2a   : > { %363 = vst [vmem:[%s1308_s4 + $0x10] sm:$0xff] %v1096_v8 }
  0x2b   : > { %364 = vst [vmem:[%s1308_s4 + $0x18] sm:$0xff] %v1096_v8 }
  0x2c PF: > { %v987_v9 = vld [vmem:[%s1172_s11 + $0x38] sm:$0xff]  ;;  %v986_v12 = vld [vmem:[%s1172_s11 + $0x30] sm:$0xff]  ;;  %v985_v15 = vld [vmem:[%s1172_s11 + $0x28] sm:$0xff]  ;;  %p968_p11 = scmp.ne.s32.totalorder %s1086_s17, 2 }
  0x2d   : > { %v995_v10 = vld [vmem:[%s1172_s11 + $0x78] sm:$0xff]  ;;  %601 = vmatpush.bf16.msra.mxu0 %v987_v9  ;;  %v994_v13 = vld [vmem:[%s1172_s11 + $0x70] sm:$0xff]  ;;  %1004 = vmatpush.bf16.msra.mxu3 %v987_v9  ;;  %v993_v16 = vld [vmem:[%s1172_s11 + $0x68] sm:$0xff] }
  0x2e   : > { %v1003_v11 = vld [vmem:[%s1172_s11 + $0xb8] sm:$0xff]  ;;  %620 = vmatpush.bf16.msra.mxu1 %v995_v10  ;;  %v1002_v14 = vld [vmem:[%s1172_s11 + $0xb0] sm:$0xff]  ;;  %v1001_v17 = vld [vmem:[%s1172_s11 + $0xa8] sm:$0xff] }
  0x2f   : > { %639 = vmatpush.bf16.msra.mxu2 %v1003_v11  ;;  %v984_v18 = vld [vmem:[%s1172_s11 + $0x20] sm:$0xff]  ;;  %v983_v21 = vld [vmem:[%s1172_s11 + $0x18] sm:$0xff]  ;;  %v982_v24 = vld [vmem:[%s1172_s11 + $0x10] sm:$0xff] }
  0x30   : > { %v992_v19 = vld [vmem:[%s1172_s11 + $0x60] sm:$0xff]  ;;  %v991_v22 = vld [vmem:[%s1172_s11 + $0x58] sm:$0xff]  ;;  %v990_v25 = vld [vmem:[%s1172_s11 + $0x50] sm:$0xff] }
  0x31   : > { %602 = vmatpush.bf16.msra.mxu0 %v986_v12  ;;  %1005 = vmatpush.bf16.msra.mxu3 %v986_v12  ;;  %v1000_v20 = vld [vmem:[%s1172_s11 + $0xa0] sm:$0xff]  ;;  %v999_v23 = vld [vmem:[%s1172_s11 + $0x98] sm:$0xff]  ;;  %v998_v26 = vld [vmem:[%s1172_s11 + $0x90] sm:$0xff] }
  0x32   : > { %621 = vmatpush.bf16.msra.mxu1 %v994_v13  ;;  %v981_v27 = vld [vmem:[%s1172_s11 + $0x8] sm:$0xff]  ;;  %v980_v30 = vld [vmem:[%s1172_s11] sm:$0xff]  ;;  %v367_v4 = vld [vmem:[%s1308_s4 + $0x10] sm:$0xff] }
  0x33   : > { %640 = vmatpush.bf16.msra.mxu2 %v1002_v14  ;;  %v989_v28 = vld [vmem:[%s1172_s11 + $0x48] sm:$0xff]  ;;  %v988_v31 = vld [vmem:[%s1172_s11 + $0x40] sm:$0xff]  ;;  %v368_v11 = vld [vmem:[%s1308_s4 + $0x18] sm:$0xff] }
  0x34   : > { %v997_v29 = vld [vmem:[%s1172_s11 + $0x88] sm:$0xff]  ;;  %v996_v32 = vld [vmem:[%s1172_s11 + $0x80] sm:$0xff] }
  0x35   : > { %603 = vmatpush.bf16.msra.mxu0 %v985_v15  ;;  %1006 = vmatpush.bf16.msra.mxu3 %v985_v15  ;;  %v850_v33 = vld [vmem:[%s1174_s12] sm:$0xf]  ;;  %v975_v34 = vld [vmem:[%s1174_s12 + $0x8] sm:$0xf0]  ;;  %v974_v35 = vld [vmem:[%s1174_s12 + $0x4] sm:$0xf] }
  0x36   : > { %622 = vmatpush.bf16.msra.mxu1 %v993_v16  ;;  %v852_v36 = vld [vmem:[%s1174_s12 + $0xc] sm:$0xf0]  ;;  %v858_v37 = vld [vmem:[%s1174_s12 + $0x8] sm:$0xf]  ;;  %v976_v38 = vld [vmem:[%s1174_s12 + $0x10] sm:$0xf0]  ;;  %v851_v41 = vor.u32 %v975_v34, %v850_v33 }
  0x37   : > { %641 = vmatpush.bf16.msra.mxu2 %v1001_v17  ;;  %v862_v39 = vld [vmem:[%s1174_s12 + $0x18] sm:$0xf]  ;;  %v978_v40 = vld [vmem:[%s1174_s12 + $0x20] sm:$0xf0]  ;;  %v855_v42 = vor.u32 %v974_v35, %v852_v36  ;;  %v859_v43 = vor.u32 %v976_v38, %v858_v37  ;;  %v977_v45 = vld [vmem:[%s1174_s12 + $0x1c] sm:$0xf] }
  0x38   : > { %v863_v44 = vor.u32 %v978_v40, %v862_v39  ;;  %v864_v46 = vld [vmem:[%s1174_s12 + $0x24] sm:$0xf0]  ;;  %v870_v47 = vld [vmem:[%s1174_s12 + $0x20] sm:$0xf]  ;;  %v979_v48 = vld [vmem:[%s1174_s12 + $0x28] sm:$0xf0] }
  0x39   : > { %604 = vmatpush.bf16.msra.mxu0 %v984_v18  ;;  %1007 = vmatpush.bf16.msra.mxu3 %v984_v18  ;;  %v867_v49 = vor.u32 %v977_v45, %v864_v46  ;;  %v871_v50 = vor.u32 %v979_v48, %v870_v47  ;;  %v365_v54 = vld [vmem:[%s1308_s4] sm:$0xff]  ;;  %v366_v61 = vld [vmem:[%s1308_s4 + $0x8] sm:$0xff] }
  0x3a   : > { %623 = vmatpush.bf16.msra.mxu1 %v992_v19 }
  0x3b   : > { %642 = vmatpush.bf16.msra.mxu2 %v1000_v20 }
  0x3d   : > { %605 = vmatpush.bf16.msra.mxu0 %v983_v21  ;;  %1008 = vmatpush.bf16.msra.mxu3 %v983_v21 }
  0x3e   : > { %624 = vmatpush.bf16.msra.mxu1 %v991_v22 }
  0x3f   : > { %643 = vmatpush.bf16.msra.mxu2 %v999_v23 }
  0x41   : > { %606 = vmatpush.bf16.msra.mxu0 %v982_v24  ;;  %1009 = vmatpush.bf16.msra.mxu3 %v982_v24 }
  0x42   : > { %625 = vmatpush.bf16.msra.mxu1 %v990_v25 }
  0x43   : > { %644 = vmatpush.bf16.msra.mxu2 %v998_v26 }
  0x45   : > { %607 = vmatpush.bf16.msra.mxu0 %v981_v27  ;;  %1010 = vmatpush.bf16.msra.mxu3 %v981_v27 }
  0x46   : > { %626 = vmatpush.bf16.msra.mxu1 %v989_v28 }
  0x47   : > { %645 = vmatpush.bf16.msra.mxu2 %v997_v29 }
  0x49   : > { %608 = vmatpush.bf16.msra.mxu0 %v980_v30  ;;  %1011 = vmatpush.bf16.msra.mxu3 %v980_v30 }
  0x4a   : > { %627 = vmatpush.bf16.msra.mxu1 %v988_v31 }
  0x4b   : > { %646 = vmatpush.bf16.msra.mxu2 %v996_v32 }
  0x4c   : > { %609 = vmatmul.bf16.vlgmr.msra.gmra.mxu0 %v851_v41  ;;  %614 = vmatmul.bf16.vlgmr.msra.gmra.mxu3 %v863_v44 }
  0x4d   : > { %628 = vmatmul.bf16.vlgmr.msra.gmra.mxu1 %v855_v42 }
  0x4e   : > { %647 = vmatmul.bf16.vlgmr.msra.gmra.mxu2 %v859_v43 }
  0x5d   : > { %633 = vmatmul.bf16.gmra.mxu1 %v867_v49 }
  0x5e   : > { %652 = vmatmul.bf16.gmra.mxu2 %v871_v50 }
  0xc9   : > { %v610_v52 = vpop.f32.mrf.mxu0 }
  0xca   : > { %v629_v51 = vpop.f32.mrf.mxu1 }
  0xcb   : > { %v630_v53 = vadd.f32 %v629_v51, %v610_v52 }
  0xcf   : > { %v615_v2 = vpop.f32.mrf.mxu3 }
  0xd1   : > { %v648_v55 = vpop.f32.mrf.mxu2  ;;  %v612_v59 = vpop.f32.mrf.mxu0 }
  0xd2   : > { %v649_v56 = vadd.f32 %v648_v55, %v630_v53  ;;  %v631_v57 = vpop.f32.mrf.mxu1 }
  0xd3   : > { %v632_v60 = vadd.f32 %v631_v57, %v612_v59 }
  0xd4   : > { %v658_v58 = vadd.f32 %v649_v56, %v365_v54 }
  0xd6   : > { %662 = vst [vmem:[%s1308_s4] sm:$0xff] %v658_v58 }
  0xd7   : > { %v617_v9 = vpop.f32.mrf.mxu3 }
  0xd9   : > { %v650_v62 = vpop.f32.mrf.mxu2 }
  0xda   : > { %v651_v63 = vadd.f32 %v650_v62, %v632_v60  ;;  %v634_v0 = vpop.f32.mrf.mxu1 }
  0xdb   : > { %v635_v3 = vadd.f32 %v634_v0, %v615_v2 }
  0xdc   : > { %v659_v1 = vadd.f32 %v651_v63, %v366_v61 }
  0xde   : > { %663 = vst [vmem:[%s1308_s4 + $0x8] sm:$0xff] %v659_v1 }
  0xe1   : > { %v653_v5 = vpop.f32.mrf.mxu2 }
  0xe2   : > { %v654_v6 = vadd.f32 %v653_v5, %v635_v3  ;;  %v636_v8 = vpop.f32.mrf.mxu1 }
  0xe3   : > { %v637_v10 = vadd.f32 %v636_v8, %v617_v9 }
  0xe4   : > { %v660_v7 = vadd.f32 %v654_v6, %v367_v4 }
  0xe6   : > { %664 = vst [vmem:[%s1308_s4 + $0x10] sm:$0xff] %v660_v7 }
  0xe9   : > { %v655_v12 = vpop.f32.mrf.mxu2 }
  0xea   : > { %v656_v13 = vadd.f32 %v655_v12, %v637_v10  ;;  %669 = sbr.rel (%p968_p11) target bundleno = 253 (0xfd), region = 70 }
  0xec   : > { %v661_v14 = vadd.f32 %v656_v13, %v368_v11 }
  0xee   : > { %665 = vst [vmem:[%s1308_s4 + $0x18] sm:$0xff] %v661_v14 }
  0xef   : > { %v670_v15 = vld [vmem:[%s1308_s4] sm:$0xff]  ;;  %v671_v18 = vld [vmem:[%s1308_s4 + $0x8] sm:$0xff]  ;;  %v672_v22 = vld [vmem:[%s1308_s4 + $0x10] sm:$0xff] }
  0xf0   : > { %v1055_v16 = vld [vmem:[%s1306_s2] ss:$0 sm:$0xff]  ;;  %v683_v19 = vld [vmem:[%s1307_s3 + $0x8] sm:$0xff]  ;;  %v684_v23 = vld [vmem:[%s1307_s3 + $0x10] sm:$0xff] }
  0xf1   : > { %v682_v17 = vld [vmem:[%s1307_s3] sm:$0xff]  ;;  %v678_v20 = vadd.f32 %v1055_v16, %v670_v15  ;;  %v679_v21 = vadd.f32 %v1055_v16, %v671_v18  ;;  %v680_v25 = vadd.f32 %v1055_v16, %v672_v22  ;;  %v685_v27 = vld [vmem:[%s1307_s3 + $0x18] sm:$0xff] }
  0xf3   : > { %v686_v28 = vadd.f32 %v682_v17, %v678_v20  ;;  %v687_v29 = vadd.f32 %v683_v19, %v679_v21  ;;  %v688_v30 = vadd.f32 %v684_v23, %v680_v25 }
  0xf5   : > { %v673_v24 = vld [vmem:[%s1308_s4 + $0x18] sm:$0xff]  ;;  %v690_v32 = vmax.f32 %v686_v28, 0.0  ;;  %v691_v33 = vmax.f32 %v687_v29, 0.0  ;;  %v692_v34 = vmax.f32 %v688_v30, 0.0 }
  0xf6   : > { %v681_v26 = vadd.f32 %v1055_v16, %v673_v24 }
  0xf7   : > { %694 = vst [vmem:[%s1308_s4] sm:$0xff] %v690_v32 }
  0xf8   : > { %v689_v31 = vadd.f32 %v685_v27, %v681_v26  ;;  %695 = vst [vmem:[%s1308_s4 + $0x8] sm:$0xff] %v691_v33 }
  0xf9   : > { %696 = vst [vmem:[%s1308_s4 + $0x10] sm:$0xff] %v692_v34 }
  0xfa   : > { %v693_v35 = vmax.f32 %v689_v31, 0.0 }
  0xfc   : > { %697 = vst [vmem:[%s1308_s4 + $0x18] sm:$0xff] %v693_v35 }
  0xfd PF: > { %s14_s19 = sadd.s32 1, %s1094_s19   ;;  %s1309_s15 = smov %s1082_s16 }
  0xfe   : > { %p11_p12 = scmp.ge.s32.totalorder %s14_s19, 5   ;;  %s1310_s16 = smov %s1157_s23 }
  0xff   : > { %s1311_s17 = smov %s1090_s18  ;;  %s1312_s18 = smov %s1314_s20 }
 0x100   :  { %13 = sbr.rel (!%p11_p12) target bundleno = 3 (0x3), region = 120 }

// kernel: res18feature_forward.32
= control target key start
LH: loop header
LB: loop body
LE: loop exit
PB: predicated region body
PF: predicated region fallthrough
CT: control target
= control target key end

     0   :  { %s1128_s12 = smov 0   ;;  %s1130_s13 = smov 0   ;;  %s1306_s0 = inlined_call_operand.vmem [shape: bf16[8,1152], index: 0, kind: input, shape index: {}]   ;;  %s1307_s1 = inlined_call_operand.vmem [shape: bf16[1152,256], index: 1, kind: input, shape index: {}]   ;;  %s1308_s2 = inlined_call_operand.vmem [shape: f32[1,256], index: 2, kind: input, shape index: {}]   ;;  %s1309_s3 = inlined_call_operand.vmem [shape: f32[8,256], index: 3, kind: output, shape index: {}]  }
   0x1   :  { %s1132_s14 = smov 0  }
   0x2 LB: > { %s25_s15 = sadd.s32 1, %s1101_s13  ;;  %p807_p0 = scmp.ge.s32.totalorder %s1105_s14, 1  ;;  %s1105_s14 = sphi %s1132_s14, %s13_s14   ;;  %s1101_s13 = sphi %s1130_s13, %s1311_s13   ;;  %s1097_s12 = sphi %s1128_s12, %s1310_s12  }
   0x3   : > { %p26_p1 = scmp.ge.s32.totalorder %s25_s15, 3  ;;  %p194_p2 = scmp.lt.s32.totalorder %s1105_s14, 4 }
   0x5   : > { %s1313_s15 = smov (%p26_p1, %s25_s15), 0  ;;  %p195_p3 = pnand %p807_p0, %p194_p2 }
   0x6   : > { %s240_s16 = smul.u32 (!%p195_p3), 3, %s1097_s12  ;;  %p811_p6 = scmp.ne.s32.totalorder (!%p195_p3), %s1097_s12, 0 }
   0x7   : > { %198 = sbr.rel (%p195_p3) target bundleno = 234 (0xea), region = 32 }
   0x8   : > { %s250_s17 = smul.u32 (!%p195_p3), 48, %s1097_s12  ;;  %p243_p4 = scmp.lt.s32.totalorder (!%p195_p3), %s240_s16, 8 }
   0xa   : > { %p252_p5 = scmp.lt.s32.totalorder (!%p195_p3), %s250_s17, 143 }
   0xc   : > { %s1315_s16 = smov (!%p243_p4, %s240_s16), 8  ;;  %s1317_s17 = smov (!%p252_p5, %s250_s17), 143 }
   0xd   : > { %s808_s18 = sshll.u32 %s1315_s16, 2  ;;  %s1009_s22 = sshll.u32 %s1317_s17, 3 }
   0xe   : > { %s1153_s21 = scalar_lea.vmem %s1306_s0, %s808_s18  ;;  %s1158_s25 = scalar_lea.vmem %s1307_s1, %s1009_s22 }
   0xf   : > { %280 = sbr.rel (%p811_p6) target bundleno = 23 (0x17), region = 36 }
  0x14   : > { %v1107_v0 = vmov 0.0  }
  0x15   : > { %281 = vst [vmem:[%s1309_s3] sm:$0xff] %v1107_v0 }
  0x16   : > { %282 = vst [vmem:[%s1309_s3 + $0x8] sm:$0xff] %v1107_v0 }
  0x17 PF: > { %v870_v1 = vld [vmem:[%s1158_s25 + $0x70] sm:$0xf]  ;;  %v1025_v2 = vld [vmem:[%s1158_s25 + $0x74] sm:$0xf0]  ;;  %v862_v6 = vld [vmem:[%s1158_s25 + $0x60] sm:$0xf] }
  0x18   : > { %v934_v3 = vld [vmem:[%s1158_s25 + $0xf0] sm:$0xf]  ;;  %v871_v4 = vor.u32 %v1025_v2, %v870_v1  ;;  %v1041_v5 = vld [vmem:[%s1158_s25 + $0xf4] sm:$0xf0]  ;;  %v1023_v7 = vld [vmem:[%s1158_s25 + $0x64] sm:$0xf0] }
  0x19   : > { %v935_v8 = vor.u32 %v1041_v5, %v934_v3  ;;  %v926_v9 = vld [vmem:[%s1158_s25 + $0xe0] sm:$0xf]  ;;  %v1039_v10 = vld [vmem:[%s1158_s25 + $0xe4] sm:$0xf0]  ;;  %v863_v11 = vor.u32 %v1023_v7, %v862_v6  ;;  %v854_v12 = vld [vmem:[%s1158_s25 + $0x50] sm:$0xf] }
  0x1a   : > { %586 = vmatpush.bf16.msra.mxu0 %v871_v4  ;;  %v927_v13 = vor.u32 %v1039_v10, %v926_v9  ;;  %v1021_v14 = vld [vmem:[%s1158_s25 + $0x54] sm:$0xf0]  ;;  %v998_v15 = vld [vmem:[%s1158_s25 + $0x170] sm:$0xf]  ;;  %v990_v20 = vld [vmem:[%s1158_s25 + $0x160] sm:$0xf] }
  0x1b   : > { %599 = vmatpush.bf16.msra.mxu1 %v935_v8  ;;  %v1057_v16 = vld [vmem:[%s1158_s25 + $0x174] sm:$0xf0]  ;;  %v918_v17 = vld [vmem:[%s1158_s25 + $0xd0] sm:$0xf]  ;;  %v1055_v21 = vld [vmem:[%s1158_s25 + $0x164] sm:$0xf0]  ;;  %v855_v23 = vor.u32 %v1021_v14, %v854_v12 }
  0x1c   : > { %v1037_v18 = vld [vmem:[%s1158_s25 + $0xd4] sm:$0xf0]  ;;  %v999_v19 = vor.u32 %v1057_v16, %v998_v15  ;;  %v1024_v22 = vld [vmem:[%s1158_s25 + $0x74] sm:$0xf]  ;;  %v846_v24 = vld [vmem:[%s1158_s25 + $0x40] sm:$0xf]  ;;  %v991_v26 = vor.u32 %v1055_v21, %v990_v20 }
  0x1d   : > { %v1019_v25 = vld [vmem:[%s1158_s25 + $0x44] sm:$0xf0]  ;;  %v872_v27 = vld [vmem:[%s1158_s25 + $0x78] sm:$0xf0]  ;;  %v919_v28 = vor.u32 %v1037_v18, %v918_v17  ;;  %v910_v29 = vld [vmem:[%s1158_s25 + $0xc0] sm:$0xf] }
  0x1e   : > { %587 = vmatpush.bf16.msra.mxu0 %v863_v11  ;;  %612 = vmatpush.bf16.msra.mxu2 %v999_v19  ;;  %v1035_v30 = vld [vmem:[%s1158_s25 + $0xc4] sm:$0xf0]  ;;  %v875_v31 = vor.u32 %v1024_v22, %v872_v27  ;;  %v982_v32 = vld [vmem:[%s1158_s25 + $0x150] sm:$0xf]  ;;  %v1053_v33 = vld [vmem:[%s1158_s25 + $0x154] sm:$0xf0]  ;;  %v847_v37 = vor.u32 %v1019_v25, %v846_v24 }
  0x1f   : > { %600 = vmatpush.bf16.msra.mxu1 %v927_v13  ;;  %v1022_v34 = vld [vmem:[%s1158_s25 + $0x64] sm:$0xf]  ;;  %v864_v35 = vld [vmem:[%s1158_s25 + $0x68] sm:$0xf0]  ;;  %v838_v38 = vld [vmem:[%s1158_s25 + $0x30] sm:$0xf]  ;;  %v983_v40 = vor.u32 %v1053_v33, %v982_v32  ;;  %v911_v42 = vor.u32 %v1035_v30, %v910_v29 }
  0x20   : > { %625 = vmatpush.bf16.msra.mxu3 %v875_v31  ;;  %v867_v36 = vor.u32 %v1022_v34, %v864_v35  ;;  %v1017_v39 = vld [vmem:[%s1158_s25 + $0x34] sm:$0xf0]  ;;  %v974_v41 = vld [vmem:[%s1158_s25 + $0x140] sm:$0xf]  ;;  %v1051_v43 = vld [vmem:[%s1158_s25 + $0x144] sm:$0xf0] }
  0x21   : > { %v1020_v44 = vld [vmem:[%s1158_s25 + $0x54] sm:$0xf]  ;;  %v856_v45 = vld [vmem:[%s1158_s25 + $0x58] sm:$0xf0]  ;;  %v902_v46 = vld [vmem:[%s1158_s25 + $0xb0] sm:$0xf]  ;;  %v839_v49 = vor.u32 %v1017_v39, %v838_v38  ;;  %v975_v51 = vor.u32 %v1051_v43, %v974_v41 }
  0x22   : > { %588 = vmatpush.bf16.msra.mxu0 %v855_v23  ;;  %613 = vmatpush.bf16.msra.mxu2 %v991_v26  ;;  %v1033_v47 = vld [vmem:[%s1158_s25 + $0xb4] sm:$0xf0]  ;;  %v859_v48 = vor.u32 %v1020_v44, %v856_v45  ;;  %v830_v50 = vld [vmem:[%s1158_s25 + $0x20] sm:$0xf]  ;;  %v1018_v52 = vld [vmem:[%s1158_s25 + $0x44] sm:$0xf] }
  0x23   : > { %601 = vmatpush.bf16.msra.mxu1 %v919_v28  ;;  %v848_v53 = vld [vmem:[%s1158_s25 + $0x48] sm:$0xf0]  ;;  %v903_v54 = vor.u32 %v1033_v47, %v902_v46  ;;  %v1015_v55 = vld [vmem:[%s1158_s25 + $0x24] sm:$0xf0]  ;;  %v966_v56 = vld [vmem:[%s1158_s25 + $0x130] sm:$0xf] }
  0x24   : > { %626 = vmatpush.bf16.msra.mxu3 %v867_v36  ;;  %v1049_v57 = vld [vmem:[%s1158_s25 + $0x134] sm:$0xf0]  ;;  %v894_v58 = vld [vmem:[%s1158_s25 + $0xa0] sm:$0xf]  ;;  %v1031_v59 = vld [vmem:[%s1158_s25 + $0xa4] sm:$0xf0]  ;;  %v851_v60 = vor.u32 %v1018_v52, %v848_v53  ;;  %v831_v61 = vor.u32 %v1015_v55, %v830_v50 }
  0x25   : > { %v822_v62 = vld [vmem:[%s1158_s25 + $0x10] sm:$0xf]  ;;  %v967_v63 = vor.u32 %v1049_v57, %v966_v56  ;;  %v1016_v0 = vld [vmem:[%s1158_s25 + $0x34] sm:$0xf]  ;;  %v840_v1 = vld [vmem:[%s1158_s25 + $0x38] sm:$0xf0]  ;;  %v895_v2 = vor.u32 %v1031_v59, %v894_v58 }
  0x26   : > { %589 = vmatpush.bf16.msra.mxu0 %v847_v37  ;;  %614 = vmatpush.bf16.msra.mxu2 %v983_v40  ;;  %v1013_v3 = vld [vmem:[%s1158_s25 + $0x14] sm:$0xf0]  ;;  %v958_v4 = vld [vmem:[%s1158_s25 + $0x120] sm:$0xf]  ;;  %v1047_v5 = vld [vmem:[%s1158_s25 + $0x124] sm:$0xf0]  ;;  %v843_v10 = vor.u32 %v1016_v0, %v840_v1 }
  0x27   : > { %602 = vmatpush.bf16.msra.mxu1 %v911_v42  ;;  %v886_v6 = vld [vmem:[%s1158_s25 + $0x90] sm:$0xf]  ;;  %v1029_v7 = vld [vmem:[%s1158_s25 + $0x94] sm:$0xf0]  ;;  %v814_v8 = vld [vmem:[%s1158_s25] sm:$0xf]  ;;  %v823_v11 = vor.u32 %v1013_v3, %v822_v62  ;;  %v959_v12 = vor.u32 %v1047_v5, %v958_v4 }
  0x28   : > { %627 = vmatpush.bf16.msra.mxu3 %v859_v48  ;;  %v1011_v9 = vld [vmem:[%s1158_s25 + $0x4] sm:$0xf0]  ;;  %v1014_v13 = vld [vmem:[%s1158_s25 + $0x24] sm:$0xf]  ;;  %v832_v14 = vld [vmem:[%s1158_s25 + $0x28] sm:$0xf0]  ;;  %v887_v16 = vor.u32 %v1029_v7, %v886_v6 }
  0x29   : > { %v285_v15 = vld [vmem:[%s1153_s21] sm:$0xff]  ;;  %v950_v18 = vld [vmem:[%s1158_s25 + $0x110] sm:$0xf]  ;;  %v1045_v19 = vld [vmem:[%s1158_s25 + $0x114] sm:$0xf0]  ;;  %v835_v25 = vor.u32 %v1014_v13, %v832_v14  ;;  %v815_v27 = vor.u32 %v1011_v9, %v814_v8  ;;  %p1004_p7 = scmp.ne.s32.totalorder %s1097_s12, 2 }
  0x2a   : > { %590 = vmatpush.bf16.msra.mxu0 %v839_v49  ;;  %615 = vmatpush.bf16.msra.mxu2 %v975_v51  ;;  %v878_v17 = vld [vmem:[%s1158_s25 + $0x80] sm:$0xf]  ;;  %v1027_v20 = vld [vmem:[%s1158_s25 + $0x84] sm:$0xf0]  ;;  %v1040_v21 = vld [vmem:[%s1158_s25 + $0xf4] sm:$0xf]  ;;  %v337_v26 = vunpack.c.l.b16 %v285_v15  ;;  %v951_v28 = vor.u32 %v1045_v19, %v950_v18  ;;  %v338_v29 = vunpack.c.h.b16 %v285_v15 }
  0x2b   : > { %603 = vmatpush.bf16.msra.mxu1 %v903_v54  ;;  %v936_v22 = vld [vmem:[%s1158_s25 + $0xf8] sm:$0xf0]  ;;  %v1056_v23 = vld [vmem:[%s1158_s25 + $0x174] sm:$0xf]  ;;  %v286_v32 = vld [vmem:[%s1153_s21 + $0x8] sm:$0xf]  ;;  %v879_v33 = vor.u32 %v1027_v20, %v878_v17 }
  0x2c   : > { %628 = vmatpush.bf16.msra.mxu3 %v851_v60  ;;  %v1000_v24 = vld [vmem:[%s1158_s25 + $0x178] sm:$0xf0]  ;;  %v1012_v30 = vld [vmem:[%s1158_s25 + $0x14] sm:$0xf]  ;;  %v939_v34 = vor.u32 %v1040_v21, %v936_v22  ;;  %v942_v35 = vld [vmem:[%s1158_s25 + $0x100] sm:$0xf]  ;;  %v340_v42 = vpack.c.b16 %v337_v26, %v337_v26  ;;  %v339_v44 = vunpack.c.l.b16 %v286_v32  ;;  %v1239_v45 = vpack.c.b16 %v338_v29, %v338_v29 }
  0x2d   : > { %v824_v31 = vld [vmem:[%s1158_s25 + $0x18] sm:$0xf0]  ;;  %v1043_v36 = vld [vmem:[%s1158_s25 + $0x104] sm:$0xf0]  ;;  %v1003_v37 = vor.u32 %v1056_v23, %v1000_v24  ;;  %v1038_v38 = vld [vmem:[%s1158_s25 + $0xe4] sm:$0xf] }
  0x2e   : > { %591 = vmatpush.bf16.msra.mxu0 %v831_v61  ;;  %616 = vmatpush.bf16.msra.mxu2 %v967_v63  ;;  %v928_v39 = vld [vmem:[%s1158_s25 + $0xe8] sm:$0xf0]  ;;  %v1054_v40 = vld [vmem:[%s1158_s25 + $0x164] sm:$0xf]  ;;  %v827_v43 = vor.u32 %v1012_v30, %v824_v31  ;;  %v943_v46 = vor.u32 %v1043_v36, %v942_v35  ;;  %v1036_v51 = vld [vmem:[%s1158_s25 + $0xd4] sm:$0xf]  ;;  %v342_v55 = vpack.c.b16 %v339_v44, %v339_v44 }
  0x2f   : > { %604 = vmatpush.bf16.msra.mxu1 %v895_v2  ;;  %v992_v41 = vld [vmem:[%s1158_s25 + $0x168] sm:$0xf0]  ;;  %v1010_v47 = vld [vmem:[%s1158_s25 + $0x4] sm:$0xf]  ;;  %v931_v49 = vor.u32 %v1038_v38, %v928_v39  ;;  %v920_v52 = vld [vmem:[%s1158_s25 + $0xd8] sm:$0xf0] }
  0x30   : > { %629 = vmatpush.bf16.msra.mxu3 %v843_v10  ;;  %v816_v48 = vld [vmem:[%s1158_s25 + $0x8] sm:$0xf0]  ;;  %v995_v50 = vor.u32 %v1054_v40, %v992_v41  ;;  %v1052_v53 = vld [vmem:[%s1158_s25 + $0x154] sm:$0xf]  ;;  %v984_v54 = vld [vmem:[%s1158_s25 + $0x158] sm:$0xf0]  ;;  %v923_v57 = vor.u32 %v1036_v51, %v920_v52 }
  0x31   : > { %v819_v56 = vor.u32 %v1010_v47, %v816_v48  ;;  %v987_v58 = vor.u32 %v1052_v53, %v984_v54  ;;  %v1034_v59 = vld [vmem:[%s1158_s25 + $0xc4] sm:$0xf]  ;;  %v912_v60 = vld [vmem:[%s1158_s25 + $0xc8] sm:$0xf0]  ;;  %v1032_v1 = vld [vmem:[%s1158_s25 + $0xb4] sm:$0xf] }
  0x32   : > { %592 = vmatpush.bf16.msra.mxu0 %v823_v11  ;;  %617 = vmatpush.bf16.msra.mxu2 %v959_v12  ;;  %v1050_v61 = vld [vmem:[%s1158_s25 + $0x144] sm:$0xf]  ;;  %v976_v62 = vld [vmem:[%s1158_s25 + $0x148] sm:$0xf0]  ;;  %v915_v63 = vor.u32 %v1034_v59, %v912_v60  ;;  %v904_v2 = vld [vmem:[%s1158_s25 + $0xb8] sm:$0xf0] }
  0x33   : > { %605 = vmatpush.bf16.msra.mxu1 %v887_v16  ;;  %v979_v0 = vor.u32 %v1050_v61, %v976_v62  ;;  %v1048_v3 = vld [vmem:[%s1158_s25 + $0x134] sm:$0xf]  ;;  %v968_v4 = vld [vmem:[%s1158_s25 + $0x138] sm:$0xf0]  ;;  %v907_v5 = vor.u32 %v1032_v1, %v904_v2  ;;  %v1030_v7 = vld [vmem:[%s1158_s25 + $0xa4] sm:$0xf] }
  0x34   : > { %630 = vmatpush.bf16.msra.mxu3 %v835_v25  ;;  %v971_v6 = vor.u32 %v1048_v3, %v968_v4  ;;  %v896_v8 = vld [vmem:[%s1158_s25 + $0xa8] sm:$0xf0]  ;;  %v1046_v9 = vld [vmem:[%s1158_s25 + $0x124] sm:$0xf]  ;;  %v1028_v13 = vld [vmem:[%s1158_s25 + $0x94] sm:$0xf] }
  0x35   : > { %v960_v10 = vld [vmem:[%s1158_s25 + $0x128] sm:$0xf0]  ;;  %v899_v11 = vor.u32 %v1030_v7, %v896_v8  ;;  %v888_v14 = vld [vmem:[%s1158_s25 + $0x98] sm:$0xf0]  ;;  %v1044_v15 = vld [vmem:[%s1158_s25 + $0x114] sm:$0xf] }
  0x36   : > { %593 = vmatpush.bf16.msra.mxu0 %v815_v27  ;;  %618 = vmatpush.bf16.msra.mxu2 %v951_v28  ;;  %v963_v12 = vor.u32 %v1046_v9, %v960_v10  ;;  %v952_v16 = vld [vmem:[%s1158_s25 + $0x118] sm:$0xf0]  ;;  %v891_v17 = vor.u32 %v1028_v13, %v888_v14  ;;  %v1026_v19 = vld [vmem:[%s1158_s25 + $0x84] sm:$0xf]  ;;  %v880_v20 = vld [vmem:[%s1158_s25 + $0x88] sm:$0xf0] }
  0x37   : > { %606 = vmatpush.bf16.msra.mxu1 %v879_v33  ;;  %v955_v18 = vor.u32 %v1044_v15, %v952_v16  ;;  %v1042_v21 = vld [vmem:[%s1158_s25 + $0x104] sm:$0xf]  ;;  %v944_v22 = vld [vmem:[%s1158_s25 + $0x108] sm:$0xf0]  ;;  %v883_v23 = vor.u32 %v1026_v19, %v880_v20 }
  0x38   : > { %631 = vmatpush.bf16.msra.mxu3 %v827_v43  ;;  %v947_v24 = vor.u32 %v1042_v21, %v944_v22  ;;  %v283_v30 = vld [vmem:[%s1309_s3] sm:$0xff]  ;;  %v284_v40 = vld [vmem:[%s1309_s3 + $0x8] sm:$0xff] }
  0x39   : > { %594 = vmatmul.bf16.vlgmr.msra.gmra.mxu0 %v340_v42 }
  0x3a   : > { %638 = vmatpush.bf16.msrb.mxu0 %v939_v34  ;;  %607 = vmatmul.bf16.vlgmr.msra.gmra.mxu1 %v1239_v45 }
  0x3b   : > { %651 = vmatpush.bf16.msrb.mxu1 %v1003_v37  ;;  %619 = vmatpush.bf16.msra.mxu2 %v943_v46 }
  0x3c   : > { %632 = vmatpush.bf16.msra.mxu3 %v819_v56 }
  0x3e   : > { %639 = vmatpush.bf16.msrb.mxu0 %v931_v49  ;;  %620 = vmatmul.bf16.vlgmr.msra.gmra.mxu2 %v342_v55 }
  0x3f   : > { %652 = vmatpush.bf16.msrb.mxu1 %v995_v50  ;;  %633 = vmatmul.bf16.vlgmr.msra.gmra.mxu3 %v340_v42 }
  0x42   : > { %640 = vmatpush.bf16.msrb.mxu0 %v923_v57 }
  0x43   : > { %653 = vmatpush.bf16.msrb.mxu1 %v987_v58 }
  0x46   : > { %641 = vmatpush.bf16.msrb.mxu0 %v915_v63 }
  0x47   : > { %654 = vmatpush.bf16.msrb.mxu1 %v979_v0 }
  0x4a   : > { %642 = vmatpush.bf16.msrb.mxu0 %v907_v5 }
  0x4b   : > { %655 = vmatpush.bf16.msrb.mxu1 %v971_v6 }
  0x4e   : > { %643 = vmatpush.bf16.msrb.mxu0 %v899_v11 }
  0x4f   : > { %656 = vmatpush.bf16.msrb.mxu1 %v963_v12 }
  0x52   : > { %644 = vmatpush.bf16.msrb.mxu0 %v891_v17 }
  0x53   : > { %657 = vmatpush.bf16.msrb.mxu1 %v955_v18 }
  0x56   : > { %645 = vmatpush.bf16.msrb.mxu0 %v883_v23 }
  0x57   : > { %658 = vmatpush.bf16.msrb.mxu1 %v947_v24 }
  0x59   : > { %646 = vmatmul.bf16.vlgmr.msrb.gmra.mxu0 %v1239_v45 }
  0x5a   : > { %659 = vmatmul.bf16.vlgmr.msrb.gmra.mxu1 %v342_v55 }
  0xb6   : > { %v595_v25 = vpop.f32.mrf.mxu0 }
  0xb7   : > { %v608_v26 = vpop.f32.mrf.mxu1 }
  0xb8   : > { %v609_v27 = vadd.f32 %v608_v26, %v595_v25 }
  0xbe   : > { %v597_v28 = vpop.f32.mrf.mxu0 }
  0xbf   : > { %v610_v29 = vpop.f32.mrf.mxu1 }
  0xc1   : > { %v621_v31 = vpop.f32.mrf.mxu2 }
  0xc2   : > { %v622_v32 = vadd.f32 %v621_v31, %v609_v27  ;;  %v634_v34 = vpop.f32.mrf.mxu3 }
  0xc4   : > { %v664_v33 = vadd.f32 %v622_v32, %v283_v30 }
  0xc6   : > { %666 = vst [vmem:[%s1309_s3] sm:$0xff] %v664_v33 }
  0xc9   : > { %v623_v35 = vpop.f32.mrf.mxu2 }
  0xca   : > { %v636_v36 = vpop.f32.mrf.mxu3 }
  0xd6   : > { %v647_v37 = vpop.f32.mrf.mxu0 }
  0xd7   : > { %v648_v38 = vadd.f32 %v647_v37, %v634_v34  ;;  %v660_v39 = vpop.f32.mrf.mxu1 }
  0xd9   : > { %v661_v41 = vadd.f32 %v660_v39, %v648_v38 }
  0xdb   : > { %v665_v42 = vadd.f32 %v661_v41, %v284_v40  ;;  %671 = sbr.rel (%p1004_p7) target bundleno = 234 (0xea), region = 40 }
  0xdd   : > { %667 = vst [vmem:[%s1309_s3 + $0x8] sm:$0xff] %v665_v42 }
  0xde   : > { %v649_v43 = vpop.f32.mrf.mxu0 }
  0xdf   : > { %v662_v44 = vpop.f32.mrf.mxu1 }
  0xe0   : > { %v672_v45 = vld [vmem:[%s1309_s3] sm:$0xff] }
  0xe1   : > { %v674_v46 = vld [vmem:[%s1308_s2] sm:$0x3] }
  0xe2   : > { %v676_v48 = vperm.slane %v674_v46, 0  ;;  %v677_v49 = vperm.slane %v674_v46, 1 }
  0xe4   : > { %v673_v47 = vld [vmem:[%s1309_s3 + $0x8] sm:$0xff]  ;;  %v680_v50 = vadd.f32 %v676_v48, %v672_v45 }
  0xe5   : > { %v681_v51 = vadd.f32 %v677_v49, %v673_v47 }
  0xe6   : > { %v682_v52 = vmax.f32 %v680_v50, 0.0 }
  0xe7   : > { %v683_v53 = vmax.f32 %v681_v51, 0.0 }
  0xe8   : > { %684 = vst [vmem:[%s1309_s3] sm:$0xff] %v682_v52 }
  0xe9   : > { %685 = vst [vmem:[%s1309_s3 + $0x8] sm:$0xff] %v683_v53 }
  0xea PF: > { %s13_s14 = sadd.s32 1, %s1105_s14   ;;  %s1310_s12 = smov %s1101_s13 }
  0xeb   : > { %p10_p8 = scmp.ge.s32.totalorder %s13_s14, 5   ;;  %s1311_s13 = smov %s1313_s15 }
  0xed   :  { %12 = sbr.rel (!%p10_p8) target bundleno = 2 (0x2), region = 76 }

// kernel: res18feature_forward.31
= control target key start
LH: loop header
LB: loop body
LE: loop exit
PB: predicated region body
PF: predicated region fallthrough
CT: control target
= control target key end

     0   :  { %s377_s1 = inlined_call_operand.vmem [shape: bf16[128,256], index: 1, kind: input, shape index: {}]   ;;  %s378_s0 = inlined_call_operand.vmem [shape: bf16[8,128], index: 0, kind: input, shape index: {}]   ;;  %s379_s2 = inlined_call_operand.vmem [shape: f32[1,256], index: 2, kind: input, shape index: {}]   ;;  %s380_s3 = inlined_call_operand.vmem [shape: f32[8,256], index: 3, kind: output, shape index: {}]  }
   0x1   :  { %v226_v0 = vld [vmem:[%s377_s1 + $0x70] sm:$0xf]  ;;  %v247_v1 = vld [vmem:[%s377_s1 + $0x74] sm:$0xf0]  ;;  %v246_v2 = vld [vmem:[%s377_s1 + $0x74] sm:$0xf] }
   0x2   :  { %v227_v3 = vor.u32 %v247_v1, %v226_v0  ;;  %v228_v4 = vld [vmem:[%s377_s1 + $0x78] sm:$0xf0]  ;;  %v218_v5 = vld [vmem:[%s377_s1 + $0x60] sm:$0xf]  ;;  %v245_v6 = vld [vmem:[%s377_s1 + $0x64] sm:$0xf0] }
   0x3   :  { %v231_v7 = vor.u32 %v246_v2, %v228_v4  ;;  %v244_v8 = vld [vmem:[%s377_s1 + $0x64] sm:$0xf]  ;;  %v220_v9 = vld [vmem:[%s377_s1 + $0x68] sm:$0xf0]  ;;  %v219_v10 = vor.u32 %v245_v6, %v218_v5  ;;  %v210_v12 = vld [vmem:[%s377_s1 + $0x50] sm:$0xf] }
   0x4   :  { %119 = vmatpush.bf16.msra.mxu0 %v227_v3  ;;  %v223_v11 = vor.u32 %v244_v8, %v220_v9  ;;  %v243_v13 = vld [vmem:[%s377_s1 + $0x54] sm:$0xf0]  ;;  %v242_v14 = vld [vmem:[%s377_s1 + $0x54] sm:$0xf]  ;;  %v212_v15 = vld [vmem:[%s377_s1 + $0x58] sm:$0xf0] }
   0x5   :  { %132 = vmatpush.bf16.msra.mxu1 %v231_v7  ;;  %v211_v16 = vor.u32 %v243_v13, %v210_v12  ;;  %v215_v17 = vor.u32 %v242_v14, %v212_v15  ;;  %v202_v18 = vld [vmem:[%s377_s1 + $0x40] sm:$0xf]  ;;  %v241_v19 = vld [vmem:[%s377_s1 + $0x44] sm:$0xf0]  ;;  %v240_v20 = vld [vmem:[%s377_s1 + $0x44] sm:$0xf] }
   0x6   :  { %v204_v21 = vld [vmem:[%s377_s1 + $0x48] sm:$0xf0]  ;;  %v203_v22 = vor.u32 %v241_v19, %v202_v18  ;;  %v194_v24 = vld [vmem:[%s377_s1 + $0x30] sm:$0xf]  ;;  %v239_v25 = vld [vmem:[%s377_s1 + $0x34] sm:$0xf0] }
   0x7   :  { %v207_v23 = vor.u32 %v240_v20, %v204_v21  ;;  %v238_v26 = vld [vmem:[%s377_s1 + $0x34] sm:$0xf]  ;;  %v196_v27 = vld [vmem:[%s377_s1 + $0x38] sm:$0xf0]  ;;  %v195_v28 = vor.u32 %v239_v25, %v194_v24  ;;  %v186_v30 = vld [vmem:[%s377_s1 + $0x20] sm:$0xf] }
   0x8   :  { %120 = vmatpush.bf16.msra.mxu0 %v219_v10  ;;  %v199_v29 = vor.u32 %v238_v26, %v196_v27  ;;  %v237_v31 = vld [vmem:[%s377_s1 + $0x24] sm:$0xf0]  ;;  %v236_v32 = vld [vmem:[%s377_s1 + $0x24] sm:$0xf]  ;;  %v188_v33 = vld [vmem:[%s377_s1 + $0x28] sm:$0xf0] }
   0x9   :  { %133 = vmatpush.bf16.msra.mxu1 %v223_v11  ;;  %v187_v34 = vor.u32 %v237_v31, %v186_v30  ;;  %v191_v35 = vor.u32 %v236_v32, %v188_v33  ;;  %v178_v36 = vld [vmem:[%s377_s1 + $0x10] sm:$0xf]  ;;  %v235_v37 = vld [vmem:[%s377_s1 + $0x14] sm:$0xf0]  ;;  %v234_v38 = vld [vmem:[%s377_s1 + $0x14] sm:$0xf] }
   0xa   :  { %v180_v39 = vld [vmem:[%s377_s1 + $0x18] sm:$0xf0]  ;;  %v179_v40 = vor.u32 %v235_v37, %v178_v36  ;;  %v170_v42 = vld [vmem:[%s377_s1] sm:$0xf]  ;;  %v233_v43 = vld [vmem:[%s377_s1 + $0x4] sm:$0xf0] }
   0xb   :  { %v183_v41 = vor.u32 %v234_v38, %v180_v39  ;;  %v232_v44 = vld [vmem:[%s377_s1 + $0x4] sm:$0xf]  ;;  %v172_v45 = vld [vmem:[%s377_s1 + $0x8] sm:$0xf0]  ;;  %v171_v46 = vor.u32 %v233_v43, %v170_v42  ;;  %v22_v48 = vld [vmem:[%s378_s0] sm:$0xf] }
   0xc   :  { %121 = vmatpush.bf16.msra.mxu0 %v211_v16  ;;  %v175_v47 = vor.u32 %v232_v44, %v172_v45  ;;  %v154_v49 = vld [vmem:[%s379_s2] sm:$0x3] }
   0xd   :  { %134 = vmatpush.bf16.msra.mxu1 %v215_v17  ;;  %v156_v50 = vperm.slane %v154_v49, 0  ;;  %v157_v52 = vperm.slane %v154_v49, 1 }
  0x10   :  { %122 = vmatpush.bf16.msra.mxu0 %v203_v22 }
  0x11   :  { %135 = vmatpush.bf16.msra.mxu1 %v207_v23 }
  0x14   :  { %123 = vmatpush.bf16.msra.mxu0 %v195_v28 }
  0x15   :  { %136 = vmatpush.bf16.msra.mxu1 %v199_v29 }
  0x18   :  { %124 = vmatpush.bf16.msra.mxu0 %v187_v34 }
  0x19   :  { %137 = vmatpush.bf16.msra.mxu1 %v191_v35 }
  0x1c   :  { %125 = vmatpush.bf16.msra.mxu0 %v179_v40 }
  0x1d   :  { %138 = vmatpush.bf16.msra.mxu1 %v183_v41 }
  0x20   :  { %126 = vmatpush.bf16.msra.mxu0 %v171_v46 }
  0x21   :  { %139 = vmatpush.bf16.msra.mxu1 %v175_v47 }
  0x23   :  { %127 = vmatmul.bf16.vlgmr.msra.gmra.mxu0 %v22_v48 }
  0x24   :  { %140 = vmatmul.bf16.vlgmr.msra.gmra.mxu1 %v22_v48 }
  0xa0   :  { %v128_v51 = vpop.f32.mrf.mxu0 }
  0xa1   :  { %v141_v53 = vpop.f32.mrf.mxu1  ;;  %v160_v54 = vadd.f32 %v156_v50, %v128_v51 }
  0xa2   :  { %v161_v55 = vadd.f32 %v157_v52, %v141_v53 }
  0xa3   :  { %162 = vst [vmem:[%s380_s3] sm:$0xff] %v160_v54 }
  0xa4   :  { %163 = vst [vmem:[%s380_s3 + $0x8] sm:$0xff] %v161_v55 }
  0xa8   :  { %v130_v56 = vpop.f32.mrf.mxu0 }
  0xa9   :  { %v143_v57 = vpop.f32.mrf.mxu1 }

// kernel: res18feature_forward.33
= control target key start
LH: loop header
LB: loop body
LE: loop exit
PB: predicated region body
PF: predicated region fallthrough
CT: control target
= control target key end

     0   :  { %s1222_s15 = smov 0   ;;  %s1224_s16 = smov 0   ;;  %s1406_s0 = inlined_call_operand.vmem [shape: bf16[8,2304], index: 0, kind: input, shape index: {}]   ;;  %s1407_s1 = inlined_call_operand.vmem [shape: bf16[2304,256], index: 1, kind: input, shape index: {}]   ;;  %s1408_s2 = inlined_call_operand.vmem [shape: f32[1,256], index: 2, kind: input, shape index: {}]   ;;  %s1409_s3 = inlined_call_operand.vmem [shape: f32[8,256], index: 3, kind: input, shape index: {}]   ;;  %s1410_s4 = inlined_call_operand.vmem [shape: f32[8,256], index: 4, kind: output, shape index: {}]  }
   0x1   :  { %s1226_s17 = smov 0  }
   0x2 LB: > { %s26_s18 = sadd.s32 1, %s1190_s16  ;;  %p896_p0 = scmp.ge.s32.totalorder %s1194_s17, 1  ;;  %s1194_s17 = sphi %s1226_s17, %s14_s17   ;;  %s1190_s16 = sphi %s1224_s16, %s1412_s16   ;;  %s1186_s15 = sphi %s1222_s15, %s1411_s15  }
   0x3   : > { %p27_p1 = scmp.ge.s32.totalorder %s26_s18, 6  ;;  %p236_p2 = scmp.lt.s32.totalorder %s1194_s17, 7 }
   0x5   : > { %s1414_s18 = smov (%p27_p1, %s26_s18), 0  ;;  %p237_p3 = pnand %p896_p0, %p236_p2 }
   0x6   : > { %s293_s19 = smul.u32 (!%p237_p3), 3, %s1186_s15  ;;  %p900_p6 = scmp.ne.s32.totalorder (!%p237_p3), %s1186_s15, 0 }
   0x7   : > { %240 = sbr.rel (%p237_p3) target bundleno = 236 (0xec), region = 36 }
   0x8   : > { %s303_s20 = smul.u32 (!%p237_p3), 48, %s1186_s15  ;;  %p296_p4 = scmp.lt.s32.totalorder (!%p237_p3), %s293_s19, 17 }
   0xa   : > { %p305_p5 = scmp.lt.s32.totalorder (!%p237_p3), %s303_s20, 287 }
   0xc   : > { %s1416_s19 = smov (!%p296_p4, %s293_s19), 17  ;;  %s1418_s20 = smov (!%p305_p5, %s303_s20), 287 }
   0xd   : > { %s897_s21 = sshll.u32 %s1416_s19, 2  ;;  %s1098_s25 = sshll.u32 %s1418_s20, 3 }
   0xe   : > { %s1247_s24 = scalar_lea.vmem %s1406_s0, %s897_s21  ;;  %s1252_s28 = scalar_lea.vmem %s1407_s1, %s1098_s25 }
   0xf   : > { %343 = sbr.rel (%p900_p6) target bundleno = 23 (0x17), region = 40 }
  0x14   : > { %v1196_v0 = vmov 0.0  }
  0x15   : > { %344 = vst [vmem:[%s1410_s4] sm:$0xff] %v1196_v0 }
  0x16   : > { %345 = vst [vmem:[%s1410_s4 + $0x8] sm:$0xff] %v1196_v0 }
  0x17 PF: > { %v959_v1 = vld [vmem:[%s1252_s28 + $0x70] sm:$0xf]  ;;  %v1114_v2 = vld [vmem:[%s1252_s28 + $0x74] sm:$0xf0]  ;;  %v951_v6 = vld [vmem:[%s1252_s28 + $0x60] sm:$0xf] }
  0x18   : > { %v1023_v3 = vld [vmem:[%s1252_s28 + $0xf0] sm:$0xf]  ;;  %v960_v4 = vor.u32 %v1114_v2, %v959_v1  ;;  %v1130_v5 = vld [vmem:[%s1252_s28 + $0xf4] sm:$0xf0]  ;;  %v1112_v7 = vld [vmem:[%s1252_s28 + $0x64] sm:$0xf0] }
  0x19   : > { %v1024_v8 = vor.u32 %v1130_v5, %v1023_v3  ;;  %v1015_v9 = vld [vmem:[%s1252_s28 + $0xe0] sm:$0xf]  ;;  %v1128_v10 = vld [vmem:[%s1252_s28 + $0xe4] sm:$0xf0]  ;;  %v952_v11 = vor.u32 %v1112_v7, %v951_v6  ;;  %v943_v12 = vld [vmem:[%s1252_s28 + $0x50] sm:$0xf] }
  0x1a   : > { %649 = vmatpush.bf16.msra.mxu0 %v960_v4  ;;  %v1016_v13 = vor.u32 %v1128_v10, %v1015_v9  ;;  %v1110_v14 = vld [vmem:[%s1252_s28 + $0x54] sm:$0xf0]  ;;  %v1087_v15 = vld [vmem:[%s1252_s28 + $0x170] sm:$0xf]  ;;  %v1079_v20 = vld [vmem:[%s1252_s28 + $0x160] sm:$0xf] }
  0x1b   : > { %662 = vmatpush.bf16.msra.mxu1 %v1024_v8  ;;  %v1146_v16 = vld [vmem:[%s1252_s28 + $0x174] sm:$0xf0]  ;;  %v1007_v17 = vld [vmem:[%s1252_s28 + $0xd0] sm:$0xf]  ;;  %v1144_v21 = vld [vmem:[%s1252_s28 + $0x164] sm:$0xf0]  ;;  %v944_v23 = vor.u32 %v1110_v14, %v943_v12 }
  0x1c   : > { %v1126_v18 = vld [vmem:[%s1252_s28 + $0xd4] sm:$0xf0]  ;;  %v1088_v19 = vor.u32 %v1146_v16, %v1087_v15  ;;  %v1113_v22 = vld [vmem:[%s1252_s28 + $0x74] sm:$0xf]  ;;  %v935_v24 = vld [vmem:[%s1252_s28 + $0x40] sm:$0xf]  ;;  %v1080_v26 = vor.u32 %v1144_v21, %v1079_v20 }
  0x1d   : > { %v1108_v25 = vld [vmem:[%s1252_s28 + $0x44] sm:$0xf0]  ;;  %v961_v27 = vld [vmem:[%s1252_s28 + $0x78] sm:$0xf0]  ;;  %v1008_v28 = vor.u32 %v1126_v18, %v1007_v17  ;;  %v999_v29 = vld [vmem:[%s1252_s28 + $0xc0] sm:$0xf] }
  0x1e   : > { %650 = vmatpush.bf16.msra.mxu0 %v952_v11  ;;  %675 = vmatpush.bf16.msra.mxu2 %v1088_v19  ;;  %v1124_v30 = vld [vmem:[%s1252_s28 + $0xc4] sm:$0xf0]  ;;  %v964_v31 = vor.u32 %v1113_v22, %v961_v27  ;;  %v1071_v32 = vld [vmem:[%s1252_s28 + $0x150] sm:$0xf]  ;;  %v1142_v33 = vld [vmem:[%s1252_s28 + $0x154] sm:$0xf0]  ;;  %v936_v37 = vor.u32 %v1108_v25, %v935_v24 }
  0x1f   : > { %663 = vmatpush.bf16.msra.mxu1 %v1016_v13  ;;  %v1111_v34 = vld [vmem:[%s1252_s28 + $0x64] sm:$0xf]  ;;  %v953_v35 = vld [vmem:[%s1252_s28 + $0x68] sm:$0xf0]  ;;  %v927_v38 = vld [vmem:[%s1252_s28 + $0x30] sm:$0xf]  ;;  %v1072_v40 = vor.u32 %v1142_v33, %v1071_v32  ;;  %v1000_v42 = vor.u32 %v1124_v30, %v999_v29 }
  0x20   : > { %688 = vmatpush.bf16.msra.mxu3 %v964_v31  ;;  %v956_v36 = vor.u32 %v1111_v34, %v953_v35  ;;  %v1106_v39 = vld [vmem:[%s1252_s28 + $0x34] sm:$0xf0]  ;;  %v1063_v41 = vld [vmem:[%s1252_s28 + $0x140] sm:$0xf]  ;;  %v1140_v43 = vld [vmem:[%s1252_s28 + $0x144] sm:$0xf0] }
  0x21   : > { %v1109_v44 = vld [vmem:[%s1252_s28 + $0x54] sm:$0xf]  ;;  %v945_v45 = vld [vmem:[%s1252_s28 + $0x58] sm:$0xf0]  ;;  %v991_v46 = vld [vmem:[%s1252_s28 + $0xb0] sm:$0xf]  ;;  %v928_v49 = vor.u32 %v1106_v39, %v927_v38  ;;  %v1064_v51 = vor.u32 %v1140_v43, %v1063_v41 }
  0x22   : > { %651 = vmatpush.bf16.msra.mxu0 %v944_v23  ;;  %676 = vmatpush.bf16.msra.mxu2 %v1080_v26  ;;  %v1122_v47 = vld [vmem:[%s1252_s28 + $0xb4] sm:$0xf0]  ;;  %v948_v48 = vor.u32 %v1109_v44, %v945_v45  ;;  %v919_v50 = vld [vmem:[%s1252_s28 + $0x20] sm:$0xf]  ;;  %v1107_v52 = vld [vmem:[%s1252_s28 + $0x44] sm:$0xf] }
  0x23   : > { %664 = vmatpush.bf16.msra.mxu1 %v1008_v28  ;;  %v937_v53 = vld [vmem:[%s1252_s28 + $0x48] sm:$0xf0]  ;;  %v992_v54 = vor.u32 %v1122_v47, %v991_v46  ;;  %v1104_v55 = vld [vmem:[%s1252_s28 + $0x24] sm:$0xf0]  ;;  %v1055_v56 = vld [vmem:[%s1252_s28 + $0x130] sm:$0xf] }
  0x24   : > { %689 = vmatpush.bf16.msra.mxu3 %v956_v36  ;;  %v1138_v57 = vld [vmem:[%s1252_s28 + $0x134] sm:$0xf0]  ;;  %v983_v58 = vld [vmem:[%s1252_s28 + $0xa0] sm:$0xf]  ;;  %v1120_v59 = vld [vmem:[%s1252_s28 + $0xa4] sm:$0xf0]  ;;  %v940_v60 = vor.u32 %v1107_v52, %v937_v53  ;;  %v920_v61 = vor.u32 %v1104_v55, %v919_v50 }
  0x25   : > { %v911_v62 = vld [vmem:[%s1252_s28 + $0x10] sm:$0xf]  ;;  %v1056_v63 = vor.u32 %v1138_v57, %v1055_v56  ;;  %v1105_v0 = vld [vmem:[%s1252_s28 + $0x34] sm:$0xf]  ;;  %v929_v1 = vld [vmem:[%s1252_s28 + $0x38] sm:$0xf0]  ;;  %v984_v2 = vor.u32 %v1120_v59, %v983_v58 }
  0x26   : > { %652 = vmatpush.bf16.msra.mxu0 %v936_v37  ;;  %677 = vmatpush.bf16.msra.mxu2 %v1072_v40  ;;  %v1102_v3 = vld [vmem:[%s1252_s28 + $0x14] sm:$0xf0]  ;;  %v1047_v4 = vld [vmem:[%s1252_s28 + $0x120] sm:$0xf]  ;;  %v1136_v5 = vld [vmem:[%s1252_s28 + $0x124] sm:$0xf0]  ;;  %v932_v10 = vor.u32 %v1105_v0, %v929_v1 }
  0x27   : > { %665 = vmatpush.bf16.msra.mxu1 %v1000_v42  ;;  %v975_v6 = vld [vmem:[%s1252_s28 + $0x90] sm:$0xf]  ;;  %v1118_v7 = vld [vmem:[%s1252_s28 + $0x94] sm:$0xf0]  ;;  %v903_v8 = vld [vmem:[%s1252_s28] sm:$0xf]  ;;  %v912_v11 = vor.u32 %v1102_v3, %v911_v62  ;;  %v1048_v12 = vor.u32 %v1136_v5, %v1047_v4 }
  0x28   : > { %690 = vmatpush.bf16.msra.mxu3 %v948_v48  ;;  %v1100_v9 = vld [vmem:[%s1252_s28 + $0x4] sm:$0xf0]  ;;  %v1103_v13 = vld [vmem:[%s1252_s28 + $0x24] sm:$0xf]  ;;  %v921_v14 = vld [vmem:[%s1252_s28 + $0x28] sm:$0xf0]  ;;  %v976_v16 = vor.u32 %v1118_v7, %v975_v6 }
  0x29   : > { %v348_v15 = vld [vmem:[%s1247_s24] sm:$0xff]  ;;  %v1039_v18 = vld [vmem:[%s1252_s28 + $0x110] sm:$0xf]  ;;  %v1134_v19 = vld [vmem:[%s1252_s28 + $0x114] sm:$0xf0]  ;;  %v924_v25 = vor.u32 %v1103_v13, %v921_v14  ;;  %v904_v27 = vor.u32 %v1100_v9, %v903_v8  ;;  %p1093_p7 = scmp.ne.s32.totalorder %s1186_s15, 5 }
  0x2a   : > { %653 = vmatpush.bf16.msra.mxu0 %v928_v49  ;;  %678 = vmatpush.bf16.msra.mxu2 %v1064_v51  ;;  %v967_v17 = vld [vmem:[%s1252_s28 + $0x80] sm:$0xf]  ;;  %v1116_v20 = vld [vmem:[%s1252_s28 + $0x84] sm:$0xf0]  ;;  %v1129_v21 = vld [vmem:[%s1252_s28 + $0xf4] sm:$0xf]  ;;  %v400_v26 = vunpack.c.l.b16 %v348_v15  ;;  %v1040_v28 = vor.u32 %v1134_v19, %v1039_v18  ;;  %v401_v29 = vunpack.c.h.b16 %v348_v15 }
  0x2b   : > { %666 = vmatpush.bf16.msra.mxu1 %v992_v54  ;;  %v1025_v22 = vld [vmem:[%s1252_s28 + $0xf8] sm:$0xf0]  ;;  %v1145_v23 = vld [vmem:[%s1252_s28 + $0x174] sm:$0xf]  ;;  %v349_v32 = vld [vmem:[%s1247_s24 + $0x8] sm:$0xf]  ;;  %v968_v33 = vor.u32 %v1116_v20, %v967_v17 }
  0x2c   : > { %691 = vmatpush.bf16.msra.mxu3 %v940_v60  ;;  %v1089_v24 = vld [vmem:[%s1252_s28 + $0x178] sm:$0xf0]  ;;  %v1101_v30 = vld [vmem:[%s1252_s28 + $0x14] sm:$0xf]  ;;  %v1028_v34 = vor.u32 %v1129_v21, %v1025_v22  ;;  %v1031_v35 = vld [vmem:[%s1252_s28 + $0x100] sm:$0xf]  ;;  %v403_v42 = vpack.c.b16 %v400_v26, %v400_v26  ;;  %v402_v44 = vunpack.c.l.b16 %v349_v32  ;;  %v1333_v45 = vpack.c.b16 %v401_v29, %v401_v29 }
  0x2d   : > { %v913_v31 = vld [vmem:[%s1252_s28 + $0x18] sm:$0xf0]  ;;  %v1132_v36 = vld [vmem:[%s1252_s28 + $0x104] sm:$0xf0]  ;;  %v1092_v37 = vor.u32 %v1145_v23, %v1089_v24  ;;  %v1127_v38 = vld [vmem:[%s1252_s28 + $0xe4] sm:$0xf] }
  0x2e   : > { %654 = vmatpush.bf16.msra.mxu0 %v920_v61  ;;  %679 = vmatpush.bf16.msra.mxu2 %v1056_v63  ;;  %v1017_v39 = vld [vmem:[%s1252_s28 + $0xe8] sm:$0xf0]  ;;  %v1143_v40 = vld [vmem:[%s1252_s28 + $0x164] sm:$0xf]  ;;  %v916_v43 = vor.u32 %v1101_v30, %v913_v31  ;;  %v1032_v46 = vor.u32 %v1132_v36, %v1031_v35  ;;  %v1125_v51 = vld [vmem:[%s1252_s28 + $0xd4] sm:$0xf]  ;;  %v405_v55 = vpack.c.b16 %v402_v44, %v402_v44 }
  0x2f   : > { %667 = vmatpush.bf16.msra.mxu1 %v984_v2  ;;  %v1081_v41 = vld [vmem:[%s1252_s28 + $0x168] sm:$0xf0]  ;;  %v1099_v47 = vld [vmem:[%s1252_s28 + $0x4] sm:$0xf]  ;;  %v1020_v49 = vor.u32 %v1127_v38, %v1017_v39  ;;  %v1009_v52 = vld [vmem:[%s1252_s28 + $0xd8] sm:$0xf0] }
  0x30   : > { %692 = vmatpush.bf16.msra.mxu3 %v932_v10  ;;  %v905_v48 = vld [vmem:[%s1252_s28 + $0x8] sm:$0xf0]  ;;  %v1084_v50 = vor.u32 %v1143_v40, %v1081_v41  ;;  %v1141_v53 = vld [vmem:[%s1252_s28 + $0x154] sm:$0xf]  ;;  %v1073_v54 = vld [vmem:[%s1252_s28 + $0x158] sm:$0xf0]  ;;  %v1012_v57 = vor.u32 %v1125_v51, %v1009_v52 }
  0x31   : > { %v908_v56 = vor.u32 %v1099_v47, %v905_v48  ;;  %v1076_v58 = vor.u32 %v1141_v53, %v1073_v54  ;;  %v1123_v59 = vld [vmem:[%s1252_s28 + $0xc4] sm:$0xf]  ;;  %v1001_v60 = vld [vmem:[%s1252_s28 + $0xc8] sm:$0xf0]  ;;  %v1121_v1 = vld [vmem:[%s1252_s28 + $0xb4] sm:$0xf] }
  0x32   : > { %655 = vmatpush.bf16.msra.mxu0 %v912_v11  ;;  %680 = vmatpush.bf16.msra.mxu2 %v1048_v12  ;;  %v1139_v61 = vld [vmem:[%s1252_s28 + $0x144] sm:$0xf]  ;;  %v1065_v62 = vld [vmem:[%s1252_s28 + $0x148] sm:$0xf0]  ;;  %v1004_v63 = vor.u32 %v1123_v59, %v1001_v60  ;;  %v993_v2 = vld [vmem:[%s1252_s28 + $0xb8] sm:$0xf0] }
  0x33   : > { %668 = vmatpush.bf16.msra.mxu1 %v976_v16  ;;  %v1068_v0 = vor.u32 %v1139_v61, %v1065_v62  ;;  %v1137_v3 = vld [vmem:[%s1252_s28 + $0x134] sm:$0xf]  ;;  %v1057_v4 = vld [vmem:[%s1252_s28 + $0x138] sm:$0xf0]  ;;  %v996_v5 = vor.u32 %v1121_v1, %v993_v2  ;;  %v1119_v7 = vld [vmem:[%s1252_s28 + $0xa4] sm:$0xf] }
  0x34   : > { %693 = vmatpush.bf16.msra.mxu3 %v924_v25  ;;  %v1060_v6 = vor.u32 %v1137_v3, %v1057_v4  ;;  %v985_v8 = vld [vmem:[%s1252_s28 + $0xa8] sm:$0xf0]  ;;  %v1135_v9 = vld [vmem:[%s1252_s28 + $0x124] sm:$0xf]  ;;  %v1117_v13 = vld [vmem:[%s1252_s28 + $0x94] sm:$0xf] }
  0x35   : > { %v1049_v10 = vld [vmem:[%s1252_s28 + $0x128] sm:$0xf0]  ;;  %v988_v11 = vor.u32 %v1119_v7, %v985_v8  ;;  %v977_v14 = vld [vmem:[%s1252_s28 + $0x98] sm:$0xf0]  ;;  %v1133_v15 = vld [vmem:[%s1252_s28 + $0x114] sm:$0xf] }
  0x36   : > { %656 = vmatpush.bf16.msra.mxu0 %v904_v27  ;;  %681 = vmatpush.bf16.msra.mxu2 %v1040_v28  ;;  %v1052_v12 = vor.u32 %v1135_v9, %v1049_v10  ;;  %v1041_v16 = vld [vmem:[%s1252_s28 + $0x118] sm:$0xf0]  ;;  %v980_v17 = vor.u32 %v1117_v13, %v977_v14  ;;  %v1115_v19 = vld [vmem:[%s1252_s28 + $0x84] sm:$0xf]  ;;  %v969_v20 = vld [vmem:[%s1252_s28 + $0x88] sm:$0xf0] }
  0x37   : > { %669 = vmatpush.bf16.msra.mxu1 %v968_v33  ;;  %v1044_v18 = vor.u32 %v1133_v15, %v1041_v16  ;;  %v1131_v21 = vld [vmem:[%s1252_s28 + $0x104] sm:$0xf]  ;;  %v1033_v22 = vld [vmem:[%s1252_s28 + $0x108] sm:$0xf0]  ;;  %v972_v23 = vor.u32 %v1115_v19, %v969_v20 }
  0x38   : > { %694 = vmatpush.bf16.msra.mxu3 %v916_v43  ;;  %v1036_v24 = vor.u32 %v1131_v21, %v1033_v22  ;;  %v346_v30 = vld [vmem:[%s1410_s4] sm:$0xff]  ;;  %v347_v40 = vld [vmem:[%s1410_s4 + $0x8] sm:$0xff] }
  0x39   : > { %657 = vmatmul.bf16.vlgmr.msra.gmra.mxu0 %v403_v42 }
  0x3a   : > { %701 = vmatpush.bf16.msrb.mxu0 %v1028_v34  ;;  %670 = vmatmul.bf16.vlgmr.msra.gmra.mxu1 %v1333_v45 }
  0x3b   : > { %714 = vmatpush.bf16.msrb.mxu1 %v1092_v37  ;;  %682 = vmatpush.bf16.msra.mxu2 %v1032_v46 }
  0x3c   : > { %695 = vmatpush.bf16.msra.mxu3 %v908_v56 }
  0x3e   : > { %702 = vmatpush.bf16.msrb.mxu0 %v1020_v49  ;;  %683 = vmatmul.bf16.vlgmr.msra.gmra.mxu2 %v405_v55 }
  0x3f   : > { %715 = vmatpush.bf16.msrb.mxu1 %v1084_v50  ;;  %696 = vmatmul.bf16.vlgmr.msra.gmra.mxu3 %v403_v42 }
  0x42   : > { %703 = vmatpush.bf16.msrb.mxu0 %v1012_v57 }
  0x43   : > { %716 = vmatpush.bf16.msrb.mxu1 %v1076_v58 }
  0x46   : > { %704 = vmatpush.bf16.msrb.mxu0 %v1004_v63 }
  0x47   : > { %717 = vmatpush.bf16.msrb.mxu1 %v1068_v0 }
  0x4a   : > { %705 = vmatpush.bf16.msrb.mxu0 %v996_v5 }
  0x4b   : > { %718 = vmatpush.bf16.msrb.mxu1 %v1060_v6 }
  0x4e   : > { %706 = vmatpush.bf16.msrb.mxu0 %v988_v11 }
  0x4f   : > { %719 = vmatpush.bf16.msrb.mxu1 %v1052_v12 }
  0x52   : > { %707 = vmatpush.bf16.msrb.mxu0 %v980_v17 }
  0x53   : > { %720 = vmatpush.bf16.msrb.mxu1 %v1044_v18 }
  0x56   : > { %708 = vmatpush.bf16.msrb.mxu0 %v972_v23 }
  0x57   : > { %721 = vmatpush.bf16.msrb.mxu1 %v1036_v24 }
  0x59   : > { %709 = vmatmul.bf16.vlgmr.msrb.gmra.mxu0 %v1333_v45 }
  0x5a   : > { %722 = vmatmul.bf16.vlgmr.msrb.gmra.mxu1 %v405_v55 }
  0xb6   : > { %v658_v25 = vpop.f32.mrf.mxu0 }
  0xb7   : > { %v671_v26 = vpop.f32.mrf.mxu1 }
  0xb8   : > { %v672_v27 = vadd.f32 %v671_v26, %v658_v25 }
  0xbe   : > { %v660_v28 = vpop.f32.mrf.mxu0 }
  0xbf   : > { %v673_v29 = vpop.f32.mrf.mxu1 }
  0xc1   : > { %v684_v31 = vpop.f32.mrf.mxu2 }
  0xc2   : > { %v685_v32 = vadd.f32 %v684_v31, %v672_v27  ;;  %v697_v34 = vpop.f32.mrf.mxu3 }
  0xc4   : > { %v727_v33 = vadd.f32 %v685_v32, %v346_v30 }
  0xc6   : > { %729 = vst [vmem:[%s1410_s4] sm:$0xff] %v727_v33 }
  0xc9   : > { %v686_v35 = vpop.f32.mrf.mxu2 }
  0xca   : > { %v699_v36 = vpop.f32.mrf.mxu3 }
  0xd6   : > { %v710_v37 = vpop.f32.mrf.mxu0 }
  0xd7   : > { %v711_v38 = vadd.f32 %v710_v37, %v697_v34  ;;  %v723_v39 = vpop.f32.mrf.mxu1 }
  0xd9   : > { %v724_v41 = vadd.f32 %v723_v39, %v711_v38 }
  0xdb   : > { %v728_v42 = vadd.f32 %v724_v41, %v347_v40  ;;  %734 = sbr.rel (%p1093_p7) target bundleno = 236 (0xec), region = 44 }
  0xdd   : > { %730 = vst [vmem:[%s1410_s4 + $0x8] sm:$0xff] %v728_v42 }
  0xde   : > { %v712_v43 = vpop.f32.mrf.mxu0 }
  0xdf   : > { %v725_v44 = vpop.f32.mrf.mxu1 }
  0xe0   : > { %v735_v45 = vld [vmem:[%s1410_s4] sm:$0xff]  ;;  %v746_v51 = vld [vmem:[%s1409_s3 + $0x8] sm:$0xff] }
  0xe1   : > { %v737_v46 = vld [vmem:[%s1408_s2] sm:$0x3] }
  0xe2   : > { %v739_v47 = vperm.slane %v737_v46, 0  ;;  %v740_v49 = vperm.slane %v737_v46, 1  ;;  %v745_v50 = vld [vmem:[%s1409_s3] sm:$0xff] }
  0xe4   : > { %v736_v48 = vld [vmem:[%s1410_s4 + $0x8] sm:$0xff]  ;;  %v743_v52 = vadd.f32 %v739_v47, %v735_v45 }
  0xe5   : > { %v744_v53 = vadd.f32 %v740_v49, %v736_v48 }
  0xe6   : > { %v747_v54 = vadd.f32 %v745_v50, %v743_v52 }
  0xe7   : > { %v748_v55 = vadd.f32 %v746_v51, %v744_v53 }
  0xe8   : > { %v749_v56 = vmax.f32 %v747_v54, 0.0 }
  0xe9   : > { %v750_v57 = vmax.f32 %v748_v55, 0.0 }
  0xea   : > { %751 = vst [vmem:[%s1410_s4] sm:$0xff] %v749_v56 }
  0xeb   : > { %752 = vst [vmem:[%s1410_s4 + $0x8] sm:$0xff] %v750_v57 }
  0xec PF: > { %s14_s17 = sadd.s32 1, %s1194_s17   ;;  %s1411_s15 = smov %s1190_s16 }
  0xed   : > { %p11_p8 = scmp.ge.s32.totalorder %s14_s17, 8   ;;  %s1412_s16 = smov %s1414_s18 }
  0xef   :  { %13 = sbr.rel (!%p11_p8) target bundleno = 2 (0x2), region = 83 }

// kernel: res18feature_forward.34
= control target key start
LH: loop header
LB: loop body
LE: loop exit
PB: predicated region body
PF: predicated region fallthrough
CT: control target
= control target key end

     0   :  { %s1128_s12 = smov 0   ;;  %s1130_s13 = smov 0   ;;  %s1306_s0 = inlined_call_operand.vmem [shape: bf16[8,2304], index: 0, kind: input, shape index: {}]   ;;  %s1307_s1 = inlined_call_operand.vmem [shape: bf16[2304,256], index: 1, kind: input, shape index: {}]   ;;  %s1308_s2 = inlined_call_operand.vmem [shape: f32[1,256], index: 2, kind: input, shape index: {}]   ;;  %s1309_s3 = inlined_call_operand.vmem [shape: f32[8,256], index: 3, kind: output, shape index: {}]  }
   0x1   :  { %s1132_s14 = smov 0  }
   0x2 LB: > { %s25_s15 = sadd.s32 1, %s1101_s13  ;;  %p807_p0 = scmp.ge.s32.totalorder %s1105_s14, 1  ;;  %s1105_s14 = sphi %s1132_s14, %s13_s14   ;;  %s1101_s13 = sphi %s1130_s13, %s1311_s13   ;;  %s1097_s12 = sphi %s1128_s12, %s1310_s12  }
   0x3   : > { %p26_p1 = scmp.ge.s32.totalorder %s25_s15, 6  ;;  %p194_p2 = scmp.lt.s32.totalorder %s1105_s14, 7 }
   0x5   : > { %s1313_s15 = smov (%p26_p1, %s25_s15), 0  ;;  %p195_p3 = pnand %p807_p0, %p194_p2 }
   0x6   : > { %s240_s16 = smul.u32 (!%p195_p3), 3, %s1097_s12  ;;  %p811_p6 = scmp.ne.s32.totalorder (!%p195_p3), %s1097_s12, 0 }
   0x7   : > { %198 = sbr.rel (%p195_p3) target bundleno = 234 (0xea), region = 32 }
   0x8   : > { %s250_s17 = smul.u32 (!%p195_p3), 48, %s1097_s12  ;;  %p243_p4 = scmp.lt.s32.totalorder (!%p195_p3), %s240_s16, 17 }
   0xa   : > { %p252_p5 = scmp.lt.s32.totalorder (!%p195_p3), %s250_s17, 287 }
   0xc   : > { %s1315_s16 = smov (!%p243_p4, %s240_s16), 17  ;;  %s1317_s17 = smov (!%p252_p5, %s250_s17), 287 }
   0xd   : > { %s808_s18 = sshll.u32 %s1315_s16, 2  ;;  %s1009_s22 = sshll.u32 %s1317_s17, 3 }
   0xe   : > { %s1153_s21 = scalar_lea.vmem %s1306_s0, %s808_s18  ;;  %s1158_s25 = scalar_lea.vmem %s1307_s1, %s1009_s22 }
   0xf   : > { %280 = sbr.rel (%p811_p6) target bundleno = 23 (0x17), region = 36 }
  0x14   : > { %v1107_v0 = vmov 0.0  }
  0x15   : > { %281 = vst [vmem:[%s1309_s3] sm:$0xff] %v1107_v0 }
  0x16   : > { %282 = vst [vmem:[%s1309_s3 + $0x8] sm:$0xff] %v1107_v0 }
  0x17 PF: > { %v870_v1 = vld [vmem:[%s1158_s25 + $0x70] sm:$0xf]  ;;  %v1025_v2 = vld [vmem:[%s1158_s25 + $0x74] sm:$0xf0]  ;;  %v862_v6 = vld [vmem:[%s1158_s25 + $0x60] sm:$0xf] }
  0x18   : > { %v934_v3 = vld [vmem:[%s1158_s25 + $0xf0] sm:$0xf]  ;;  %v871_v4 = vor.u32 %v1025_v2, %v870_v1  ;;  %v1041_v5 = vld [vmem:[%s1158_s25 + $0xf4] sm:$0xf0]  ;;  %v1023_v7 = vld [vmem:[%s1158_s25 + $0x64] sm:$0xf0] }
  0x19   : > { %v935_v8 = vor.u32 %v1041_v5, %v934_v3  ;;  %v926_v9 = vld [vmem:[%s1158_s25 + $0xe0] sm:$0xf]  ;;  %v1039_v10 = vld [vmem:[%s1158_s25 + $0xe4] sm:$0xf0]  ;;  %v863_v11 = vor.u32 %v1023_v7, %v862_v6  ;;  %v854_v12 = vld [vmem:[%s1158_s25 + $0x50] sm:$0xf] }
  0x1a   : > { %586 = vmatpush.bf16.msra.mxu0 %v871_v4  ;;  %v927_v13 = vor.u32 %v1039_v10, %v926_v9  ;;  %v1021_v14 = vld [vmem:[%s1158_s25 + $0x54] sm:$0xf0]  ;;  %v998_v15 = vld [vmem:[%s1158_s25 + $0x170] sm:$0xf]  ;;  %v990_v20 = vld [vmem:[%s1158_s25 + $0x160] sm:$0xf] }
  0x1b   : > { %599 = vmatpush.bf16.msra.mxu1 %v935_v8  ;;  %v1057_v16 = vld [vmem:[%s1158_s25 + $0x174] sm:$0xf0]  ;;  %v918_v17 = vld [vmem:[%s1158_s25 + $0xd0] sm:$0xf]  ;;  %v1055_v21 = vld [vmem:[%s1158_s25 + $0x164] sm:$0xf0]  ;;  %v855_v23 = vor.u32 %v1021_v14, %v854_v12 }
  0x1c   : > { %v1037_v18 = vld [vmem:[%s1158_s25 + $0xd4] sm:$0xf0]  ;;  %v999_v19 = vor.u32 %v1057_v16, %v998_v15  ;;  %v1024_v22 = vld [vmem:[%s1158_s25 + $0x74] sm:$0xf]  ;;  %v846_v24 = vld [vmem:[%s1158_s25 + $0x40] sm:$0xf]  ;;  %v991_v26 = vor.u32 %v1055_v21, %v990_v20 }
  0x1d   : > { %v1019_v25 = vld [vmem:[%s1158_s25 + $0x44] sm:$0xf0]  ;;  %v872_v27 = vld [vmem:[%s1158_s25 + $0x78] sm:$0xf0]  ;;  %v919_v28 = vor.u32 %v1037_v18, %v918_v17  ;;  %v910_v29 = vld [vmem:[%s1158_s25 + $0xc0] sm:$0xf] }
  0x1e   : > { %587 = vmatpush.bf16.msra.mxu0 %v863_v11  ;;  %612 = vmatpush.bf16.msra.mxu2 %v999_v19  ;;  %v1035_v30 = vld [vmem:[%s1158_s25 + $0xc4] sm:$0xf0]  ;;  %v875_v31 = vor.u32 %v1024_v22, %v872_v27  ;;  %v982_v32 = vld [vmem:[%s1158_s25 + $0x150] sm:$0xf]  ;;  %v1053_v33 = vld [vmem:[%s1158_s25 + $0x154] sm:$0xf0]  ;;  %v847_v37 = vor.u32 %v1019_v25, %v846_v24 }
  0x1f   : > { %600 = vmatpush.bf16.msra.mxu1 %v927_v13  ;;  %v1022_v34 = vld [vmem:[%s1158_s25 + $0x64] sm:$0xf]  ;;  %v864_v35 = vld [vmem:[%s1158_s25 + $0x68] sm:$0xf0]  ;;  %v838_v38 = vld [vmem:[%s1158_s25 + $0x30] sm:$0xf]  ;;  %v983_v40 = vor.u32 %v1053_v33, %v982_v32  ;;  %v911_v42 = vor.u32 %v1035_v30, %v910_v29 }
  0x20   : > { %625 = vmatpush.bf16.msra.mxu3 %v875_v31  ;;  %v867_v36 = vor.u32 %v1022_v34, %v864_v35  ;;  %v1017_v39 = vld [vmem:[%s1158_s25 + $0x34] sm:$0xf0]  ;;  %v974_v41 = vld [vmem:[%s1158_s25 + $0x140] sm:$0xf]  ;;  %v1051_v43 = vld [vmem:[%s1158_s25 + $0x144] sm:$0xf0] }
  0x21   : > { %v1020_v44 = vld [vmem:[%s1158_s25 + $0x54] sm:$0xf]  ;;  %v856_v45 = vld [vmem:[%s1158_s25 + $0x58] sm:$0xf0]  ;;  %v902_v46 = vld [vmem:[%s1158_s25 + $0xb0] sm:$0xf]  ;;  %v839_v49 = vor.u32 %v1017_v39, %v838_v38  ;;  %v975_v51 = vor.u32 %v1051_v43, %v974_v41 }
  0x22   : > { %588 = vmatpush.bf16.msra.mxu0 %v855_v23  ;;  %613 = vmatpush.bf16.msra.mxu2 %v991_v26  ;;  %v1033_v47 = vld [vmem:[%s1158_s25 + $0xb4] sm:$0xf0]  ;;  %v859_v48 = vor.u32 %v1020_v44, %v856_v45  ;;  %v830_v50 = vld [vmem:[%s1158_s25 + $0x20] sm:$0xf]  ;;  %v1018_v52 = vld [vmem:[%s1158_s25 + $0x44] sm:$0xf] }
  0x23   : > { %601 = vmatpush.bf16.msra.mxu1 %v919_v28  ;;  %v848_v53 = vld [vmem:[%s1158_s25 + $0x48] sm:$0xf0]  ;;  %v903_v54 = vor.u32 %v1033_v47, %v902_v46  ;;  %v1015_v55 = vld [vmem:[%s1158_s25 + $0x24] sm:$0xf0]  ;;  %v966_v56 = vld [vmem:[%s1158_s25 + $0x130] sm:$0xf] }
  0x24   : > { %626 = vmatpush.bf16.msra.mxu3 %v867_v36  ;;  %v1049_v57 = vld [vmem:[%s1158_s25 + $0x134] sm:$0xf0]  ;;  %v894_v58 = vld [vmem:[%s1158_s25 + $0xa0] sm:$0xf]  ;;  %v1031_v59 = vld [vmem:[%s1158_s25 + $0xa4] sm:$0xf0]  ;;  %v851_v60 = vor.u32 %v1018_v52, %v848_v53  ;;  %v831_v61 = vor.u32 %v1015_v55, %v830_v50 }
  0x25   : > { %v822_v62 = vld [vmem:[%s1158_s25 + $0x10] sm:$0xf]  ;;  %v967_v63 = vor.u32 %v1049_v57, %v966_v56  ;;  %v1016_v0 = vld [vmem:[%s1158_s25 + $0x34] sm:$0xf]  ;;  %v840_v1 = vld [vmem:[%s1158_s25 + $0x38] sm:$0xf0]  ;;  %v895_v2 = vor.u32 %v1031_v59, %v894_v58 }
  0x26   : > { %589 = vmatpush.bf16.msra.mxu0 %v847_v37  ;;  %614 = vmatpush.bf16.msra.mxu2 %v983_v40  ;;  %v1013_v3 = vld [vmem:[%s1158_s25 + $0x14] sm:$0xf0]  ;;  %v958_v4 = vld [vmem:[%s1158_s25 + $0x120] sm:$0xf]  ;;  %v1047_v5 = vld [vmem:[%s1158_s25 + $0x124] sm:$0xf0]  ;;  %v843_v10 = vor.u32 %v1016_v0, %v840_v1 }
  0x27   : > { %602 = vmatpush.bf16.msra.mxu1 %v911_v42  ;;  %v886_v6 = vld [vmem:[%s1158_s25 + $0x90] sm:$0xf]  ;;  %v1029_v7 = vld [vmem:[%s1158_s25 + $0x94] sm:$0xf0]  ;;  %v814_v8 = vld [vmem:[%s1158_s25] sm:$0xf]  ;;  %v823_v11 = vor.u32 %v1013_v3, %v822_v62  ;;  %v959_v12 = vor.u32 %v1047_v5, %v958_v4 }
  0x28   : > { %627 = vmatpush.bf16.msra.mxu3 %v859_v48  ;;  %v1011_v9 = vld [vmem:[%s1158_s25 + $0x4] sm:$0xf0]  ;;  %v1014_v13 = vld [vmem:[%s1158_s25 + $0x24] sm:$0xf]  ;;  %v832_v14 = vld [vmem:[%s1158_s25 + $0x28] sm:$0xf0]  ;;  %v887_v16 = vor.u32 %v1029_v7, %v886_v6 }
  0x29   : > { %v285_v15 = vld [vmem:[%s1153_s21] sm:$0xff]  ;;  %v950_v18 = vld [vmem:[%s1158_s25 + $0x110] sm:$0xf]  ;;  %v1045_v19 = vld [vmem:[%s1158_s25 + $0x114] sm:$0xf0]  ;;  %v835_v25 = vor.u32 %v1014_v13, %v832_v14  ;;  %v815_v27 = vor.u32 %v1011_v9, %v814_v8  ;;  %p1004_p7 = scmp.ne.s32.totalorder %s1097_s12, 5 }
  0x2a   : > { %590 = vmatpush.bf16.msra.mxu0 %v839_v49  ;;  %615 = vmatpush.bf16.msra.mxu2 %v975_v51  ;;  %v878_v17 = vld [vmem:[%s1158_s25 + $0x80] sm:$0xf]  ;;  %v1027_v20 = vld [vmem:[%s1158_s25 + $0x84] sm:$0xf0]  ;;  %v1040_v21 = vld [vmem:[%s1158_s25 + $0xf4] sm:$0xf]  ;;  %v337_v26 = vunpack.c.l.b16 %v285_v15  ;;  %v951_v28 = vor.u32 %v1045_v19, %v950_v18  ;;  %v338_v29 = vunpack.c.h.b16 %v285_v15 }
  0x2b   : > { %603 = vmatpush.bf16.msra.mxu1 %v903_v54  ;;  %v936_v22 = vld [vmem:[%s1158_s25 + $0xf8] sm:$0xf0]  ;;  %v1056_v23 = vld [vmem:[%s1158_s25 + $0x174] sm:$0xf]  ;;  %v286_v32 = vld [vmem:[%s1153_s21 + $0x8] sm:$0xf]  ;;  %v879_v33 = vor.u32 %v1027_v20, %v878_v17 }
  0x2c   : > { %628 = vmatpush.bf16.msra.mxu3 %v851_v60  ;;  %v1000_v24 = vld [vmem:[%s1158_s25 + $0x178] sm:$0xf0]  ;;  %v1012_v30 = vld [vmem:[%s1158_s25 + $0x14] sm:$0xf]  ;;  %v939_v34 = vor.u32 %v1040_v21, %v936_v22  ;;  %v942_v35 = vld [vmem:[%s1158_s25 + $0x100] sm:$0xf]  ;;  %v340_v42 = vpack.c.b16 %v337_v26, %v337_v26  ;;  %v339_v44 = vunpack.c.l.b16 %v286_v32  ;;  %v1239_v45 = vpack.c.b16 %v338_v29, %v338_v29 }
  0x2d   : > { %v824_v31 = vld [vmem:[%s1158_s25 + $0x18] sm:$0xf0]  ;;  %v1043_v36 = vld [vmem:[%s1158_s25 + $0x104] sm:$0xf0]  ;;  %v1003_v37 = vor.u32 %v1056_v23, %v1000_v24  ;;  %v1038_v38 = vld [vmem:[%s1158_s25 + $0xe4] sm:$0xf] }
  0x2e   : > { %591 = vmatpush.bf16.msra.mxu0 %v831_v61  ;;  %616 = vmatpush.bf16.msra.mxu2 %v967_v63  ;;  %v928_v39 = vld [vmem:[%s1158_s25 + $0xe8] sm:$0xf0]  ;;  %v1054_v40 = vld [vmem:[%s1158_s25 + $0x164] sm:$0xf]  ;;  %v827_v43 = vor.u32 %v1012_v30, %v824_v31  ;;  %v943_v46 = vor.u32 %v1043_v36, %v942_v35  ;;  %v1036_v51 = vld [vmem:[%s1158_s25 + $0xd4] sm:$0xf]  ;;  %v342_v55 = vpack.c.b16 %v339_v44, %v339_v44 }
  0x2f   : > { %604 = vmatpush.bf16.msra.mxu1 %v895_v2  ;;  %v992_v41 = vld [vmem:[%s1158_s25 + $0x168] sm:$0xf0]  ;;  %v1010_v47 = vld [vmem:[%s1158_s25 + $0x4] sm:$0xf]  ;;  %v931_v49 = vor.u32 %v1038_v38, %v928_v39  ;;  %v920_v52 = vld [vmem:[%s1158_s25 + $0xd8] sm:$0xf0] }
  0x30   : > { %629 = vmatpush.bf16.msra.mxu3 %v843_v10  ;;  %v816_v48 = vld [vmem:[%s1158_s25 + $0x8] sm:$0xf0]  ;;  %v995_v50 = vor.u32 %v1054_v40, %v992_v41  ;;  %v1052_v53 = vld [vmem:[%s1158_s25 + $0x154] sm:$0xf]  ;;  %v984_v54 = vld [vmem:[%s1158_s25 + $0x158] sm:$0xf0]  ;;  %v923_v57 = vor.u32 %v1036_v51, %v920_v52 }
  0x31   : > { %v819_v56 = vor.u32 %v1010_v47, %v816_v48  ;;  %v987_v58 = vor.u32 %v1052_v53, %v984_v54  ;;  %v1034_v59 = vld [vmem:[%s1158_s25 + $0xc4] sm:$0xf]  ;;  %v912_v60 = vld [vmem:[%s1158_s25 + $0xc8] sm:$0xf0]  ;;  %v1032_v1 = vld [vmem:[%s1158_s25 + $0xb4] sm:$0xf] }
  0x32   : > { %592 = vmatpush.bf16.msra.mxu0 %v823_v11  ;;  %617 = vmatpush.bf16.msra.mxu2 %v959_v12  ;;  %v1050_v61 = vld [vmem:[%s1158_s25 + $0x144] sm:$0xf]  ;;  %v976_v62 = vld [vmem:[%s1158_s25 + $0x148] sm:$0xf0]  ;;  %v915_v63 = vor.u32 %v1034_v59, %v912_v60  ;;  %v904_v2 = vld [vmem:[%s1158_s25 + $0xb8] sm:$0xf0] }
  0x33   : > { %605 = vmatpush.bf16.msra.mxu1 %v887_v16  ;;  %v979_v0 = vor.u32 %v1050_v61, %v976_v62  ;;  %v1048_v3 = vld [vmem:[%s1158_s25 + $0x134] sm:$0xf]  ;;  %v968_v4 = vld [vmem:[%s1158_s25 + $0x138] sm:$0xf0]  ;;  %v907_v5 = vor.u32 %v1032_v1, %v904_v2  ;;  %v1030_v7 = vld [vmem:[%s1158_s25 + $0xa4] sm:$0xf] }
  0x34   : > { %630 = vmatpush.bf16.msra.mxu3 %v835_v25  ;;  %v971_v6 = vor.u32 %v1048_v3, %v968_v4  ;;  %v896_v8 = vld [vmem:[%s1158_s25 + $0xa8] sm:$0xf0]  ;;  %v1046_v9 = vld [vmem:[%s1158_s25 + $0x124] sm:$0xf]  ;;  %v1028_v13 = vld [vmem:[%s1158_s25 + $0x94] sm:$0xf] }
  0x35   : > { %v960_v10 = vld [vmem:[%s1158_s25 + $0x128] sm:$0xf0]  ;;  %v899_v11 = vor.u32 %v1030_v7, %v896_v8  ;;  %v888_v14 = vld [vmem:[%s1158_s25 + $0x98] sm:$0xf0]  ;;  %v1044_v15 = vld [vmem:[%s1158_s25 + $0x114] sm:$0xf] }
  0x36   : > { %593 = vmatpush.bf16.msra.mxu0 %v815_v27  ;;  %618 = vmatpush.bf16.msra.mxu2 %v951_v28  ;;  %v963_v12 = vor.u32 %v1046_v9, %v960_v10  ;;  %v952_v16 = vld [vmem:[%s1158_s25 + $0x118] sm:$0xf0]  ;;  %v891_v17 = vor.u32 %v1028_v13, %v888_v14  ;;  %v1026_v19 = vld [vmem:[%s1158_s25 + $0x84] sm:$0xf]  ;;  %v880_v20 = vld [vmem:[%s1158_s25 + $0x88] sm:$0xf0] }
  0x37   : > { %606 = vmatpush.bf16.msra.mxu1 %v879_v33  ;;  %v955_v18 = vor.u32 %v1044_v15, %v952_v16  ;;  %v1042_v21 = vld [vmem:[%s1158_s25 + $0x104] sm:$0xf]  ;;  %v944_v22 = vld [vmem:[%s1158_s25 + $0x108] sm:$0xf0]  ;;  %v883_v23 = vor.u32 %v1026_v19, %v880_v20 }
  0x38   : > { %631 = vmatpush.bf16.msra.mxu3 %v827_v43  ;;  %v947_v24 = vor.u32 %v1042_v21, %v944_v22  ;;  %v283_v30 = vld [vmem:[%s1309_s3] sm:$0xff]  ;;  %v284_v40 = vld [vmem:[%s1309_s3 + $0x8] sm:$0xff] }
  0x39   : > { %594 = vmatmul.bf16.vlgmr.msra.gmra.mxu0 %v340_v42 }
  0x3a   : > { %638 = vmatpush.bf16.msrb.mxu0 %v939_v34  ;;  %607 = vmatmul.bf16.vlgmr.msra.gmra.mxu1 %v1239_v45 }
  0x3b   : > { %651 = vmatpush.bf16.msrb.mxu1 %v1003_v37  ;;  %619 = vmatpush.bf16.msra.mxu2 %v943_v46 }
  0x3c   : > { %632 = vmatpush.bf16.msra.mxu3 %v819_v56 }
  0x3e   : > { %639 = vmatpush.bf16.msrb.mxu0 %v931_v49  ;;  %620 = vmatmul.bf16.vlgmr.msra.gmra.mxu2 %v342_v55 }
  0x3f   : > { %652 = vmatpush.bf16.msrb.mxu1 %v995_v50  ;;  %633 = vmatmul.bf16.vlgmr.msra.gmra.mxu3 %v340_v42 }
  0x42   : > { %640 = vmatpush.bf16.msrb.mxu0 %v923_v57 }
  0x43   : > { %653 = vmatpush.bf16.msrb.mxu1 %v987_v58 }
  0x46   : > { %641 = vmatpush.bf16.msrb.mxu0 %v915_v63 }
  0x47   : > { %654 = vmatpush.bf16.msrb.mxu1 %v979_v0 }
  0x4a   : > { %642 = vmatpush.bf16.msrb.mxu0 %v907_v5 }
  0x4b   : > { %655 = vmatpush.bf16.msrb.mxu1 %v971_v6 }
  0x4e   : > { %643 = vmatpush.bf16.msrb.mxu0 %v899_v11 }
  0x4f   : > { %656 = vmatpush.bf16.msrb.mxu1 %v963_v12 }
  0x52   : > { %644 = vmatpush.bf16.msrb.mxu0 %v891_v17 }
  0x53   : > { %657 = vmatpush.bf16.msrb.mxu1 %v955_v18 }
  0x56   : > { %645 = vmatpush.bf16.msrb.mxu0 %v883_v23 }
  0x57   : > { %658 = vmatpush.bf16.msrb.mxu1 %v947_v24 }
  0x59   : > { %646 = vmatmul.bf16.vlgmr.msrb.gmra.mxu0 %v1239_v45 }
  0x5a   : > { %659 = vmatmul.bf16.vlgmr.msrb.gmra.mxu1 %v342_v55 }
  0xb6   : > { %v595_v25 = vpop.f32.mrf.mxu0 }
  0xb7   : > { %v608_v26 = vpop.f32.mrf.mxu1 }
  0xb8   : > { %v609_v27 = vadd.f32 %v608_v26, %v595_v25 }
  0xbe   : > { %v597_v28 = vpop.f32.mrf.mxu0 }
  0xbf   : > { %v610_v29 = vpop.f32.mrf.mxu1 }
  0xc1   : > { %v621_v31 = vpop.f32.mrf.mxu2 }
  0xc2   : > { %v622_v32 = vadd.f32 %v621_v31, %v609_v27  ;;  %v634_v34 = vpop.f32.mrf.mxu3 }
  0xc4   : > { %v664_v33 = vadd.f32 %v622_v32, %v283_v30 }
  0xc6   : > { %666 = vst [vmem:[%s1309_s3] sm:$0xff] %v664_v33 }
  0xc9   : > { %v623_v35 = vpop.f32.mrf.mxu2 }
  0xca   : > { %v636_v36 = vpop.f32.mrf.mxu3 }
  0xd6   : > { %v647_v37 = vpop.f32.mrf.mxu0 }
  0xd7   : > { %v648_v38 = vadd.f32 %v647_v37, %v634_v34  ;;  %v660_v39 = vpop.f32.mrf.mxu1 }
  0xd9   : > { %v661_v41 = vadd.f32 %v660_v39, %v648_v38 }
  0xdb   : > { %v665_v42 = vadd.f32 %v661_v41, %v284_v40  ;;  %671 = sbr.rel (%p1004_p7) target bundleno = 234 (0xea), region = 40 }
  0xdd   : > { %667 = vst [vmem:[%s1309_s3 + $0x8] sm:$0xff] %v665_v42 }
  0xde   : > { %v649_v43 = vpop.f32.mrf.mxu0 }
  0xdf   : > { %v662_v44 = vpop.f32.mrf.mxu1 }
  0xe0   : > { %v672_v45 = vld [vmem:[%s1309_s3] sm:$0xff] }
  0xe1   : > { %v674_v46 = vld [vmem:[%s1308_s2] sm:$0x3] }
  0xe2   : > { %v676_v48 = vperm.slane %v674_v46, 0  ;;  %v677_v49 = vperm.slane %v674_v46, 1 }
  0xe4   : > { %v673_v47 = vld [vmem:[%s1309_s3 + $0x8] sm:$0xff]  ;;  %v680_v50 = vadd.f32 %v676_v48, %v672_v45 }
  0xe5   : > { %v681_v51 = vadd.f32 %v677_v49, %v673_v47 }
  0xe6   : > { %v682_v52 = vmax.f32 %v680_v50, 0.0 }
  0xe7   : > { %v683_v53 = vmax.f32 %v681_v51, 0.0 }
  0xe8   : > { %684 = vst [vmem:[%s1309_s3] sm:$0xff] %v682_v52 }
  0xe9   : > { %685 = vst [vmem:[%s1309_s3 + $0x8] sm:$0xff] %v683_v53 }
  0xea PF: > { %s13_s14 = sadd.s32 1, %s1105_s14   ;;  %s1310_s12 = smov %s1101_s13 }
  0xeb   : > { %p10_p8 = scmp.ge.s32.totalorder %s13_s14, 8   ;;  %s1311_s13 = smov %s1313_s15 }
  0xed   :  { %12 = sbr.rel (!%p10_p8) target bundleno = 2 (0x2), region = 76 }

// kernel: res18feature_forward.37
= control target key start
LH: loop header
LB: loop body
LE: loop exit
PB: predicated region body
PF: predicated region fallthrough
CT: control target
= control target key end

     0   :  { %s1754_s12 = smov 0   ;;  %s1756_s13 = smov 0   ;;  %s2072_s0 = inlined_call_operand.vmem [shape: bf16[8,2304], index: 0, kind: input, shape index: {}]   ;;  %s2073_s1 = inlined_call_operand.vmem [shape: bf16[2304,512], index: 1, kind: input, shape index: {}]   ;;  %s2074_s2 = inlined_call_operand.vmem [shape: f32[1,512], index: 2, kind: input, shape index: {}]   ;;  %s2075_s3 = inlined_call_operand.vmem [shape: f32[8,512], index: 3, kind: output, shape index: {}]  }
   0x1   :  { %s1758_s14 = smov 0  }
   0x2 LB: > { %s25_s15 = sadd.s32 1, %s1727_s13  ;;  %p1193_p0 = scmp.ge.s32.totalorder %s1731_s14, 1  ;;  %s1731_s14 = sphi %s1758_s14, %s13_s14   ;;  %s1727_s13 = sphi %s1756_s13, %s2077_s13   ;;  %s1723_s12 = sphi %s1754_s12, %s2076_s12  }
   0x3   : > { %p26_p1 = scmp.ge.s32.totalorder %s25_s15, 6  ;;  %p194_p2 = scmp.lt.s32.totalorder %s1731_s14, 7 }
   0x5   : > { %s2079_s15 = smov (%p26_p1, %s25_s15), 0  ;;  %p195_p3 = pnand %p1193_p0, %p194_p2 }
   0x6   : > { %s240_s16 = smul.u32 (!%p195_p3), 3, %s1723_s12  ;;  %p1197_p6 = scmp.ne.s32.totalorder (!%p195_p3), %s1723_s12, 0 }
   0x7   : > { %198 = sbr.rel (%p195_p3) target bundleno = 277 (0x115), region = 32 }
   0x8   : > { %s250_s17 = smul.u32 (!%p195_p3), 48, %s1723_s12  ;;  %p243_p4 = scmp.lt.s32.totalorder (!%p195_p3), %s240_s16, 17 }
   0xa   : > { %p252_p5 = scmp.lt.s32.totalorder (!%p195_p3), %s250_s17, 287 }
   0xc   : > { %s2081_s16 = smov (!%p243_p4, %s240_s16), 17  ;;  %s2083_s17 = smov (!%p252_p5, %s250_s17), 287 }
   0xd   : > { %s1194_s18 = sshll.u32 %s2081_s16, 2  ;;  %s1587_s22 = sshll.u32 %s2083_s17, 4 }
   0xe   : > { %s1779_s21 = scalar_lea.vmem %s2072_s0, %s1194_s18  ;;  %s1784_s25 = scalar_lea.vmem %s2073_s1, %s1587_s22 }
   0xf   : > { %280 = sbr.rel (%p1197_p6) target bundleno = 25 (0x19), region = 36 }
  0x14   : > { %v1733_v0 = vmov 0.0  }
  0x15   : > { %281 = vst [vmem:[%s2075_s3] sm:$0xff] %v1733_v0 }
  0x16   : > { %282 = vst [vmem:[%s2075_s3 + $0x8] sm:$0xff] %v1733_v0 }
  0x17   : > { %283 = vst [vmem:[%s2075_s3 + $0x10] sm:$0xff] %v1733_v0 }
  0x18   : > { %284 = vst [vmem:[%s2075_s3 + $0x18] sm:$0xff] %v1733_v0 }
  0x19 PF: > { %v1312_v1 = vld [vmem:[%s1784_s25 + $0xe0] sm:$0xf]  ;;  %v1618_v2 = vld [vmem:[%s1784_s25 + $0xec] sm:$0xf0]  ;;  %v1616_v10 = vld [vmem:[%s1784_s25 + $0xe4] sm:$0xf] }
  0x1a   : > { %v1440_v3 = vld [vmem:[%s1784_s25 + $0x1e0] sm:$0xf]  ;;  %v1313_v4 = vor.u32 %v1618_v2, %v1312_v1  ;;  %v1650_v5 = vld [vmem:[%s1784_s25 + $0x1ec] sm:$0xf0]  ;;  %v1314_v11 = vld [vmem:[%s1784_s25 + $0xf0] sm:$0xf0] }
  0x1b   : > { %v1568_v6 = vld [vmem:[%s1784_s25 + $0x2e0] sm:$0xf]  ;;  %v1682_v7 = vld [vmem:[%s1784_s25 + $0x2ec] sm:$0xf0]  ;;  %v1441_v8 = vor.u32 %v1650_v5, %v1440_v3  ;;  %v1317_v13 = vor.u32 %v1616_v10, %v1314_v11  ;;  %v1612_v21 = vld [vmem:[%s1784_s25 + $0xc4] sm:$0xf] }
  0x1c   : > { %v1569_v9 = vor.u32 %v1682_v7, %v1568_v6  ;;  %v1296_v12 = vld [vmem:[%s1784_s25 + $0xc0] sm:$0xf]  ;;  %878 = vmatpush.bf16.msra.mxu0 %v1313_v4  ;;  %v1614_v14 = vld [vmem:[%s1784_s25 + $0xcc] sm:$0xf0]  ;;  %v1298_v23 = vld [vmem:[%s1784_s25 + $0xd0] sm:$0xf0] }
  0x1d   : > { %v1424_v15 = vld [vmem:[%s1784_s25 + $0x1c0] sm:$0xf]  ;;  %v1646_v16 = vld [vmem:[%s1784_s25 + $0x1cc] sm:$0xf0]  ;;  %891 = vmatpush.bf16.msra.mxu1 %v1441_v8  ;;  %v1297_v17 = vor.u32 %v1614_v14, %v1296_v12  ;;  %917 = vmatpush.bf16.msra.mxu3 %v1317_v13  ;;  %v1301_v26 = vor.u32 %v1612_v21, %v1298_v23  ;;  %v1608_v32 = vld [vmem:[%s1784_s25 + $0xa4] sm:$0xf] }
  0x1e   : > { %904 = vmatpush.bf16.msra.mxu2 %v1569_v9  ;;  %v1425_v18 = vor.u32 %v1646_v16, %v1424_v15  ;;  %v1552_v19 = vld [vmem:[%s1784_s25 + $0x2c0] sm:$0xf]  ;;  %v1678_v20 = vld [vmem:[%s1784_s25 + $0x2cc] sm:$0xf0]  ;;  %v1282_v33 = vld [vmem:[%s1784_s25 + $0xb0] sm:$0xf0] }
  0x1f   : > { %v1553_v22 = vor.u32 %v1678_v20, %v1552_v19  ;;  %v1280_v24 = vld [vmem:[%s1784_s25 + $0xa0] sm:$0xf]  ;;  %v1610_v25 = vld [vmem:[%s1784_s25 + $0xac] sm:$0xf0]  ;;  %v1285_v39 = vor.u32 %v1608_v32, %v1282_v33  ;;  %v1604_v43 = vld [vmem:[%s1784_s25 + $0x84] sm:$0xf] }
  0x20   : > { %v1408_v27 = vld [vmem:[%s1784_s25 + $0x1a0] sm:$0xf]  ;;  %v1642_v28 = vld [vmem:[%s1784_s25 + $0x1ac] sm:$0xf0]  ;;  %879 = vmatpush.bf16.msra.mxu0 %v1297_v17  ;;  %v1281_v30 = vor.u32 %v1610_v25, %v1280_v24  ;;  %v1266_v44 = vld [vmem:[%s1784_s25 + $0x90] sm:$0xf0] }
  0x21   : > { %v1536_v29 = vld [vmem:[%s1784_s25 + $0x2a0] sm:$0xf]  ;;  %v1674_v31 = vld [vmem:[%s1784_s25 + $0x2ac] sm:$0xf0]  ;;  %892 = vmatpush.bf16.msra.mxu1 %v1425_v18  ;;  %v1409_v34 = vor.u32 %v1642_v28, %v1408_v27  ;;  %918 = vmatpush.bf16.msra.mxu3 %v1301_v26  ;;  %v1269_v51 = vor.u32 %v1604_v43, %v1266_v44  ;;  %v1600_v55 = vld [vmem:[%s1784_s25 + $0x64] sm:$0xf] }
  0x22   : > { %905 = vmatpush.bf16.msra.mxu2 %v1553_v22  ;;  %v1537_v35 = vor.u32 %v1674_v31, %v1536_v29  ;;  %v1264_v36 = vld [vmem:[%s1784_s25 + $0x80] sm:$0xf]  ;;  %v1606_v37 = vld [vmem:[%s1784_s25 + $0x8c] sm:$0xf0]  ;;  %v1250_v56 = vld [vmem:[%s1784_s25 + $0x70] sm:$0xf0] }
  0x23   : > { %v1392_v38 = vld [vmem:[%s1784_s25 + $0x180] sm:$0xf]  ;;  %v1638_v40 = vld [vmem:[%s1784_s25 + $0x18c] sm:$0xf0]  ;;  %v1265_v45 = vor.u32 %v1606_v37, %v1264_v36  ;;  %v1253_v63 = vor.u32 %v1600_v55, %v1250_v56  ;;  %v1596_v3 = vld [vmem:[%s1784_s25 + $0x44] sm:$0xf] }
  0x24   : > { %v1520_v41 = vld [vmem:[%s1784_s25 + $0x280] sm:$0xf]  ;;  %v1670_v42 = vld [vmem:[%s1784_s25 + $0x28c] sm:$0xf0]  ;;  %880 = vmatpush.bf16.msra.mxu0 %v1281_v30  ;;  %v1393_v46 = vor.u32 %v1638_v40, %v1392_v38  ;;  %v1234_v4 = vld [vmem:[%s1784_s25 + $0x50] sm:$0xf0] }
  0x25   : > { %893 = vmatpush.bf16.msra.mxu1 %v1409_v34  ;;  %v1521_v47 = vor.u32 %v1670_v42, %v1520_v41  ;;  %v1248_v48 = vld [vmem:[%s1784_s25 + $0x60] sm:$0xf]  ;;  %v1602_v49 = vld [vmem:[%s1784_s25 + $0x6c] sm:$0xf0]  ;;  %919 = vmatpush.bf16.msra.mxu3 %v1285_v39  ;;  %v1237_v11 = vor.u32 %v1596_v3, %v1234_v4  ;;  %v1592_v15 = vld [vmem:[%s1784_s25 + $0x24] sm:$0xf] }
  0x26   : > { %906 = vmatpush.bf16.msra.mxu2 %v1537_v35  ;;  %v1376_v50 = vld [vmem:[%s1784_s25 + $0x160] sm:$0xf]  ;;  %v1634_v52 = vld [vmem:[%s1784_s25 + $0x16c] sm:$0xf0]  ;;  %v1249_v57 = vor.u32 %v1602_v49, %v1248_v48  ;;  %v1218_v16 = vld [vmem:[%s1784_s25 + $0x30] sm:$0xf0] }
  0x27   : > { %v1504_v53 = vld [vmem:[%s1784_s25 + $0x260] sm:$0xf]  ;;  %v1666_v54 = vld [vmem:[%s1784_s25 + $0x26c] sm:$0xf0]  ;;  %v1377_v58 = vor.u32 %v1634_v52, %v1376_v50  ;;  %v1221_v25 = vor.u32 %v1592_v15, %v1218_v16  ;;  %v1588_v27 = vld [vmem:[%s1784_s25 + $0x4] sm:$0xf] }
  0x28   : > { %881 = vmatpush.bf16.msra.mxu0 %v1265_v45  ;;  %v1505_v59 = vor.u32 %v1666_v54, %v1504_v53  ;;  %v1232_v60 = vld [vmem:[%s1784_s25 + $0x40] sm:$0xf]  ;;  %v1598_v61 = vld [vmem:[%s1784_s25 + $0x4c] sm:$0xf0]  ;;  %v1202_v28 = vld [vmem:[%s1784_s25 + $0x10] sm:$0xf0] }
  0x29   : > { %894 = vmatpush.bf16.msra.mxu1 %v1393_v46  ;;  %v1360_v62 = vld [vmem:[%s1784_s25 + $0x140] sm:$0xf]  ;;  %920 = vmatpush.bf16.msra.mxu3 %v1269_v51  ;;  %v1630_v0 = vld [vmem:[%s1784_s25 + $0x14c] sm:$0xf0]  ;;  %v1233_v5 = vor.u32 %v1598_v61, %v1232_v60  ;;  %v1648_v29 = vld [vmem:[%s1784_s25 + $0x1e4] sm:$0xf]  ;;  %v1205_v40 = vor.u32 %v1588_v27, %v1202_v28 }
  0x2a   : > { %907 = vmatpush.bf16.msra.mxu2 %v1521_v47  ;;  %v1488_v1 = vld [vmem:[%s1784_s25 + $0x240] sm:$0xf]  ;;  %v1662_v2 = vld [vmem:[%s1784_s25 + $0x24c] sm:$0xf0]  ;;  %v1361_v6 = vor.u32 %v1630_v0, %v1360_v62  ;;  %v1442_v30 = vld [vmem:[%s1784_s25 + $0x1f0] sm:$0xf0] }
  0x2b   : > { %v1489_v7 = vor.u32 %v1662_v2, %v1488_v1  ;;  %v1216_v8 = vld [vmem:[%s1784_s25 + $0x20] sm:$0xf]  ;;  %v1594_v9 = vld [vmem:[%s1784_s25 + $0x2c] sm:$0xf0]  ;;  %v1680_v31 = vld [vmem:[%s1784_s25 + $0x2e4] sm:$0xf]  ;;  %v1445_v41 = vor.u32 %v1648_v29, %v1442_v30 }
  0x2c   : > { %882 = vmatpush.bf16.msra.mxu0 %v1249_v57  ;;  %v1344_v10 = vld [vmem:[%s1784_s25 + $0x120] sm:$0xf]  ;;  %v1626_v12 = vld [vmem:[%s1784_s25 + $0x12c] sm:$0xf0]  ;;  %v1217_v17 = vor.u32 %v1594_v9, %v1216_v8  ;;  %v1570_v33 = vld [vmem:[%s1784_s25 + $0x2f0] sm:$0xf0] }
  0x2d   : > { %895 = vmatpush.bf16.msra.mxu1 %v1377_v58  ;;  %921 = vmatpush.bf16.msra.mxu3 %v1253_v63  ;;  %v1472_v13 = vld [vmem:[%s1784_s25 + $0x220] sm:$0xf]  ;;  %v1658_v14 = vld [vmem:[%s1784_s25 + $0x22c] sm:$0xf0]  ;;  %v1345_v20 = vor.u32 %v1626_v12, %v1344_v10  ;;  %v1320_v34 = vld [vmem:[%s1784_s25 + $0xe8] sm:$0xf]  ;;  %v1573_v42 = vor.u32 %v1680_v31, %v1570_v33 }
  0x2e   : > { %908 = vmatpush.bf16.msra.mxu2 %v1505_v59  ;;  %v1200_v18 = vld [vmem:[%s1784_s25] sm:$0xf]  ;;  %v1590_v19 = vld [vmem:[%s1784_s25 + $0xc] sm:$0xf0]  ;;  %v1473_v21 = vor.u32 %v1658_v14, %v1472_v13  ;;  %v1619_v35 = vld [vmem:[%s1784_s25 + $0xf4] sm:$0xf0] }
  0x2f   : > { %v1328_v22 = vld [vmem:[%s1784_s25 + $0x100] sm:$0xf]  ;;  %v1622_v23 = vld [vmem:[%s1784_s25 + $0x10c] sm:$0xf0]  ;;  %v1201_v32 = vor.u32 %v1590_v19, %v1200_v18  ;;  %v1448_v38 = vld [vmem:[%s1784_s25 + $0x1e8] sm:$0xf]  ;;  %v1321_v43 = vor.u32 %v1619_v35, %v1320_v34 }
  0x30   : > { %883 = vmatpush.bf16.msra.mxu0 %v1233_v5  ;;  %v1456_v24 = vld [vmem:[%s1784_s25 + $0x200] sm:$0xf]  ;;  %v1654_v26 = vld [vmem:[%s1784_s25 + $0x20c] sm:$0xf0]  ;;  %v1329_v36 = vor.u32 %v1622_v23, %v1328_v22  ;;  %v1651_v39 = vld [vmem:[%s1784_s25 + $0x1f4] sm:$0xf0] }
  0x31   : > { %896 = vmatpush.bf16.msra.mxu1 %v1361_v6  ;;  %922 = vmatpush.bf16.msra.mxu3 %v1237_v11  ;;  %v1457_v37 = vor.u32 %v1654_v26, %v1456_v24  ;;  %v1644_v44 = vld [vmem:[%s1784_s25 + $0x1c4] sm:$0xf]  ;;  %v1426_v45 = vld [vmem:[%s1784_s25 + $0x1d0] sm:$0xf0]  ;;  %v1449_v47 = vor.u32 %v1651_v39, %v1448_v38  ;;  %v1304_v49 = vld [vmem:[%s1784_s25 + $0xc8] sm:$0xf] }
  0x32   : > { %909 = vmatpush.bf16.msra.mxu2 %v1489_v7  ;;  %v1676_v46 = vld [vmem:[%s1784_s25 + $0x2c4] sm:$0xf]  ;;  %v1554_v48 = vld [vmem:[%s1784_s25 + $0x2d0] sm:$0xf0]  ;;  %v1615_v50 = vld [vmem:[%s1784_s25 + $0xd4] sm:$0xf0]  ;;  %v1429_v53 = vor.u32 %v1644_v44, %v1426_v45 }
  0x33   : > { %v1432_v51 = vld [vmem:[%s1784_s25 + $0x1c8] sm:$0xf]  ;;  %v1647_v52 = vld [vmem:[%s1784_s25 + $0x1d4] sm:$0xf0]  ;;  %v1640_v54 = vld [vmem:[%s1784_s25 + $0x1a4] sm:$0xf]  ;;  %v1557_v56 = vor.u32 %v1676_v46, %v1554_v48  ;;  %v1305_v57 = vor.u32 %v1615_v50, %v1304_v49 }
  0x34   : > { %884 = vmatpush.bf16.msra.mxu0 %v1217_v17  ;;  %v1410_v55 = vld [vmem:[%s1784_s25 + $0x1b0] sm:$0xf0]  ;;  %v1672_v58 = vld [vmem:[%s1784_s25 + $0x2a4] sm:$0xf]  ;;  %v1433_v61 = vor.u32 %v1647_v52, %v1432_v51  ;;  %v1288_v62 = vld [vmem:[%s1784_s25 + $0xa8] sm:$0xf] }
  0x35   : > { %897 = vmatpush.bf16.msra.mxu1 %v1345_v20  ;;  %923 = vmatpush.bf16.msra.mxu3 %v1221_v25  ;;  %v1538_v59 = vld [vmem:[%s1784_s25 + $0x2b0] sm:$0xf0]  ;;  %v289_v60 = vld [vmem:[%s1779_s21] sm:$0xff]  ;;  %v1611_v63 = vld [vmem:[%s1784_s25 + $0xb4] sm:$0xf0]  ;;  %v1413_v6 = vor.u32 %v1640_v54, %v1410_v55  ;;  %p1582_p7 = scmp.ne.s32.totalorder %s1723_s12, 5 }
  0x36   : > { %910 = vmatpush.bf16.msra.mxu2 %v1473_v21  ;;  %v389_v0 = vunpack.c.l.b16 %v289_v60  ;;  %v390_v1 = vunpack.c.h.b16 %v289_v60  ;;  %v290_v2 = vld [vmem:[%s1779_s21 + $0x8] sm:$0xf]  ;;  %v1643_v4 = vld [vmem:[%s1784_s25 + $0x1b4] sm:$0xf0]  ;;  %v1541_v9 = vor.u32 %v1672_v58, %v1538_v59  ;;  %v1289_v10 = vor.u32 %v1611_v63, %v1288_v62  ;;  %v1636_v11 = vld [vmem:[%s1784_s25 + $0x184] sm:$0xf] }
  0x37   : > { %v1416_v3 = vld [vmem:[%s1784_s25 + $0x1a8] sm:$0xf]  ;;  %v391_v5 = vunpack.c.l.b16 %v290_v2  ;;  %v1394_v12 = vld [vmem:[%s1784_s25 + $0x190] sm:$0xf0]  ;;  %v1668_v13 = vld [vmem:[%s1784_s25 + $0x284] sm:$0xf] }
  0x38   : > { %885 = vmatpush.bf16.msra.mxu0 %v1201_v32  ;;  %v1889_v7 = vpack.c.b16 %v389_v0, %v389_v0  ;;  %v1891_v8 = vpack.c.b16 %v390_v1, %v390_v1  ;;  %v1417_v15 = vor.u32 %v1643_v4, %v1416_v3  ;;  %v1522_v16 = vld [vmem:[%s1784_s25 + $0x290] sm:$0xf0]  ;;  %v1272_v17 = vld [vmem:[%s1784_s25 + $0x88] sm:$0xf]  ;;  %v1607_v18 = vld [vmem:[%s1784_s25 + $0x94] sm:$0xf0]  ;;  %v1397_v21 = vor.u32 %v1636_v11, %v1394_v12 }
  0x39   : > { %898 = vmatpush.bf16.msra.mxu1 %v1329_v36  ;;  %924 = vmatpush.bf16.msra.mxu3 %v1205_v40  ;;  %v1896_v14 = vpack.c.b16 %v391_v5, %v391_v5  ;;  %v1400_v19 = vld [vmem:[%s1784_s25 + $0x188] sm:$0xf]  ;;  %v1639_v20 = vld [vmem:[%s1784_s25 + $0x194] sm:$0xf0]  ;;  %v1525_v22 = vor.u32 %v1668_v13, %v1522_v16  ;;  %v1273_v23 = vor.u32 %v1607_v18, %v1272_v17  ;;  %v1632_v24 = vld [vmem:[%s1784_s25 + $0x164] sm:$0xf] }
  0x3a   : > { %911 = vmatpush.bf16.msra.mxu2 %v1457_v37  ;;  %v1378_v25 = vld [vmem:[%s1784_s25 + $0x170] sm:$0xf0]  ;;  %v1664_v26 = vld [vmem:[%s1784_s25 + $0x264] sm:$0xf]  ;;  %v1401_v27 = vor.u32 %v1639_v20, %v1400_v19  ;;  %v1256_v29 = vld [vmem:[%s1784_s25 + $0x68] sm:$0xf] }
  0x3b   : > { %886 = vmatmul.bf16.vlgmr.msra.gmra.mxu0 %v1889_v7  ;;  %v1506_v28 = vld [vmem:[%s1784_s25 + $0x270] sm:$0xf0]  ;;  %v1603_v30 = vld [vmem:[%s1784_s25 + $0x74] sm:$0xf0]  ;;  %v1384_v31 = vld [vmem:[%s1784_s25 + $0x168] sm:$0xf]  ;;  %v1381_v33 = vor.u32 %v1632_v24, %v1378_v25 }
  0x3c   : > { %930 = vmatpush.bf16.msrb.mxu0 %v1445_v41  ;;  %899 = vmatmul.bf16.vlgmr.msra.gmra.mxu1 %v1891_v8  ;;  %v1635_v32 = vld [vmem:[%s1784_s25 + $0x174] sm:$0xf0]  ;;  %v1509_v34 = vor.u32 %v1664_v26, %v1506_v28  ;;  %v1257_v35 = vor.u32 %v1603_v30, %v1256_v29  ;;  %v1628_v36 = vld [vmem:[%s1784_s25 + $0x144] sm:$0xf]  ;;  %v1362_v37 = vld [vmem:[%s1784_s25 + $0x150] sm:$0xf0] }
  0x3d   : > { %943 = vmatpush.bf16.msrb.mxu1 %v1573_v42  ;;  %969 = vmatpush.bf16.msrb.mxu3 %v1449_v47  ;;  %v1660_v38 = vld [vmem:[%s1784_s25 + $0x244] sm:$0xf]  ;;  %v1385_v39 = vor.u32 %v1635_v32, %v1384_v31  ;;  %v1490_v40 = vld [vmem:[%s1784_s25 + $0x250] sm:$0xf0]  ;;  %v1240_v41 = vld [vmem:[%s1784_s25 + $0x48] sm:$0xf]  ;;  %v1365_v45 = vor.u32 %v1628_v36, %v1362_v37 }
  0x3e   : > { %956 = vmatpush.bf16.msrb.mxu2 %v1321_v43  ;;  %925 = vmatmul.bf16.vlgmr.msra.gmra.mxu3 %v1889_v7  ;;  %v1599_v42 = vld [vmem:[%s1784_s25 + $0x54] sm:$0xf0]  ;;  %v1368_v43 = vld [vmem:[%s1784_s25 + $0x148] sm:$0xf]  ;;  %v1493_v46 = vor.u32 %v1660_v38, %v1490_v40  ;;  %v1624_v48 = vld [vmem:[%s1784_s25 + $0x124] sm:$0xf] }
  0x3f   : > { %912 = vmatmul.bf16.vlgmr.msra.gmra.mxu2 %v1896_v14  ;;  %v1631_v44 = vld [vmem:[%s1784_s25 + $0x154] sm:$0xf0]  ;;  %v1241_v47 = vor.u32 %v1599_v42, %v1240_v41  ;;  %v1346_v49 = vld [vmem:[%s1784_s25 + $0x130] sm:$0xf0]  ;;  %v1656_v50 = vld [vmem:[%s1784_s25 + $0x224] sm:$0xf] }
  0x40   : > { %931 = vmatpush.bf16.msrb.mxu0 %v1429_v53  ;;  %v1369_v51 = vor.u32 %v1631_v44, %v1368_v43  ;;  %v1474_v52 = vld [vmem:[%s1784_s25 + $0x230] sm:$0xf0]  ;;  %v1224_v53 = vld [vmem:[%s1784_s25 + $0x28] sm:$0xf]  ;;  %v1595_v54 = vld [vmem:[%s1784_s25 + $0x34] sm:$0xf0] }
  0x41   : > { %944 = vmatpush.bf16.msrb.mxu1 %v1557_v56  ;;  %970 = vmatpush.bf16.msrb.mxu3 %v1433_v61  ;;  %v1352_v55 = vld [vmem:[%s1784_s25 + $0x128] sm:$0xf]  ;;  %v1627_v56 = vld [vmem:[%s1784_s25 + $0x134] sm:$0xf0]  ;;  %v1620_v58 = vld [vmem:[%s1784_s25 + $0x104] sm:$0xf]  ;;  %v1477_v60 = vor.u32 %v1656_v50, %v1474_v52  ;;  %v1225_v61 = vor.u32 %v1595_v54, %v1224_v53 }
  0x42   : > { %957 = vmatpush.bf16.msrb.mxu2 %v1305_v57  ;;  %v1349_v57 = vor.u32 %v1624_v48, %v1346_v49  ;;  %v1330_v59 = vld [vmem:[%s1784_s25 + $0x110] sm:$0xf0]  ;;  %v1652_v62 = vld [vmem:[%s1784_s25 + $0x204] sm:$0xf]  ;;  %v1208_v0 = vld [vmem:[%s1784_s25 + $0x8] sm:$0xf]  ;;  %v1353_v1 = vor.u32 %v1627_v56, %v1352_v55 }
  0x43   : > { %v1458_v63 = vld [vmem:[%s1784_s25 + $0x210] sm:$0xf0]  ;;  %v1591_v2 = vld [vmem:[%s1784_s25 + $0x14] sm:$0xf0]  ;;  %v1336_v3 = vld [vmem:[%s1784_s25 + $0x108] sm:$0xf] }
  0x44   : > { %932 = vmatpush.bf16.msrb.mxu0 %v1413_v6  ;;  %v1623_v4 = vld [vmem:[%s1784_s25 + $0x114] sm:$0xf0]  ;;  %v1576_v5 = vld [vmem:[%s1784_s25 + $0x2e8] sm:$0xf]  ;;  %v1322_v11 = vld [vmem:[%s1784_s25 + $0xf8] sm:$0xf0]  ;;  %v1209_v16 = vor.u32 %v1591_v2, %v1208_v0 }
  0x45   : > { %945 = vmatpush.bf16.msrb.mxu1 %v1541_v9  ;;  %971 = vmatpush.bf16.msrb.mxu3 %v1417_v15  ;;  %v1683_v6 = vld [vmem:[%s1784_s25 + $0x2f4] sm:$0xf0]  ;;  %v1617_v9 = vld [vmem:[%s1784_s25 + $0xec] sm:$0xf]  ;;  %v1450_v13 = vld [vmem:[%s1784_s25 + $0x1f8] sm:$0xf0]  ;;  %v1461_v15 = vor.u32 %v1652_v62, %v1458_v63  ;;  %v1337_v19 = vor.u32 %v1623_v4, %v1336_v3 }
  0x46   : > { %958 = vmatpush.bf16.msrb.mxu2 %v1289_v10  ;;  %v1333_v10 = vor.u32 %v1620_v58, %v1330_v59  ;;  %v1649_v12 = vld [vmem:[%s1784_s25 + $0x1ec] sm:$0xf]  ;;  %v1578_v18 = vld [vmem:[%s1784_s25 + $0x2f8] sm:$0xf0]  ;;  %v1577_v20 = vor.u32 %v1683_v6, %v1576_v5  ;;  %v1679_v24 = vld [vmem:[%s1784_s25 + $0x2d4] sm:$0xf0] }
  0x47   : > { %v1681_v17 = vld [vmem:[%s1784_s25 + $0x2ec] sm:$0xf]  ;;  %v1434_v29 = vld [vmem:[%s1784_s25 + $0x1d8] sm:$0xf0]  ;;  %v1675_v36 = vld [vmem:[%s1784_s25 + $0x2b4] sm:$0xf0] }
  0x48   : > { %933 = vmatpush.bf16.msrb.mxu0 %v1397_v21  ;;  %v1325_v21 = vor.u32 %v1617_v9, %v1322_v11  ;;  %v1613_v25 = vld [vmem:[%s1784_s25 + $0xcc] sm:$0xf]  ;;  %v1581_v26 = vor.u32 %v1681_v17, %v1578_v18  ;;  %v1562_v31 = vld [vmem:[%s1784_s25 + $0x2d8] sm:$0xf0]  ;;  %v1671_v48 = vld [vmem:[%s1784_s25 + $0x294] sm:$0xf0] }
  0x49   : > { %946 = vmatpush.bf16.msrb.mxu1 %v1525_v22  ;;  %972 = vmatpush.bf16.msrb.mxu3 %v1401_v27  ;;  %v1453_v22 = vor.u32 %v1649_v12, %v1450_v13  ;;  %v1306_v27 = vld [vmem:[%s1784_s25 + $0xd8] sm:$0xf0]  ;;  %v1645_v28 = vld [vmem:[%s1784_s25 + $0x1cc] sm:$0xf]  ;;  %v1512_v59 = vld [vmem:[%s1784_s25 + $0x268] sm:$0xf] }
  0x4a   : > { %959 = vmatpush.bf16.msrb.mxu2 %v1273_v23  ;;  %v1560_v23 = vld [vmem:[%s1784_s25 + $0x2c8] sm:$0xf]  ;;  %v1677_v30 = vld [vmem:[%s1784_s25 + $0x2cc] sm:$0xf]  ;;  %v1418_v41 = vld [vmem:[%s1784_s25 + $0x1b8] sm:$0xf0] }
  0x4b   : > { %v1561_v32 = vor.u32 %v1679_v24, %v1560_v23  ;;  %v1609_v37 = vld [vmem:[%s1784_s25 + $0xac] sm:$0xf]  ;;  %v1565_v38 = vor.u32 %v1677_v30, %v1562_v31  ;;  %v1546_v43 = vld [vmem:[%s1784_s25 + $0x2b8] sm:$0xf0]  ;;  %v1496_v9 = vld [vmem:[%s1784_s25 + $0x248] sm:$0xf] }
  0x4c   : > { %934 = vmatpush.bf16.msrb.mxu0 %v1381_v33  ;;  %v1309_v33 = vor.u32 %v1613_v25, %v1306_v27  ;;  %v1641_v40 = vld [vmem:[%s1784_s25 + $0x1ac] sm:$0xf]  ;;  %v1402_v53 = vld [vmem:[%s1784_s25 + $0x198] sm:$0xf0]  ;;  %v1659_v23 = vld [vmem:[%s1784_s25 + $0x234] sm:$0xf0] }
  0x4d   : > { %947 = vmatpush.bf16.msrb.mxu1 %v1509_v34  ;;  %973 = vmatpush.bf16.msrb.mxu3 %v1385_v39  ;;  %v1437_v34 = vor.u32 %v1645_v28, %v1434_v29  ;;  %v1290_v39 = vld [vmem:[%s1784_s25 + $0xb8] sm:$0xf0]  ;;  %v1673_v42 = vld [vmem:[%s1784_s25 + $0x2ac] sm:$0xf] }
  0x4e   : > { %960 = vmatpush.bf16.msrb.mxu2 %v1257_v35  ;;  %v1544_v35 = vld [vmem:[%s1784_s25 + $0x2a8] sm:$0xf]  ;;  %v1605_v49 = vld [vmem:[%s1784_s25 + $0x8c] sm:$0xf]  ;;  %v1549_v50 = vor.u32 %v1673_v42, %v1546_v43  ;;  %v1530_v55 = vld [vmem:[%s1784_s25 + $0x298] sm:$0xf0] }
  0x4f   : > { %v1545_v44 = vor.u32 %v1675_v36, %v1544_v35  ;;  %v1637_v52 = vld [vmem:[%s1784_s25 + $0x18c] sm:$0xf]  ;;  %v1258_v63 = vld [vmem:[%s1784_s25 + $0x78] sm:$0xf0]  ;;  %v1655_v35 = vld [vmem:[%s1784_s25 + $0x214] sm:$0xf0] }
  0x50   : > { %935 = vmatpush.bf16.msrb.mxu0 %v1365_v45  ;;  %v1293_v45 = vor.u32 %v1609_v37, %v1290_v39  ;;  %v1669_v54 = vld [vmem:[%s1784_s25 + $0x28c] sm:$0xf]  ;;  %v1405_v58 = vor.u32 %v1637_v52, %v1402_v53  ;;  %v1514_v3 = vld [vmem:[%s1784_s25 + $0x278] sm:$0xf0] }
  0x51   : > { %948 = vmatpush.bf16.msrb.mxu1 %v1493_v46  ;;  %974 = vmatpush.bf16.msrb.mxu3 %v1369_v51  ;;  %v1421_v46 = vor.u32 %v1641_v40, %v1418_v41  ;;  %v1274_v51 = vld [vmem:[%s1784_s25 + $0x98] sm:$0xf0]  ;;  %v1533_v62 = vor.u32 %v1669_v54, %v1530_v55  ;;  %v1633_v0 = vld [vmem:[%s1784_s25 + $0x16c] sm:$0xf] }
  0x52   : > { %961 = vmatpush.bf16.msrb.mxu2 %v1241_v47  ;;  %v1528_v47 = vld [vmem:[%s1784_s25 + $0x288] sm:$0xf]  ;;  %v1665_v2 = vld [vmem:[%s1784_s25 + $0x26c] sm:$0xf]  ;;  %v1242_v13 = vld [vmem:[%s1784_s25 + $0x58] sm:$0xf0] }
  0x53   : > { %v1529_v56 = vor.u32 %v1671_v48, %v1528_v47  ;;  %v1597_v11 = vld [vmem:[%s1784_s25 + $0x4c] sm:$0xf]  ;;  %v1517_v12 = vor.u32 %v1665_v2, %v1514_v3  ;;  %v1498_v18 = vld [vmem:[%s1784_s25 + $0x258] sm:$0xf0] }
  0x54   : > { %936 = vmatpush.bf16.msrb.mxu0 %v1349_v57  ;;  %v1277_v57 = vor.u32 %v1605_v49, %v1274_v51  ;;  %v1661_v17 = vld [vmem:[%s1784_s25 + $0x24c] sm:$0xf]  ;;  %v1354_v28 = vld [vmem:[%s1784_s25 + $0x138] sm:$0xf0] }
  0x55   : > { %949 = vmatpush.bf16.msrb.mxu1 %v1477_v60  ;;  %975 = vmatpush.bf16.msrb.mxu3 %v1353_v1  ;;  %v1667_v60 = vld [vmem:[%s1784_s25 + $0x274] sm:$0xf0]  ;;  %v1386_v1 = vld [vmem:[%s1784_s25 + $0x178] sm:$0xf0]  ;;  %v1593_v24 = vld [vmem:[%s1784_s25 + $0x2c] sm:$0xf]  ;;  %v1501_v25 = vor.u32 %v1661_v17, %v1498_v18 }
  0x56   : > { %962 = vmatpush.bf16.msrb.mxu2 %v1225_v61  ;;  %v1601_v61 = vld [vmem:[%s1784_s25 + $0x6c] sm:$0xf]  ;;  %v1513_v4 = vor.u32 %v1667_v60, %v1512_v59  ;;  %v1389_v6 = vor.u32 %v1633_v0, %v1386_v1  ;;  %v1482_v30 = vld [vmem:[%s1784_s25 + $0x238] sm:$0xf0] }
  0x57   : > { %v1261_v5 = vor.u32 %v1601_v61, %v1258_v63  ;;  %v1625_v27 = vld [vmem:[%s1784_s25 + $0x12c] sm:$0xf]  ;;  %v1338_v40 = vld [vmem:[%s1784_s25 + $0x118] sm:$0xf0] }
  0x58   : > { %937 = vmatpush.bf16.msrb.mxu0 %v1333_v10  ;;  %v1663_v10 = vld [vmem:[%s1784_s25 + $0x254] sm:$0xf0]  ;;  %v1657_v29 = vld [vmem:[%s1784_s25 + $0x22c] sm:$0xf]  ;;  %v1466_v42 = vld [vmem:[%s1784_s25 + $0x218] sm:$0xf0] }
  0x59   : > { %950 = vmatpush.bf16.msrb.mxu1 %v1461_v15  ;;  %976 = vmatpush.bf16.msrb.mxu3 %v1337_v19  ;;  %v1629_v15 = vld [vmem:[%s1784_s25 + $0x14c] sm:$0xf]  ;;  %v1497_v19 = vor.u32 %v1663_v10, %v1496_v9  ;;  %v1485_v37 = vor.u32 %v1657_v29, %v1482_v30  ;;  %v288_v17 = vld [vmem:[%s2075_s3 + $0x18] sm:$0xff] }
  0x5a   : > { %963 = vmatpush.bf16.msrb.mxu2 %v1209_v16  ;;  %v1370_v16 = vld [vmem:[%s1784_s25 + $0x158] sm:$0xf0]  ;;  %v1589_v36 = vld [vmem:[%s1784_s25 + $0xc] sm:$0xf] }
  0x5b   : > { %938 = vmatmul.bf16.vlgmr.msrb.gmra.mxu0 %v1891_v8  ;;  %v1621_v39 = vld [vmem:[%s1784_s25 + $0x10c] sm:$0xf] }
  0x5c   : > { %982 = vmatpush.bf16.msra.mxu0 %v1577_v20  ;;  %951 = vmatmul.bf16.vlgmr.msrb.gmra.mxu1 %v1896_v14  ;;  %v1245_v20 = vor.u32 %v1597_v11, %v1242_v13  ;;  %v1653_v41 = vld [vmem:[%s1784_s25 + $0x20c] sm:$0xf] }
  0x5d   : > { %995 = vmatpush.bf16.msra.mxu1 %v1325_v21  ;;  %1021 = vmatpush.bf16.msra.mxu3 %v1581_v26  ;;  %v1373_v21 = vor.u32 %v1629_v15, %v1370_v16  ;;  %v1226_v26 = vld [vmem:[%s1784_s25 + $0x38] sm:$0xf0]  ;;  %v286_v59 = vld [vmem:[%s2075_s3 + $0x8] sm:$0xff] }
  0x5e   : > { %1008 = vmatpush.bf16.msra.mxu2 %v1453_v22  ;;  %977 = vmatmul.bf16.vlgmr.msrb.gmra.mxu3 %v1891_v8  ;;  %v1480_v22 = vld [vmem:[%s1784_s25 + $0x228] sm:$0xf] }
  0x5f   : > { %964 = vmatmul.bf16.vlgmr.msrb.gmra.mxu2 %v1889_v7  ;;  %v1481_v31 = vor.u32 %v1659_v23, %v1480_v22 }
  0x60   : > { %983 = vmatpush.bf16.msra.mxu0 %v1561_v32  ;;  %v1229_v32 = vor.u32 %v1593_v24, %v1226_v26 }
  0x61   : > { %996 = vmatpush.bf16.msra.mxu1 %v1309_v33  ;;  %1022 = vmatpush.bf16.msra.mxu3 %v1565_v38  ;;  %v1357_v33 = vor.u32 %v1625_v27, %v1354_v28  ;;  %v1210_v38 = vld [vmem:[%s1784_s25 + $0x18] sm:$0xf0] }
  0x62   : > { %1009 = vmatpush.bf16.msra.mxu2 %v1437_v34  ;;  %v1464_v34 = vld [vmem:[%s1784_s25 + $0x208] sm:$0xf] }
  0x63   : > { %v1465_v43 = vor.u32 %v1655_v35, %v1464_v34 }
  0x64   : > { %984 = vmatpush.bf16.msra.mxu0 %v1545_v44  ;;  %v1213_v44 = vor.u32 %v1589_v36, %v1210_v38 }
  0x65   : > { %997 = vmatpush.bf16.msra.mxu1 %v1293_v45  ;;  %1023 = vmatpush.bf16.msra.mxu3 %v1549_v50  ;;  %v1341_v45 = vor.u32 %v1621_v39, %v1338_v40  ;;  %v285_v50 = vld [vmem:[%s2075_s3] sm:$0xff] }
  0x66   : > { %1010 = vmatpush.bf16.msra.mxu2 %v1421_v46  ;;  %v1469_v46 = vor.u32 %v1653_v41, %v1466_v42 }
  0x68   : > { %985 = vmatpush.bf16.msra.mxu0 %v1529_v56 }
  0x69   : > { %998 = vmatpush.bf16.msra.mxu1 %v1277_v57  ;;  %1024 = vmatpush.bf16.msra.mxu3 %v1533_v62 }
  0x6a   : > { %1011 = vmatpush.bf16.msra.mxu2 %v1405_v58 }
  0x6c   : > { %986 = vmatpush.bf16.msra.mxu0 %v1513_v4 }
  0x6d   : > { %999 = vmatpush.bf16.msra.mxu1 %v1261_v5  ;;  %1025 = vmatpush.bf16.msra.mxu3 %v1517_v12  ;;  %v287_v5 = vld [vmem:[%s2075_s3 + $0x10] sm:$0xff] }
  0x6e   : > { %1012 = vmatpush.bf16.msra.mxu2 %v1389_v6 }
  0x70   : > { %987 = vmatpush.bf16.msra.mxu0 %v1497_v19 }
  0x71   : > { %1000 = vmatpush.bf16.msra.mxu1 %v1245_v20  ;;  %1026 = vmatpush.bf16.msra.mxu3 %v1501_v25 }
  0x72   : > { %1013 = vmatpush.bf16.msra.mxu2 %v1373_v21 }
  0x74   : > { %988 = vmatpush.bf16.msra.mxu0 %v1481_v31 }
  0x75   : > { %1001 = vmatpush.bf16.msra.mxu1 %v1229_v32  ;;  %1027 = vmatpush.bf16.msra.mxu3 %v1485_v37 }
  0x76   : > { %1014 = vmatpush.bf16.msra.mxu2 %v1357_v33 }
  0x78   : > { %989 = vmatpush.bf16.msra.mxu0 %v1465_v43 }
  0x79   : > { %1002 = vmatpush.bf16.msra.mxu1 %v1213_v44  ;;  %1028 = vmatpush.bf16.msra.mxu3 %v1469_v46 }
  0x7a   : > { %1015 = vmatpush.bf16.msra.mxu2 %v1341_v45 }
  0x7b   : > { %990 = vmatmul.bf16.vlgmr.msra.gmra.mxu0 %v1896_v14 }
  0x7c   : > { %1003 = vmatmul.bf16.vlgmr.msra.gmra.mxu1 %v1889_v7  ;;  %1029 = vmatmul.bf16.vlgmr.msra.gmra.mxu3 %v1896_v14 }
  0x7d   : > { %1016 = vmatmul.bf16.vlgmr.msra.gmra.mxu2 %v1891_v8 }
  0xb8   : > { %v887_v47 = vpop.f32.mrf.mxu0 }
  0xb9   : > { %v900_v48 = vpop.f32.mrf.mxu1 }
  0xba   : > { %v901_v49 = vadd.f32 %v900_v48, %v887_v47 }
  0xc0   : > { %v889_v52 = vpop.f32.mrf.mxu0 }
  0xc1   : > { %v926_v54 = vpop.f32.mrf.mxu3  ;;  %v902_v55 = vpop.f32.mrf.mxu1 }
  0xc2   : > { %v913_v51 = vpop.f32.mrf.mxu2 }
  0xc3   : > { %v914_v53 = vadd.f32 %v913_v51, %v901_v49 }
  0xc5   : > { %v1034_v56 = vadd.f32 %v914_v53, %v285_v50 }
  0xc7   : > { %1038 = vst [vmem:[%s2075_s3] sm:$0xff] %v1034_v56 }
  0xc9   : > { %v928_v8 = vpop.f32.mrf.mxu3 }
  0xca   : > { %v915_v7 = vpop.f32.mrf.mxu2 }
  0xd8   : > { %v939_v14 = vpop.f32.mrf.mxu0 }
  0xd9   : > { %v940_v57 = vadd.f32 %v939_v14, %v926_v54  ;;  %v952_v58 = vpop.f32.mrf.mxu1 }
  0xdb   : > { %v953_v60 = vadd.f32 %v952_v58, %v940_v57 }
  0xdd   : > { %v1035_v61 = vadd.f32 %v953_v60, %v286_v59 }
  0xdf   : > { %1039 = vst [vmem:[%s2075_s3 + $0x8] sm:$0xff] %v1035_v61 }
  0xe0   : > { %v941_v0 = vpop.f32.mrf.mxu0 }
  0xe1   : > { %v978_v63 = vpop.f32.mrf.mxu3  ;;  %v954_v1 = vpop.f32.mrf.mxu1 }
  0xe2   : > { %v965_v62 = vpop.f32.mrf.mxu2 }
  0xe3   : > { %v979_v4 = vadd.f32 %v978_v63, %v965_v62 }
  0xe9   : > { %v980_v3 = vpop.f32.mrf.mxu3 }
  0xea   : > { %v967_v2 = vpop.f32.mrf.mxu2 }
  0xf8   : > { %v991_v6 = vpop.f32.mrf.mxu0 }
  0xf9   : > { %v992_v9 = vadd.f32 %v991_v6, %v979_v4  ;;  %v1004_v10 = vpop.f32.mrf.mxu1 }
  0xfb   : > { %v1036_v11 = vadd.f32 %v992_v9, %v287_v5 }
  0xfd   : > { %1040 = vst [vmem:[%s2075_s3 + $0x10] sm:$0xff] %v1036_v11 }
  0xff   : > { %v1030_v15 = vpop.f32.mrf.mxu3 }
 0x100   : > { %v1017_v12 = vpop.f32.mrf.mxu2  ;;  %v993_v16 = vpop.f32.mrf.mxu0 }
 0x101   : > { %v1018_v13 = vadd.f32 %v1017_v12, %v1004_v10  ;;  %v1006_v18 = vpop.f32.mrf.mxu1 }
 0x103   : > { %v1031_v19 = vadd.f32 %v1030_v15, %v1018_v13 }
 0x104   : > { %1045 = sbr.rel (%p1582_p7) target bundleno = 277 (0x115), region = 40 }
 0x105   : > { %v1037_v20 = vadd.f32 %v1031_v19, %v288_v17 }
 0x107   : > { %1041 = vst [vmem:[%s2075_s3 + $0x18] sm:$0xff] %v1037_v20  ;;  %v1032_v22 = vpop.f32.mrf.mxu3 }
 0x108   : > { %v1019_v21 = vpop.f32.mrf.mxu2 }
 0x109   : > { %v1046_v23 = vld [vmem:[%s2075_s3] sm:$0xff]  ;;  %v1047_v25 = vld [vmem:[%s2075_s3 + $0x8] sm:$0xff]  ;;  %v1048_v28 = vld [vmem:[%s2075_s3 + $0x10] sm:$0xff] }
 0x10a   : > { %v1050_v24 = vld [vmem:[%s2074_s2] sm:$0xf] }
 0x10b   : > { %v1052_v26 = vperm.slane %v1050_v24, 0  ;;  %v1053_v27 = vperm.slane %v1050_v24, 1  ;;  %v1054_v29 = vperm.slane %v1050_v24, 2  ;;  %v1055_v31 = vperm.slane %v1050_v24, 3 }
 0x10d   : > { %v1060_v32 = vadd.f32 %v1052_v26, %v1046_v23  ;;  %v1061_v33 = vadd.f32 %v1053_v27, %v1047_v25  ;;  %v1062_v34 = vadd.f32 %v1054_v29, %v1048_v28 }
 0x10e   : > { %v1049_v30 = vld [vmem:[%s2075_s3 + $0x18] sm:$0xff] }
 0x10f   : > { %v1063_v35 = vadd.f32 %v1055_v31, %v1049_v30  ;;  %v1064_v36 = vmax.f32 %v1060_v32, 0.0  ;;  %v1065_v37 = vmax.f32 %v1061_v33, 0.0  ;;  %v1066_v38 = vmax.f32 %v1062_v34, 0.0 }
 0x111   : > { %v1067_v39 = vmax.f32 %v1063_v35, 0.0  ;;  %1068 = vst [vmem:[%s2075_s3] sm:$0xff] %v1064_v36 }
 0x112   : > { %1069 = vst [vmem:[%s2075_s3 + $0x8] sm:$0xff] %v1065_v37 }
 0x113   : > { %1070 = vst [vmem:[%s2075_s3 + $0x10] sm:$0xff] %v1066_v38 }
 0x114   : > { %1071 = vst [vmem:[%s2075_s3 + $0x18] sm:$0xff] %v1067_v39 }
 0x115 PF: > { %s13_s14 = sadd.s32 1, %s1731_s14   ;;  %s2076_s12 = smov %s1727_s13 }
 0x116   : > { %p10_p8 = scmp.ge.s32.totalorder %s13_s14, 8   ;;  %s2077_s13 = smov %s2079_s15 }
 0x118   :  { %12 = sbr.rel (!%p10_p8) target bundleno = 2 (0x2), region = 76 }

// kernel: res18feature_forward.36
= control target key start
LH: loop header
LB: loop body
LE: loop exit
PB: predicated region body
PF: predicated region fallthrough
CT: control target
= control target key end

     0   :  { %s1314_s1 = inlined_call_operand.vmem [shape: bf16[256,512], index: 1, kind: input, shape index: {}]   ;;  %s1315_s0 = inlined_call_operand.vmem [shape: bf16[8,256], index: 0, kind: input, shape index: {}]   ;;  %s1316_s2 = inlined_call_operand.vmem [shape: f32[1,512], index: 2, kind: input, shape index: {}]   ;;  %s1317_s3 = inlined_call_operand.vmem [shape: f32[8,512], index: 3, kind: output, shape index: {}]  }
   0x1   :  { %v673_v0 = vld [vmem:[%s1314_s1 + $0xe0] sm:$0xf]  ;;  %v845_v1 = vld [vmem:[%s1314_s1 + $0xec] sm:$0xf0]  ;;  %v843_v5 = vld [vmem:[%s1314_s1 + $0xe4] sm:$0xf] }
   0x2   :  { %v801_v2 = vld [vmem:[%s1314_s1 + $0x1e0] sm:$0xf]  ;;  %v674_v3 = vor.u32 %v845_v1, %v673_v0  ;;  %v877_v4 = vld [vmem:[%s1314_s1 + $0x1ec] sm:$0xf0]  ;;  %v675_v6 = vld [vmem:[%s1314_s1 + $0xf0] sm:$0xf0] }
   0x3   :  { %v802_v7 = vor.u32 %v877_v4, %v801_v2  ;;  %v678_v8 = vor.u32 %v843_v5, %v675_v6  ;;  %v875_v9 = vld [vmem:[%s1314_s1 + $0x1e4] sm:$0xf]  ;;  %v803_v10 = vld [vmem:[%s1314_s1 + $0x1f0] sm:$0xf0]  ;;  %v657_v11 = vld [vmem:[%s1314_s1 + $0xc0] sm:$0xf] }
   0x4   :  { %418 = vmatpush.bf16.msra.mxu0 %v674_v3  ;;  %v806_v12 = vor.u32 %v875_v9, %v803_v10  ;;  %v841_v13 = vld [vmem:[%s1314_s1 + $0xcc] sm:$0xf0]  ;;  %v785_v14 = vld [vmem:[%s1314_s1 + $0x1c0] sm:$0xf]  ;;  %v839_v18 = vld [vmem:[%s1314_s1 + $0xc4] sm:$0xf] }
   0x5   :  { %v873_v15 = vld [vmem:[%s1314_s1 + $0x1cc] sm:$0xf0]  ;;  %431 = vmatpush.bf16.msra.mxu1 %v802_v7  ;;  %444 = vmatpush.bf16.msra.mxu2 %v678_v8  ;;  %v658_v16 = vor.u32 %v841_v13, %v657_v11  ;;  %v659_v19 = vld [vmem:[%s1314_s1 + $0xd0] sm:$0xf0]  ;;  %v871_v20 = vld [vmem:[%s1314_s1 + $0x1c4] sm:$0xf] }
   0x6   :  { %v786_v17 = vor.u32 %v873_v15, %v785_v14  ;;  %457 = vmatpush.bf16.msra.mxu3 %v806_v12  ;;  %v662_v21 = vor.u32 %v839_v18, %v659_v19  ;;  %v787_v22 = vld [vmem:[%s1314_s1 + $0x1d0] sm:$0xf0]  ;;  %v641_v23 = vld [vmem:[%s1314_s1 + $0xa0] sm:$0xf]  ;;  %v837_v24 = vld [vmem:[%s1314_s1 + $0xac] sm:$0xf0] }
   0x7   :  { %v790_v25 = vor.u32 %v871_v20, %v787_v22  ;;  %v769_v26 = vld [vmem:[%s1314_s1 + $0x1a0] sm:$0xf]  ;;  %v869_v27 = vld [vmem:[%s1314_s1 + $0x1ac] sm:$0xf0]  ;;  %v835_v28 = vld [vmem:[%s1314_s1 + $0xa4] sm:$0xf]  ;;  %v642_v29 = vor.u32 %v837_v24, %v641_v23 }
   0x8   :  { %419 = vmatpush.bf16.msra.mxu0 %v658_v16  ;;  %v643_v30 = vld [vmem:[%s1314_s1 + $0xb0] sm:$0xf0]  ;;  %v867_v31 = vld [vmem:[%s1314_s1 + $0x1a4] sm:$0xf]  ;;  %v770_v33 = vor.u32 %v869_v27, %v769_v26  ;;  %v625_v35 = vld [vmem:[%s1314_s1 + $0x80] sm:$0xf] }
   0x9   :  { %v771_v32 = vld [vmem:[%s1314_s1 + $0x1b0] sm:$0xf0]  ;;  %432 = vmatpush.bf16.msra.mxu1 %v786_v17  ;;  %445 = vmatpush.bf16.msra.mxu2 %v662_v21  ;;  %v646_v34 = vor.u32 %v835_v28, %v643_v30  ;;  %v833_v36 = vld [vmem:[%s1314_s1 + $0x8c] sm:$0xf0]  ;;  %v753_v37 = vld [vmem:[%s1314_s1 + $0x180] sm:$0xf] }
   0xa   :  { %458 = vmatpush.bf16.msra.mxu3 %v790_v25  ;;  %v774_v38 = vor.u32 %v867_v31, %v771_v32  ;;  %v865_v39 = vld [vmem:[%s1314_s1 + $0x18c] sm:$0xf0]  ;;  %v831_v40 = vld [vmem:[%s1314_s1 + $0x84] sm:$0xf]  ;;  %v627_v41 = vld [vmem:[%s1314_s1 + $0x90] sm:$0xf0]  ;;  %v626_v44 = vor.u32 %v833_v36, %v625_v35 }
   0xb   :  { %v863_v42 = vld [vmem:[%s1314_s1 + $0x184] sm:$0xf]  ;;  %v755_v43 = vld [vmem:[%s1314_s1 + $0x190] sm:$0xf0]  ;;  %v754_v45 = vor.u32 %v865_v39, %v753_v37  ;;  %v630_v46 = vor.u32 %v831_v40, %v627_v41  ;;  %v609_v47 = vld [vmem:[%s1314_s1 + $0x60] sm:$0xf] }
   0xc   :  { %420 = vmatpush.bf16.msra.mxu0 %v642_v29  ;;  %v829_v48 = vld [vmem:[%s1314_s1 + $0x6c] sm:$0xf0]  ;;  %v737_v49 = vld [vmem:[%s1314_s1 + $0x160] sm:$0xf]  ;;  %v758_v50 = vor.u32 %v863_v42, %v755_v43  ;;  %v827_v52 = vld [vmem:[%s1314_s1 + $0x64] sm:$0xf] }
   0xd   :  { %433 = vmatpush.bf16.msra.mxu1 %v770_v33  ;;  %446 = vmatpush.bf16.msra.mxu2 %v646_v34  ;;  %v861_v51 = vld [vmem:[%s1314_s1 + $0x16c] sm:$0xf0]  ;;  %v611_v53 = vld [vmem:[%s1314_s1 + $0x70] sm:$0xf0]  ;;  %v859_v54 = vld [vmem:[%s1314_s1 + $0x164] sm:$0xf]  ;;  %v610_v56 = vor.u32 %v829_v48, %v609_v47 }
   0xe   :  { %459 = vmatpush.bf16.msra.mxu3 %v774_v38  ;;  %v739_v55 = vld [vmem:[%s1314_s1 + $0x170] sm:$0xf0]  ;;  %v738_v57 = vor.u32 %v861_v51, %v737_v49  ;;  %v614_v58 = vor.u32 %v827_v52, %v611_v53  ;;  %v593_v59 = vld [vmem:[%s1314_s1 + $0x40] sm:$0xf]  ;;  %v825_v60 = vld [vmem:[%s1314_s1 + $0x4c] sm:$0xf0] }
   0xf   :  { %v721_v61 = vld [vmem:[%s1314_s1 + $0x140] sm:$0xf]  ;;  %v742_v62 = vor.u32 %v859_v54, %v739_v55  ;;  %v857_v63 = vld [vmem:[%s1314_s1 + $0x14c] sm:$0xf0]  ;;  %v823_v0 = vld [vmem:[%s1314_s1 + $0x44] sm:$0xf]  ;;  %v594_v4 = vor.u32 %v825_v60, %v593_v59 }
  0x10   :  { %421 = vmatpush.bf16.msra.mxu0 %v626_v44  ;;  %v595_v1 = vld [vmem:[%s1314_s1 + $0x50] sm:$0xf0]  ;;  %v855_v2 = vld [vmem:[%s1314_s1 + $0x144] sm:$0xf]  ;;  %v722_v5 = vor.u32 %v857_v63, %v721_v61  ;;  %v577_v7 = vld [vmem:[%s1314_s1 + $0x20] sm:$0xf] }
  0x11   :  { %434 = vmatpush.bf16.msra.mxu1 %v754_v45  ;;  %447 = vmatpush.bf16.msra.mxu2 %v630_v46  ;;  %v723_v3 = vld [vmem:[%s1314_s1 + $0x150] sm:$0xf0]  ;;  %v598_v6 = vor.u32 %v823_v0, %v595_v1  ;;  %v821_v8 = vld [vmem:[%s1314_s1 + $0x2c] sm:$0xf0]  ;;  %v705_v9 = vld [vmem:[%s1314_s1 + $0x120] sm:$0xf] }
  0x12   :  { %460 = vmatpush.bf16.msra.mxu3 %v758_v50  ;;  %v726_v10 = vor.u32 %v855_v2, %v723_v3  ;;  %v853_v11 = vld [vmem:[%s1314_s1 + $0x12c] sm:$0xf0]  ;;  %v819_v12 = vld [vmem:[%s1314_s1 + $0x24] sm:$0xf]  ;;  %v579_v13 = vld [vmem:[%s1314_s1 + $0x30] sm:$0xf0]  ;;  %v578_v16 = vor.u32 %v821_v8, %v577_v7 }
  0x13   :  { %v851_v14 = vld [vmem:[%s1314_s1 + $0x124] sm:$0xf]  ;;  %v707_v15 = vld [vmem:[%s1314_s1 + $0x130] sm:$0xf0]  ;;  %v561_v17 = vld [vmem:[%s1314_s1] sm:$0xf]  ;;  %v706_v20 = vor.u32 %v853_v11, %v705_v9  ;;  %v582_v21 = vor.u32 %v819_v12, %v579_v13 }
  0x14   :  { %422 = vmatpush.bf16.msra.mxu0 %v610_v56  ;;  %v817_v18 = vld [vmem:[%s1314_s1 + $0xc] sm:$0xf0]  ;;  %v689_v19 = vld [vmem:[%s1314_s1 + $0x100] sm:$0xf]  ;;  %v815_v23 = vld [vmem:[%s1314_s1 + $0x4] sm:$0xf]  ;;  %v710_v25 = vor.u32 %v851_v14, %v707_v15 }
  0x15   :  { %435 = vmatpush.bf16.msra.mxu1 %v738_v57  ;;  %448 = vmatpush.bf16.msra.mxu2 %v614_v58  ;;  %v849_v22 = vld [vmem:[%s1314_s1 + $0x10c] sm:$0xf0]  ;;  %v563_v24 = vld [vmem:[%s1314_s1 + $0x10] sm:$0xf0]  ;;  %v847_v26 = vld [vmem:[%s1314_s1 + $0x104] sm:$0xf]  ;;  %v562_v32 = vor.u32 %v817_v18, %v561_v17 }
  0x16   :  { %461 = vmatpush.bf16.msra.mxu3 %v742_v62  ;;  %v691_v27 = vld [vmem:[%s1314_s1 + $0x110] sm:$0xf0]  ;;  %v681_v28 = vld [vmem:[%s1314_s1 + $0xe8] sm:$0xf]  ;;  %v846_v29 = vld [vmem:[%s1314_s1 + $0xf4] sm:$0xf0]  ;;  %v690_v37 = vor.u32 %v849_v22, %v689_v19  ;;  %v566_v38 = vor.u32 %v815_v23, %v563_v24 }
  0x17   :  { %v809_v30 = vld [vmem:[%s1314_s1 + $0x1e8] sm:$0xf]  ;;  %v26_v31 = vld [vmem:[%s1315_s0] sm:$0xff]  ;;  %v878_v33 = vld [vmem:[%s1314_s1 + $0x1f4] sm:$0xf0]  ;;  %v694_v42 = vor.u32 %v847_v26, %v691_v27  ;;  %v682_v43 = vor.u32 %v846_v29, %v681_v28 }
  0x18   :  { %423 = vmatpush.bf16.msra.mxu0 %v594_v4  ;;  %v844_v34 = vld [vmem:[%s1314_s1 + $0xec] sm:$0xf]  ;;  %v683_v35 = vld [vmem:[%s1314_s1 + $0xf8] sm:$0xf0]  ;;  %v92_v36 = vunpack.c.l.b16 %v26_v31  ;;  %v93_v41 = vunpack.c.h.b16 %v26_v31  ;;  %v810_v44 = vor.u32 %v878_v33, %v809_v30  ;;  %v665_v46 = vld [vmem:[%s1314_s1 + $0xc8] sm:$0xf] }
  0x19   :  { %436 = vmatpush.bf16.msra.mxu1 %v722_v5  ;;  %449 = vmatpush.bf16.msra.mxu2 %v598_v6  ;;  %v876_v39 = vld [vmem:[%s1314_s1 + $0x1ec] sm:$0xf]  ;;  %v811_v40 = vld [vmem:[%s1314_s1 + $0x1f8] sm:$0xf0]  ;;  %v686_v45 = vor.u32 %v844_v34, %v683_v35  ;;  %v842_v47 = vld [vmem:[%s1314_s1 + $0xd4] sm:$0xf0] }
  0x1a   :  { %462 = vmatpush.bf16.msra.mxu3 %v726_v10  ;;  %v793_v48 = vld [vmem:[%s1314_s1 + $0x1c8] sm:$0xf]  ;;  %v814_v49 = vor.u32 %v876_v39, %v811_v40  ;;  %v874_v50 = vld [vmem:[%s1314_s1 + $0x1d4] sm:$0xf0]  ;;  %v840_v51 = vld [vmem:[%s1314_s1 + $0xcc] sm:$0xf]  ;;  %v1137_v53 = vpack.c.b16 %v92_v36, %v92_v36  ;;  %v1145_v56 = vpack.c.b16 %v93_v41, %v93_v41  ;;  %v666_v57 = vor.u32 %v842_v47, %v665_v46 }
  0x1b   :  { %v667_v52 = vld [vmem:[%s1314_s1 + $0xd8] sm:$0xf0]  ;;  %v872_v54 = vld [vmem:[%s1314_s1 + $0x1cc] sm:$0xf]  ;;  %v794_v58 = vor.u32 %v874_v50, %v793_v48  ;;  %v649_v60 = vld [vmem:[%s1314_s1 + $0xa8] sm:$0xf] }
  0x1c   :  { %424 = vmatpush.bf16.msra.mxu0 %v578_v16  ;;  %v795_v55 = vld [vmem:[%s1314_s1 + $0x1d8] sm:$0xf0]  ;;  %v670_v59 = vor.u32 %v840_v51, %v667_v52  ;;  %v838_v61 = vld [vmem:[%s1314_s1 + $0xb4] sm:$0xf0]  ;;  %v777_v62 = vld [vmem:[%s1314_s1 + $0x1a8] sm:$0xf] }
  0x1d   :  { %437 = vmatpush.bf16.msra.mxu1 %v706_v20  ;;  %450 = vmatpush.bf16.msra.mxu2 %v582_v21  ;;  %v798_v63 = vor.u32 %v872_v54, %v795_v55  ;;  %v870_v0 = vld [vmem:[%s1314_s1 + $0x1b4] sm:$0xf0]  ;;  %v836_v1 = vld [vmem:[%s1314_s1 + $0xac] sm:$0xf]  ;;  %v651_v2 = vld [vmem:[%s1314_s1 + $0xb8] sm:$0xf0]  ;;  %v650_v5 = vor.u32 %v838_v61, %v649_v60 }
  0x1e   :  { %463 = vmatpush.bf16.msra.mxu3 %v710_v25  ;;  %v868_v3 = vld [vmem:[%s1314_s1 + $0x1ac] sm:$0xf]  ;;  %v779_v4 = vld [vmem:[%s1314_s1 + $0x1b8] sm:$0xf0]  ;;  %v778_v6 = vor.u32 %v870_v0, %v777_v62  ;;  %v654_v7 = vor.u32 %v836_v1, %v651_v2  ;;  %v633_v8 = vld [vmem:[%s1314_s1 + $0x88] sm:$0xf] }
  0x1f   :  { %v834_v9 = vld [vmem:[%s1314_s1 + $0x94] sm:$0xf0]  ;;  %v761_v10 = vld [vmem:[%s1314_s1 + $0x188] sm:$0xf]  ;;  %v782_v11 = vor.u32 %v868_v3, %v779_v4  ;;  %v832_v13 = vld [vmem:[%s1314_s1 + $0x8c] sm:$0xf] }
  0x20   :  { %425 = vmatpush.bf16.msra.mxu0 %v562_v32  ;;  %v866_v12 = vld [vmem:[%s1314_s1 + $0x194] sm:$0xf0]  ;;  %v635_v14 = vld [vmem:[%s1314_s1 + $0x98] sm:$0xf0]  ;;  %v864_v15 = vld [vmem:[%s1314_s1 + $0x18c] sm:$0xf]  ;;  %v634_v17 = vor.u32 %v834_v9, %v633_v8 }
  0x21   :  { %438 = vmatpush.bf16.msra.mxu1 %v690_v37  ;;  %451 = vmatpush.bf16.msra.mxu2 %v566_v38  ;;  %v763_v16 = vld [vmem:[%s1314_s1 + $0x198] sm:$0xf0]  ;;  %v762_v18 = vor.u32 %v866_v12, %v761_v10  ;;  %v638_v19 = vor.u32 %v832_v13, %v635_v14  ;;  %v617_v20 = vld [vmem:[%s1314_s1 + $0x68] sm:$0xf]  ;;  %v830_v21 = vld [vmem:[%s1314_s1 + $0x74] sm:$0xf0] }
  0x22   :  { %464 = vmatpush.bf16.msra.mxu3 %v694_v42  ;;  %v745_v22 = vld [vmem:[%s1314_s1 + $0x168] sm:$0xf]  ;;  %v766_v23 = vor.u32 %v864_v15, %v763_v16  ;;  %v862_v24 = vld [vmem:[%s1314_s1 + $0x174] sm:$0xf0]  ;;  %v828_v25 = vld [vmem:[%s1314_s1 + $0x6c] sm:$0xf]  ;;  %v618_v29 = vor.u32 %v830_v21, %v617_v20 }
  0x23   :  { %426 = vmatmul.bf16.vlgmr.msra.gmra.mxu0 %v1137_v53  ;;  %v619_v26 = vld [vmem:[%s1314_s1 + $0x78] sm:$0xf0]  ;;  %v860_v27 = vld [vmem:[%s1314_s1 + $0x16c] sm:$0xf]  ;;  %v746_v30 = vor.u32 %v862_v24, %v745_v22  ;;  %v601_v32 = vld [vmem:[%s1314_s1 + $0x48] sm:$0xf] }
  0x24   :  { %470 = vmatpush.bf16.msrb.mxu0 %v682_v43  ;;  %452 = vmatmul.bf16.vlgmr.msra.gmra.mxu2 %v1137_v53  ;;  %v747_v28 = vld [vmem:[%s1314_s1 + $0x178] sm:$0xf0]  ;;  %v622_v31 = vor.u32 %v828_v25, %v619_v26  ;;  %v826_v33 = vld [vmem:[%s1314_s1 + $0x54] sm:$0xf0]  ;;  %v729_v34 = vld [vmem:[%s1314_s1 + $0x148] sm:$0xf] }
  0x25   :  { %483 = vmatpush.bf16.msrb.mxu1 %v810_v44  ;;  %496 = vmatpush.bf16.msrb.mxu2 %v686_v45  ;;  %v750_v35 = vor.u32 %v860_v27, %v747_v28  ;;  %v858_v36 = vld [vmem:[%s1314_s1 + $0x154] sm:$0xf0]  ;;  %v824_v37 = vld [vmem:[%s1314_s1 + $0x4c] sm:$0xf]  ;;  %v603_v38 = vld [vmem:[%s1314_s1 + $0x58] sm:$0xf0]  ;;  %v602_v41 = vor.u32 %v826_v33, %v601_v32 }
  0x26   :  { %509 = vmatpush.bf16.msrb.mxu3 %v814_v49  ;;  %439 = vmatmul.bf16.vlgmr.msra.gmra.mxu1 %v1145_v56  ;;  %v856_v39 = vld [vmem:[%s1314_s1 + $0x14c] sm:$0xf]  ;;  %v731_v40 = vld [vmem:[%s1314_s1 + $0x158] sm:$0xf0]  ;;  %v730_v42 = vor.u32 %v858_v36, %v729_v34  ;;  %v606_v43 = vor.u32 %v824_v37, %v603_v38  ;;  %v585_v44 = vld [vmem:[%s1314_s1 + $0x28] sm:$0xf] }
  0x27   :  { %465 = vmatmul.bf16.vlgmr.msra.gmra.mxu3 %v1145_v56  ;;  %v822_v45 = vld [vmem:[%s1314_s1 + $0x34] sm:$0xf0]  ;;  %v713_v46 = vld [vmem:[%s1314_s1 + $0x128] sm:$0xf]  ;;  %v734_v47 = vor.u32 %v856_v39, %v731_v40  ;;  %v820_v49 = vld [vmem:[%s1314_s1 + $0x2c] sm:$0xf] }
  0x28   :  { %471 = vmatpush.bf16.msrb.mxu0 %v666_v57  ;;  %v854_v48 = vld [vmem:[%s1314_s1 + $0x134] sm:$0xf0]  ;;  %v587_v50 = vld [vmem:[%s1314_s1 + $0x38] sm:$0xf0]  ;;  %v852_v51 = vld [vmem:[%s1314_s1 + $0x12c] sm:$0xf]  ;;  %v586_v54 = vor.u32 %v822_v45, %v585_v44 }
  0x29   :  { %484 = vmatpush.bf16.msrb.mxu1 %v794_v58  ;;  %497 = vmatpush.bf16.msrb.mxu2 %v670_v59  ;;  %v715_v52 = vld [vmem:[%s1314_s1 + $0x138] sm:$0xf0]  ;;  %v714_v55 = vor.u32 %v854_v48, %v713_v46  ;;  %v590_v57 = vor.u32 %v820_v49, %v587_v50  ;;  %v569_v58 = vld [vmem:[%s1314_s1 + $0x8] sm:$0xf]  ;;  %v818_v59 = vld [vmem:[%s1314_s1 + $0x14] sm:$0xf0] }
  0x2a   :  { %510 = vmatpush.bf16.msrb.mxu3 %v798_v63  ;;  %v697_v60 = vld [vmem:[%s1314_s1 + $0x108] sm:$0xf]  ;;  %v718_v61 = vor.u32 %v852_v51, %v715_v52  ;;  %v850_v62 = vld [vmem:[%s1314_s1 + $0x114] sm:$0xf0]  ;;  %v816_v63 = vld [vmem:[%s1314_s1 + $0xc] sm:$0xf]  ;;  %v570_v3 = vor.u32 %v818_v59, %v569_v58 }
  0x2b   :  { %v571_v0 = vld [vmem:[%s1314_s1 + $0x18] sm:$0xf0]  ;;  %v848_v1 = vld [vmem:[%s1314_s1 + $0x10c] sm:$0xf]  ;;  %v698_v4 = vor.u32 %v850_v62, %v697_v60 }
  0x2c   :  { %472 = vmatpush.bf16.msrb.mxu0 %v650_v5  ;;  %v699_v2 = vld [vmem:[%s1314_s1 + $0x118] sm:$0xf0]  ;;  %v574_v5 = vor.u32 %v816_v63, %v571_v0 }
  0x2d   :  { %485 = vmatpush.bf16.msrb.mxu1 %v778_v6  ;;  %498 = vmatpush.bf16.msrb.mxu2 %v654_v7  ;;  %v702_v6 = vor.u32 %v848_v1, %v699_v2  ;;  %v537_v7 = vld [vmem:[%s1316_s2] sm:$0xf] }
  0x2e   :  { %511 = vmatpush.bf16.msrb.mxu3 %v782_v11  ;;  %v539_v11 = vperm.slane %v537_v7, 0  ;;  %v540_v16 = vperm.slane %v537_v7, 1 }
  0x30   :  { %473 = vmatpush.bf16.msrb.mxu0 %v634_v17 }
  0x31   :  { %486 = vmatpush.bf16.msrb.mxu1 %v762_v18  ;;  %499 = vmatpush.bf16.msrb.mxu2 %v638_v19 }
  0x32   :  { %512 = vmatpush.bf16.msrb.mxu3 %v766_v23  ;;  %v541_v23 = vperm.slane %v537_v7, 2 }
  0x34   :  { %474 = vmatpush.bf16.msrb.mxu0 %v618_v29  ;;  %v542_v29 = vperm.slane %v537_v7, 3 }
  0x35   :  { %487 = vmatpush.bf16.msrb.mxu1 %v746_v30  ;;  %500 = vmatpush.bf16.msrb.mxu2 %v622_v31 }
  0x36   :  { %513 = vmatpush.bf16.msrb.mxu3 %v750_v35 }
  0x38   :  { %475 = vmatpush.bf16.msrb.mxu0 %v602_v41 }
  0x39   :  { %488 = vmatpush.bf16.msrb.mxu1 %v730_v42  ;;  %501 = vmatpush.bf16.msrb.mxu2 %v606_v43 }
  0x3a   :  { %514 = vmatpush.bf16.msrb.mxu3 %v734_v47 }
  0x3c   :  { %476 = vmatpush.bf16.msrb.mxu0 %v586_v54 }
  0x3d   :  { %489 = vmatpush.bf16.msrb.mxu1 %v714_v55  ;;  %502 = vmatpush.bf16.msrb.mxu2 %v590_v57 }
  0x3e   :  { %515 = vmatpush.bf16.msrb.mxu3 %v718_v61 }
  0x40   :  { %477 = vmatpush.bf16.msrb.mxu0 %v570_v3 }
  0x41   :  { %490 = vmatpush.bf16.msrb.mxu1 %v698_v4  ;;  %503 = vmatpush.bf16.msrb.mxu2 %v574_v5 }
  0x42   :  { %516 = vmatpush.bf16.msrb.mxu3 %v702_v6 }
  0x43   :  { %478 = vmatmul.bf16.vlgmr.msrb.gmra.mxu0 %v1137_v53 }
  0x44   :  { %491 = vmatmul.bf16.vlgmr.msrb.gmra.mxu1 %v1145_v56  ;;  %504 = vmatmul.bf16.vlgmr.msrb.gmra.mxu2 %v1137_v53 }
  0x45   :  { %517 = vmatmul.bf16.vlgmr.msrb.gmra.mxu3 %v1145_v56 }
  0xa0   :  { %v427_v8 = vpop.f32.mrf.mxu0 }
  0xa3   :  { %v440_v9 = vpop.f32.mrf.mxu1 }
  0xa4   :  { %v441_v10 = vadd.f32 %v440_v9, %v427_v8 }
  0xa6   :  { %v547_v13 = vadd.f32 %v539_v11, %v441_v10 }
  0xa7   :  { %v453_v12 = vpop.f32.mrf.mxu2 }
  0xa8   :  { %551 = vst [vmem:[%s1317_s3] sm:$0xff] %v547_v13  ;;  %v429_v53 = vpop.f32.mrf.mxu0 }
  0xaa   :  { %v466_v14 = vpop.f32.mrf.mxu3 }
  0xab   :  { %v467_v15 = vadd.f32 %v466_v14, %v453_v12  ;;  %v442_v17 = vpop.f32.mrf.mxu1 }
  0xad   :  { %v548_v56 = vadd.f32 %v540_v16, %v467_v15 }
  0xaf   :  { %552 = vst [vmem:[%s1317_s3 + $0x8] sm:$0xff] %v548_v56  ;;  %v455_v18 = vpop.f32.mrf.mxu2 }
  0xb2   :  { %v468_v19 = vpop.f32.mrf.mxu3 }
  0xc0   :  { %v479_v20 = vpop.f32.mrf.mxu0 }
  0xc1   :  { %v492_v21 = vpop.f32.mrf.mxu1 }
  0xc2   :  { %v493_v22 = vadd.f32 %v492_v21, %v479_v20 }
  0xc4   :  { %v549_v24 = vadd.f32 %v541_v23, %v493_v22 }
  0xc6   :  { %553 = vst [vmem:[%s1317_s3 + $0x10] sm:$0xff] %v549_v24 }
  0xc7   :  { %v505_v25 = vpop.f32.mrf.mxu2 }
  0xc8   :  { %v518_v26 = vpop.f32.mrf.mxu3  ;;  %v481_v27 = vpop.f32.mrf.mxu0 }
  0xc9   :  { %v519_v28 = vadd.f32 %v518_v26, %v505_v25  ;;  %v494_v30 = vpop.f32.mrf.mxu1 }
  0xcb   :  { %v550_v31 = vadd.f32 %v542_v29, %v519_v28 }
  0xcd   :  { %554 = vst [vmem:[%s1317_s3 + $0x18] sm:$0xff] %v550_v31 }
  0xcf   :  { %v507_v32 = vpop.f32.mrf.mxu2 }
  0xd0   :  { %v520_v33 = vpop.f32.mrf.mxu3 }

// kernel: res18feature_forward.38
= control target key start
LH: loop header
LB: loop body
LE: loop exit
PB: predicated region body
PF: predicated region fallthrough
CT: control target
= control target key end

     0   :  { %s2261_s15 = smov 0   ;;  %s2263_s16 = smov 0   ;;  %s2661_s0 = inlined_call_operand.vmem [shape: bf16[8,4608], index: 0, kind: input, shape index: {}]   ;;  %s2662_s1 = inlined_call_operand.vmem [shape: bf16[4608,512], index: 1, kind: input, shape index: {}]   ;;  %s2663_s2 = inlined_call_operand.vmem [shape: f32[1,512], index: 2, kind: input, shape index: {}]   ;;  %s2664_s3 = inlined_call_operand.vmem [shape: f32[8,512], index: 3, kind: input, shape index: {}]   ;;  %s2665_s4 = inlined_call_operand.vmem [shape: f32[8,512], index: 4, kind: output, shape index: {}]  }
   0x1   :  { %s2265_s17 = smov 0  }
   0x2 LB: > { %s26_s18 = sadd.s32 1, %s2229_s16  ;;  %p1533_p0 = scmp.ge.s32.totalorder %s2233_s17, 1  ;;  %s2233_s17 = sphi %s2265_s17, %s14_s17   ;;  %s2229_s16 = sphi %s2263_s16, %s2667_s16   ;;  %s2225_s15 = sphi %s2261_s15, %s2666_s15  }
   0x3   : > { %p27_p1 = scmp.ge.s32.totalorder %s26_s18, 9  ;;  %p236_p2 = scmp.lt.s32.totalorder %s2233_s17, 10 }
   0x5   : > { %s2669_s18 = smov (%p27_p1, %s26_s18), 0  ;;  %p237_p3 = pnand %p1533_p0, %p236_p2 }
   0x6   : > { %s1534_s19 = sshll.u32 (!%p237_p3), %s2225_s15, 2  ;;  %s1536_s20 = sshll.u32 (!%p237_p3), %s2225_s15, 6 }
   0x7   : > { %240 = sbr.rel (%p237_p3) target bundleno = 312 (0x138), region = 36  ;;  %p296_p4 = scmp.lt.s32.totalorder (!%p237_p3), %s1534_s19, 35 }
   0x8   : > { %p305_p5 = scmp.lt.s32.totalorder (!%p237_p3), %s1536_s20, 575  ;;  %p1539_p6 = scmp.ne.s32.totalorder (!%p237_p3), %s2225_s15, 0 }
   0xc   : > { %s2671_s19 = smov (!%p296_p4, %s1534_s19), 35  ;;  %s2673_s20 = smov (!%p305_p5, %s1536_s20), 575 }
   0xd   : > { %s1535_s21 = sshll.u32 %s2671_s19, 2  ;;  %s2057_s25 = sshll.u32 %s2673_s20, 4 }
   0xe   : > { %s2286_s24 = scalar_lea.vmem %s2661_s0, %s1535_s21  ;;  %s2291_s28 = scalar_lea.vmem %s2662_s1, %s2057_s25 }
   0xf   : > { %343 = sbr.rel (%p1539_p6) target bundleno = 25 (0x19), region = 40 }
  0x14   : > { %v2235_v0 = vmov 0.0  }
  0x15   : > { %344 = vst [vmem:[%s2665_s4] sm:$0xff] %v2235_v0 }
  0x16   : > { %345 = vst [vmem:[%s2665_s4 + $0x8] sm:$0xff] %v2235_v0 }
  0x17   : > { %346 = vst [vmem:[%s2665_s4 + $0x10] sm:$0xff] %v2235_v0 }
  0x18   : > { %347 = vst [vmem:[%s2665_s4 + $0x18] sm:$0xff] %v2235_v0 }
  0x19 PF: > { %v1654_v1 = vld [vmem:[%s2291_s28 + $0xe0] sm:$0xf]  ;;  %v2088_v2 = vld [vmem:[%s2291_s28 + $0xec] sm:$0xf0]  ;;  %p2052_p7 = scmp.ne.s32.totalorder %s2225_s15, 8 }
  0x1a   : > { %v1782_v3 = vld [vmem:[%s2291_s28 + $0x1e0] sm:$0xf]  ;;  %v1655_v4 = vor.u32 %v2088_v2, %v1654_v1  ;;  %v2120_v5 = vld [vmem:[%s2291_s28 + $0x1ec] sm:$0xf0] }
  0x1b   : > { %v1910_v6 = vld [vmem:[%s2291_s28 + $0x2e0] sm:$0xf]  ;;  %v2152_v7 = vld [vmem:[%s2291_s28 + $0x2ec] sm:$0xf0]  ;;  %v1783_v8 = vor.u32 %v2120_v5, %v1782_v3 }
  0x1c   : > { %v1911_v9 = vor.u32 %v2152_v7, %v1910_v6  ;;  %v2038_v10 = vld [vmem:[%s2291_s28 + $0x3e0] sm:$0xf]  ;;  %v2184_v11 = vld [vmem:[%s2291_s28 + $0x3ec] sm:$0xf0]  ;;  %1136 = vmatpush.bf16.msra.mxu0 %v1655_v4 }
  0x1d   : > { %v1638_v12 = vld [vmem:[%s2291_s28 + $0xc0] sm:$0xf]  ;;  %v2039_v13 = vor.u32 %v2184_v11, %v2038_v10  ;;  %v2084_v14 = vld [vmem:[%s2291_s28 + $0xcc] sm:$0xf0]  ;;  %1149 = vmatpush.bf16.msra.mxu1 %v1783_v8 }
  0x1e   : > { %v1766_v15 = vld [vmem:[%s2291_s28 + $0x1c0] sm:$0xf]  ;;  %v2116_v16 = vld [vmem:[%s2291_s28 + $0x1cc] sm:$0xf0]  ;;  %1162 = vmatpush.bf16.msra.mxu2 %v1911_v9  ;;  %v1639_v17 = vor.u32 %v2084_v14, %v1638_v12 }
  0x1f   : > { %v1767_v18 = vor.u32 %v2116_v16, %v1766_v15  ;;  %v1894_v19 = vld [vmem:[%s2291_s28 + $0x2c0] sm:$0xf]  ;;  %v2148_v20 = vld [vmem:[%s2291_s28 + $0x2cc] sm:$0xf0]  ;;  %1175 = vmatpush.bf16.msra.mxu3 %v2039_v13 }
  0x20   : > { %v2022_v21 = vld [vmem:[%s2291_s28 + $0x3c0] sm:$0xf]  ;;  %v1895_v22 = vor.u32 %v2148_v20, %v1894_v19  ;;  %v2180_v23 = vld [vmem:[%s2291_s28 + $0x3cc] sm:$0xf0]  ;;  %1137 = vmatpush.bf16.msra.mxu0 %v1639_v17 }
  0x21   : > { %v1622_v24 = vld [vmem:[%s2291_s28 + $0xa0] sm:$0xf]  ;;  %v2080_v25 = vld [vmem:[%s2291_s28 + $0xac] sm:$0xf0]  ;;  %v2023_v26 = vor.u32 %v2180_v23, %v2022_v21  ;;  %1150 = vmatpush.bf16.msra.mxu1 %v1767_v18 }
  0x22   : > { %v1750_v27 = vld [vmem:[%s2291_s28 + $0x1a0] sm:$0xf]  ;;  %v2112_v28 = vld [vmem:[%s2291_s28 + $0x1ac] sm:$0xf0]  ;;  %v1623_v30 = vor.u32 %v2080_v25, %v1622_v24  ;;  %1163 = vmatpush.bf16.msra.mxu2 %v1895_v22 }
  0x23   : > { %v1878_v29 = vld [vmem:[%s2291_s28 + $0x2a0] sm:$0xf]  ;;  %v2144_v31 = vld [vmem:[%s2291_s28 + $0x2ac] sm:$0xf0]  ;;  %v1751_v34 = vor.u32 %v2112_v28, %v1750_v27  ;;  %1176 = vmatpush.bf16.msra.mxu3 %v2023_v26 }
  0x24   : > { %v2006_v32 = vld [vmem:[%s2291_s28 + $0x3a0] sm:$0xf]  ;;  %v2176_v33 = vld [vmem:[%s2291_s28 + $0x3ac] sm:$0xf0]  ;;  %v1879_v35 = vor.u32 %v2144_v31, %v1878_v29  ;;  %1138 = vmatpush.bf16.msra.mxu0 %v1623_v30  ;;  %v2086_v29 = vld [vmem:[%s2291_s28 + $0xe4] sm:$0xf] }
  0x25   : > { %v1606_v36 = vld [vmem:[%s2291_s28 + $0x80] sm:$0xf]  ;;  %v2076_v37 = vld [vmem:[%s2291_s28 + $0x8c] sm:$0xf0]  ;;  %v2007_v39 = vor.u32 %v2176_v33, %v2006_v32  ;;  %1151 = vmatpush.bf16.msra.mxu1 %v1751_v34  ;;  %v1656_v30 = vld [vmem:[%s2291_s28 + $0xf0] sm:$0xf0] }
  0x26   : > { %v1734_v38 = vld [vmem:[%s2291_s28 + $0x180] sm:$0xf]  ;;  %v2108_v40 = vld [vmem:[%s2291_s28 + $0x18c] sm:$0xf0]  ;;  %v1607_v45 = vor.u32 %v2076_v37, %v1606_v36  ;;  %1164 = vmatpush.bf16.msra.mxu2 %v1879_v35  ;;  %v2118_v31 = vld [vmem:[%s2291_s28 + $0x1e4] sm:$0xf] }
  0x27   : > { %v1862_v41 = vld [vmem:[%s2291_s28 + $0x280] sm:$0xf]  ;;  %v2140_v42 = vld [vmem:[%s2291_s28 + $0x28c] sm:$0xf0]  ;;  %v1735_v46 = vor.u32 %v2108_v40, %v1734_v38  ;;  %1177 = vmatpush.bf16.msra.mxu3 %v2007_v39  ;;  %v1784_v33 = vld [vmem:[%s2291_s28 + $0x1f0] sm:$0xf0] }
  0x28   : > { %v1990_v43 = vld [vmem:[%s2291_s28 + $0x380] sm:$0xf]  ;;  %v2172_v44 = vld [vmem:[%s2291_s28 + $0x38c] sm:$0xf0]  ;;  %v1863_v47 = vor.u32 %v2140_v42, %v1862_v41  ;;  %1139 = vmatpush.bf16.msra.mxu0 %v1607_v45  ;;  %v2150_v34 = vld [vmem:[%s2291_s28 + $0x2e4] sm:$0xf]  ;;  %v1659_v41 = vor.u32 %v2086_v29, %v1656_v30  ;;  %v1787_v42 = vor.u32 %v2118_v31, %v1784_v33 }
  0x29   : > { %v1590_v48 = vld [vmem:[%s2291_s28 + $0x60] sm:$0xf]  ;;  %v2072_v49 = vld [vmem:[%s2291_s28 + $0x6c] sm:$0xf0]  ;;  %v1991_v51 = vor.u32 %v2172_v44, %v1990_v43  ;;  %1152 = vmatpush.bf16.msra.mxu1 %v1735_v46  ;;  %v1912_v35 = vld [vmem:[%s2291_s28 + $0x2f0] sm:$0xf0] }
  0x2a   : > { %v1718_v50 = vld [vmem:[%s2291_s28 + $0x160] sm:$0xf]  ;;  %v2104_v52 = vld [vmem:[%s2291_s28 + $0x16c] sm:$0xf0]  ;;  %v1591_v57 = vor.u32 %v2072_v49, %v1590_v48  ;;  %1165 = vmatpush.bf16.msra.mxu2 %v1863_v47  ;;  %v2182_v38 = vld [vmem:[%s2291_s28 + $0x3e4] sm:$0xf]  ;;  %v1915_v43 = vor.u32 %v2150_v34, %v1912_v35 }
  0x2b   : > { %v1846_v53 = vld [vmem:[%s2291_s28 + $0x260] sm:$0xf]  ;;  %v2136_v54 = vld [vmem:[%s2291_s28 + $0x26c] sm:$0xf0]  ;;  %v1719_v58 = vor.u32 %v2104_v52, %v1718_v50  ;;  %1178 = vmatpush.bf16.msra.mxu3 %v1991_v51  ;;  %v2040_v39 = vld [vmem:[%s2291_s28 + $0x3f0] sm:$0xf0] }
  0x2c   : > { %v1974_v55 = vld [vmem:[%s2291_s28 + $0x360] sm:$0xf]  ;;  %v2168_v56 = vld [vmem:[%s2291_s28 + $0x36c] sm:$0xf0]  ;;  %v1847_v59 = vor.u32 %v2136_v54, %v1846_v53  ;;  %1140 = vmatpush.bf16.msra.mxu0 %v1591_v57  ;;  %v2082_v44 = vld [vmem:[%s2291_s28 + $0xc4] sm:$0xf]  ;;  %v2043_v47 = vor.u32 %v2182_v38, %v2040_v39 }
  0x2d   : > { %v1574_v60 = vld [vmem:[%s2291_s28 + $0x40] sm:$0xf]  ;;  %v2068_v61 = vld [vmem:[%s2291_s28 + $0x4c] sm:$0xf0]  ;;  %v1975_v63 = vor.u32 %v2168_v56, %v1974_v55  ;;  %1153 = vmatpush.bf16.msra.mxu1 %v1719_v58  ;;  %v1640_v45 = vld [vmem:[%s2291_s28 + $0xd0] sm:$0xf0] }
  0x2e   : > { %v1702_v62 = vld [vmem:[%s2291_s28 + $0x140] sm:$0xf]  ;;  %v2100_v0 = vld [vmem:[%s2291_s28 + $0x14c] sm:$0xf0]  ;;  %v1575_v5 = vor.u32 %v2068_v61, %v1574_v60  ;;  %1166 = vmatpush.bf16.msra.mxu2 %v1847_v59  ;;  %v2114_v46 = vld [vmem:[%s2291_s28 + $0x1c4] sm:$0xf]  ;;  %v1643_v53 = vor.u32 %v2082_v44, %v1640_v45 }
  0x2f   : > { %v1830_v1 = vld [vmem:[%s2291_s28 + $0x240] sm:$0xf]  ;;  %v2132_v2 = vld [vmem:[%s2291_s28 + $0x24c] sm:$0xf0]  ;;  %v1703_v6 = vor.u32 %v2100_v0, %v1702_v62  ;;  %1179 = vmatpush.bf16.msra.mxu3 %v1975_v63  ;;  %v1768_v48 = vld [vmem:[%s2291_s28 + $0x1d0] sm:$0xf0] }
  0x30   : > { %v1958_v3 = vld [vmem:[%s2291_s28 + $0x340] sm:$0xf]  ;;  %v2164_v4 = vld [vmem:[%s2291_s28 + $0x34c] sm:$0xf0]  ;;  %v1831_v7 = vor.u32 %v2132_v2, %v1830_v1  ;;  %1141 = vmatpush.bf16.msra.mxu0 %v1575_v5  ;;  %v2146_v49 = vld [vmem:[%s2291_s28 + $0x2c4] sm:$0xf]  ;;  %v1771_v54 = vor.u32 %v2114_v46, %v1768_v48 }
  0x31   : > { %v1558_v8 = vld [vmem:[%s2291_s28 + $0x20] sm:$0xf]  ;;  %v2064_v9 = vld [vmem:[%s2291_s28 + $0x2c] sm:$0xf0]  ;;  %v1959_v11 = vor.u32 %v2164_v4, %v1958_v3  ;;  %1154 = vmatpush.bf16.msra.mxu1 %v1703_v6  ;;  %v1896_v50 = vld [vmem:[%s2291_s28 + $0x2d0] sm:$0xf0] }
  0x32   : > { %v1686_v10 = vld [vmem:[%s2291_s28 + $0x120] sm:$0xf]  ;;  %v2096_v12 = vld [vmem:[%s2291_s28 + $0x12c] sm:$0xf0]  ;;  %v1559_v17 = vor.u32 %v2064_v9, %v1558_v8  ;;  %1167 = vmatpush.bf16.msra.mxu2 %v1831_v7  ;;  %v2178_v51 = vld [vmem:[%s2291_s28 + $0x3c4] sm:$0xf]  ;;  %v1899_v55 = vor.u32 %v2146_v49, %v1896_v50 }
  0x33   : > { %v1814_v13 = vld [vmem:[%s2291_s28 + $0x220] sm:$0xf]  ;;  %v2128_v14 = vld [vmem:[%s2291_s28 + $0x22c] sm:$0xf0]  ;;  %v1687_v20 = vor.u32 %v2096_v12, %v1686_v10  ;;  %1180 = vmatpush.bf16.msra.mxu3 %v1959_v11  ;;  %v2024_v52 = vld [vmem:[%s2291_s28 + $0x3d0] sm:$0xf0] }
  0x34   : > { %v1942_v15 = vld [vmem:[%s2291_s28 + $0x320] sm:$0xf]  ;;  %v2160_v16 = vld [vmem:[%s2291_s28 + $0x32c] sm:$0xf0]  ;;  %v1815_v21 = vor.u32 %v2128_v14, %v1814_v13  ;;  %1142 = vmatpush.bf16.msra.mxu0 %v1559_v17  ;;  %v2078_v56 = vld [vmem:[%s2291_s28 + $0xa4] sm:$0xf]  ;;  %v2027_v59 = vor.u32 %v2178_v51, %v2024_v52 }
  0x35   : > { %v1542_v18 = vld [vmem:[%s2291_s28] sm:$0xf]  ;;  %v2060_v19 = vld [vmem:[%s2291_s28 + $0xc] sm:$0xf0]  ;;  %v1943_v25 = vor.u32 %v2160_v16, %v1942_v15  ;;  %1155 = vmatpush.bf16.msra.mxu1 %v1687_v20  ;;  %v1624_v57 = vld [vmem:[%s2291_s28 + $0xb0] sm:$0xf0] }
  0x36   : > { %v1670_v22 = vld [vmem:[%s2291_s28 + $0x100] sm:$0xf]  ;;  %v2092_v23 = vld [vmem:[%s2291_s28 + $0x10c] sm:$0xf0]  ;;  %v1543_v32 = vor.u32 %v2060_v19, %v1542_v18  ;;  %1168 = vmatpush.bf16.msra.mxu2 %v1815_v21  ;;  %v2110_v58 = vld [vmem:[%s2291_s28 + $0x1a4] sm:$0xf]  ;;  %v1627_v1 = vor.u32 %v2078_v56, %v1624_v57 }
  0x37   : > { %v1798_v24 = vld [vmem:[%s2291_s28 + $0x200] sm:$0xf]  ;;  %v2124_v26 = vld [vmem:[%s2291_s28 + $0x20c] sm:$0xf0]  ;;  %v1671_v36 = vor.u32 %v2092_v23, %v1670_v22  ;;  %1181 = vmatpush.bf16.msra.mxu3 %v1943_v25  ;;  %v1752_v60 = vld [vmem:[%s2291_s28 + $0x1b0] sm:$0xf0] }
  0x38   : > { %v1926_v27 = vld [vmem:[%s2291_s28 + $0x300] sm:$0xf]  ;;  %v2156_v28 = vld [vmem:[%s2291_s28 + $0x30c] sm:$0xf0]  ;;  %v1799_v37 = vor.u32 %v2124_v26, %v1798_v24  ;;  %1143 = vmatpush.bf16.msra.mxu0 %v1543_v32  ;;  %v2142_v61 = vld [vmem:[%s2291_s28 + $0x2a4] sm:$0xf]  ;;  %v1755_v3 = vor.u32 %v2110_v58, %v1752_v60 }
  0x39   : > { %v1927_v40 = vor.u32 %v2156_v28, %v1926_v27  ;;  %1156 = vmatpush.bf16.msra.mxu1 %v1671_v36  ;;  %v1880_v62 = vld [vmem:[%s2291_s28 + $0x2b0] sm:$0xf0]  ;;  %v2174_v63 = vld [vmem:[%s2291_s28 + $0x3a4] sm:$0xf]  ;;  %v353_v2 = vld [vmem:[%s2286_s24 + $0x8] sm:$0xff] }
  0x3a   : > { %1169 = vmatpush.bf16.msra.mxu2 %v1799_v37  ;;  %v2008_v0 = vld [vmem:[%s2291_s28 + $0x3b0] sm:$0xf0]  ;;  %v1883_v4 = vor.u32 %v2142_v61, %v1880_v62  ;;  %v2074_v5 = vld [vmem:[%s2291_s28 + $0x84] sm:$0xf]  ;;  %v486_v8 = vunpack.c.l.b16 %v353_v2  ;;  %v487_v9 = vunpack.c.h.b16 %v353_v2 }
  0x3b   : > { %1182 = vmatpush.bf16.msra.mxu3 %v1927_v40  ;;  %v1608_v6 = vld [vmem:[%s2291_s28 + $0x90] sm:$0xf0]  ;;  %v2106_v7 = vld [vmem:[%s2291_s28 + $0x184] sm:$0xf]  ;;  %v2011_v10 = vor.u32 %v2174_v63, %v2008_v0 }
  0x3c   : > { %1188 = vmatpush.bf16.msrb.mxu0 %v1659_v41  ;;  %v1736_v11 = vld [vmem:[%s2291_s28 + $0x190] sm:$0xf0]  ;;  %v2138_v12 = vld [vmem:[%s2291_s28 + $0x284] sm:$0xf]  ;;  %v2403_v16 = vpack.c.b16 %v486_v8, %v486_v8  ;;  %v2405_v17 = vpack.c.b16 %v487_v9, %v487_v9  ;;  %v1611_v19 = vor.u32 %v2074_v5, %v1608_v6  ;;  %v2089_v8 = vld [vmem:[%s2291_s28 + $0xf4] sm:$0xf0] }
  0x3d   : > { %1201 = vmatpush.bf16.msrb.mxu1 %v1787_v42  ;;  %v1864_v13 = vld [vmem:[%s2291_s28 + $0x290] sm:$0xf0]  ;;  %v2170_v14 = vld [vmem:[%s2291_s28 + $0x384] sm:$0xf]  ;;  %v1739_v22 = vor.u32 %v2106_v7, %v1736_v11  ;;  %v1662_v7 = vld [vmem:[%s2291_s28 + $0xe8] sm:$0xf] }
  0x3e   : > { %1214 = vmatpush.bf16.msrb.mxu2 %v1915_v43  ;;  %v1992_v15 = vld [vmem:[%s2291_s28 + $0x390] sm:$0xf0]  ;;  %v352_v18 = vld [vmem:[%s2286_s24] sm:$0xff]  ;;  %v1867_v23 = vor.u32 %v2138_v12, %v1864_v13  ;;  %1183 = vmatmul.bf16.vlgmr.msra.gmra.mxu3 %v2405_v17  ;;  %v1790_v9 = vld [vmem:[%s2291_s28 + $0x1e8] sm:$0xf] }
  0x3f   : > { %1227 = vmatpush.bf16.msrb.mxu3 %v2043_v47  ;;  %v484_v20 = vunpack.c.l.b16 %v352_v18  ;;  %v485_v21 = vunpack.c.h.b16 %v352_v18  ;;  %v2070_v24 = vld [vmem:[%s2291_s28 + $0x64] sm:$0xf]  ;;  %v1592_v25 = vld [vmem:[%s2291_s28 + $0x70] sm:$0xf0]  ;;  %v1995_v27 = vor.u32 %v2170_v14, %v1992_v15  ;;  %1170 = vmatmul.bf16.vlgmr.msra.gmra.mxu2 %v2403_v16  ;;  %v2121_v11 = vld [vmem:[%s2291_s28 + $0x1f4] sm:$0xf0] }
  0x40   : > { %1189 = vmatpush.bf16.msrb.mxu0 %v1643_v53  ;;  %v2102_v26 = vld [vmem:[%s2291_s28 + $0x164] sm:$0xf]  ;;  %v1720_v28 = vld [vmem:[%s2291_s28 + $0x170] sm:$0xf0]  ;;  %v1595_v35 = vor.u32 %v2070_v24, %v1592_v25  ;;  %v1918_v12 = vld [vmem:[%s2291_s28 + $0x2e8] sm:$0xf] }
  0x41   : > { %1202 = vmatpush.bf16.msrb.mxu1 %v1771_v54  ;;  %v2134_v29 = vld [vmem:[%s2291_s28 + $0x264] sm:$0xf]  ;;  %v1848_v30 = vld [vmem:[%s2291_s28 + $0x270] sm:$0xf0]  ;;  %v2415_v31 = vpack.c.b16 %v484_v20, %v484_v20  ;;  %v2417_v32 = vpack.c.b16 %v485_v21, %v485_v21  ;;  %v1723_v36 = vor.u32 %v2102_v26, %v1720_v28  ;;  %v2153_v13 = vld [vmem:[%s2291_s28 + $0x2f4] sm:$0xf0]  ;;  %v1663_v21 = vor.u32 %v2089_v8, %v1662_v7 }
  0x42   : > { %1215 = vmatpush.bf16.msrb.mxu2 %v1899_v55  ;;  %v2166_v33 = vld [vmem:[%s2291_s28 + $0x364] sm:$0xf]  ;;  %v1976_v34 = vld [vmem:[%s2291_s28 + $0x370] sm:$0xf0]  ;;  %v1851_v37 = vor.u32 %v2134_v29, %v1848_v30  ;;  %v2046_v18 = vld [vmem:[%s2291_s28 + $0x3e8] sm:$0xf] }
  0x43   : > { %1228 = vmatpush.bf16.msrb.mxu3 %v2027_v59  ;;  %1157 = vmatmul.bf16.vlgmr.msra.gmra.mxu1 %v2417_v32  ;;  %v2066_v38 = vld [vmem:[%s2291_s28 + $0x44] sm:$0xf]  ;;  %v1576_v39 = vld [vmem:[%s2291_s28 + $0x50] sm:$0xf0]  ;;  %v1979_v41 = vor.u32 %v2166_v33, %v1976_v34  ;;  %v1646_v24 = vld [vmem:[%s2291_s28 + $0xc8] sm:$0xf] }
  0x44   : > { %1190 = vmatpush.bf16.msrb.mxu0 %v1627_v1  ;;  %v2098_v40 = vld [vmem:[%s2291_s28 + $0x144] sm:$0xf]  ;;  %v1704_v42 = vld [vmem:[%s2291_s28 + $0x150] sm:$0xf0]  ;;  %v1579_v47 = vor.u32 %v2066_v38, %v1576_v39  ;;  %v2085_v25 = vld [vmem:[%s2291_s28 + $0xd4] sm:$0xf0] }
  0x45   : > { %1203 = vmatpush.bf16.msrb.mxu1 %v1755_v3  ;;  %v2130_v43 = vld [vmem:[%s2291_s28 + $0x244] sm:$0xf]  ;;  %v1832_v44 = vld [vmem:[%s2291_s28 + $0x250] sm:$0xf0]  ;;  %1144 = vmatmul.bf16.vlgmr.msra.gmra.mxu0 %v2415_v31  ;;  %v1707_v48 = vor.u32 %v2098_v40, %v1704_v42  ;;  %v1774_v26 = vld [vmem:[%s2291_s28 + $0x1c8] sm:$0xf] }
  0x46   : > { %1216 = vmatpush.bf16.msrb.mxu2 %v1883_v4  ;;  %v2162_v45 = vld [vmem:[%s2291_s28 + $0x344] sm:$0xf]  ;;  %v1960_v46 = vld [vmem:[%s2291_s28 + $0x350] sm:$0xf0]  ;;  %v1835_v49 = vor.u32 %v2130_v43, %v1832_v44  ;;  %v2117_v28 = vld [vmem:[%s2291_s28 + $0x1d4] sm:$0xf0] }
  0x47   : > { %1229 = vmatpush.bf16.msrb.mxu3 %v2011_v10  ;;  %v2062_v50 = vld [vmem:[%s2291_s28 + $0x24] sm:$0xf]  ;;  %v1560_v51 = vld [vmem:[%s2291_s28 + $0x30] sm:$0xf0]  ;;  %v1963_v53 = vor.u32 %v2162_v45, %v1960_v46  ;;  %v1902_v29 = vld [vmem:[%s2291_s28 + $0x2c8] sm:$0xf] }
  0x48   : > { %1191 = vmatpush.bf16.msrb.mxu0 %v1611_v19  ;;  %v2094_v52 = vld [vmem:[%s2291_s28 + $0x124] sm:$0xf]  ;;  %v1688_v54 = vld [vmem:[%s2291_s28 + $0x130] sm:$0xf0]  ;;  %v1563_v59 = vor.u32 %v2062_v50, %v1560_v51  ;;  %v2185_v19 = vld [vmem:[%s2291_s28 + $0x3f4] sm:$0xf0] }
  0x49   : > { %1204 = vmatpush.bf16.msrb.mxu1 %v1739_v22  ;;  %v2126_v55 = vld [vmem:[%s2291_s28 + $0x224] sm:$0xf]  ;;  %v1816_v56 = vld [vmem:[%s2291_s28 + $0x230] sm:$0xf0]  ;;  %v1691_v62 = vor.u32 %v2094_v52, %v1688_v54  ;;  %v1791_v22 = vor.u32 %v2121_v11, %v1790_v9  ;;  %v2149_v30 = vld [vmem:[%s2291_s28 + $0x2d4] sm:$0xf0] }
  0x4a   : > { %1217 = vmatpush.bf16.msrb.mxu2 %v1867_v23  ;;  %v2158_v57 = vld [vmem:[%s2291_s28 + $0x324] sm:$0xf]  ;;  %v1944_v58 = vld [vmem:[%s2291_s28 + $0x330] sm:$0xf0]  ;;  %v1819_v63 = vor.u32 %v2126_v55, %v1816_v56  ;;  %v1919_v23 = vor.u32 %v2153_v13, %v1918_v12  ;;  %v2030_v33 = vld [vmem:[%s2291_s28 + $0x3c8] sm:$0xf] }
  0x4b   : > { %1230 = vmatpush.bf16.msrb.mxu3 %v1995_v27  ;;  %v2058_v60 = vld [vmem:[%s2291_s28 + $0x4] sm:$0xf]  ;;  %v1544_v61 = vld [vmem:[%s2291_s28 + $0x10] sm:$0xf0]  ;;  %v1947_v3 = vor.u32 %v2158_v57, %v1944_v58  ;;  %v2047_v27 = vor.u32 %v2185_v19, %v2046_v18  ;;  %v2181_v34 = vld [vmem:[%s2291_s28 + $0x3d4] sm:$0xf0] }
  0x4c   : > { %1192 = vmatpush.bf16.msrb.mxu0 %v1595_v35  ;;  %v2090_v0 = vld [vmem:[%s2291_s28 + $0x104] sm:$0xf]  ;;  %v1672_v1 = vld [vmem:[%s2291_s28 + $0x110] sm:$0xf0]  ;;  %v1547_v10 = vor.u32 %v2058_v60, %v1544_v61  ;;  %v1647_v35 = vor.u32 %v2085_v25, %v1646_v24  ;;  %v1630_v38 = vld [vmem:[%s2291_s28 + $0xa8] sm:$0xf] }
  0x4d   : > { %1205 = vmatpush.bf16.msrb.mxu1 %v1723_v36  ;;  %v2122_v2 = vld [vmem:[%s2291_s28 + $0x204] sm:$0xf]  ;;  %v1800_v4 = vld [vmem:[%s2291_s28 + $0x210] sm:$0xf0]  ;;  %v1675_v14 = vor.u32 %v2090_v0, %v1672_v1  ;;  %v1775_v36 = vor.u32 %v2117_v28, %v1774_v26  ;;  %v2081_v39 = vld [vmem:[%s2291_s28 + $0xb4] sm:$0xf0] }
  0x4e   : > { %1218 = vmatpush.bf16.msrb.mxu2 %v1851_v37  ;;  %v2154_v5 = vld [vmem:[%s2291_s28 + $0x304] sm:$0xf]  ;;  %v1928_v6 = vld [vmem:[%s2291_s28 + $0x310] sm:$0xf0]  ;;  %v1803_v15 = vor.u32 %v2122_v2, %v1800_v4  ;;  %v1903_v37 = vor.u32 %v2149_v30, %v1902_v29  ;;  %v1758_v40 = vld [vmem:[%s2291_s28 + $0x1a8] sm:$0xf] }
  0x4f   : > { %1231 = vmatpush.bf16.msrb.mxu3 %v1979_v41  ;;  %v1931_v20 = vor.u32 %v2154_v5, %v1928_v6  ;;  %v2031_v41 = vor.u32 %v2181_v34, %v2030_v33  ;;  %v2113_v42 = vld [vmem:[%s2291_s28 + $0x1b4] sm:$0xf0]  ;;  %v1886_v43 = vld [vmem:[%s2291_s28 + $0x2a8] sm:$0xf] }
  0x50   : > { %1193 = vmatpush.bf16.msrb.mxu0 %v1579_v47  ;;  %v2145_v44 = vld [vmem:[%s2291_s28 + $0x2b4] sm:$0xf0]  ;;  %v2014_v45 = vld [vmem:[%s2291_s28 + $0x3a8] sm:$0xf]  ;;  %v1631_v47 = vor.u32 %v2081_v39, %v1630_v38 }
  0x51   : > { %1206 = vmatpush.bf16.msrb.mxu1 %v1707_v48  ;;  %v2177_v46 = vld [vmem:[%s2291_s28 + $0x3b4] sm:$0xf0]  ;;  %v1759_v48 = vor.u32 %v2113_v42, %v1758_v40  ;;  %v1614_v50 = vld [vmem:[%s2291_s28 + $0x88] sm:$0xf] }
  0x52   : > { %1219 = vmatpush.bf16.msrb.mxu2 %v1835_v49  ;;  %v1887_v49 = vor.u32 %v2145_v44, %v1886_v43  ;;  %v2077_v51 = vld [vmem:[%s2291_s28 + $0x94] sm:$0xf0]  ;;  %v1742_v52 = vld [vmem:[%s2291_s28 + $0x188] sm:$0xf] }
  0x53   : > { %1232 = vmatpush.bf16.msrb.mxu3 %v1963_v53  ;;  %v2015_v53 = vor.u32 %v2177_v46, %v2014_v45  ;;  %v2109_v54 = vld [vmem:[%s2291_s28 + $0x194] sm:$0xf0]  ;;  %v1870_v55 = vld [vmem:[%s2291_s28 + $0x288] sm:$0xf] }
  0x54   : > { %1194 = vmatpush.bf16.msrb.mxu0 %v1563_v59  ;;  %v2141_v56 = vld [vmem:[%s2291_s28 + $0x294] sm:$0xf0]  ;;  %v1998_v57 = vld [vmem:[%s2291_s28 + $0x388] sm:$0xf]  ;;  %v1615_v59 = vor.u32 %v2077_v51, %v1614_v50  ;;  %v1743_v60 = vor.u32 %v2109_v54, %v1742_v52  ;;  %v1792_v51 = vld [vmem:[%s2291_s28 + $0x1f8] sm:$0xf0] }
  0x55   : > { %1207 = vmatpush.bf16.msrb.mxu1 %v1691_v62  ;;  %v2173_v58 = vld [vmem:[%s2291_s28 + $0x394] sm:$0xf0]  ;;  %v1871_v61 = vor.u32 %v2141_v56, %v1870_v55  ;;  %v1598_v62 = vld [vmem:[%s2291_s28 + $0x68] sm:$0xf]  ;;  %v2151_v52 = vld [vmem:[%s2291_s28 + $0x2ec] sm:$0xf] }
  0x56   : > { %1220 = vmatpush.bf16.msrb.mxu2 %v1819_v63  ;;  %v2073_v63 = vld [vmem:[%s2291_s28 + $0x74] sm:$0xf0]  ;;  %v1726_v0 = vld [vmem:[%s2291_s28 + $0x168] sm:$0xf]  ;;  %v1999_v1 = vor.u32 %v2173_v58, %v1998_v57  ;;  %v2183_v56 = vld [vmem:[%s2291_s28 + $0x3ec] sm:$0xf] }
  0x57   : > { %1233 = vmatpush.bf16.msrb.mxu3 %v1947_v3  ;;  %v2105_v2 = vld [vmem:[%s2291_s28 + $0x174] sm:$0xf0]  ;;  %v1854_v3 = vld [vmem:[%s2291_s28 + $0x268] sm:$0xf]  ;;  %v1599_v7 = vor.u32 %v2073_v63, %v1598_v62  ;;  %v2048_v57 = vld [vmem:[%s2291_s28 + $0x3f8] sm:$0xf0] }
  0x58   : > { %1195 = vmatpush.bf16.msrb.mxu0 %v1547_v10  ;;  %v2137_v4 = vld [vmem:[%s2291_s28 + $0x274] sm:$0xf0]  ;;  %v1982_v5 = vld [vmem:[%s2291_s28 + $0x368] sm:$0xf]  ;;  %v1727_v8 = vor.u32 %v2105_v2, %v1726_v0  ;;  %v2083_v62 = vld [vmem:[%s2291_s28 + $0xcc] sm:$0xf] }
  0x59   : > { %1208 = vmatpush.bf16.msrb.mxu1 %v1675_v14  ;;  %v2169_v6 = vld [vmem:[%s2291_s28 + $0x374] sm:$0xf0]  ;;  %v1855_v9 = vor.u32 %v2137_v4, %v1854_v3  ;;  %v1582_v10 = vld [vmem:[%s2291_s28 + $0x48] sm:$0xf]  ;;  %v1648_v63 = vld [vmem:[%s2291_s28 + $0xd8] sm:$0xf0] }
  0x5a   : > { %1221 = vmatpush.bf16.msrb.mxu2 %v1803_v15  ;;  %v2069_v11 = vld [vmem:[%s2291_s28 + $0x54] sm:$0xf0]  ;;  %v1710_v12 = vld [vmem:[%s2291_s28 + $0x148] sm:$0xf]  ;;  %v1983_v13 = vor.u32 %v2169_v6, %v1982_v5  ;;  %v2115_v0 = vld [vmem:[%s2291_s28 + $0x1cc] sm:$0xf] }
  0x5b   : > { %1234 = vmatpush.bf16.msrb.mxu3 %v1931_v20  ;;  %1196 = vmatmul.bf16.vlgmr.msrb.gmra.mxu0 %v2415_v31  ;;  %v2101_v14 = vld [vmem:[%s2291_s28 + $0x154] sm:$0xf0]  ;;  %v1838_v15 = vld [vmem:[%s2291_s28 + $0x248] sm:$0xf]  ;;  %v1776_v2 = vld [vmem:[%s2291_s28 + $0x1d8] sm:$0xf0] }
  0x5c   : > { %1240 = vmatpush.bf16.msra.mxu0 %v1663_v21  ;;  %1209 = vmatmul.bf16.vlgmr.msrb.gmra.mxu1 %v2417_v32  ;;  %v2133_v18 = vld [vmem:[%s2291_s28 + $0x254] sm:$0xf0]  ;;  %v1966_v19 = vld [vmem:[%s2291_s28 + $0x348] sm:$0xf]  ;;  %v1583_v21 = vor.u32 %v2069_v11, %v1582_v10  ;;  %v2147_v3 = vld [vmem:[%s2291_s28 + $0x2cc] sm:$0xf] }
  0x5d   : > { %1253 = vmatpush.bf16.msra.mxu1 %v1791_v22  ;;  %1222 = vmatmul.bf16.vlgmr.msrb.gmra.mxu2 %v2403_v16  ;;  %v2165_v20 = vld [vmem:[%s2291_s28 + $0x354] sm:$0xf0]  ;;  %v1711_v22 = vor.u32 %v2101_v14, %v1710_v12  ;;  %v1566_v24 = vld [vmem:[%s2291_s28 + $0x28] sm:$0xf]  ;;  %v1904_v4 = vld [vmem:[%s2291_s28 + $0x2d8] sm:$0xf0] }
  0x5e   : > { %1266 = vmatpush.bf16.msra.mxu2 %v1919_v23  ;;  %1235 = vmatmul.bf16.vlgmr.msrb.gmra.mxu3 %v2405_v17  ;;  %v1839_v23 = vor.u32 %v2133_v18, %v1838_v15  ;;  %v2065_v25 = vld [vmem:[%s2291_s28 + $0x34] sm:$0xf0]  ;;  %v1694_v26 = vld [vmem:[%s2291_s28 + $0x128] sm:$0xf]  ;;  %v2179_v5 = vld [vmem:[%s2291_s28 + $0x3cc] sm:$0xf] }
  0x5f   : > { %1279 = vmatpush.bf16.msra.mxu3 %v2047_v27  ;;  %v1967_v27 = vor.u32 %v2165_v20, %v1966_v19  ;;  %v2097_v28 = vld [vmem:[%s2291_s28 + $0x134] sm:$0xf0]  ;;  %v1822_v29 = vld [vmem:[%s2291_s28 + $0x228] sm:$0xf]  ;;  %v2032_v6 = vld [vmem:[%s2291_s28 + $0x3d8] sm:$0xf0] }
  0x60   : > { %1241 = vmatpush.bf16.msra.mxu0 %v1647_v35  ;;  %v2129_v30 = vld [vmem:[%s2291_s28 + $0x234] sm:$0xf0]  ;;  %v1950_v33 = vld [vmem:[%s2291_s28 + $0x328] sm:$0xf]  ;;  %v1567_v35 = vor.u32 %v2065_v25, %v1566_v24  ;;  %v1695_v38 = vor.u32 %v2097_v28, %v1694_v26  ;;  %v2079_v10 = vld [vmem:[%s2291_s28 + $0xac] sm:$0xf] }
  0x61   : > { %1254 = vmatpush.bf16.msra.mxu1 %v1775_v36  ;;  %v2161_v34 = vld [vmem:[%s2291_s28 + $0x334] sm:$0xf0]  ;;  %v1550_v36 = vld [vmem:[%s2291_s28 + $0x8] sm:$0xf]  ;;  %v1823_v39 = vor.u32 %v2129_v30, %v1822_v29  ;;  %v1632_v11 = vld [vmem:[%s2291_s28 + $0xb8] sm:$0xf0] }
  0x62   : > { %1267 = vmatpush.bf16.msra.mxu2 %v1903_v37  ;;  %v2061_v37 = vld [vmem:[%s2291_s28 + $0x14] sm:$0xf0]  ;;  %v1678_v40 = vld [vmem:[%s2291_s28 + $0x108] sm:$0xf]  ;;  %v1951_v43 = vor.u32 %v2161_v34, %v1950_v33  ;;  %v2111_v12 = vld [vmem:[%s2291_s28 + $0x1ac] sm:$0xf] }
  0x63   : > { %1280 = vmatpush.bf16.msra.mxu3 %v2031_v41  ;;  %v2093_v41 = vld [vmem:[%s2291_s28 + $0x114] sm:$0xf0]  ;;  %v1806_v42 = vld [vmem:[%s2291_s28 + $0x208] sm:$0xf]  ;;  %v1551_v50 = vor.u32 %v2061_v37, %v1550_v36  ;;  %v1760_v14 = vld [vmem:[%s2291_s28 + $0x1b8] sm:$0xf0] }
  0x64   : > { %1242 = vmatpush.bf16.msra.mxu0 %v1631_v47  ;;  %v2125_v44 = vld [vmem:[%s2291_s28 + $0x214] sm:$0xf0]  ;;  %v1934_v45 = vld [vmem:[%s2291_s28 + $0x308] sm:$0xf]  ;;  %v2087_v47 = vld [vmem:[%s2291_s28 + $0xec] sm:$0xf]  ;;  %v1679_v54 = vor.u32 %v2093_v41, %v1678_v40 }
  0x65   : > { %1255 = vmatpush.bf16.msra.mxu1 %v1759_v48  ;;  %v2157_v46 = vld [vmem:[%s2291_s28 + $0x314] sm:$0xf0]  ;;  %v1664_v48 = vld [vmem:[%s2291_s28 + $0xf8] sm:$0xf0]  ;;  %v1807_v55 = vor.u32 %v2125_v44, %v1806_v42  ;;  %v2143_v15 = vld [vmem:[%s2291_s28 + $0x2ac] sm:$0xf] }
  0x66   : > { %1268 = vmatpush.bf16.msra.mxu2 %v1887_v49  ;;  %v2119_v49 = vld [vmem:[%s2291_s28 + $0x1ec] sm:$0xf]  ;;  %v1935_v58 = vor.u32 %v2157_v46, %v1934_v45  ;;  %v1888_v18 = vld [vmem:[%s2291_s28 + $0x2b8] sm:$0xf0] }
  0x67   : > { %1281 = vmatpush.bf16.msra.mxu3 %v2015_v53  ;;  %v1920_v53 = vld [vmem:[%s2291_s28 + $0x2f8] sm:$0xf0]  ;;  %v2175_v19 = vld [vmem:[%s2291_s28 + $0x3ac] sm:$0xf] }
  0x68   : > { %1243 = vmatpush.bf16.msra.mxu0 %v1615_v59  ;;  %v1667_v59 = vor.u32 %v2087_v47, %v1664_v48  ;;  %v2016_v20 = vld [vmem:[%s2291_s28 + $0x3b8] sm:$0xf0]  ;;  %v2075_v24 = vld [vmem:[%s2291_s28 + $0x8c] sm:$0xf] }
  0x69   : > { %1256 = vmatpush.bf16.msra.mxu1 %v1743_v60  ;;  %v1795_v60 = vor.u32 %v2119_v49, %v1792_v51  ;;  %v1616_v25 = vld [vmem:[%s2291_s28 + $0x98] sm:$0xf0]  ;;  %v2107_v26 = vld [vmem:[%s2291_s28 + $0x18c] sm:$0xf] }
  0x6a   : > { %1269 = vmatpush.bf16.msra.mxu2 %v1871_v61  ;;  %v1923_v61 = vor.u32 %v2151_v52, %v1920_v53  ;;  %v1744_v28 = vld [vmem:[%s2291_s28 + $0x198] sm:$0xf0]  ;;  %v2139_v29 = vld [vmem:[%s2291_s28 + $0x28c] sm:$0xf] }
  0x6b   : > { %1282 = vmatpush.bf16.msra.mxu3 %v1999_v1  ;;  %v2051_v1 = vor.u32 %v2183_v56, %v2048_v57  ;;  %v1872_v30 = vld [vmem:[%s2291_s28 + $0x298] sm:$0xf0]  ;;  %v2171_v33 = vld [vmem:[%s2291_s28 + $0x38c] sm:$0xf]  ;;  %v1747_v36 = vor.u32 %v2107_v26, %v1744_v28 }
  0x6c   : > { %1244 = vmatpush.bf16.msra.mxu0 %v1599_v7  ;;  %v1651_v7 = vor.u32 %v2083_v62, %v1648_v63  ;;  %v2000_v34 = vld [vmem:[%s2291_s28 + $0x398] sm:$0xf0]  ;;  %v1875_v37 = vor.u32 %v2139_v29, %v1872_v30  ;;  %v2103_v40 = vld [vmem:[%s2291_s28 + $0x16c] sm:$0xf] }
  0x6d   : > { %1257 = vmatpush.bf16.msra.mxu1 %v1727_v8  ;;  %v1779_v8 = vor.u32 %v2115_v0, %v1776_v2  ;;  %v2003_v41 = vor.u32 %v2171_v33, %v2000_v34  ;;  %v1728_v42 = vld [vmem:[%s2291_s28 + $0x178] sm:$0xf0]  ;;  %v2167_v45 = vld [vmem:[%s2291_s28 + $0x36c] sm:$0xf]  ;;  %v348_v33 = vld [vmem:[%s2665_s4] sm:$0xff] }
  0x6e   : > { %1270 = vmatpush.bf16.msra.mxu2 %v1855_v9  ;;  %v1907_v9 = vor.u32 %v2147_v3, %v1904_v4  ;;  %v1856_v44 = vld [vmem:[%s2291_s28 + $0x278] sm:$0xf0]  ;;  %v1731_v48 = vor.u32 %v2103_v40, %v1728_v42  ;;  %v2099_v52 = vld [vmem:[%s2291_s28 + $0x14c] sm:$0xf] }
  0x6f   : > { %1283 = vmatpush.bf16.msra.mxu3 %v1983_v13  ;;  %v2035_v13 = vor.u32 %v2179_v5, %v2032_v6  ;;  %v1984_v46 = vld [vmem:[%s2291_s28 + $0x378] sm:$0xf0]  ;;  %v2163_v57 = vld [vmem:[%s2291_s28 + $0x34c] sm:$0xf] }
  0x70   : > { %1245 = vmatpush.bf16.msra.mxu0 %v1583_v21  ;;  %v1635_v21 = vor.u32 %v2079_v10, %v1632_v11  ;;  %v1584_v51 = vld [vmem:[%s2291_s28 + $0x58] sm:$0xf0]  ;;  %v1987_v53 = vor.u32 %v2167_v45, %v1984_v46  ;;  %v2063_v62 = vld [vmem:[%s2291_s28 + $0x2c] sm:$0xf] }
  0x71   : > { %1258 = vmatpush.bf16.msra.mxu1 %v1711_v22  ;;  %v1763_v22 = vor.u32 %v2111_v12, %v1760_v14  ;;  %v1840_v56 = vld [vmem:[%s2291_s28 + $0x258] sm:$0xf0]  ;;  %v2095_v0 = vld [vmem:[%s2291_s28 + $0x12c] sm:$0xf] }
  0x72   : > { %1271 = vmatpush.bf16.msra.mxu2 %v1839_v23  ;;  %v1891_v23 = vor.u32 %v2143_v15, %v1888_v18  ;;  %v1568_v63 = vld [vmem:[%s2291_s28 + $0x38] sm:$0xf0]  ;;  %v2127_v3 = vld [vmem:[%s2291_s28 + $0x22c] sm:$0xf] }
  0x73   : > { %1284 = vmatpush.bf16.msra.mxu3 %v1967_v27  ;;  %v2019_v27 = vor.u32 %v2175_v19, %v2016_v20  ;;  %v1696_v2 = vld [vmem:[%s2291_s28 + $0x138] sm:$0xf0]  ;;  %v2159_v5 = vld [vmem:[%s2291_s28 + $0x32c] sm:$0xf] }
  0x74   : > { %1246 = vmatpush.bf16.msra.mxu0 %v1567_v35  ;;  %v1619_v35 = vor.u32 %v2075_v24, %v1616_v25  ;;  %v1824_v4 = vld [vmem:[%s2291_s28 + $0x238] sm:$0xf0]  ;;  %v2059_v10 = vld [vmem:[%s2291_s28 + $0xc] sm:$0xf] }
  0x75   : > { %1259 = vmatpush.bf16.msra.mxu1 %v1695_v38  ;;  %v2071_v38 = vld [vmem:[%s2291_s28 + $0x6c] sm:$0xf]  ;;  %v1952_v6 = vld [vmem:[%s2291_s28 + $0x338] sm:$0xf0] }
  0x76   : > { %1272 = vmatpush.bf16.msra.mxu2 %v1823_v39  ;;  %v1600_v39 = vld [vmem:[%s2291_s28 + $0x78] sm:$0xf0]  ;;  %v2091_v12 = vld [vmem:[%s2291_s28 + $0x10c] sm:$0xf] }
  0x77   : > { %1285 = vmatpush.bf16.msra.mxu3 %v1951_v43  ;;  %v2135_v43 = vld [vmem:[%s2291_s28 + $0x26c] sm:$0xf]  ;;  %v1603_v47 = vor.u32 %v2071_v38, %v1600_v39  ;;  %v1552_v11 = vld [vmem:[%s2291_s28 + $0x18] sm:$0xf0] }
  0x78   : > { %1247 = vmatpush.bf16.msra.mxu0 %v1551_v50  ;;  %v1859_v49 = vor.u32 %v2135_v43, %v1856_v44  ;;  %v2067_v50 = vld [vmem:[%s2291_s28 + $0x4c] sm:$0xf]  ;;  %v1680_v14 = vld [vmem:[%s2291_s28 + $0x118] sm:$0xf0] }
  0x79   : > { %1260 = vmatpush.bf16.msra.mxu1 %v1679_v54  ;;  %v1712_v54 = vld [vmem:[%s2291_s28 + $0x158] sm:$0xf0]  ;;  %v2123_v15 = vld [vmem:[%s2291_s28 + $0x20c] sm:$0xf] }
  0x7a   : > { %1273 = vmatpush.bf16.msra.mxu2 %v1807_v55  ;;  %v2131_v55 = vld [vmem:[%s2291_s28 + $0x24c] sm:$0xf]  ;;  %v1808_v18 = vld [vmem:[%s2291_s28 + $0x218] sm:$0xf0] }
  0x7b   : > { %1286 = vmatpush.bf16.msra.mxu3 %v1935_v58  ;;  %1248 = vmatmul.bf16.vlgmr.msra.gmra.mxu0 %v2415_v31  ;;  %v1968_v58 = vld [vmem:[%s2291_s28 + $0x358] sm:$0xf0]  ;;  %v2155_v19 = vld [vmem:[%s2291_s28 + $0x30c] sm:$0xf] }
  0x7c   : > { %1292 = vmatpush.bf16.msrb.mxu0 %v1667_v59  ;;  %1261 = vmatmul.bf16.vlgmr.msra.gmra.mxu1 %v2417_v32  ;;  %v1587_v59 = vor.u32 %v2067_v50, %v1584_v51  ;;  %v1936_v20 = vld [vmem:[%s2291_s28 + $0x318] sm:$0xf0]  ;;  %v349_v42 = vld [vmem:[%s2665_s4 + $0x8] sm:$0xff] }
  0x7d   : > { %1305 = vmatpush.bf16.msrb.mxu1 %v1795_v60  ;;  %1274 = vmatmul.bf16.vlgmr.msra.gmra.mxu2 %v2403_v16  ;;  %v1715_v60 = vor.u32 %v2099_v52, %v1712_v54  ;;  %v1939_v24 = vor.u32 %v2155_v19, %v1936_v20 }
  0x7e   : > { %1318 = vmatpush.bf16.msrb.mxu2 %v1923_v61  ;;  %1287 = vmatmul.bf16.vlgmr.msra.gmra.mxu3 %v2405_v17  ;;  %v1843_v61 = vor.u32 %v2131_v55, %v1840_v56  ;;  %v350_v55 = vld [vmem:[%s2665_s4 + $0x10] sm:$0xff] }
  0x7f   : > { %1331 = vmatpush.bf16.msrb.mxu3 %v2051_v1  ;;  %v1971_v1 = vor.u32 %v2163_v57, %v1968_v58 }
  0x80   : > { %1293 = vmatpush.bf16.msrb.mxu0 %v1651_v7  ;;  %v1571_v7 = vor.u32 %v2063_v62, %v1568_v63 }
  0x81   : > { %1306 = vmatpush.bf16.msrb.mxu1 %v1779_v8  ;;  %v1699_v8 = vor.u32 %v2095_v0, %v1696_v2 }
  0x82   : > { %1319 = vmatpush.bf16.msrb.mxu2 %v1907_v9  ;;  %v1827_v9 = vor.u32 %v2127_v3, %v1824_v4 }
  0x83   : > { %1332 = vmatpush.bf16.msrb.mxu3 %v2035_v13  ;;  %v1955_v13 = vor.u32 %v2159_v5, %v1952_v6  ;;  %v351_v5 = vld [vmem:[%s2665_s4 + $0x18] sm:$0xff] }
  0x84   : > { %1294 = vmatpush.bf16.msrb.mxu0 %v1635_v21  ;;  %v1555_v21 = vor.u32 %v2059_v10, %v1552_v11 }
  0x85   : > { %1307 = vmatpush.bf16.msrb.mxu1 %v1763_v22  ;;  %v1683_v22 = vor.u32 %v2091_v12, %v1680_v14 }
  0x86   : > { %1320 = vmatpush.bf16.msrb.mxu2 %v1891_v23  ;;  %v1811_v23 = vor.u32 %v2123_v15, %v1808_v18 }
  0x87   : > { %1333 = vmatpush.bf16.msrb.mxu3 %v2019_v27 }
  0x88   : > { %1295 = vmatpush.bf16.msrb.mxu0 %v1619_v35 }
  0x89   : > { %1308 = vmatpush.bf16.msrb.mxu1 %v1747_v36 }
  0x8a   : > { %1321 = vmatpush.bf16.msrb.mxu2 %v1875_v37 }
  0x8b   : > { %1334 = vmatpush.bf16.msrb.mxu3 %v2003_v41 }
  0x8c   : > { %1296 = vmatpush.bf16.msrb.mxu0 %v1603_v47 }
  0x8d   : > { %1309 = vmatpush.bf16.msrb.mxu1 %v1731_v48 }
  0x8e   : > { %1322 = vmatpush.bf16.msrb.mxu2 %v1859_v49 }
  0x8f   : > { %1335 = vmatpush.bf16.msrb.mxu3 %v1987_v53 }
  0x90   : > { %1297 = vmatpush.bf16.msrb.mxu0 %v1587_v59 }
  0x91   : > { %1310 = vmatpush.bf16.msrb.mxu1 %v1715_v60 }
  0x92   : > { %1323 = vmatpush.bf16.msrb.mxu2 %v1843_v61 }
  0x93   : > { %1336 = vmatpush.bf16.msrb.mxu3 %v1971_v1 }
  0x94   : > { %1298 = vmatpush.bf16.msrb.mxu0 %v1571_v7 }
  0x95   : > { %1311 = vmatpush.bf16.msrb.mxu1 %v1699_v8 }
  0x96   : > { %1324 = vmatpush.bf16.msrb.mxu2 %v1827_v9 }
  0x97   : > { %1337 = vmatpush.bf16.msrb.mxu3 %v1955_v13 }
  0x98   : > { %1299 = vmatpush.bf16.msrb.mxu0 %v1555_v21 }
  0x99   : > { %1312 = vmatpush.bf16.msrb.mxu1 %v1683_v22 }
  0x9a   : > { %1325 = vmatpush.bf16.msrb.mxu2 %v1811_v23 }
  0x9b   : > { %1338 = vmatpush.bf16.msrb.mxu3 %v1939_v24  ;;  %1300 = vmatmul.bf16.vlgmr.msrb.gmra.mxu0 %v2415_v31 }
  0x9c   : > { %1313 = vmatmul.bf16.vlgmr.msrb.gmra.mxu1 %v2417_v32 }
  0x9d   : > { %1326 = vmatmul.bf16.vlgmr.msrb.gmra.mxu2 %v2403_v16 }
  0x9e   : > { %1339 = vmatmul.bf16.vlgmr.msrb.gmra.mxu3 %v2405_v17 }
  0xc0   : > { %v1158_v25 = vpop.f32.mrf.mxu1 }
  0xc1   : > { %v1184_v30 = vpop.f32.mrf.mxu3 }
  0xc2   : > { %v1145_v26 = vpop.f32.mrf.mxu0  ;;  %v1171_v28 = vpop.f32.mrf.mxu2 }
  0xc3   : > { %v1159_v27 = vadd.f32 %v1158_v25, %v1145_v26 }
  0xc5   : > { %v1172_v29 = vadd.f32 %v1171_v28, %v1159_v27 }
  0xc7   : > { %v1185_v34 = vadd.f32 %v1184_v30, %v1172_v29 }
  0xc8   : > { %v1160_v35 = vpop.f32.mrf.mxu1 }
  0xc9   : > { %v1344_v36 = vadd.f32 %v1185_v34, %v348_v33  ;;  %v1186_v17 = vpop.f32.mrf.mxu3 }
  0xca   : > { %v1147_v31 = vpop.f32.mrf.mxu0  ;;  %v1173_v16 = vpop.f32.mrf.mxu2 }
  0xcb   : > { %1348 = vst [vmem:[%s2665_s4] sm:$0xff] %v1344_v36 }
  0xd8   : > { %v1197_v32 = vpop.f32.mrf.mxu0 }
  0xd9   : > { %v1210_v37 = vpop.f32.mrf.mxu1 }
  0xda   : > { %v1211_v38 = vadd.f32 %v1210_v37, %v1197_v32 }
  0xe0   : > { %v1223_v39 = vpop.f32.mrf.mxu2  ;;  %v1199_v44 = vpop.f32.mrf.mxu0 }
  0xe1   : > { %v1224_v40 = vadd.f32 %v1223_v39, %v1211_v38  ;;  %v1236_v41 = vpop.f32.mrf.mxu3  ;;  %v1212_v45 = vpop.f32.mrf.mxu1 }
  0xe3   : > { %v1237_v43 = vadd.f32 %v1236_v41, %v1224_v40 }
  0xe5   : > { %v1345_v46 = vadd.f32 %v1237_v43, %v349_v42 }
  0xe7   : > { %1349 = vst [vmem:[%s2665_s4 + $0x8] sm:$0xff] %v1345_v46 }
  0xe8   : > { %v1225_v47 = vpop.f32.mrf.mxu2 }
  0xe9   : > { %v1238_v48 = vpop.f32.mrf.mxu3 }
  0xf8   : > { %v1249_v49 = vpop.f32.mrf.mxu0 }
  0xf9   : > { %v1262_v50 = vpop.f32.mrf.mxu1 }
  0xfa   : > { %v1263_v51 = vadd.f32 %v1262_v50, %v1249_v49 }
 0x100   : > { %v1275_v52 = vpop.f32.mrf.mxu2  ;;  %v1251_v57 = vpop.f32.mrf.mxu0 }
 0x101   : > { %v1276_v53 = vadd.f32 %v1275_v52, %v1263_v51  ;;  %v1288_v54 = vpop.f32.mrf.mxu3  ;;  %v1264_v58 = vpop.f32.mrf.mxu1 }
 0x103   : > { %v1289_v56 = vadd.f32 %v1288_v54, %v1276_v53 }
 0x105   : > { %v1346_v59 = vadd.f32 %v1289_v56, %v350_v55 }
 0x107   : > { %1350 = vst [vmem:[%s2665_s4 + $0x10] sm:$0xff] %v1346_v59 }
 0x108   : > { %v1277_v60 = vpop.f32.mrf.mxu2 }
 0x109   : > { %v1290_v61 = vpop.f32.mrf.mxu3 }
 0x118   : > { %v1301_v62 = vpop.f32.mrf.mxu0 }
 0x119   : > { %v1314_v63 = vpop.f32.mrf.mxu1 }
 0x11a   : > { %v1315_v0 = vadd.f32 %v1314_v63, %v1301_v62 }
 0x120   : > { %v1327_v1 = vpop.f32.mrf.mxu2  ;;  %v1303_v4 = vpop.f32.mrf.mxu0 }
 0x121   : > { %v1328_v2 = vadd.f32 %v1327_v1, %v1315_v0  ;;  %v1340_v3 = vpop.f32.mrf.mxu3  ;;  %v1316_v6 = vpop.f32.mrf.mxu1 }
 0x123   : > { %v1341_v7 = vadd.f32 %v1340_v3, %v1328_v2 }
 0x125   : > { %v1347_v8 = vadd.f32 %v1341_v7, %v351_v5  ;;  %1355 = sbr.rel (%p2052_p7) target bundleno = 312 (0x138), region = 44 }
 0x127   : > { %1351 = vst [vmem:[%s2665_s4 + $0x18] sm:$0xff] %v1347_v8 }
 0x128   : > { %v1329_v9 = vpop.f32.mrf.mxu2 }
 0x129   : > { %v1342_v10 = vpop.f32.mrf.mxu3 }
 0x12a   : > { %v1356_v11 = vld [vmem:[%s2665_s4] sm:$0xff]  ;;  %v1357_v15 = vld [vmem:[%s2665_s4 + $0x8] sm:$0xff]  ;;  %v1358_v19 = vld [vmem:[%s2665_s4 + $0x10] sm:$0xff] }
 0x12b   : > { %v1360_v12 = vld [vmem:[%s2663_s2] sm:$0xf]  ;;  %v1375_v21 = vld [vmem:[%s2664_s3 + $0x8] sm:$0xff]  ;;  %v1376_v22 = vld [vmem:[%s2664_s3 + $0x10] sm:$0xff] }
 0x12c   : > { %v1362_v13 = vperm.slane %v1360_v12, 0  ;;  %v1374_v14 = vld [vmem:[%s2664_s3] sm:$0xff]  ;;  %v1363_v18 = vperm.slane %v1360_v12, 1  ;;  %v1364_v20 = vperm.slane %v1360_v12, 2  ;;  %v1365_v24 = vperm.slane %v1360_v12, 3  ;;  %v1377_v28 = vld [vmem:[%s2664_s3 + $0x18] sm:$0xff] }
 0x12e   : > { %v1359_v23 = vld [vmem:[%s2665_s4 + $0x18] sm:$0xff]  ;;  %v1370_v25 = vadd.f32 %v1362_v13, %v1356_v11  ;;  %v1371_v26 = vadd.f32 %v1363_v18, %v1357_v15  ;;  %v1372_v27 = vadd.f32 %v1364_v20, %v1358_v19 }
 0x12f   : > { %v1373_v29 = vadd.f32 %v1365_v24, %v1359_v23 }
 0x130   : > { %v1378_v30 = vadd.f32 %v1374_v14, %v1370_v25  ;;  %v1379_v33 = vadd.f32 %v1375_v21, %v1371_v26  ;;  %v1380_v34 = vadd.f32 %v1376_v22, %v1372_v27 }
 0x131   : > { %v1381_v35 = vadd.f32 %v1377_v28, %v1373_v29 }
 0x132   : > { %v1382_v36 = vmax.f32 %v1378_v30, 0.0  ;;  %v1383_v31 = vmax.f32 %v1379_v33, 0.0  ;;  %v1384_v16 = vmax.f32 %v1380_v34, 0.0 }
 0x133   : > { %v1385_v17 = vmax.f32 %v1381_v35, 0.0 }
 0x134   : > { %1386 = vst [vmem:[%s2665_s4] sm:$0xff] %v1382_v36 }
 0x135   : > { %1387 = vst [vmem:[%s2665_s4 + $0x8] sm:$0xff] %v1383_v31 }
 0x136   : > { %1388 = vst [vmem:[%s2665_s4 + $0x10] sm:$0xff] %v1384_v16 }
 0x137   : > { %1389 = vst [vmem:[%s2665_s4 + $0x18] sm:$0xff] %v1385_v17 }
 0x138 PF: > { %s14_s17 = sadd.s32 1, %s2233_s17   ;;  %s2666_s15 = smov %s2229_s16 }
 0x139   : > { %p11_p8 = scmp.ge.s32.totalorder %s14_s17, 11   ;;  %s2667_s16 = smov %s2669_s18 }
 0x13b   :  { %13 = sbr.rel (!%p11_p8) target bundleno = 2 (0x2), region = 83 }

// kernel: res18feature_forward.39
= control target key start
LH: loop header
LB: loop body
LE: loop exit
PB: predicated region body
PF: predicated region fallthrough
CT: control target
= control target key end

     0   :  { %s2163_s12 = smov 0   ;;  %s2165_s13 = smov 0   ;;  %s2551_s0 = inlined_call_operand.vmem [shape: bf16[8,4608], index: 0, kind: input, shape index: {}]   ;;  %s2552_s1 = inlined_call_operand.vmem [shape: bf16[4608,512], index: 1, kind: input, shape index: {}]   ;;  %s2553_s2 = inlined_call_operand.vmem [shape: f32[1,512], index: 2, kind: input, shape index: {}]   ;;  %s2554_s3 = inlined_call_operand.vmem [shape: f32[8,512], index: 3, kind: output, shape index: {}]  }
   0x1   :  { %s2167_s14 = smov 0  }
   0x2 LB: > { %s25_s15 = sadd.s32 1, %s2136_s13  ;;  %p1440_p0 = scmp.ge.s32.totalorder %s2140_s14, 1  ;;  %s2140_s14 = sphi %s2167_s14, %s13_s14   ;;  %s2136_s13 = sphi %s2165_s13, %s2556_s13   ;;  %s2132_s12 = sphi %s2163_s12, %s2555_s12  }
   0x3   : > { %p26_p1 = scmp.ge.s32.totalorder %s25_s15, 9  ;;  %p194_p2 = scmp.lt.s32.totalorder %s2140_s14, 10 }
   0x5   : > { %s2558_s15 = smov (%p26_p1, %s25_s15), 0  ;;  %p195_p3 = pnand %p1440_p0, %p194_p2 }
   0x6   : > { %s1441_s16 = sshll.u32 (!%p195_p3), %s2132_s12, 2  ;;  %s1443_s17 = sshll.u32 (!%p195_p3), %s2132_s12, 6 }
   0x7   : > { %198 = sbr.rel (%p195_p3) target bundleno = 310 (0x136), region = 32  ;;  %p243_p4 = scmp.lt.s32.totalorder (!%p195_p3), %s1441_s16, 35 }
   0x8   : > { %p252_p5 = scmp.lt.s32.totalorder (!%p195_p3), %s1443_s17, 575  ;;  %p1446_p6 = scmp.ne.s32.totalorder (!%p195_p3), %s2132_s12, 0 }
   0xc   : > { %s2560_s16 = smov (!%p243_p4, %s1441_s16), 35  ;;  %s2562_s17 = smov (!%p252_p5, %s1443_s17), 575 }
   0xd   : > { %s1442_s18 = sshll.u32 %s2560_s16, 2  ;;  %s1964_s22 = sshll.u32 %s2562_s17, 4 }
   0xe   : > { %s2188_s21 = scalar_lea.vmem %s2551_s0, %s1442_s18  ;;  %s2193_s25 = scalar_lea.vmem %s2552_s1, %s1964_s22 }
   0xf   : > { %280 = sbr.rel (%p1446_p6) target bundleno = 25 (0x19), region = 36 }
  0x14   : > { %v2142_v0 = vmov 0.0  }
  0x15   : > { %281 = vst [vmem:[%s2554_s3] sm:$0xff] %v2142_v0 }
  0x16   : > { %282 = vst [vmem:[%s2554_s3 + $0x8] sm:$0xff] %v2142_v0 }
  0x17   : > { %283 = vst [vmem:[%s2554_s3 + $0x10] sm:$0xff] %v2142_v0 }
  0x18   : > { %284 = vst [vmem:[%s2554_s3 + $0x18] sm:$0xff] %v2142_v0 }
  0x19 PF: > { %v1561_v1 = vld [vmem:[%s2193_s25 + $0xe0] sm:$0xf]  ;;  %v1995_v2 = vld [vmem:[%s2193_s25 + $0xec] sm:$0xf0]  ;;  %p1959_p7 = scmp.ne.s32.totalorder %s2132_s12, 8 }
  0x1a   : > { %v1689_v3 = vld [vmem:[%s2193_s25 + $0x1e0] sm:$0xf]  ;;  %v1562_v4 = vor.u32 %v1995_v2, %v1561_v1  ;;  %v2027_v5 = vld [vmem:[%s2193_s25 + $0x1ec] sm:$0xf0] }
  0x1b   : > { %v1817_v6 = vld [vmem:[%s2193_s25 + $0x2e0] sm:$0xf]  ;;  %v2059_v7 = vld [vmem:[%s2193_s25 + $0x2ec] sm:$0xf0]  ;;  %v1690_v8 = vor.u32 %v2027_v5, %v1689_v3 }
  0x1c   : > { %v1818_v9 = vor.u32 %v2059_v7, %v1817_v6  ;;  %v1945_v10 = vld [vmem:[%s2193_s25 + $0x3e0] sm:$0xf]  ;;  %v2091_v11 = vld [vmem:[%s2193_s25 + $0x3ec] sm:$0xf0]  ;;  %1073 = vmatpush.bf16.msra.mxu0 %v1562_v4 }
  0x1d   : > { %v1545_v12 = vld [vmem:[%s2193_s25 + $0xc0] sm:$0xf]  ;;  %v1946_v13 = vor.u32 %v2091_v11, %v1945_v10  ;;  %v1991_v14 = vld [vmem:[%s2193_s25 + $0xcc] sm:$0xf0]  ;;  %1086 = vmatpush.bf16.msra.mxu1 %v1690_v8 }
  0x1e   : > { %v1673_v15 = vld [vmem:[%s2193_s25 + $0x1c0] sm:$0xf]  ;;  %v2023_v16 = vld [vmem:[%s2193_s25 + $0x1cc] sm:$0xf0]  ;;  %1099 = vmatpush.bf16.msra.mxu2 %v1818_v9  ;;  %v1546_v17 = vor.u32 %v1991_v14, %v1545_v12 }
  0x1f   : > { %v1674_v18 = vor.u32 %v2023_v16, %v1673_v15  ;;  %v1801_v19 = vld [vmem:[%s2193_s25 + $0x2c0] sm:$0xf]  ;;  %v2055_v20 = vld [vmem:[%s2193_s25 + $0x2cc] sm:$0xf0]  ;;  %1112 = vmatpush.bf16.msra.mxu3 %v1946_v13 }
  0x20   : > { %v1929_v21 = vld [vmem:[%s2193_s25 + $0x3c0] sm:$0xf]  ;;  %v1802_v22 = vor.u32 %v2055_v20, %v1801_v19  ;;  %v2087_v23 = vld [vmem:[%s2193_s25 + $0x3cc] sm:$0xf0]  ;;  %1074 = vmatpush.bf16.msra.mxu0 %v1546_v17 }
  0x21   : > { %v1529_v24 = vld [vmem:[%s2193_s25 + $0xa0] sm:$0xf]  ;;  %v1987_v25 = vld [vmem:[%s2193_s25 + $0xac] sm:$0xf0]  ;;  %v1930_v26 = vor.u32 %v2087_v23, %v1929_v21  ;;  %1087 = vmatpush.bf16.msra.mxu1 %v1674_v18 }
  0x22   : > { %v1657_v27 = vld [vmem:[%s2193_s25 + $0x1a0] sm:$0xf]  ;;  %v2019_v28 = vld [vmem:[%s2193_s25 + $0x1ac] sm:$0xf0]  ;;  %v1530_v30 = vor.u32 %v1987_v25, %v1529_v24  ;;  %1100 = vmatpush.bf16.msra.mxu2 %v1802_v22 }
  0x23   : > { %v1785_v29 = vld [vmem:[%s2193_s25 + $0x2a0] sm:$0xf]  ;;  %v2051_v31 = vld [vmem:[%s2193_s25 + $0x2ac] sm:$0xf0]  ;;  %v1658_v34 = vor.u32 %v2019_v28, %v1657_v27  ;;  %1113 = vmatpush.bf16.msra.mxu3 %v1930_v26 }
  0x24   : > { %v1913_v32 = vld [vmem:[%s2193_s25 + $0x3a0] sm:$0xf]  ;;  %v2083_v33 = vld [vmem:[%s2193_s25 + $0x3ac] sm:$0xf0]  ;;  %v1786_v35 = vor.u32 %v2051_v31, %v1785_v29  ;;  %1075 = vmatpush.bf16.msra.mxu0 %v1530_v30  ;;  %v1993_v29 = vld [vmem:[%s2193_s25 + $0xe4] sm:$0xf] }
  0x25   : > { %v1513_v36 = vld [vmem:[%s2193_s25 + $0x80] sm:$0xf]  ;;  %v1983_v37 = vld [vmem:[%s2193_s25 + $0x8c] sm:$0xf0]  ;;  %v1914_v39 = vor.u32 %v2083_v33, %v1913_v32  ;;  %1088 = vmatpush.bf16.msra.mxu1 %v1658_v34  ;;  %v1563_v30 = vld [vmem:[%s2193_s25 + $0xf0] sm:$0xf0] }
  0x26   : > { %v1641_v38 = vld [vmem:[%s2193_s25 + $0x180] sm:$0xf]  ;;  %v2015_v40 = vld [vmem:[%s2193_s25 + $0x18c] sm:$0xf0]  ;;  %v1514_v45 = vor.u32 %v1983_v37, %v1513_v36  ;;  %1101 = vmatpush.bf16.msra.mxu2 %v1786_v35  ;;  %v2025_v31 = vld [vmem:[%s2193_s25 + $0x1e4] sm:$0xf] }
  0x27   : > { %v1769_v41 = vld [vmem:[%s2193_s25 + $0x280] sm:$0xf]  ;;  %v2047_v42 = vld [vmem:[%s2193_s25 + $0x28c] sm:$0xf0]  ;;  %v1642_v46 = vor.u32 %v2015_v40, %v1641_v38  ;;  %1114 = vmatpush.bf16.msra.mxu3 %v1914_v39  ;;  %v1691_v33 = vld [vmem:[%s2193_s25 + $0x1f0] sm:$0xf0] }
  0x28   : > { %v1897_v43 = vld [vmem:[%s2193_s25 + $0x380] sm:$0xf]  ;;  %v2079_v44 = vld [vmem:[%s2193_s25 + $0x38c] sm:$0xf0]  ;;  %v1770_v47 = vor.u32 %v2047_v42, %v1769_v41  ;;  %1076 = vmatpush.bf16.msra.mxu0 %v1514_v45  ;;  %v2057_v34 = vld [vmem:[%s2193_s25 + $0x2e4] sm:$0xf]  ;;  %v1566_v41 = vor.u32 %v1993_v29, %v1563_v30  ;;  %v1694_v42 = vor.u32 %v2025_v31, %v1691_v33 }
  0x29   : > { %v1497_v48 = vld [vmem:[%s2193_s25 + $0x60] sm:$0xf]  ;;  %v1979_v49 = vld [vmem:[%s2193_s25 + $0x6c] sm:$0xf0]  ;;  %v1898_v51 = vor.u32 %v2079_v44, %v1897_v43  ;;  %1089 = vmatpush.bf16.msra.mxu1 %v1642_v46  ;;  %v1819_v35 = vld [vmem:[%s2193_s25 + $0x2f0] sm:$0xf0] }
  0x2a   : > { %v1625_v50 = vld [vmem:[%s2193_s25 + $0x160] sm:$0xf]  ;;  %v2011_v52 = vld [vmem:[%s2193_s25 + $0x16c] sm:$0xf0]  ;;  %v1498_v57 = vor.u32 %v1979_v49, %v1497_v48  ;;  %1102 = vmatpush.bf16.msra.mxu2 %v1770_v47  ;;  %v2089_v38 = vld [vmem:[%s2193_s25 + $0x3e4] sm:$0xf]  ;;  %v1822_v43 = vor.u32 %v2057_v34, %v1819_v35 }
  0x2b   : > { %v1753_v53 = vld [vmem:[%s2193_s25 + $0x260] sm:$0xf]  ;;  %v2043_v54 = vld [vmem:[%s2193_s25 + $0x26c] sm:$0xf0]  ;;  %v1626_v58 = vor.u32 %v2011_v52, %v1625_v50  ;;  %1115 = vmatpush.bf16.msra.mxu3 %v1898_v51  ;;  %v1947_v39 = vld [vmem:[%s2193_s25 + $0x3f0] sm:$0xf0] }
  0x2c   : > { %v1881_v55 = vld [vmem:[%s2193_s25 + $0x360] sm:$0xf]  ;;  %v2075_v56 = vld [vmem:[%s2193_s25 + $0x36c] sm:$0xf0]  ;;  %v1754_v59 = vor.u32 %v2043_v54, %v1753_v53  ;;  %1077 = vmatpush.bf16.msra.mxu0 %v1498_v57  ;;  %v1989_v44 = vld [vmem:[%s2193_s25 + $0xc4] sm:$0xf]  ;;  %v1950_v47 = vor.u32 %v2089_v38, %v1947_v39 }
  0x2d   : > { %v1481_v60 = vld [vmem:[%s2193_s25 + $0x40] sm:$0xf]  ;;  %v1975_v61 = vld [vmem:[%s2193_s25 + $0x4c] sm:$0xf0]  ;;  %v1882_v63 = vor.u32 %v2075_v56, %v1881_v55  ;;  %1090 = vmatpush.bf16.msra.mxu1 %v1626_v58  ;;  %v1547_v45 = vld [vmem:[%s2193_s25 + $0xd0] sm:$0xf0] }
  0x2e   : > { %v1609_v62 = vld [vmem:[%s2193_s25 + $0x140] sm:$0xf]  ;;  %v2007_v0 = vld [vmem:[%s2193_s25 + $0x14c] sm:$0xf0]  ;;  %v1482_v5 = vor.u32 %v1975_v61, %v1481_v60  ;;  %1103 = vmatpush.bf16.msra.mxu2 %v1754_v59  ;;  %v2021_v46 = vld [vmem:[%s2193_s25 + $0x1c4] sm:$0xf]  ;;  %v1550_v53 = vor.u32 %v1989_v44, %v1547_v45 }
  0x2f   : > { %v1737_v1 = vld [vmem:[%s2193_s25 + $0x240] sm:$0xf]  ;;  %v2039_v2 = vld [vmem:[%s2193_s25 + $0x24c] sm:$0xf0]  ;;  %v1610_v6 = vor.u32 %v2007_v0, %v1609_v62  ;;  %1116 = vmatpush.bf16.msra.mxu3 %v1882_v63  ;;  %v1675_v48 = vld [vmem:[%s2193_s25 + $0x1d0] sm:$0xf0] }
  0x30   : > { %v1865_v3 = vld [vmem:[%s2193_s25 + $0x340] sm:$0xf]  ;;  %v2071_v4 = vld [vmem:[%s2193_s25 + $0x34c] sm:$0xf0]  ;;  %v1738_v7 = vor.u32 %v2039_v2, %v1737_v1  ;;  %1078 = vmatpush.bf16.msra.mxu0 %v1482_v5  ;;  %v2053_v49 = vld [vmem:[%s2193_s25 + $0x2c4] sm:$0xf]  ;;  %v1678_v54 = vor.u32 %v2021_v46, %v1675_v48 }
  0x31   : > { %v1465_v8 = vld [vmem:[%s2193_s25 + $0x20] sm:$0xf]  ;;  %v1971_v9 = vld [vmem:[%s2193_s25 + $0x2c] sm:$0xf0]  ;;  %v1866_v11 = vor.u32 %v2071_v4, %v1865_v3  ;;  %1091 = vmatpush.bf16.msra.mxu1 %v1610_v6  ;;  %v1803_v50 = vld [vmem:[%s2193_s25 + $0x2d0] sm:$0xf0] }
  0x32   : > { %v1593_v10 = vld [vmem:[%s2193_s25 + $0x120] sm:$0xf]  ;;  %v2003_v12 = vld [vmem:[%s2193_s25 + $0x12c] sm:$0xf0]  ;;  %v1466_v17 = vor.u32 %v1971_v9, %v1465_v8  ;;  %1104 = vmatpush.bf16.msra.mxu2 %v1738_v7  ;;  %v2085_v51 = vld [vmem:[%s2193_s25 + $0x3c4] sm:$0xf]  ;;  %v1806_v55 = vor.u32 %v2053_v49, %v1803_v50 }
  0x33   : > { %v1721_v13 = vld [vmem:[%s2193_s25 + $0x220] sm:$0xf]  ;;  %v2035_v14 = vld [vmem:[%s2193_s25 + $0x22c] sm:$0xf0]  ;;  %v1594_v20 = vor.u32 %v2003_v12, %v1593_v10  ;;  %1117 = vmatpush.bf16.msra.mxu3 %v1866_v11  ;;  %v1931_v52 = vld [vmem:[%s2193_s25 + $0x3d0] sm:$0xf0] }
  0x34   : > { %v1849_v15 = vld [vmem:[%s2193_s25 + $0x320] sm:$0xf]  ;;  %v2067_v16 = vld [vmem:[%s2193_s25 + $0x32c] sm:$0xf0]  ;;  %v1722_v21 = vor.u32 %v2035_v14, %v1721_v13  ;;  %1079 = vmatpush.bf16.msra.mxu0 %v1466_v17  ;;  %v1985_v56 = vld [vmem:[%s2193_s25 + $0xa4] sm:$0xf]  ;;  %v1934_v59 = vor.u32 %v2085_v51, %v1931_v52 }
  0x35   : > { %v1449_v18 = vld [vmem:[%s2193_s25] sm:$0xf]  ;;  %v1967_v19 = vld [vmem:[%s2193_s25 + $0xc] sm:$0xf0]  ;;  %v1850_v25 = vor.u32 %v2067_v16, %v1849_v15  ;;  %1092 = vmatpush.bf16.msra.mxu1 %v1594_v20  ;;  %v1531_v57 = vld [vmem:[%s2193_s25 + $0xb0] sm:$0xf0] }
  0x36   : > { %v1577_v22 = vld [vmem:[%s2193_s25 + $0x100] sm:$0xf]  ;;  %v1999_v23 = vld [vmem:[%s2193_s25 + $0x10c] sm:$0xf0]  ;;  %v1450_v32 = vor.u32 %v1967_v19, %v1449_v18  ;;  %1105 = vmatpush.bf16.msra.mxu2 %v1722_v21  ;;  %v2017_v58 = vld [vmem:[%s2193_s25 + $0x1a4] sm:$0xf]  ;;  %v1534_v1 = vor.u32 %v1985_v56, %v1531_v57 }
  0x37   : > { %v1705_v24 = vld [vmem:[%s2193_s25 + $0x200] sm:$0xf]  ;;  %v2031_v26 = vld [vmem:[%s2193_s25 + $0x20c] sm:$0xf0]  ;;  %v1578_v36 = vor.u32 %v1999_v23, %v1577_v22  ;;  %1118 = vmatpush.bf16.msra.mxu3 %v1850_v25  ;;  %v1659_v60 = vld [vmem:[%s2193_s25 + $0x1b0] sm:$0xf0] }
  0x38   : > { %v1833_v27 = vld [vmem:[%s2193_s25 + $0x300] sm:$0xf]  ;;  %v2063_v28 = vld [vmem:[%s2193_s25 + $0x30c] sm:$0xf0]  ;;  %v1706_v37 = vor.u32 %v2031_v26, %v1705_v24  ;;  %1080 = vmatpush.bf16.msra.mxu0 %v1450_v32  ;;  %v2049_v61 = vld [vmem:[%s2193_s25 + $0x2a4] sm:$0xf]  ;;  %v1662_v3 = vor.u32 %v2017_v58, %v1659_v60 }
  0x39   : > { %v1834_v40 = vor.u32 %v2063_v28, %v1833_v27  ;;  %1093 = vmatpush.bf16.msra.mxu1 %v1578_v36  ;;  %v1787_v62 = vld [vmem:[%s2193_s25 + $0x2b0] sm:$0xf0]  ;;  %v2081_v63 = vld [vmem:[%s2193_s25 + $0x3a4] sm:$0xf]  ;;  %v290_v2 = vld [vmem:[%s2188_s21 + $0x8] sm:$0xff] }
  0x3a   : > { %1106 = vmatpush.bf16.msra.mxu2 %v1706_v37  ;;  %v1915_v0 = vld [vmem:[%s2193_s25 + $0x3b0] sm:$0xf0]  ;;  %v1790_v4 = vor.u32 %v2049_v61, %v1787_v62  ;;  %v1981_v5 = vld [vmem:[%s2193_s25 + $0x84] sm:$0xf]  ;;  %v423_v8 = vunpack.c.l.b16 %v290_v2  ;;  %v424_v9 = vunpack.c.h.b16 %v290_v2 }
  0x3b   : > { %1119 = vmatpush.bf16.msra.mxu3 %v1834_v40  ;;  %v1515_v6 = vld [vmem:[%s2193_s25 + $0x90] sm:$0xf0]  ;;  %v2013_v7 = vld [vmem:[%s2193_s25 + $0x184] sm:$0xf]  ;;  %v1918_v10 = vor.u32 %v2081_v63, %v1915_v0 }
  0x3c   : > { %1125 = vmatpush.bf16.msrb.mxu0 %v1566_v41  ;;  %v1643_v11 = vld [vmem:[%s2193_s25 + $0x190] sm:$0xf0]  ;;  %v2045_v12 = vld [vmem:[%s2193_s25 + $0x284] sm:$0xf]  ;;  %v2305_v16 = vpack.c.b16 %v423_v8, %v423_v8  ;;  %v2307_v17 = vpack.c.b16 %v424_v9, %v424_v9  ;;  %v1518_v19 = vor.u32 %v1981_v5, %v1515_v6  ;;  %v1996_v8 = vld [vmem:[%s2193_s25 + $0xf4] sm:$0xf0] }
  0x3d   : > { %1138 = vmatpush.bf16.msrb.mxu1 %v1694_v42  ;;  %v1771_v13 = vld [vmem:[%s2193_s25 + $0x290] sm:$0xf0]  ;;  %v2077_v14 = vld [vmem:[%s2193_s25 + $0x384] sm:$0xf]  ;;  %v1646_v22 = vor.u32 %v2013_v7, %v1643_v11  ;;  %v1569_v7 = vld [vmem:[%s2193_s25 + $0xe8] sm:$0xf] }
  0x3e   : > { %1151 = vmatpush.bf16.msrb.mxu2 %v1822_v43  ;;  %v1899_v15 = vld [vmem:[%s2193_s25 + $0x390] sm:$0xf0]  ;;  %v289_v18 = vld [vmem:[%s2188_s21] sm:$0xff]  ;;  %v1774_v23 = vor.u32 %v2045_v12, %v1771_v13  ;;  %1120 = vmatmul.bf16.vlgmr.msra.gmra.mxu3 %v2307_v17  ;;  %v1697_v9 = vld [vmem:[%s2193_s25 + $0x1e8] sm:$0xf] }
  0x3f   : > { %1164 = vmatpush.bf16.msrb.mxu3 %v1950_v47  ;;  %v421_v20 = vunpack.c.l.b16 %v289_v18  ;;  %v422_v21 = vunpack.c.h.b16 %v289_v18  ;;  %v1977_v24 = vld [vmem:[%s2193_s25 + $0x64] sm:$0xf]  ;;  %v1499_v25 = vld [vmem:[%s2193_s25 + $0x70] sm:$0xf0]  ;;  %v1902_v27 = vor.u32 %v2077_v14, %v1899_v15  ;;  %1107 = vmatmul.bf16.vlgmr.msra.gmra.mxu2 %v2305_v16  ;;  %v2028_v11 = vld [vmem:[%s2193_s25 + $0x1f4] sm:$0xf0] }
  0x40   : > { %1126 = vmatpush.bf16.msrb.mxu0 %v1550_v53  ;;  %v2009_v26 = vld [vmem:[%s2193_s25 + $0x164] sm:$0xf]  ;;  %v1627_v28 = vld [vmem:[%s2193_s25 + $0x170] sm:$0xf0]  ;;  %v1502_v35 = vor.u32 %v1977_v24, %v1499_v25  ;;  %v1825_v12 = vld [vmem:[%s2193_s25 + $0x2e8] sm:$0xf] }
  0x41   : > { %1139 = vmatpush.bf16.msrb.mxu1 %v1678_v54  ;;  %v2041_v29 = vld [vmem:[%s2193_s25 + $0x264] sm:$0xf]  ;;  %v1755_v30 = vld [vmem:[%s2193_s25 + $0x270] sm:$0xf0]  ;;  %v2317_v31 = vpack.c.b16 %v421_v20, %v421_v20  ;;  %v2319_v32 = vpack.c.b16 %v422_v21, %v422_v21  ;;  %v1630_v36 = vor.u32 %v2009_v26, %v1627_v28  ;;  %v2060_v13 = vld [vmem:[%s2193_s25 + $0x2f4] sm:$0xf0]  ;;  %v1570_v21 = vor.u32 %v1996_v8, %v1569_v7 }
  0x42   : > { %1152 = vmatpush.bf16.msrb.mxu2 %v1806_v55  ;;  %v2073_v33 = vld [vmem:[%s2193_s25 + $0x364] sm:$0xf]  ;;  %v1883_v34 = vld [vmem:[%s2193_s25 + $0x370] sm:$0xf0]  ;;  %v1758_v37 = vor.u32 %v2041_v29, %v1755_v30  ;;  %v1953_v18 = vld [vmem:[%s2193_s25 + $0x3e8] sm:$0xf] }
  0x43   : > { %1165 = vmatpush.bf16.msrb.mxu3 %v1934_v59  ;;  %1094 = vmatmul.bf16.vlgmr.msra.gmra.mxu1 %v2319_v32  ;;  %v1973_v38 = vld [vmem:[%s2193_s25 + $0x44] sm:$0xf]  ;;  %v1483_v39 = vld [vmem:[%s2193_s25 + $0x50] sm:$0xf0]  ;;  %v1886_v41 = vor.u32 %v2073_v33, %v1883_v34  ;;  %v1553_v24 = vld [vmem:[%s2193_s25 + $0xc8] sm:$0xf] }
  0x44   : > { %1127 = vmatpush.bf16.msrb.mxu0 %v1534_v1  ;;  %v2005_v40 = vld [vmem:[%s2193_s25 + $0x144] sm:$0xf]  ;;  %v1611_v42 = vld [vmem:[%s2193_s25 + $0x150] sm:$0xf0]  ;;  %v1486_v47 = vor.u32 %v1973_v38, %v1483_v39  ;;  %v1992_v25 = vld [vmem:[%s2193_s25 + $0xd4] sm:$0xf0] }
  0x45   : > { %1140 = vmatpush.bf16.msrb.mxu1 %v1662_v3  ;;  %v2037_v43 = vld [vmem:[%s2193_s25 + $0x244] sm:$0xf]  ;;  %v1739_v44 = vld [vmem:[%s2193_s25 + $0x250] sm:$0xf0]  ;;  %1081 = vmatmul.bf16.vlgmr.msra.gmra.mxu0 %v2317_v31  ;;  %v1614_v48 = vor.u32 %v2005_v40, %v1611_v42  ;;  %v1681_v26 = vld [vmem:[%s2193_s25 + $0x1c8] sm:$0xf] }
  0x46   : > { %1153 = vmatpush.bf16.msrb.mxu2 %v1790_v4  ;;  %v2069_v45 = vld [vmem:[%s2193_s25 + $0x344] sm:$0xf]  ;;  %v1867_v46 = vld [vmem:[%s2193_s25 + $0x350] sm:$0xf0]  ;;  %v1742_v49 = vor.u32 %v2037_v43, %v1739_v44  ;;  %v2024_v28 = vld [vmem:[%s2193_s25 + $0x1d4] sm:$0xf0] }
  0x47   : > { %1166 = vmatpush.bf16.msrb.mxu3 %v1918_v10  ;;  %v1969_v50 = vld [vmem:[%s2193_s25 + $0x24] sm:$0xf]  ;;  %v1467_v51 = vld [vmem:[%s2193_s25 + $0x30] sm:$0xf0]  ;;  %v1870_v53 = vor.u32 %v2069_v45, %v1867_v46  ;;  %v1809_v29 = vld [vmem:[%s2193_s25 + $0x2c8] sm:$0xf] }
  0x48   : > { %1128 = vmatpush.bf16.msrb.mxu0 %v1518_v19  ;;  %v2001_v52 = vld [vmem:[%s2193_s25 + $0x124] sm:$0xf]  ;;  %v1595_v54 = vld [vmem:[%s2193_s25 + $0x130] sm:$0xf0]  ;;  %v1470_v59 = vor.u32 %v1969_v50, %v1467_v51  ;;  %v2092_v19 = vld [vmem:[%s2193_s25 + $0x3f4] sm:$0xf0] }
  0x49   : > { %1141 = vmatpush.bf16.msrb.mxu1 %v1646_v22  ;;  %v2033_v55 = vld [vmem:[%s2193_s25 + $0x224] sm:$0xf]  ;;  %v1723_v56 = vld [vmem:[%s2193_s25 + $0x230] sm:$0xf0]  ;;  %v1598_v62 = vor.u32 %v2001_v52, %v1595_v54  ;;  %v1698_v22 = vor.u32 %v2028_v11, %v1697_v9  ;;  %v2056_v30 = vld [vmem:[%s2193_s25 + $0x2d4] sm:$0xf0] }
  0x4a   : > { %1154 = vmatpush.bf16.msrb.mxu2 %v1774_v23  ;;  %v2065_v57 = vld [vmem:[%s2193_s25 + $0x324] sm:$0xf]  ;;  %v1851_v58 = vld [vmem:[%s2193_s25 + $0x330] sm:$0xf0]  ;;  %v1726_v63 = vor.u32 %v2033_v55, %v1723_v56  ;;  %v1826_v23 = vor.u32 %v2060_v13, %v1825_v12  ;;  %v1937_v33 = vld [vmem:[%s2193_s25 + $0x3c8] sm:$0xf] }
  0x4b   : > { %1167 = vmatpush.bf16.msrb.mxu3 %v1902_v27  ;;  %v1965_v60 = vld [vmem:[%s2193_s25 + $0x4] sm:$0xf]  ;;  %v1451_v61 = vld [vmem:[%s2193_s25 + $0x10] sm:$0xf0]  ;;  %v1854_v3 = vor.u32 %v2065_v57, %v1851_v58  ;;  %v1954_v27 = vor.u32 %v2092_v19, %v1953_v18  ;;  %v2088_v34 = vld [vmem:[%s2193_s25 + $0x3d4] sm:$0xf0] }
  0x4c   : > { %1129 = vmatpush.bf16.msrb.mxu0 %v1502_v35  ;;  %v1997_v0 = vld [vmem:[%s2193_s25 + $0x104] sm:$0xf]  ;;  %v1579_v1 = vld [vmem:[%s2193_s25 + $0x110] sm:$0xf0]  ;;  %v1454_v10 = vor.u32 %v1965_v60, %v1451_v61  ;;  %v1554_v35 = vor.u32 %v1992_v25, %v1553_v24  ;;  %v1537_v38 = vld [vmem:[%s2193_s25 + $0xa8] sm:$0xf] }
  0x4d   : > { %1142 = vmatpush.bf16.msrb.mxu1 %v1630_v36  ;;  %v2029_v2 = vld [vmem:[%s2193_s25 + $0x204] sm:$0xf]  ;;  %v1707_v4 = vld [vmem:[%s2193_s25 + $0x210] sm:$0xf0]  ;;  %v1582_v14 = vor.u32 %v1997_v0, %v1579_v1  ;;  %v1682_v36 = vor.u32 %v2024_v28, %v1681_v26  ;;  %v1988_v39 = vld [vmem:[%s2193_s25 + $0xb4] sm:$0xf0] }
  0x4e   : > { %1155 = vmatpush.bf16.msrb.mxu2 %v1758_v37  ;;  %v2061_v5 = vld [vmem:[%s2193_s25 + $0x304] sm:$0xf]  ;;  %v1835_v6 = vld [vmem:[%s2193_s25 + $0x310] sm:$0xf0]  ;;  %v1710_v15 = vor.u32 %v2029_v2, %v1707_v4  ;;  %v1810_v37 = vor.u32 %v2056_v30, %v1809_v29  ;;  %v1665_v40 = vld [vmem:[%s2193_s25 + $0x1a8] sm:$0xf] }
  0x4f   : > { %1168 = vmatpush.bf16.msrb.mxu3 %v1886_v41  ;;  %v1838_v20 = vor.u32 %v2061_v5, %v1835_v6  ;;  %v1938_v41 = vor.u32 %v2088_v34, %v1937_v33  ;;  %v2020_v42 = vld [vmem:[%s2193_s25 + $0x1b4] sm:$0xf0]  ;;  %v1793_v43 = vld [vmem:[%s2193_s25 + $0x2a8] sm:$0xf] }
  0x50   : > { %1130 = vmatpush.bf16.msrb.mxu0 %v1486_v47  ;;  %v2052_v44 = vld [vmem:[%s2193_s25 + $0x2b4] sm:$0xf0]  ;;  %v1921_v45 = vld [vmem:[%s2193_s25 + $0x3a8] sm:$0xf]  ;;  %v1538_v47 = vor.u32 %v1988_v39, %v1537_v38 }
  0x51   : > { %1143 = vmatpush.bf16.msrb.mxu1 %v1614_v48  ;;  %v2084_v46 = vld [vmem:[%s2193_s25 + $0x3b4] sm:$0xf0]  ;;  %v1666_v48 = vor.u32 %v2020_v42, %v1665_v40  ;;  %v1521_v50 = vld [vmem:[%s2193_s25 + $0x88] sm:$0xf] }
  0x52   : > { %1156 = vmatpush.bf16.msrb.mxu2 %v1742_v49  ;;  %v1794_v49 = vor.u32 %v2052_v44, %v1793_v43  ;;  %v1984_v51 = vld [vmem:[%s2193_s25 + $0x94] sm:$0xf0]  ;;  %v1649_v52 = vld [vmem:[%s2193_s25 + $0x188] sm:$0xf] }
  0x53   : > { %1169 = vmatpush.bf16.msrb.mxu3 %v1870_v53  ;;  %v1922_v53 = vor.u32 %v2084_v46, %v1921_v45  ;;  %v2016_v54 = vld [vmem:[%s2193_s25 + $0x194] sm:$0xf0]  ;;  %v1777_v55 = vld [vmem:[%s2193_s25 + $0x288] sm:$0xf] }
  0x54   : > { %1131 = vmatpush.bf16.msrb.mxu0 %v1470_v59  ;;  %v2048_v56 = vld [vmem:[%s2193_s25 + $0x294] sm:$0xf0]  ;;  %v1905_v57 = vld [vmem:[%s2193_s25 + $0x388] sm:$0xf]  ;;  %v1522_v59 = vor.u32 %v1984_v51, %v1521_v50  ;;  %v1650_v60 = vor.u32 %v2016_v54, %v1649_v52  ;;  %v1699_v51 = vld [vmem:[%s2193_s25 + $0x1f8] sm:$0xf0] }
  0x55   : > { %1144 = vmatpush.bf16.msrb.mxu1 %v1598_v62  ;;  %v2080_v58 = vld [vmem:[%s2193_s25 + $0x394] sm:$0xf0]  ;;  %v1778_v61 = vor.u32 %v2048_v56, %v1777_v55  ;;  %v1505_v62 = vld [vmem:[%s2193_s25 + $0x68] sm:$0xf]  ;;  %v2058_v52 = vld [vmem:[%s2193_s25 + $0x2ec] sm:$0xf] }
  0x56   : > { %1157 = vmatpush.bf16.msrb.mxu2 %v1726_v63  ;;  %v1980_v63 = vld [vmem:[%s2193_s25 + $0x74] sm:$0xf0]  ;;  %v1633_v0 = vld [vmem:[%s2193_s25 + $0x168] sm:$0xf]  ;;  %v1906_v1 = vor.u32 %v2080_v58, %v1905_v57  ;;  %v2090_v56 = vld [vmem:[%s2193_s25 + $0x3ec] sm:$0xf] }
  0x57   : > { %1170 = vmatpush.bf16.msrb.mxu3 %v1854_v3  ;;  %v2012_v2 = vld [vmem:[%s2193_s25 + $0x174] sm:$0xf0]  ;;  %v1761_v3 = vld [vmem:[%s2193_s25 + $0x268] sm:$0xf]  ;;  %v1506_v7 = vor.u32 %v1980_v63, %v1505_v62  ;;  %v1955_v57 = vld [vmem:[%s2193_s25 + $0x3f8] sm:$0xf0] }
  0x58   : > { %1132 = vmatpush.bf16.msrb.mxu0 %v1454_v10  ;;  %v2044_v4 = vld [vmem:[%s2193_s25 + $0x274] sm:$0xf0]  ;;  %v1889_v5 = vld [vmem:[%s2193_s25 + $0x368] sm:$0xf]  ;;  %v1634_v8 = vor.u32 %v2012_v2, %v1633_v0  ;;  %v1990_v62 = vld [vmem:[%s2193_s25 + $0xcc] sm:$0xf] }
  0x59   : > { %1145 = vmatpush.bf16.msrb.mxu1 %v1582_v14  ;;  %v2076_v6 = vld [vmem:[%s2193_s25 + $0x374] sm:$0xf0]  ;;  %v1762_v9 = vor.u32 %v2044_v4, %v1761_v3  ;;  %v1489_v10 = vld [vmem:[%s2193_s25 + $0x48] sm:$0xf]  ;;  %v1555_v63 = vld [vmem:[%s2193_s25 + $0xd8] sm:$0xf0] }
  0x5a   : > { %1158 = vmatpush.bf16.msrb.mxu2 %v1710_v15  ;;  %v1976_v11 = vld [vmem:[%s2193_s25 + $0x54] sm:$0xf0]  ;;  %v1617_v12 = vld [vmem:[%s2193_s25 + $0x148] sm:$0xf]  ;;  %v1890_v13 = vor.u32 %v2076_v6, %v1889_v5  ;;  %v2022_v0 = vld [vmem:[%s2193_s25 + $0x1cc] sm:$0xf] }
  0x5b   : > { %1171 = vmatpush.bf16.msrb.mxu3 %v1838_v20  ;;  %1133 = vmatmul.bf16.vlgmr.msrb.gmra.mxu0 %v2317_v31  ;;  %v2008_v14 = vld [vmem:[%s2193_s25 + $0x154] sm:$0xf0]  ;;  %v1745_v15 = vld [vmem:[%s2193_s25 + $0x248] sm:$0xf]  ;;  %v1683_v2 = vld [vmem:[%s2193_s25 + $0x1d8] sm:$0xf0] }
  0x5c   : > { %1177 = vmatpush.bf16.msra.mxu0 %v1570_v21  ;;  %1146 = vmatmul.bf16.vlgmr.msrb.gmra.mxu1 %v2319_v32  ;;  %v2040_v18 = vld [vmem:[%s2193_s25 + $0x254] sm:$0xf0]  ;;  %v1873_v19 = vld [vmem:[%s2193_s25 + $0x348] sm:$0xf]  ;;  %v1490_v21 = vor.u32 %v1976_v11, %v1489_v10  ;;  %v2054_v3 = vld [vmem:[%s2193_s25 + $0x2cc] sm:$0xf] }
  0x5d   : > { %1190 = vmatpush.bf16.msra.mxu1 %v1698_v22  ;;  %1159 = vmatmul.bf16.vlgmr.msrb.gmra.mxu2 %v2305_v16  ;;  %v2072_v20 = vld [vmem:[%s2193_s25 + $0x354] sm:$0xf0]  ;;  %v1618_v22 = vor.u32 %v2008_v14, %v1617_v12  ;;  %v1473_v24 = vld [vmem:[%s2193_s25 + $0x28] sm:$0xf]  ;;  %v1811_v4 = vld [vmem:[%s2193_s25 + $0x2d8] sm:$0xf0] }
  0x5e   : > { %1203 = vmatpush.bf16.msra.mxu2 %v1826_v23  ;;  %1172 = vmatmul.bf16.vlgmr.msrb.gmra.mxu3 %v2307_v17  ;;  %v1746_v23 = vor.u32 %v2040_v18, %v1745_v15  ;;  %v1972_v25 = vld [vmem:[%s2193_s25 + $0x34] sm:$0xf0]  ;;  %v1601_v26 = vld [vmem:[%s2193_s25 + $0x128] sm:$0xf]  ;;  %v2086_v5 = vld [vmem:[%s2193_s25 + $0x3cc] sm:$0xf] }
  0x5f   : > { %1216 = vmatpush.bf16.msra.mxu3 %v1954_v27  ;;  %v1874_v27 = vor.u32 %v2072_v20, %v1873_v19  ;;  %v2004_v28 = vld [vmem:[%s2193_s25 + $0x134] sm:$0xf0]  ;;  %v1729_v29 = vld [vmem:[%s2193_s25 + $0x228] sm:$0xf]  ;;  %v1939_v6 = vld [vmem:[%s2193_s25 + $0x3d8] sm:$0xf0] }
  0x60   : > { %1178 = vmatpush.bf16.msra.mxu0 %v1554_v35  ;;  %v2036_v30 = vld [vmem:[%s2193_s25 + $0x234] sm:$0xf0]  ;;  %v1857_v33 = vld [vmem:[%s2193_s25 + $0x328] sm:$0xf]  ;;  %v1474_v35 = vor.u32 %v1972_v25, %v1473_v24  ;;  %v1602_v38 = vor.u32 %v2004_v28, %v1601_v26  ;;  %v1986_v10 = vld [vmem:[%s2193_s25 + $0xac] sm:$0xf] }
  0x61   : > { %1191 = vmatpush.bf16.msra.mxu1 %v1682_v36  ;;  %v2068_v34 = vld [vmem:[%s2193_s25 + $0x334] sm:$0xf0]  ;;  %v1457_v36 = vld [vmem:[%s2193_s25 + $0x8] sm:$0xf]  ;;  %v1730_v39 = vor.u32 %v2036_v30, %v1729_v29  ;;  %v1539_v11 = vld [vmem:[%s2193_s25 + $0xb8] sm:$0xf0] }
  0x62   : > { %1204 = vmatpush.bf16.msra.mxu2 %v1810_v37  ;;  %v1968_v37 = vld [vmem:[%s2193_s25 + $0x14] sm:$0xf0]  ;;  %v1585_v40 = vld [vmem:[%s2193_s25 + $0x108] sm:$0xf]  ;;  %v1858_v43 = vor.u32 %v2068_v34, %v1857_v33  ;;  %v2018_v12 = vld [vmem:[%s2193_s25 + $0x1ac] sm:$0xf] }
  0x63   : > { %1217 = vmatpush.bf16.msra.mxu3 %v1938_v41  ;;  %v2000_v41 = vld [vmem:[%s2193_s25 + $0x114] sm:$0xf0]  ;;  %v1713_v42 = vld [vmem:[%s2193_s25 + $0x208] sm:$0xf]  ;;  %v1458_v50 = vor.u32 %v1968_v37, %v1457_v36  ;;  %v1667_v14 = vld [vmem:[%s2193_s25 + $0x1b8] sm:$0xf0] }
  0x64   : > { %1179 = vmatpush.bf16.msra.mxu0 %v1538_v47  ;;  %v2032_v44 = vld [vmem:[%s2193_s25 + $0x214] sm:$0xf0]  ;;  %v1841_v45 = vld [vmem:[%s2193_s25 + $0x308] sm:$0xf]  ;;  %v1994_v47 = vld [vmem:[%s2193_s25 + $0xec] sm:$0xf]  ;;  %v1586_v54 = vor.u32 %v2000_v41, %v1585_v40 }
  0x65   : > { %1192 = vmatpush.bf16.msra.mxu1 %v1666_v48  ;;  %v2064_v46 = vld [vmem:[%s2193_s25 + $0x314] sm:$0xf0]  ;;  %v1571_v48 = vld [vmem:[%s2193_s25 + $0xf8] sm:$0xf0]  ;;  %v1714_v55 = vor.u32 %v2032_v44, %v1713_v42  ;;  %v2050_v15 = vld [vmem:[%s2193_s25 + $0x2ac] sm:$0xf] }
  0x66   : > { %1205 = vmatpush.bf16.msra.mxu2 %v1794_v49  ;;  %v2026_v49 = vld [vmem:[%s2193_s25 + $0x1ec] sm:$0xf]  ;;  %v1842_v58 = vor.u32 %v2064_v46, %v1841_v45  ;;  %v1795_v18 = vld [vmem:[%s2193_s25 + $0x2b8] sm:$0xf0] }
  0x67   : > { %1218 = vmatpush.bf16.msra.mxu3 %v1922_v53  ;;  %v1827_v53 = vld [vmem:[%s2193_s25 + $0x2f8] sm:$0xf0]  ;;  %v2082_v19 = vld [vmem:[%s2193_s25 + $0x3ac] sm:$0xf] }
  0x68   : > { %1180 = vmatpush.bf16.msra.mxu0 %v1522_v59  ;;  %v1574_v59 = vor.u32 %v1994_v47, %v1571_v48  ;;  %v1923_v20 = vld [vmem:[%s2193_s25 + $0x3b8] sm:$0xf0]  ;;  %v1982_v24 = vld [vmem:[%s2193_s25 + $0x8c] sm:$0xf] }
  0x69   : > { %1193 = vmatpush.bf16.msra.mxu1 %v1650_v60  ;;  %v1702_v60 = vor.u32 %v2026_v49, %v1699_v51  ;;  %v1523_v25 = vld [vmem:[%s2193_s25 + $0x98] sm:$0xf0]  ;;  %v2014_v26 = vld [vmem:[%s2193_s25 + $0x18c] sm:$0xf] }
  0x6a   : > { %1206 = vmatpush.bf16.msra.mxu2 %v1778_v61  ;;  %v1830_v61 = vor.u32 %v2058_v52, %v1827_v53  ;;  %v1651_v28 = vld [vmem:[%s2193_s25 + $0x198] sm:$0xf0]  ;;  %v2046_v29 = vld [vmem:[%s2193_s25 + $0x28c] sm:$0xf] }
  0x6b   : > { %1219 = vmatpush.bf16.msra.mxu3 %v1906_v1  ;;  %v1958_v1 = vor.u32 %v2090_v56, %v1955_v57  ;;  %v1779_v30 = vld [vmem:[%s2193_s25 + $0x298] sm:$0xf0]  ;;  %v2078_v33 = vld [vmem:[%s2193_s25 + $0x38c] sm:$0xf]  ;;  %v1654_v36 = vor.u32 %v2014_v26, %v1651_v28 }
  0x6c   : > { %1181 = vmatpush.bf16.msra.mxu0 %v1506_v7  ;;  %v1558_v7 = vor.u32 %v1990_v62, %v1555_v63  ;;  %v1907_v34 = vld [vmem:[%s2193_s25 + $0x398] sm:$0xf0]  ;;  %v1782_v37 = vor.u32 %v2046_v29, %v1779_v30  ;;  %v2010_v40 = vld [vmem:[%s2193_s25 + $0x16c] sm:$0xf] }
  0x6d   : > { %1194 = vmatpush.bf16.msra.mxu1 %v1634_v8  ;;  %v1686_v8 = vor.u32 %v2022_v0, %v1683_v2  ;;  %v1910_v41 = vor.u32 %v2078_v33, %v1907_v34  ;;  %v1635_v42 = vld [vmem:[%s2193_s25 + $0x178] sm:$0xf0]  ;;  %v2074_v45 = vld [vmem:[%s2193_s25 + $0x36c] sm:$0xf]  ;;  %v285_v33 = vld [vmem:[%s2554_s3] sm:$0xff] }
  0x6e   : > { %1207 = vmatpush.bf16.msra.mxu2 %v1762_v9  ;;  %v1814_v9 = vor.u32 %v2054_v3, %v1811_v4  ;;  %v1763_v44 = vld [vmem:[%s2193_s25 + $0x278] sm:$0xf0]  ;;  %v1638_v48 = vor.u32 %v2010_v40, %v1635_v42  ;;  %v2006_v52 = vld [vmem:[%s2193_s25 + $0x14c] sm:$0xf] }
  0x6f   : > { %1220 = vmatpush.bf16.msra.mxu3 %v1890_v13  ;;  %v1942_v13 = vor.u32 %v2086_v5, %v1939_v6  ;;  %v1891_v46 = vld [vmem:[%s2193_s25 + $0x378] sm:$0xf0]  ;;  %v2070_v57 = vld [vmem:[%s2193_s25 + $0x34c] sm:$0xf] }
  0x70   : > { %1182 = vmatpush.bf16.msra.mxu0 %v1490_v21  ;;  %v1542_v21 = vor.u32 %v1986_v10, %v1539_v11  ;;  %v1491_v51 = vld [vmem:[%s2193_s25 + $0x58] sm:$0xf0]  ;;  %v1894_v53 = vor.u32 %v2074_v45, %v1891_v46  ;;  %v1970_v62 = vld [vmem:[%s2193_s25 + $0x2c] sm:$0xf] }
  0x71   : > { %1195 = vmatpush.bf16.msra.mxu1 %v1618_v22  ;;  %v1670_v22 = vor.u32 %v2018_v12, %v1667_v14  ;;  %v1747_v56 = vld [vmem:[%s2193_s25 + $0x258] sm:$0xf0]  ;;  %v2002_v0 = vld [vmem:[%s2193_s25 + $0x12c] sm:$0xf] }
  0x72   : > { %1208 = vmatpush.bf16.msra.mxu2 %v1746_v23  ;;  %v1798_v23 = vor.u32 %v2050_v15, %v1795_v18  ;;  %v1475_v63 = vld [vmem:[%s2193_s25 + $0x38] sm:$0xf0]  ;;  %v2034_v3 = vld [vmem:[%s2193_s25 + $0x22c] sm:$0xf] }
  0x73   : > { %1221 = vmatpush.bf16.msra.mxu3 %v1874_v27  ;;  %v1926_v27 = vor.u32 %v2082_v19, %v1923_v20  ;;  %v1603_v2 = vld [vmem:[%s2193_s25 + $0x138] sm:$0xf0]  ;;  %v2066_v5 = vld [vmem:[%s2193_s25 + $0x32c] sm:$0xf] }
  0x74   : > { %1183 = vmatpush.bf16.msra.mxu0 %v1474_v35  ;;  %v1526_v35 = vor.u32 %v1982_v24, %v1523_v25  ;;  %v1731_v4 = vld [vmem:[%s2193_s25 + $0x238] sm:$0xf0]  ;;  %v1966_v10 = vld [vmem:[%s2193_s25 + $0xc] sm:$0xf] }
  0x75   : > { %1196 = vmatpush.bf16.msra.mxu1 %v1602_v38  ;;  %v1978_v38 = vld [vmem:[%s2193_s25 + $0x6c] sm:$0xf]  ;;  %v1859_v6 = vld [vmem:[%s2193_s25 + $0x338] sm:$0xf0] }
  0x76   : > { %1209 = vmatpush.bf16.msra.mxu2 %v1730_v39  ;;  %v1507_v39 = vld [vmem:[%s2193_s25 + $0x78] sm:$0xf0]  ;;  %v1998_v12 = vld [vmem:[%s2193_s25 + $0x10c] sm:$0xf] }
  0x77   : > { %1222 = vmatpush.bf16.msra.mxu3 %v1858_v43  ;;  %v2042_v43 = vld [vmem:[%s2193_s25 + $0x26c] sm:$0xf]  ;;  %v1510_v47 = vor.u32 %v1978_v38, %v1507_v39  ;;  %v1459_v11 = vld [vmem:[%s2193_s25 + $0x18] sm:$0xf0] }
  0x78   : > { %1184 = vmatpush.bf16.msra.mxu0 %v1458_v50  ;;  %v1766_v49 = vor.u32 %v2042_v43, %v1763_v44  ;;  %v1974_v50 = vld [vmem:[%s2193_s25 + $0x4c] sm:$0xf]  ;;  %v1587_v14 = vld [vmem:[%s2193_s25 + $0x118] sm:$0xf0] }
  0x79   : > { %1197 = vmatpush.bf16.msra.mxu1 %v1586_v54  ;;  %v1619_v54 = vld [vmem:[%s2193_s25 + $0x158] sm:$0xf0]  ;;  %v2030_v15 = vld [vmem:[%s2193_s25 + $0x20c] sm:$0xf] }
  0x7a   : > { %1210 = vmatpush.bf16.msra.mxu2 %v1714_v55  ;;  %v2038_v55 = vld [vmem:[%s2193_s25 + $0x24c] sm:$0xf]  ;;  %v1715_v18 = vld [vmem:[%s2193_s25 + $0x218] sm:$0xf0] }
  0x7b   : > { %1223 = vmatpush.bf16.msra.mxu3 %v1842_v58  ;;  %1185 = vmatmul.bf16.vlgmr.msra.gmra.mxu0 %v2317_v31  ;;  %v1875_v58 = vld [vmem:[%s2193_s25 + $0x358] sm:$0xf0]  ;;  %v2062_v19 = vld [vmem:[%s2193_s25 + $0x30c] sm:$0xf] }
  0x7c   : > { %1229 = vmatpush.bf16.msrb.mxu0 %v1574_v59  ;;  %1198 = vmatmul.bf16.vlgmr.msra.gmra.mxu1 %v2319_v32  ;;  %v1494_v59 = vor.u32 %v1974_v50, %v1491_v51  ;;  %v1843_v20 = vld [vmem:[%s2193_s25 + $0x318] sm:$0xf0]  ;;  %v286_v42 = vld [vmem:[%s2554_s3 + $0x8] sm:$0xff] }
  0x7d   : > { %1242 = vmatpush.bf16.msrb.mxu1 %v1702_v60  ;;  %1211 = vmatmul.bf16.vlgmr.msra.gmra.mxu2 %v2305_v16  ;;  %v1622_v60 = vor.u32 %v2006_v52, %v1619_v54  ;;  %v1846_v24 = vor.u32 %v2062_v19, %v1843_v20 }
  0x7e   : > { %1255 = vmatpush.bf16.msrb.mxu2 %v1830_v61  ;;  %1224 = vmatmul.bf16.vlgmr.msra.gmra.mxu3 %v2307_v17  ;;  %v1750_v61 = vor.u32 %v2038_v55, %v1747_v56  ;;  %v287_v55 = vld [vmem:[%s2554_s3 + $0x10] sm:$0xff] }
  0x7f   : > { %1268 = vmatpush.bf16.msrb.mxu3 %v1958_v1  ;;  %v1878_v1 = vor.u32 %v2070_v57, %v1875_v58 }
  0x80   : > { %1230 = vmatpush.bf16.msrb.mxu0 %v1558_v7  ;;  %v1478_v7 = vor.u32 %v1970_v62, %v1475_v63 }
  0x81   : > { %1243 = vmatpush.bf16.msrb.mxu1 %v1686_v8  ;;  %v1606_v8 = vor.u32 %v2002_v0, %v1603_v2 }
  0x82   : > { %1256 = vmatpush.bf16.msrb.mxu2 %v1814_v9  ;;  %v1734_v9 = vor.u32 %v2034_v3, %v1731_v4 }
  0x83   : > { %1269 = vmatpush.bf16.msrb.mxu3 %v1942_v13  ;;  %v1862_v13 = vor.u32 %v2066_v5, %v1859_v6  ;;  %v288_v5 = vld [vmem:[%s2554_s3 + $0x18] sm:$0xff] }
  0x84   : > { %1231 = vmatpush.bf16.msrb.mxu0 %v1542_v21  ;;  %v1462_v21 = vor.u32 %v1966_v10, %v1459_v11 }
  0x85   : > { %1244 = vmatpush.bf16.msrb.mxu1 %v1670_v22  ;;  %v1590_v22 = vor.u32 %v1998_v12, %v1587_v14 }
  0x86   : > { %1257 = vmatpush.bf16.msrb.mxu2 %v1798_v23  ;;  %v1718_v23 = vor.u32 %v2030_v15, %v1715_v18 }
  0x87   : > { %1270 = vmatpush.bf16.msrb.mxu3 %v1926_v27 }
  0x88   : > { %1232 = vmatpush.bf16.msrb.mxu0 %v1526_v35 }
  0x89   : > { %1245 = vmatpush.bf16.msrb.mxu1 %v1654_v36 }
  0x8a   : > { %1258 = vmatpush.bf16.msrb.mxu2 %v1782_v37 }
  0x8b   : > { %1271 = vmatpush.bf16.msrb.mxu3 %v1910_v41 }
  0x8c   : > { %1233 = vmatpush.bf16.msrb.mxu0 %v1510_v47 }
  0x8d   : > { %1246 = vmatpush.bf16.msrb.mxu1 %v1638_v48 }
  0x8e   : > { %1259 = vmatpush.bf16.msrb.mxu2 %v1766_v49 }
  0x8f   : > { %1272 = vmatpush.bf16.msrb.mxu3 %v1894_v53 }
  0x90   : > { %1234 = vmatpush.bf16.msrb.mxu0 %v1494_v59 }
  0x91   : > { %1247 = vmatpush.bf16.msrb.mxu1 %v1622_v60 }
  0x92   : > { %1260 = vmatpush.bf16.msrb.mxu2 %v1750_v61 }
  0x93   : > { %1273 = vmatpush.bf16.msrb.mxu3 %v1878_v1 }
  0x94   : > { %1235 = vmatpush.bf16.msrb.mxu0 %v1478_v7 }
  0x95   : > { %1248 = vmatpush.bf16.msrb.mxu1 %v1606_v8 }
  0x96   : > { %1261 = vmatpush.bf16.msrb.mxu2 %v1734_v9 }
  0x97   : > { %1274 = vmatpush.bf16.msrb.mxu3 %v1862_v13 }
  0x98   : > { %1236 = vmatpush.bf16.msrb.mxu0 %v1462_v21 }
  0x99   : > { %1249 = vmatpush.bf16.msrb.mxu1 %v1590_v22 }
  0x9a   : > { %1262 = vmatpush.bf16.msrb.mxu2 %v1718_v23 }
  0x9b   : > { %1275 = vmatpush.bf16.msrb.mxu3 %v1846_v24  ;;  %1237 = vmatmul.bf16.vlgmr.msrb.gmra.mxu0 %v2317_v31 }
  0x9c   : > { %1250 = vmatmul.bf16.vlgmr.msrb.gmra.mxu1 %v2319_v32 }
  0x9d   : > { %1263 = vmatmul.bf16.vlgmr.msrb.gmra.mxu2 %v2305_v16 }
  0x9e   : > { %1276 = vmatmul.bf16.vlgmr.msrb.gmra.mxu3 %v2307_v17 }
  0xc0   : > { %v1095_v25 = vpop.f32.mrf.mxu1 }
  0xc1   : > { %v1121_v30 = vpop.f32.mrf.mxu3 }
  0xc2   : > { %v1082_v26 = vpop.f32.mrf.mxu0  ;;  %v1108_v28 = vpop.f32.mrf.mxu2 }
  0xc3   : > { %v1096_v27 = vadd.f32 %v1095_v25, %v1082_v26 }
  0xc5   : > { %v1109_v29 = vadd.f32 %v1108_v28, %v1096_v27 }
  0xc7   : > { %v1122_v34 = vadd.f32 %v1121_v30, %v1109_v29 }
  0xc8   : > { %v1097_v35 = vpop.f32.mrf.mxu1 }
  0xc9   : > { %v1281_v36 = vadd.f32 %v1122_v34, %v285_v33  ;;  %v1123_v17 = vpop.f32.mrf.mxu3 }
  0xca   : > { %v1084_v31 = vpop.f32.mrf.mxu0  ;;  %v1110_v16 = vpop.f32.mrf.mxu2 }
  0xcb   : > { %1285 = vst [vmem:[%s2554_s3] sm:$0xff] %v1281_v36 }
  0xd8   : > { %v1134_v32 = vpop.f32.mrf.mxu0 }
  0xd9   : > { %v1147_v37 = vpop.f32.mrf.mxu1 }
  0xda   : > { %v1148_v38 = vadd.f32 %v1147_v37, %v1134_v32 }
  0xe0   : > { %v1160_v39 = vpop.f32.mrf.mxu2  ;;  %v1136_v44 = vpop.f32.mrf.mxu0 }
  0xe1   : > { %v1161_v40 = vadd.f32 %v1160_v39, %v1148_v38  ;;  %v1173_v41 = vpop.f32.mrf.mxu3  ;;  %v1149_v45 = vpop.f32.mrf.mxu1 }
  0xe3   : > { %v1174_v43 = vadd.f32 %v1173_v41, %v1161_v40 }
  0xe5   : > { %v1282_v46 = vadd.f32 %v1174_v43, %v286_v42 }
  0xe7   : > { %1286 = vst [vmem:[%s2554_s3 + $0x8] sm:$0xff] %v1282_v46 }
  0xe8   : > { %v1162_v47 = vpop.f32.mrf.mxu2 }
  0xe9   : > { %v1175_v48 = vpop.f32.mrf.mxu3 }
  0xf8   : > { %v1186_v49 = vpop.f32.mrf.mxu0 }
  0xf9   : > { %v1199_v50 = vpop.f32.mrf.mxu1 }
  0xfa   : > { %v1200_v51 = vadd.f32 %v1199_v50, %v1186_v49 }
 0x100   : > { %v1212_v52 = vpop.f32.mrf.mxu2  ;;  %v1188_v57 = vpop.f32.mrf.mxu0 }
 0x101   : > { %v1213_v53 = vadd.f32 %v1212_v52, %v1200_v51  ;;  %v1225_v54 = vpop.f32.mrf.mxu3  ;;  %v1201_v58 = vpop.f32.mrf.mxu1 }
 0x103   : > { %v1226_v56 = vadd.f32 %v1225_v54, %v1213_v53 }
 0x105   : > { %v1283_v59 = vadd.f32 %v1226_v56, %v287_v55 }
 0x107   : > { %1287 = vst [vmem:[%s2554_s3 + $0x10] sm:$0xff] %v1283_v59 }
 0x108   : > { %v1214_v60 = vpop.f32.mrf.mxu2 }
 0x109   : > { %v1227_v61 = vpop.f32.mrf.mxu3 }
 0x118   : > { %v1238_v62 = vpop.f32.mrf.mxu0 }
 0x119   : > { %v1251_v63 = vpop.f32.mrf.mxu1 }
 0x11a   : > { %v1252_v0 = vadd.f32 %v1251_v63, %v1238_v62 }
 0x120   : > { %v1264_v1 = vpop.f32.mrf.mxu2  ;;  %v1240_v4 = vpop.f32.mrf.mxu0 }
 0x121   : > { %v1265_v2 = vadd.f32 %v1264_v1, %v1252_v0  ;;  %v1277_v3 = vpop.f32.mrf.mxu3  ;;  %v1253_v6 = vpop.f32.mrf.mxu1 }
 0x123   : > { %v1278_v7 = vadd.f32 %v1277_v3, %v1265_v2 }
 0x125   : > { %v1284_v8 = vadd.f32 %v1278_v7, %v288_v5  ;;  %1292 = sbr.rel (%p1959_p7) target bundleno = 310 (0x136), region = 40 }
 0x127   : > { %1288 = vst [vmem:[%s2554_s3 + $0x18] sm:$0xff] %v1284_v8 }
 0x128   : > { %v1266_v9 = vpop.f32.mrf.mxu2 }
 0x129   : > { %v1279_v10 = vpop.f32.mrf.mxu3 }
 0x12a   : > { %v1293_v11 = vld [vmem:[%s2554_s3] sm:$0xff]  ;;  %v1294_v13 = vld [vmem:[%s2554_s3 + $0x8] sm:$0xff]  ;;  %v1295_v18 = vld [vmem:[%s2554_s3 + $0x10] sm:$0xff] }
 0x12b   : > { %v1297_v12 = vld [vmem:[%s2553_s2] sm:$0xf] }
 0x12c   : > { %v1299_v14 = vperm.slane %v1297_v12, 0  ;;  %v1300_v15 = vperm.slane %v1297_v12, 1  ;;  %v1301_v19 = vperm.slane %v1297_v12, 2  ;;  %v1302_v21 = vperm.slane %v1297_v12, 3 }
 0x12e   : > { %v1296_v20 = vld [vmem:[%s2554_s3 + $0x18] sm:$0xff]  ;;  %v1307_v22 = vadd.f32 %v1299_v14, %v1293_v11  ;;  %v1308_v23 = vadd.f32 %v1300_v15, %v1294_v13  ;;  %v1309_v24 = vadd.f32 %v1301_v19, %v1295_v18 }
 0x12f   : > { %v1310_v25 = vadd.f32 %v1302_v21, %v1296_v20 }
 0x130   : > { %v1311_v26 = vmax.f32 %v1307_v22, 0.0  ;;  %v1312_v27 = vmax.f32 %v1308_v23, 0.0  ;;  %v1313_v28 = vmax.f32 %v1309_v24, 0.0 }
 0x131   : > { %v1314_v29 = vmax.f32 %v1310_v25, 0.0 }
 0x132   : > { %1315 = vst [vmem:[%s2554_s3] sm:$0xff] %v1311_v26 }
 0x133   : > { %1316 = vst [vmem:[%s2554_s3 + $0x8] sm:$0xff] %v1312_v27 }
 0x134   : > { %1317 = vst [vmem:[%s2554_s3 + $0x10] sm:$0xff] %v1313_v28 }
 0x135   : > { %1318 = vst [vmem:[%s2554_s3 + $0x18] sm:$0xff] %v1314_v29 }
 0x136 PF: > { %s13_s14 = sadd.s32 1, %s2140_s14   ;;  %s2555_s12 = smov %s2136_s13 }
 0x137   : > { %p10_p8 = scmp.ge.s32.totalorder %s13_s14, 11   ;;  %s2556_s13 = smov %s2558_s15 }
 0x139   :  { %12 = sbr.rel (!%p10_p8) target bundleno = 2 (0x2), region = 76 }

// kernel: res18feature_forward.41
= control target key start
LH: loop header
LB: loop body
LE: loop exit
PB: predicated region body
PF: predicated region fallthrough
CT: control target
= control target key end

     0   :  { %s650_s1 = inlined_call_operand.vmem [shape: bf16[512,128], index: 1, kind: input, shape index: {}]   ;;  %s651_s0 = inlined_call_operand.vmem [shape: bf16[8,512], index: 0, kind: input, shape index: {}]   ;;  %s652_s2 = inlined_call_operand.vmem [shape: f32[1,128], index: 2, kind: input, shape index: {}]   ;;  %s653_s3 = inlined_call_operand.vmem [shape: f32[8,128], index: 3, kind: output, shape index: {}]  }
   0x1   :  { %v495_v0 = vld [vmem:[%s650_s1 + $0x38] sm:$0xff]  ;;  %v494_v4 = vld [vmem:[%s650_s1 + $0x30] sm:$0xff]  ;;  %v493_v8 = vld [vmem:[%s650_s1 + $0x28] sm:$0xff] }
   0x2   :  { %v503_v1 = vld [vmem:[%s650_s1 + $0x78] sm:$0xff]  ;;  %292 = vmatpush.bf16.msra.mxu0 %v495_v0  ;;  %v502_v5 = vld [vmem:[%s650_s1 + $0x70] sm:$0xff]  ;;  %v501_v9 = vld [vmem:[%s650_s1 + $0x68] sm:$0xff] }
   0x3   :  { %v511_v2 = vld [vmem:[%s650_s1 + $0xb8] sm:$0xff]  ;;  %305 = vmatpush.bf16.msra.mxu1 %v503_v1  ;;  %v510_v6 = vld [vmem:[%s650_s1 + $0xb0] sm:$0xff]  ;;  %v509_v10 = vld [vmem:[%s650_s1 + $0xa8] sm:$0xff] }
   0x4   :  { %v519_v3 = vld [vmem:[%s650_s1 + $0xf8] sm:$0xff]  ;;  %318 = vmatpush.bf16.msra.mxu2 %v511_v2  ;;  %v518_v7 = vld [vmem:[%s650_s1 + $0xf0] sm:$0xff]  ;;  %v517_v11 = vld [vmem:[%s650_s1 + $0xe8] sm:$0xff] }
   0x5   :  { %331 = vmatpush.bf16.msra.mxu3 %v519_v3  ;;  %v492_v12 = vld [vmem:[%s650_s1 + $0x20] sm:$0xff]  ;;  %v491_v16 = vld [vmem:[%s650_s1 + $0x18] sm:$0xff]  ;;  %v490_v20 = vld [vmem:[%s650_s1 + $0x10] sm:$0xff] }
   0x6   :  { %293 = vmatpush.bf16.msra.mxu0 %v494_v4  ;;  %v500_v13 = vld [vmem:[%s650_s1 + $0x60] sm:$0xff]  ;;  %v499_v17 = vld [vmem:[%s650_s1 + $0x58] sm:$0xff]  ;;  %v498_v21 = vld [vmem:[%s650_s1 + $0x50] sm:$0xff] }
   0x7   :  { %306 = vmatpush.bf16.msra.mxu1 %v502_v5  ;;  %v508_v14 = vld [vmem:[%s650_s1 + $0xa0] sm:$0xff]  ;;  %v507_v18 = vld [vmem:[%s650_s1 + $0x98] sm:$0xff]  ;;  %v506_v22 = vld [vmem:[%s650_s1 + $0x90] sm:$0xff] }
   0x8   :  { %319 = vmatpush.bf16.msra.mxu2 %v510_v6  ;;  %v516_v15 = vld [vmem:[%s650_s1 + $0xe0] sm:$0xff]  ;;  %v515_v19 = vld [vmem:[%s650_s1 + $0xd8] sm:$0xff]  ;;  %v514_v23 = vld [vmem:[%s650_s1 + $0xd0] sm:$0xff] }
   0x9   :  { %332 = vmatpush.bf16.msra.mxu3 %v518_v7  ;;  %v489_v24 = vld [vmem:[%s650_s1 + $0x8] sm:$0xff]  ;;  %v20_v26 = vld [vmem:[%s651_s0] sm:$0xff] }
   0xa   :  { %294 = vmatpush.bf16.msra.mxu0 %v493_v8  ;;  %v497_v25 = vld [vmem:[%s650_s1 + $0x48] sm:$0xff]  ;;  %v88_v30 = vunpack.c.l.b16 %v20_v26  ;;  %v89_v31 = vunpack.c.h.b16 %v20_v26  ;;  %v488_v32 = vld [vmem:[%s650_s1] sm:$0xff] }
   0xb   :  { %307 = vmatpush.bf16.msra.mxu1 %v501_v9  ;;  %v505_v27 = vld [vmem:[%s650_s1 + $0x88] sm:$0xff]  ;;  %v496_v33 = vld [vmem:[%s650_s1 + $0x40] sm:$0xff] }
   0xc   :  { %320 = vmatpush.bf16.msra.mxu2 %v509_v10  ;;  %v513_v28 = vld [vmem:[%s650_s1 + $0xc8] sm:$0xff]  ;;  %v504_v36 = vld [vmem:[%s650_s1 + $0x80] sm:$0xff]  ;;  %v92_v38 = vpack.c.b16 %v88_v30, %v88_v30  ;;  %v93_v39 = vpack.c.b16 %v89_v31, %v89_v31 }
   0xd   :  { %333 = vmatpush.bf16.msra.mxu3 %v517_v11  ;;  %v21_v29 = vld [vmem:[%s651_s0 + $0x8] sm:$0xff]  ;;  %v512_v37 = vld [vmem:[%s650_s1 + $0xc0] sm:$0xff] }
   0xe   :  { %295 = vmatpush.bf16.msra.mxu0 %v492_v12  ;;  %v90_v34 = vunpack.c.l.b16 %v21_v29  ;;  %v91_v35 = vunpack.c.h.b16 %v21_v29  ;;  %v521_v51 = vld [vmem:[%s652_s2] ss:$0 sm:$0xff] }
   0xf   :  { %308 = vmatpush.bf16.msra.mxu1 %v500_v13 }
  0x10   :  { %321 = vmatpush.bf16.msra.mxu2 %v508_v14  ;;  %v94_v40 = vpack.c.b16 %v90_v34, %v90_v34  ;;  %v95_v41 = vpack.c.b16 %v91_v35, %v91_v35 }
  0x11   :  { %334 = vmatpush.bf16.msra.mxu3 %v516_v15 }
  0x12   :  { %296 = vmatpush.bf16.msra.mxu0 %v491_v16 }
  0x13   :  { %309 = vmatpush.bf16.msra.mxu1 %v499_v17 }
  0x14   :  { %322 = vmatpush.bf16.msra.mxu2 %v507_v18 }
  0x15   :  { %335 = vmatpush.bf16.msra.mxu3 %v515_v19 }
  0x16   :  { %297 = vmatpush.bf16.msra.mxu0 %v490_v20 }
  0x17   :  { %310 = vmatpush.bf16.msra.mxu1 %v498_v21 }
  0x18   :  { %323 = vmatpush.bf16.msra.mxu2 %v506_v22 }
  0x19   :  { %336 = vmatpush.bf16.msra.mxu3 %v514_v23 }
  0x1a   :  { %298 = vmatpush.bf16.msra.mxu0 %v489_v24 }
  0x1b   :  { %311 = vmatpush.bf16.msra.mxu1 %v497_v25 }
  0x1c   :  { %324 = vmatpush.bf16.msra.mxu2 %v505_v27 }
  0x1d   :  { %337 = vmatpush.bf16.msra.mxu3 %v513_v28 }
  0x1e   :  { %299 = vmatpush.bf16.msra.mxu0 %v488_v32 }
  0x1f   :  { %312 = vmatpush.bf16.msra.mxu1 %v496_v33 }
  0x20   :  { %325 = vmatpush.bf16.msra.mxu2 %v504_v36 }
  0x21   :  { %338 = vmatpush.bf16.msra.mxu3 %v512_v37  ;;  %300 = vmatmul.bf16.vlgmr.msra.gmra.mxu0 %v92_v38 }
  0x22   :  { %313 = vmatmul.bf16.vlgmr.msra.gmra.mxu1 %v93_v39 }
  0x23   :  { %326 = vmatmul.bf16.vlgmr.msra.gmra.mxu2 %v94_v40 }
  0x24   :  { %339 = vmatmul.bf16.vlgmr.msra.gmra.mxu3 %v95_v41 }
  0x9e   :  { %v301_v42 = vpop.f32.mrf.mxu0 }
  0x9f   :  { %v314_v43 = vpop.f32.mrf.mxu1 }
  0xa0   :  { %v315_v44 = vadd.f32 %v314_v43, %v301_v42 }
  0xa6   :  { %v327_v45 = vpop.f32.mrf.mxu2  ;;  %v303_v48 = vpop.f32.mrf.mxu0 }
  0xa7   :  { %v340_v46 = vpop.f32.mrf.mxu3  ;;  %v328_v47 = vadd.f32 %v327_v45, %v315_v44  ;;  %v316_v49 = vpop.f32.mrf.mxu1 }
  0xa9   :  { %v341_v50 = vadd.f32 %v340_v46, %v328_v47 }
  0xab   :  { %v354_v52 = vadd.f32 %v521_v51, %v341_v50 }
  0xad   :  { %355 = vst [vmem:[%s653_s3] sm:$0xff] %v354_v52 }
  0xae   :  { %v329_v53 = vpop.f32.mrf.mxu2 }
  0xaf   :  { %v342_v54 = vpop.f32.mrf.mxu3 }

</bundles_post_ra>
